<compile_context>
chip_gen: v6e
topology: v6e:2x2x1
jax: 0.10.0
libtpu: 0.0.40
codegen_flags: <defaults>
</compile_context>

<pallas_src>
import functools
import math

import jax
import jax.numpy as jnp
import numpy as np
from jax.experimental import pallas as pl
from jax.experimental.pallas import tpu as pltpu


# --------------------------------------------------------------------------
# in-kernel helpers (plain jnp, traced inside the Pallas kernel)
# --------------------------------------------------------------------------
def _layer_norm(v, gamma, beta, eps=1e-6):
    mu = jnp.mean(v, axis=-1, keepdims=True)
    var = jnp.mean((v - mu) ** 2, axis=-1, keepdims=True)
    return (v - mu) * jax.lax.rsqrt(var + eps) * gamma + beta


def _mha_core(q, k, v, mask, wo, bo, *, num_heads):
    """q: (Lq, D) projected queries, k/v: (Lk, D) projected keys/values,
    mask: (Lq, Lk) float {0,1} (1 = masked). Returns (Lq, D)."""
    _, D = q.shape
    dk = D // num_heads
    scale = 1.0 / math.sqrt(dk)
    heads = []
    for h in range(num_heads):          # small static head loop, static slices
        lo, hi = h * dk, (h + 1) * dk
        qh, kh, vh = q[:, lo:hi], k[:, lo:hi], v[:, lo:hi]
        # scores = qh @ kh^T (contract last dims of both) / sqrt(dk)
        s = jax.lax.dot_general(qh, kh, (((1,), (1,)), ((), ())),
                                preferred_element_type=jnp.float32) * scale
        s = s + mask * (-1e9)
        s = s - jnp.max(s, axis=-1, keepdims=True)
        e = jnp.exp(s)
        p = e / jnp.sum(e, axis=-1, keepdims=True)
        heads.append(jnp.dot(p, vh, preferred_element_type=jnp.float32))
    merged = jnp.concatenate(heads, axis=-1)                   # (Lq, D)
    return jnp.dot(merged, wo, preferred_element_type=jnp.float32) + bo


# --------------------------------------------------------------------------
# fused decoder-layer kernel: one batch element per grid step
# --------------------------------------------------------------------------
def _decoder_layer_kernel(
        x_ref, mem_ref, lam_ref, pad_ref,
        wqkv1_ref, bqkv1_ref, wo1_ref, bo1_ref,
        wq2_ref, bq2_ref, wkv2_ref, bkv2_ref, wo2_ref, bo2_ref,
        wf1_ref, bf1_ref, wf2_ref, bf2_ref,
        g1_ref, be1_ref, g2_ref, be2_ref, g3_ref, be3_ref,
        out_ref, *, num_heads):
    D = x_ref.shape[-1]

    x = x_ref[0].astype(jnp.float32)            # (Lq, D)
    mem = mem_ref[0].astype(jnp.float32)        # (Lm, D)
    la_mask = lam_ref[0].astype(jnp.float32)    # (Lq, Lq)
    pad_mask = pad_ref[0].astype(jnp.float32)   # (Lq, Lm)

    # ---- self attention (packed QKV projection, one big matmul) ----------
    qkv = jnp.dot(x, wqkv1_ref[...],
                  preferred_element_type=jnp.float32) + bqkv1_ref[...]
    att1 = _mha_core(qkv[:, :D], qkv[:, D:2 * D], qkv[:, 2 * D:],
                     la_mask, wo1_ref[...], bo1_ref[...], num_heads=num_heads)
    # TODO(synk): nn.Dropout(p=0.1) after each sub-block is identity in
    # eval/inference mode; training-mode dropout is not implemented here.
    h1 = _layer_norm(x + att1, g1_ref[...], be1_ref[...])

    # ---- cross (source) attention (packed KV projection) -----------------
    q2 = jnp.dot(h1, wq2_ref[...],
                 preferred_element_type=jnp.float32) + bq2_ref[...]
    kv2 = jnp.dot(mem, wkv2_ref[...],
                  preferred_element_type=jnp.float32) + bkv2_ref[...]
    att2 = _mha_core(q2, kv2[:, :D], kv2[:, D:],
                     pad_mask, wo2_ref[...], bo2_ref[...], num_heads=num_heads)
    h2 = _layer_norm(h1 + att2, g2_ref[...], be2_ref[...])

    # ---- positionwise feed-forward ----------------------------------------
    f = jnp.dot(h2, wf1_ref[...],
                preferred_element_type=jnp.float32) + bf1_ref[...]
    f = jnp.maximum(f, 0.0)
    f = jnp.dot(f, wf2_ref[...],
                preferred_element_type=jnp.float32) + bf2_ref[...]
    h3 = _layer_norm(h2 + f, g3_ref[...], be3_ref[...])

    out_ref[0] = h3.astype(out_ref.dtype)


# --------------------------------------------------------------------------
# wrapper
# --------------------------------------------------------------------------
def text_decoder_layer(x, memory, look_ahead_mask, trg_padding_mask, params,
                       *, num_heads):
    """x: (N, Lq, D), memory: (N, Lm, D); masks: (N, Lq, Lq)/(N, Lq, Lm)
    with 1 = masked. Returns (N, Lq, D)."""
    N, Lq, D = x.shape
    Lm = memory.shape[1]

    def batch_spec(l, c):
        return pl.BlockSpec((1, l, c), lambda n: (n, 0, 0))

    def full_spec(arr):
        nd = arr.ndim
        return pl.BlockSpec(arr.shape, lambda n, _nd=nd: (0,) * _nd)

    weight_order = [
        "wqkv1", "bqkv1", "wo1", "bo1",
        "wq2", "bq2", "wkv2", "bkv2", "wo2", "bo2",
        "wf1", "bf1", "wf2", "bf2",
        "g1", "be1", "g2", "be2", "g3", "be3",
    ]
    weights = [params[k] for k in weight_order]

    kernel = functools.partial(_decoder_layer_kernel, num_heads=num_heads)

    return pl.pallas_call(
        kernel,
        out_shape=jax.ShapeDtypeStruct((N, Lq, D), jnp.float32),
        grid_spec=pltpu.PrefetchScalarGridSpec(
            num_scalar_prefetch=0,
            grid=(N,),
            in_specs=[
                batch_spec(Lq, D),     # x
                batch_spec(Lm, D),     # memory
                batch_spec(Lq, Lq),    # look-ahead mask
                batch_spec(Lq, Lm),    # target padding mask
            ] + [full_spec(w) for w in weights],
            out_specs=pl.BlockSpec((1, Lq, D), lambda n: (n, 0, 0)),
        ),
        compiler_params=pltpu.CompilerParams(
            dimension_semantics=("parallel",)),
    )(x, memory, look_ahead_mask, trg_padding_mask, *weights)


# --------------------------------------------------------------------------
# synthetic parameters (weights stored as (in, out); packed QKV / KV)
# --------------------------------------------------------------------------
def make_params(key, d_model, dff):
    D, F = d_model, dff
    ks = jax.random.split(key, 32)
    it = iter(range(32))

    def lin(k, fan_in, fan_out, scale=0.05):
        return scale * jax.random.normal(k, (fan_in, fan_out), jnp.float32)

    def vec(k, n, scale=0.05):
        return scale * jax.random.normal(k, (1, n), jnp.float32)

    p = {}
    p["wqkv1"] = lin(ks[next(it)], D, 3 * D)
    p["bqkv1"] = vec(ks[next(it)], 3 * D)
    p["wo1"] = lin(ks[next(it)], D, D)
    p["bo1"] = vec(ks[next(it)], D)
    p["wq2"] = lin(ks[next(it)], D, D)
    p["bq2"] = vec(ks[next(it)], D)
    p["wkv2"] = lin(ks[next(it)], D, 2 * D)
    p["bkv2"] = vec(ks[next(it)], 2 * D)
    p["wo2"] = lin(ks[next(it)], D, D)
    p["bo2"] = vec(ks[next(it)], D)
    p["wf1"] = lin(ks[next(it)], D, F)
    p["bf1"] = vec(ks[next(it)], F)
    p["wf2"] = lin(ks[next(it)], F, D)
    p["bf2"] = vec(ks[next(it)], D)
    for j in (1, 2, 3):
        p[f"g{j}"] = 1.0 + 0.1 * jax.random.normal(ks[next(it)], (1, D),
                                                   jnp.float32)
        p[f"be{j}"] = 0.1 * jax.random.normal(ks[next(it)], (1, D),
                                              jnp.float32)
    return p


# --------------------------------------------------------------------------
# plain-JAX reference (same math, no Pallas)
# --------------------------------------------------------------------------
def _reference(x, memory, la_mask, pad_mask, params, *, num_heads):
    N, Lq, D = x.shape
    H = num_heads
    dk = D // H

    def split(t):
        n, l, _ = t.shape
        return t.reshape(n, l, H, dk).transpose(0, 2, 1, 3)  # (N,H,L,dk)

    def mha(q_in, kv_in, wq, bq, wk, bk, wv, bv, wo, bo, mask):
        q = split(q_in @ wq + bq)
        k = split(kv_in @ wk + bk)
        v = split(kv_in @ wv + bv)
        scores = jnp.einsum("nhqd,nhkd->nhqk", q, k) / math.sqrt(dk)
        scores = scores + mask[:, None, :, :] * (-1e9)
        p_attn = jax.nn.softmax(scores, axis=-1)
        o = jnp.einsum("nhqk,nhkd->nhqd", p_attn, v)
        o = o.transpose(0, 2, 1, 3).reshape(N, -1, D)
        return o @ wo + bo

    def ln(v, g, b):
        mu = v.mean(-1, keepdims=True)
        var = ((v - mu) ** 2).mean(-1, keepdims=True)
        return (v - mu) * jax.lax.rsqrt(var + 1e-6) * g + b

    wq1 = params["wqkv1"][:, :D]
    wk1 = params["wqkv1"][:, D:2 * D]
    wv1 = params["wqkv1"][:, 2 * D:]
    bq1 = params["bqkv1"][:, :D]
    bk1 = params["bqkv1"][:, D:2 * D]
    bv1 = params["bqkv1"][:, 2 * D:]
    att1 = mha(x, x, wq1, bq1, wk1, bk1, wv1, bv1,
               params["wo1"], params["bo1"], la_mask)
    h1 = ln(x + att1, params["g1"], params["be1"])

    wk2 = params["wkv2"][:, :D]
    wv2 = params["wkv2"][:, D:]
    bk2 = params["bkv2"][:, :D]
    bv2 = params["bkv2"][:, D:]
    att2 = mha(h1, memory, params["wq2"], params["bq2"], wk2, bk2, wv2, bv2,
               params["wo2"], params["bo2"], pad_mask)
    h2 = ln(h1 + att2, params["g2"], params["be2"])

    f = jnp.maximum(h2 @ params["wf1"] + params["bf1"], 0.0)
    f = f @ params["wf2"] + params["bf2"]
    return ln(h2 + f, params["g3"], params["be3"])


if __name__ == "__main__":
    # keep reference matmuls at full f32 accuracy so it matches the kernel
    jax.config.update("jax_default_matmul_precision", "highest")

    N, LQ, LM = 2, 16, 16
    D_MODEL, NUM_HEADS, DFF = 128, 4, 256

    key = jax.random.PRNGKey(0)
    kx, km, kp = jax.random.split(key, 3)

    x = jax.random.normal(kx, (N, LQ, D_MODEL), jnp.float32)
    memory = jax.random.normal(km, (N, LM, D_MODEL), jnp.float32)
    params = make_params(kp, D_MODEL, DFF)

    # causal look-ahead mask (1 = masked future position), same for all batch
    la = (jnp.arange(LQ)[None, :] > jnp.arange(LQ)[:, None]).astype(jnp.float32)
    look_ahead_mask = jnp.broadcast_to(la[None], (N, LQ, LQ))

    # source padding mask over memory positions (1 = masked / padded)
    valid_len = jnp.array([LM - 4, LM], jnp.int32)
    pad = (jnp.arange(LM)[None, :] >= valid_len[:, None]).astype(jnp.float32)
    trg_padding_mask = jnp.broadcast_to(pad[:, None, :], (N, LQ, LM))

    out = text_decoder_layer(x, memory, look_ahead_mask, trg_padding_mask,
                             params, num_heads=NUM_HEADS)
    out = jax.block_until_ready(out)

    ref = jax.block_until_ready(
        _reference(x, memory, look_ahead_mask, trg_padding_mask, params,
                   num_heads=NUM_HEADS))
    np.testing.assert_allclose(np.asarray(out), np.asarray(ref),
                               rtol=2e-3, atol=2e-3)
    assert out.shape == (N, LQ, D_MODEL)
    print("KERNEL_OK")
</pallas_src>

<mosaic_0001>
module attributes {stable_mosaic.version = 11 : i64} {
  func.func @_decoder_layer_kernel(%arg0: i32, %arg1: memref<1x16x128xf32, #tpu.memory_space<vmem>>, %arg2: memref<1x16x128xf32, #tpu.memory_space<vmem>>, %arg3: memref<1x16x16xf32, #tpu.memory_space<vmem>>, %arg4: memref<1x16x16xf32, #tpu.memory_space<vmem>>, %arg5: memref<128x384xf32, #tpu.memory_space<vmem>>, %arg6: memref<1x384xf32, #tpu.memory_space<vmem>>, %arg7: memref<128x128xf32, #tpu.memory_space<vmem>>, %arg8: memref<1x128xf32, #tpu.memory_space<vmem>>, %arg9: memref<128x128xf32, #tpu.memory_space<vmem>>, %arg10: memref<1x128xf32, #tpu.memory_space<vmem>>, %arg11: memref<128x256xf32, #tpu.memory_space<vmem>>, %arg12: memref<1x256xf32, #tpu.memory_space<vmem>>, %arg13: memref<128x128xf32, #tpu.memory_space<vmem>>, %arg14: memref<1x128xf32, #tpu.memory_space<vmem>>, %arg15: memref<128x256xf32, #tpu.memory_space<vmem>>, %arg16: memref<1x256xf32, #tpu.memory_space<vmem>>, %arg17: memref<256x128xf32, #tpu.memory_space<vmem>>, %arg18: memref<1x128xf32, #tpu.memory_space<vmem>>, %arg19: memref<1x128xf32, #tpu.memory_space<vmem>>, %arg20: memref<1x128xf32, #tpu.memory_space<vmem>>, %arg21: memref<1x128xf32, #tpu.memory_space<vmem>>, %arg22: memref<1x128xf32, #tpu.memory_space<vmem>>, %arg23: memref<1x128xf32, #tpu.memory_space<vmem>>, %arg24: memref<1x128xf32, #tpu.memory_space<vmem>>, %arg25: memref<1x16x128xf32, #tpu.memory_space<vmem>>) attributes {dimension_semantics = [#tpu.dimension_semantics<parallel>], iteration_bounds = array<i64: 2>, scalar_prefetch = 0 : i64, scratch_operands = 0 : i64, tpu.core_type = #tpu.core_type<tc>, window_params = [{transform_indices = @transform_0, window_bounds = array<i64: 1, 16, 128>}, {transform_indices = @transform_1, window_bounds = array<i64: 1, 16, 128>}, {transform_indices = @transform_2, window_bounds = array<i64: 1, 16, 16>}, {transform_indices = @transform_3, window_bounds = array<i64: 1, 16, 16>}, {pipeline_mode = #tpu.pipeline_mode<synchronous>, transform_indices = @transform_4, window_bounds = array<i64: 128, 384>}, {pipeline_mode = #tpu.pipeline_mode<synchronous>, transform_indices = @transform_5, window_bounds = array<i64: 1, 384>}, {pipeline_mode = #tpu.pipeline_mode<synchronous>, transform_indices = @transform_6, window_bounds = array<i64: 128, 128>}, {pipeline_mode = #tpu.pipeline_mode<synchronous>, transform_indices = @transform_7, window_bounds = array<i64: 1, 128>}, {pipeline_mode = #tpu.pipeline_mode<synchronous>, transform_indices = @transform_8, window_bounds = array<i64: 128, 128>}, {pipeline_mode = #tpu.pipeline_mode<synchronous>, transform_indices = @transform_9, window_bounds = array<i64: 1, 128>}, {pipeline_mode = #tpu.pipeline_mode<synchronous>, transform_indices = @transform_10, window_bounds = array<i64: 128, 256>}, {pipeline_mode = #tpu.pipeline_mode<synchronous>, transform_indices = @transform_11, window_bounds = array<i64: 1, 256>}, {pipeline_mode = #tpu.pipeline_mode<synchronous>, transform_indices = @transform_12, window_bounds = array<i64: 128, 128>}, {pipeline_mode = #tpu.pipeline_mode<synchronous>, transform_indices = @transform_13, window_bounds = array<i64: 1, 128>}, {pipeline_mode = #tpu.pipeline_mode<synchronous>, transform_indices = @transform_14, window_bounds = array<i64: 128, 256>}, {pipeline_mode = #tpu.pipeline_mode<synchronous>, transform_indices = @transform_15, window_bounds = array<i64: 1, 256>}, {pipeline_mode = #tpu.pipeline_mode<synchronous>, transform_indices = @transform_16, window_bounds = array<i64: 256, 128>}, {pipeline_mode = #tpu.pipeline_mode<synchronous>, transform_indices = @transform_17, window_bounds = array<i64: 1, 128>}, {pipeline_mode = #tpu.pipeline_mode<synchronous>, transform_indices = @transform_18, window_bounds = array<i64: 1, 128>}, {pipeline_mode = #tpu.pipeline_mode<synchronous>, transform_indices = @transform_19, window_bounds = array<i64: 1, 128>}, {pipeline_mode = #tpu.pipeline_mode<synchronous>, transform_indices = @transform_20, window_bounds = array<i64: 1, 128>}, {pipeline_mode = #tpu.pipeline_mode<synchronous>, transform_indices = @transform_21, window_bounds = array<i64: 1, 128>}, {pipeline_mode = #tpu.pipeline_mode<synchronous>, transform_indices = @transform_22, window_bounds = array<i64: 1, 128>}, {pipeline_mode = #tpu.pipeline_mode<synchronous>, transform_indices = @transform_23, window_bounds = array<i64: 1, 128>}, {transform_indices = @transform_24, window_bounds = array<i64: 1, 16, 128>}]} {
    %c0 = arith.constant 0 : index
    %c0_0 = arith.constant 0 : index
    %c0_1 = arith.constant 0 : index
    %0 = vector.load %arg1[%c0, %c0_0, %c0_1] : memref<1x16x128xf32, #tpu.memory_space<vmem>>, vector<1x16x128xf32>
    %1 = vector.shape_cast %0 : vector<1x16x128xf32> to vector<16x128xf32>
    %c0_2 = arith.constant 0 : index
    %c0_3 = arith.constant 0 : index
    %c0_4 = arith.constant 0 : index
    %2 = vector.load %arg2[%c0_2, %c0_3, %c0_4] : memref<1x16x128xf32, #tpu.memory_space<vmem>>, vector<1x16x128xf32>
    %3 = vector.shape_cast %2 : vector<1x16x128xf32> to vector<16x128xf32>
    %c0_5 = arith.constant 0 : index
    %c0_6 = arith.constant 0 : index
    %c0_7 = arith.constant 0 : index
    %4 = vector.load %arg3[%c0_5, %c0_6, %c0_7] : memref<1x16x16xf32, #tpu.memory_space<vmem>>, vector<1x16x16xf32>
    %5 = vector.shape_cast %4 : vector<1x16x16xf32> to vector<16x16xf32>
    %c0_8 = arith.constant 0 : index
    %c0_9 = arith.constant 0 : index
    %c0_10 = arith.constant 0 : index
    %6 = vector.load %arg4[%c0_8, %c0_9, %c0_10] : memref<1x16x16xf32, #tpu.memory_space<vmem>>, vector<1x16x16xf32>
    %7 = vector.shape_cast %6 : vector<1x16x16xf32> to vector<16x16xf32>
    %c0_11 = arith.constant 0 : index
    %c0_12 = arith.constant 0 : index
    %8 = vector.load %arg5[%c0_11, %c0_12] : memref<128x384xf32, #tpu.memory_space<vmem>>, vector<128x384xf32>
    %cst = arith.constant dense<0.000000e+00> : vector<16x384xf32>
    %9 = tpu.matmul %1, %8, %cst {dimension_numbers = #tpu.dot_dimension_numbers<[1], [0], [0], [1], [0, 0, 1, 1], [], []>, precision = #tpu.contract_precision<fp32>} : vector<16x128xf32>, vector<128x384xf32>, vector<16x384xf32> -> vector<16x384xf32>
    %c0_13 = arith.constant 0 : index
    %c0_14 = arith.constant 0 : index
    %10 = vector.load %arg6[%c0_13, %c0_14] : memref<1x384xf32, #tpu.memory_space<vmem>>, vector<1x384xf32>
    %11 = vector.broadcast %10 : vector<1x384xf32> to vector<16x384xf32>
    %12 = arith.addf %9, %11 : vector<16x384xf32>
    %13 = vector.extract_strided_slice %12 {offsets = [0, 0], sizes = [16, 128], strides = [1, 1]} : vector<16x384xf32> to vector<16x128xf32>
    %14 = vector.extract_strided_slice %12 {offsets = [0, 128], sizes = [16, 128], strides = [1, 1]} : vector<16x384xf32> to vector<16x128xf32>
    %15 = vector.extract_strided_slice %12 {offsets = [0, 256], sizes = [16, 128], strides = [1, 1]} : vector<16x384xf32> to vector<16x128xf32>
    %c0_15 = arith.constant 0 : index
    %c0_16 = arith.constant 0 : index
    %16 = vector.load %arg7[%c0_15, %c0_16] : memref<128x128xf32, #tpu.memory_space<vmem>>, vector<128x128xf32>
    %c0_17 = arith.constant 0 : index
    %c0_18 = arith.constant 0 : index
    %17 = vector.load %arg8[%c0_17, %c0_18] : memref<1x128xf32, #tpu.memory_space<vmem>>, vector<1x128xf32>
    %18 = vector.extract_strided_slice %13 {offsets = [0, 0], sizes = [16, 32], strides = [1, 1]} : vector<16x128xf32> to vector<16x32xf32>
    %19 = vector.extract_strided_slice %14 {offsets = [0, 0], sizes = [16, 32], strides = [1, 1]} : vector<16x128xf32> to vector<16x32xf32>
    %20 = vector.extract_strided_slice %15 {offsets = [0, 0], sizes = [16, 32], strides = [1, 1]} : vector<16x128xf32> to vector<16x32xf32>
    %cst_19 = arith.constant dense<0.000000e+00> : vector<16x16xf32>
    %21 = tpu.matmul %18, %19, %cst_19 {dimension_numbers = #tpu.dot_dimension_numbers<[1], [1], [0], [0], [0, 0, 1, 0], [], []>, precision = #tpu.contract_precision<fp32>} : vector<16x32xf32>, vector<16x32xf32>, vector<16x16xf32> -> vector<16x16xf32>
    %cst_20 = arith.constant 0.176776692 : f32
    %22 = vector.broadcast %cst_20 : f32 to vector<16x16xf32>
    %23 = arith.mulf %21, %22 : vector<16x16xf32>
    %cst_21 = arith.constant -1.000000e+09 : f32
    %24 = vector.broadcast %cst_21 : f32 to vector<16x16xf32>
    %25 = arith.mulf %5, %24 : vector<16x16xf32>
    %26 = arith.addf %23, %25 : vector<16x16xf32>
    %cst_22 = arith.constant dense<0xFF800000> : vector<16xf32>
    %27 = vector.multi_reduction <maximumf>, %26, %cst_22 [1] : vector<16x16xf32> to vector<16xf32>
    %28 = vector.shape_cast %27 : vector<16xf32> to vector<16x1xf32>
    %29 = vector.broadcast %28 : vector<16x1xf32> to vector<16x16xf32>
    %30 = arith.subf %26, %29 : vector<16x16xf32>
    %31 = math.exp %30 : vector<16x16xf32>
    %cst_23 = arith.constant dense<0.000000e+00> : vector<16xf32>
    %32 = vector.multi_reduction <add>, %31, %cst_23 [1] : vector<16x16xf32> to vector<16xf32>
    %33 = vector.shape_cast %32 : vector<16xf32> to vector<16x1xf32>
    %34 = vector.broadcast %33 : vector<16x1xf32> to vector<16x16xf32>
    %35 = arith.divf %31, %34 : vector<16x16xf32>
    %cst_24 = arith.constant dense<0.000000e+00> : vector<16x32xf32>
    %36 = tpu.matmul %35, %20, %cst_24 {dimension_numbers = #tpu.dot_dimension_numbers<[1], [0], [0], [1], [0, 0, 1, 1], [], []>, precision = #tpu.contract_precision<fp32>} : vector<16x16xf32>, vector<16x32xf32>, vector<16x32xf32> -> vector<16x32xf32>
    %37 = vector.extract_strided_slice %13 {offsets = [0, 32], sizes = [16, 32], strides = [1, 1]} : vector<16x128xf32> to vector<16x32xf32>
    %38 = vector.extract_strided_slice %14 {offsets = [0, 32], sizes = [16, 32], strides = [1, 1]} : vector<16x128xf32> to vector<16x32xf32>
    %39 = vector.extract_strided_slice %15 {offsets = [0, 32], sizes = [16, 32], strides = [1, 1]} : vector<16x128xf32> to vector<16x32xf32>
    %cst_25 = arith.constant dense<0.000000e+00> : vector<16x16xf32>
    %40 = tpu.matmul %37, %38, %cst_25 {dimension_numbers = #tpu.dot_dimension_numbers<[1], [1], [0], [0], [0, 0, 1, 0], [], []>, precision = #tpu.contract_precision<fp32>} : vector<16x32xf32>, vector<16x32xf32>, vector<16x16xf32> -> vector<16x16xf32>
    %cst_26 = arith.constant 0.176776692 : f32
    %41 = vector.broadcast %cst_26 : f32 to vector<16x16xf32>
    %42 = arith.mulf %40, %41 : vector<16x16xf32>
    %cst_27 = arith.constant -1.000000e+09 : f32
    %43 = vector.broadcast %cst_27 : f32 to vector<16x16xf32>
    %44 = arith.mulf %5, %43 : vector<16x16xf32>
    %45 = arith.addf %42, %44 : vector<16x16xf32>
    %cst_28 = arith.constant dense<0xFF800000> : vector<16xf32>
    %46 = vector.multi_reduction <maximumf>, %45, %cst_28 [1] : vector<16x16xf32> to vector<16xf32>
    %47 = vector.shape_cast %46 : vector<16xf32> to vector<16x1xf32>
    %48 = vector.broadcast %47 : vector<16x1xf32> to vector<16x16xf32>
    %49 = arith.subf %45, %48 : vector<16x16xf32>
    %50 = math.exp %49 : vector<16x16xf32>
    %cst_29 = arith.constant dense<0.000000e+00> : vector<16xf32>
    %51 = vector.multi_reduction <add>, %50, %cst_29 [1] : vector<16x16xf32> to vector<16xf32>
    %52 = vector.shape_cast %51 : vector<16xf32> to vector<16x1xf32>
    %53 = vector.broadcast %52 : vector<16x1xf32> to vector<16x16xf32>
    %54 = arith.divf %50, %53 : vector<16x16xf32>
    %cst_30 = arith.constant dense<0.000000e+00> : vector<16x32xf32>
    %55 = tpu.matmul %54, %39, %cst_30 {dimension_numbers = #tpu.dot_dimension_numbers<[1], [0], [0], [1], [0, 0, 1, 1], [], []>, precision = #tpu.contract_precision<fp32>} : vector<16x16xf32>, vector<16x32xf32>, vector<16x32xf32> -> vector<16x32xf32>
    %56 = vector.extract_strided_slice %13 {offsets = [0, 64], sizes = [16, 32], strides = [1, 1]} : vector<16x128xf32> to vector<16x32xf32>
    %57 = vector.extract_strided_slice %14 {offsets = [0, 64], sizes = [16, 32], strides = [1, 1]} : vector<16x128xf32> to vector<16x32xf32>
    %58 = vector.extract_strided_slice %15 {offsets = [0, 64], sizes = [16, 32], strides = [1, 1]} : vector<16x128xf32> to vector<16x32xf32>
    %cst_31 = arith.constant dense<0.000000e+00> : vector<16x16xf32>
    %59 = tpu.matmul %56, %57, %cst_31 {dimension_numbers = #tpu.dot_dimension_numbers<[1], [1], [0], [0], [0, 0, 1, 0], [], []>, precision = #tpu.contract_precision<fp32>} : vector<16x32xf32>, vector<16x32xf32>, vector<16x16xf32> -> vector<16x16xf32>
    %cst_32 = arith.constant 0.176776692 : f32
    %60 = vector.broadcast %cst_32 : f32 to vector<16x16xf32>
    %61 = arith.mulf %59, %60 : vector<16x16xf32>
    %cst_33 = arith.constant -1.000000e+09 : f32
    %62 = vector.broadcast %cst_33 : f32 to vector<16x16xf32>
    %63 = arith.mulf %5, %62 : vector<16x16xf32>
    %64 = arith.addf %61, %63 : vector<16x16xf32>
    %cst_34 = arith.constant dense<0xFF800000> : vector<16xf32>
    %65 = vector.multi_reduction <maximumf>, %64, %cst_34 [1] : vector<16x16xf32> to vector<16xf32>
    %66 = vector.shape_cast %65 : vector<16xf32> to vector<16x1xf32>
    %67 = vector.broadcast %66 : vector<16x1xf32> to vector<16x16xf32>
    %68 = arith.subf %64, %67 : vector<16x16xf32>
    %69 = math.exp %68 : vector<16x16xf32>
    %cst_35 = arith.constant dense<0.000000e+00> : vector<16xf32>
    %70 = vector.multi_reduction <add>, %69, %cst_35 [1] : vector<16x16xf32> to vector<16xf32>
    %71 = vector.shape_cast %70 : vector<16xf32> to vector<16x1xf32>
    %72 = vector.broadcast %71 : vector<16x1xf32> to vector<16x16xf32>
    %73 = arith.divf %69, %72 : vector<16x16xf32>
    %cst_36 = arith.constant dense<0.000000e+00> : vector<16x32xf32>
    %74 = tpu.matmul %73, %58, %cst_36 {dimension_numbers = #tpu.dot_dimension_numbers<[1], [0], [0], [1], [0, 0, 1, 1], [], []>, precision = #tpu.contract_precision<fp32>} : vector<16x16xf32>, vector<16x32xf32>, vector<16x32xf32> -> vector<16x32xf32>
    %75 = vector.extract_strided_slice %13 {offsets = [0, 96], sizes = [16, 32], strides = [1, 1]} : vector<16x128xf32> to vector<16x32xf32>
    %76 = vector.extract_strided_slice %14 {offsets = [0, 96], sizes = [16, 32], strides = [1, 1]} : vector<16x128xf32> to vector<16x32xf32>
    %77 = vector.extract_strided_slice %15 {offsets = [0, 96], sizes = [16, 32], strides = [1, 1]} : vector<16x128xf32> to vector<16x32xf32>
    %cst_37 = arith.constant dense<0.000000e+00> : vector<16x16xf32>
    %78 = tpu.matmul %75, %76, %cst_37 {dimension_numbers = #tpu.dot_dimension_numbers<[1], [1], [0], [0], [0, 0, 1, 0], [], []>, precision = #tpu.contract_precision<fp32>} : vector<16x32xf32>, vector<16x32xf32>, vector<16x16xf32> -> vector<16x16xf32>
    %cst_38 = arith.constant 0.176776692 : f32
    %79 = vector.broadcast %cst_38 : f32 to vector<16x16xf32>
    %80 = arith.mulf %78, %79 : vector<16x16xf32>
    %cst_39 = arith.constant -1.000000e+09 : f32
    %81 = vector.broadcast %cst_39 : f32 to vector<16x16xf32>
    %82 = arith.mulf %5, %81 : vector<16x16xf32>
    %83 = arith.addf %80, %82 : vector<16x16xf32>
    %cst_40 = arith.constant dense<0xFF800000> : vector<16xf32>
    %84 = vector.multi_reduction <maximumf>, %83, %cst_40 [1] : vector<16x16xf32> to vector<16xf32>
    %85 = vector.shape_cast %84 : vector<16xf32> to vector<16x1xf32>
    %86 = vector.broadcast %85 : vector<16x1xf32> to vector<16x16xf32>
    %87 = arith.subf %83, %86 : vector<16x16xf32>
    %88 = math.exp %87 : vector<16x16xf32>
    %cst_41 = arith.constant dense<0.000000e+00> : vector<16xf32>
    %89 = vector.multi_reduction <add>, %88, %cst_41 [1] : vector<16x16xf32> to vector<16xf32>
    %90 = vector.shape_cast %89 : vector<16xf32> to vector<16x1xf32>
    %91 = vector.broadcast %90 : vector<16x1xf32> to vector<16x16xf32>
    %92 = arith.divf %88, %91 : vector<16x16xf32>
    %cst_42 = arith.constant dense<0.000000e+00> : vector<16x32xf32>
    %93 = tpu.matmul %92, %77, %cst_42 {dimension_numbers = #tpu.dot_dimension_numbers<[1], [0], [0], [1], [0, 0, 1, 1], [], []>, precision = #tpu.contract_precision<fp32>} : vector<16x16xf32>, vector<16x32xf32>, vector<16x32xf32> -> vector<16x32xf32>
    %94 = tpu.concatenate %36, %55, %74, %93 in 1 : vector<16x32xf32>, vector<16x32xf32>, vector<16x32xf32>, vector<16x32xf32> -> vector<16x128xf32>
    %cst_43 = arith.constant dense<0.000000e+00> : vector<16x128xf32>
    %95 = tpu.matmul %94, %16, %cst_43 {dimension_numbers = #tpu.dot_dimension_numbers<[1], [0], [0], [1], [0, 0, 1, 1], [], []>, precision = #tpu.contract_precision<fp32>} : vector<16x128xf32>, vector<128x128xf32>, vector<16x128xf32> -> vector<16x128xf32>
    %96 = vector.broadcast %17 : vector<1x128xf32> to vector<16x128xf32>
    %97 = arith.addf %95, %96 : vector<16x128xf32>
    %98 = arith.addf %1, %97 : vector<16x128xf32>
    %c0_44 = arith.constant 0 : index
    %c0_45 = arith.constant 0 : index
    %99 = vector.load %arg19[%c0_44, %c0_45] : memref<1x128xf32, #tpu.memory_space<vmem>>, vector<1x128xf32>
    %c0_46 = arith.constant 0 : index
    %c0_47 = arith.constant 0 : index
    %100 = vector.load %arg20[%c0_46, %c0_47] : memref<1x128xf32, #tpu.memory_space<vmem>>, vector<1x128xf32>
    %cst_48 = arith.constant dense<0.000000e+00> : vector<16xf32>
    %101 = vector.multi_reduction <add>, %98, %cst_48 [1] : vector<16x128xf32> to vector<16xf32>
    %102 = vector.shape_cast %101 : vector<16xf32> to vector<16x1xf32>
    %cst_49 = arith.constant 1.280000e+02 : f32
    %103 = vector.broadcast %cst_49 : f32 to vector<16x1xf32>
    %104 = arith.divf %102, %103 : vector<16x1xf32>
    %105 = vector.broadcast %104 : vector<16x1xf32> to vector<16x128xf32>
    %106 = arith.subf %98, %105 : vector<16x128xf32>
    %107 = arith.mulf %106, %106 : vector<16x128xf32>
    %cst_50 = arith.constant dense<0.000000e+00> : vector<16xf32>
    %108 = vector.multi_reduction <add>, %107, %cst_50 [1] : vector<16x128xf32> to vector<16xf32>
    %109 = vector.shape_cast %108 : vector<16xf32> to vector<16x1xf32>
    %cst_51 = arith.constant 1.280000e+02 : f32
    %110 = vector.broadcast %cst_51 : f32 to vector<16x1xf32>
    %111 = arith.divf %109, %110 : vector<16x1xf32>
    %112 = vector.broadcast %104 : vector<16x1xf32> to vector<16x128xf32>
    %113 = arith.subf %98, %112 : vector<16x128xf32>
    %cst_52 = arith.constant 9.99999997E-7 : f32
    %114 = vector.broadcast %cst_52 : f32 to vector<16x1xf32>
    %115 = arith.addf %111, %114 : vector<16x1xf32>
    %116 = math.rsqrt %115 : vector<16x1xf32>
    %117 = vector.broadcast %116 : vector<16x1xf32> to vector<16x128xf32>
    %118 = arith.mulf %113, %117 : vector<16x128xf32>
    %119 = vector.broadcast %99 : vector<1x128xf32> to vector<16x128xf32>
    %120 = arith.mulf %118, %119 : vector<16x128xf32>
    %121 = vector.broadcast %100 : vector<1x128xf32> to vector<16x128xf32>
    %122 = arith.addf %120, %121 : vector<16x128xf32>
    %c0_53 = arith.constant 0 : index
    %c0_54 = arith.constant 0 : index
    %123 = vector.load %arg9[%c0_53, %c0_54] : memref<128x128xf32, #tpu.memory_space<vmem>>, vector<128x128xf32>
    %cst_55 = arith.constant dense<0.000000e+00> : vector<16x128xf32>
    %124 = tpu.matmul %122, %123, %cst_55 {dimension_numbers = #tpu.dot_dimension_numbers<[1], [0], [0], [1], [0, 0, 1, 1], [], []>, precision = #tpu.contract_precision<fp32>} : vector<16x128xf32>, vector<128x128xf32>, vector<16x128xf32> -> vector<16x128xf32>
    %c0_56 = arith.constant 0 : index
    %c0_57 = arith.constant 0 : index
    %125 = vector.load %arg10[%c0_56, %c0_57] : memref<1x128xf32, #tpu.memory_space<vmem>>, vector<1x128xf32>
    %126 = vector.broadcast %125 : vector<1x128xf32> to vector<16x128xf32>
    %127 = arith.addf %124, %126 : vector<16x128xf32>
    %c0_58 = arith.constant 0 : index
    %c0_59 = arith.constant 0 : index
    %128 = vector.load %arg11[%c0_58, %c0_59] : memref<128x256xf32, #tpu.memory_space<vmem>>, vector<128x256xf32>
    %cst_60 = arith.constant dense<0.000000e+00> : vector<16x256xf32>
    %129 = tpu.matmul %3, %128, %cst_60 {dimension_numbers = #tpu.dot_dimension_numbers<[1], [0], [0], [1], [0, 0, 1, 1], [], []>, precision = #tpu.contract_precision<fp32>} : vector<16x128xf32>, vector<128x256xf32>, vector<16x256xf32> -> vector<16x256xf32>
    %c0_61 = arith.constant 0 : index
    %c0_62 = arith.constant 0 : index
    %130 = vector.load %arg12[%c0_61, %c0_62] : memref<1x256xf32, #tpu.memory_space<vmem>>, vector<1x256xf32>
    %131 = vector.broadcast %130 : vector<1x256xf32> to vector<16x256xf32>
    %132 = arith.addf %129, %131 : vector<16x256xf32>
    %133 = vector.extract_strided_slice %132 {offsets = [0, 0], sizes = [16, 128], strides = [1, 1]} : vector<16x256xf32> to vector<16x128xf32>
    %134 = vector.extract_strided_slice %132 {offsets = [0, 128], sizes = [16, 128], strides = [1, 1]} : vector<16x256xf32> to vector<16x128xf32>
    %c0_63 = arith.constant 0 : index
    %c0_64 = arith.constant 0 : index
    %135 = vector.load %arg13[%c0_63, %c0_64] : memref<128x128xf32, #tpu.memory_space<vmem>>, vector<128x128xf32>
    %c0_65 = arith.constant 0 : index
    %c0_66 = arith.constant 0 : index
    %136 = vector.load %arg14[%c0_65, %c0_66] : memref<1x128xf32, #tpu.memory_space<vmem>>, vector<1x128xf32>
    %137 = vector.extract_strided_slice %127 {offsets = [0, 0], sizes = [16, 32], strides = [1, 1]} : vector<16x128xf32> to vector<16x32xf32>
    %138 = vector.extract_strided_slice %133 {offsets = [0, 0], sizes = [16, 32], strides = [1, 1]} : vector<16x128xf32> to vector<16x32xf32>
    %139 = vector.extract_strided_slice %134 {offsets = [0, 0], sizes = [16, 32], strides = [1, 1]} : vector<16x128xf32> to vector<16x32xf32>
    %cst_67 = arith.constant dense<0.000000e+00> : vector<16x16xf32>
    %140 = tpu.matmul %137, %138, %cst_67 {dimension_numbers = #tpu.dot_dimension_numbers<[1], [1], [0], [0], [0, 0, 1, 0], [], []>, precision = #tpu.contract_precision<fp32>} : vector<16x32xf32>, vector<16x32xf32>, vector<16x16xf32> -> vector<16x16xf32>
    %cst_68 = arith.constant 0.176776692 : f32
    %141 = vector.broadcast %cst_68 : f32 to vector<16x16xf32>
    %142 = arith.mulf %140, %141 : vector<16x16xf32>
    %cst_69 = arith.constant -1.000000e+09 : f32
    %143 = vector.broadcast %cst_69 : f32 to vector<16x16xf32>
    %144 = arith.mulf %7, %143 : vector<16x16xf32>
    %145 = arith.addf %142, %144 : vector<16x16xf32>
    %cst_70 = arith.constant dense<0xFF800000> : vector<16xf32>
    %146 = vector.multi_reduction <maximumf>, %145, %cst_70 [1] : vector<16x16xf32> to vector<16xf32>
    %147 = vector.shape_cast %146 : vector<16xf32> to vector<16x1xf32>
    %148 = vector.broadcast %147 : vector<16x1xf32> to vector<16x16xf32>
    %149 = arith.subf %145, %148 : vector<16x16xf32>
    %150 = math.exp %149 : vector<16x16xf32>
    %cst_71 = arith.constant dense<0.000000e+00> : vector<16xf32>
    %151 = vector.multi_reduction <add>, %150, %cst_71 [1] : vector<16x16xf32> to vector<16xf32>
    %152 = vector.shape_cast %151 : vector<16xf32> to vector<16x1xf32>
    %153 = vector.broadcast %152 : vector<16x1xf32> to vector<16x16xf32>
    %154 = arith.divf %150, %153 : vector<16x16xf32>
    %cst_72 = arith.constant dense<0.000000e+00> : vector<16x32xf32>
    %155 = tpu.matmul %154, %139, %cst_72 {dimension_numbers = #tpu.dot_dimension_numbers<[1], [0], [0], [1], [0, 0, 1, 1], [], []>, precision = #tpu.contract_precision<fp32>} : vector<16x16xf32>, vector<16x32xf32>, vector<16x32xf32> -> vector<16x32xf32>
    %156 = vector.extract_strided_slice %127 {offsets = [0, 32], sizes = [16, 32], strides = [1, 1]} : vector<16x128xf32> to vector<16x32xf32>
    %157 = vector.extract_strided_slice %133 {offsets = [0, 32], sizes = [16, 32], strides = [1, 1]} : vector<16x128xf32> to vector<16x32xf32>
    %158 = vector.extract_strided_slice %134 {offsets = [0, 32], sizes = [16, 32], strides = [1, 1]} : vector<16x128xf32> to vector<16x32xf32>
    %cst_73 = arith.constant dense<0.000000e+00> : vector<16x16xf32>
    %159 = tpu.matmul %156, %157, %cst_73 {dimension_numbers = #tpu.dot_dimension_numbers<[1], [1], [0], [0], [0, 0, 1, 0], [], []>, precision = #tpu.contract_precision<fp32>} : vector<16x32xf32>, vector<16x32xf32>, vector<16x16xf32> -> vector<16x16xf32>
    %cst_74 = arith.constant 0.176776692 : f32
    %160 = vector.broadcast %cst_74 : f32 to vector<16x16xf32>
    %161 = arith.mulf %159, %160 : vector<16x16xf32>
    %cst_75 = arith.constant -1.000000e+09 : f32
    %162 = vector.broadcast %cst_75 : f32 to vector<16x16xf32>
    %163 = arith.mulf %7, %162 : vector<16x16xf32>
    %164 = arith.addf %161, %163 : vector<16x16xf32>
    %cst_76 = arith.constant dense<0xFF800000> : vector<16xf32>
    %165 = vector.multi_reduction <maximumf>, %164, %cst_76 [1] : vector<16x16xf32> to vector<16xf32>
    %166 = vector.shape_cast %165 : vector<16xf32> to vector<16x1xf32>
    %167 = vector.broadcast %166 : vector<16x1xf32> to vector<16x16xf32>
    %168 = arith.subf %164, %167 : vector<16x16xf32>
    %169 = math.exp %168 : vector<16x16xf32>
    %cst_77 = arith.constant dense<0.000000e+00> : vector<16xf32>
    %170 = vector.multi_reduction <add>, %169, %cst_77 [1] : vector<16x16xf32> to vector<16xf32>
    %171 = vector.shape_cast %170 : vector<16xf32> to vector<16x1xf32>
    %172 = vector.broadcast %171 : vector<16x1xf32> to vector<16x16xf32>
    %173 = arith.divf %169, %172 : vector<16x16xf32>
    %cst_78 = arith.constant dense<0.000000e+00> : vector<16x32xf32>
    %174 = tpu.matmul %173, %158, %cst_78 {dimension_numbers = #tpu.dot_dimension_numbers<[1], [0], [0], [1], [0, 0, 1, 1], [], []>, precision = #tpu.contract_precision<fp32>} : vector<16x16xf32>, vector<16x32xf32>, vector<16x32xf32> -> vector<16x32xf32>
    %175 = vector.extract_strided_slice %127 {offsets = [0, 64], sizes = [16, 32], strides = [1, 1]} : vector<16x128xf32> to vector<16x32xf32>
    %176 = vector.extract_strided_slice %133 {offsets = [0, 64], sizes = [16, 32], strides = [1, 1]} : vector<16x128xf32> to vector<16x32xf32>
    %177 = vector.extract_strided_slice %134 {offsets = [0, 64], sizes = [16, 32], strides = [1, 1]} : vector<16x128xf32> to vector<16x32xf32>
    %cst_79 = arith.constant dense<0.000000e+00> : vector<16x16xf32>
    %178 = tpu.matmul %175, %176, %cst_79 {dimension_numbers = #tpu.dot_dimension_numbers<[1], [1], [0], [0], [0, 0, 1, 0], [], []>, precision = #tpu.contract_precision<fp32>} : vector<16x32xf32>, vector<16x32xf32>, vector<16x16xf32> -> vector<16x16xf32>
    %cst_80 = arith.constant 0.176776692 : f32
    %179 = vector.broadcast %cst_80 : f32 to vector<16x16xf32>
    %180 = arith.mulf %178, %179 : vector<16x16xf32>
    %cst_81 = arith.constant -1.000000e+09 : f32
    %181 = vector.broadcast %cst_81 : f32 to vector<16x16xf32>
    %182 = arith.mulf %7, %181 : vector<16x16xf32>
    %183 = arith.addf %180, %182 : vector<16x16xf32>
    %cst_82 = arith.constant dense<0xFF800000> : vector<16xf32>
    %184 = vector.multi_reduction <maximumf>, %183, %cst_82 [1] : vector<16x16xf32> to vector<16xf32>
    %185 = vector.shape_cast %184 : vector<16xf32> to vector<16x1xf32>
    %186 = vector.broadcast %185 : vector<16x1xf32> to vector<16x16xf32>
    %187 = arith.subf %183, %186 : vector<16x16xf32>
    %188 = math.exp %187 : vector<16x16xf32>
    %cst_83 = arith.constant dense<0.000000e+00> : vector<16xf32>
    %189 = vector.multi_reduction <add>, %188, %cst_83 [1] : vector<16x16xf32> to vector<16xf32>
    %190 = vector.shape_cast %189 : vector<16xf32> to vector<16x1xf32>
    %191 = vector.broadcast %190 : vector<16x1xf32> to vector<16x16xf32>
    %192 = arith.divf %188, %191 : vector<16x16xf32>
    %cst_84 = arith.constant dense<0.000000e+00> : vector<16x32xf32>
    %193 = tpu.matmul %192, %177, %cst_84 {dimension_numbers = #tpu.dot_dimension_numbers<[1], [0], [0], [1], [0, 0, 1, 1], [], []>, precision = #tpu.contract_precision<fp32>} : vector<16x16xf32>, vector<16x32xf32>, vector<16x32xf32> -> vector<16x32xf32>
    %194 = vector.extract_strided_slice %127 {offsets = [0, 96], sizes = [16, 32], strides = [1, 1]} : vector<16x128xf32> to vector<16x32xf32>
    %195 = vector.extract_strided_slice %133 {offsets = [0, 96], sizes = [16, 32], strides = [1, 1]} : vector<16x128xf32> to vector<16x32xf32>
    %196 = vector.extract_strided_slice %134 {offsets = [0, 96], sizes = [16, 32], strides = [1, 1]} : vector<16x128xf32> to vector<16x32xf32>
    %cst_85 = arith.constant dense<0.000000e+00> : vector<16x16xf32>
    %197 = tpu.matmul %194, %195, %cst_85 {dimension_numbers = #tpu.dot_dimension_numbers<[1], [1], [0], [0], [0, 0, 1, 0], [], []>, precision = #tpu.contract_precision<fp32>} : vector<16x32xf32>, vector<16x32xf32>, vector<16x16xf32> -> vector<16x16xf32>
    %cst_86 = arith.constant 0.176776692 : f32
    %198 = vector.broadcast %cst_86 : f32 to vector<16x16xf32>
    %199 = arith.mulf %197, %198 : vector<16x16xf32>
    %cst_87 = arith.constant -1.000000e+09 : f32
    %200 = vector.broadcast %cst_87 : f32 to vector<16x16xf32>
    %201 = arith.mulf %7, %200 : vector<16x16xf32>
    %202 = arith.addf %199, %201 : vector<16x16xf32>
    %cst_88 = arith.constant dense<0xFF800000> : vector<16xf32>
    %203 = vector.multi_reduction <maximumf>, %202, %cst_88 [1] : vector<16x16xf32> to vector<16xf32>
    %204 = vector.shape_cast %203 : vector<16xf32> to vector<16x1xf32>
    %205 = vector.broadcast %204 : vector<16x1xf32> to vector<16x16xf32>
    %206 = arith.subf %202, %205 : vector<16x16xf32>
    %207 = math.exp %206 : vector<16x16xf32>
    %cst_89 = arith.constant dense<0.000000e+00> : vector<16xf32>
    %208 = vector.multi_reduction <add>, %207, %cst_89 [1] : vector<16x16xf32> to vector<16xf32>
    %209 = vector.shape_cast %208 : vector<16xf32> to vector<16x1xf32>
    %210 = vector.broadcast %209 : vector<16x1xf32> to vector<16x16xf32>
    %211 = arith.divf %207, %210 : vector<16x16xf32>
    %cst_90 = arith.constant dense<0.000000e+00> : vector<16x32xf32>
    %212 = tpu.matmul %211, %196, %cst_90 {dimension_numbers = #tpu.dot_dimension_numbers<[1], [0], [0], [1], [0, 0, 1, 1], [], []>, precision = #tpu.contract_precision<fp32>} : vector<16x16xf32>, vector<16x32xf32>, vector<16x32xf32> -> vector<16x32xf32>
    %213 = tpu.concatenate %155, %174, %193, %212 in 1 : vector<16x32xf32>, vector<16x32xf32>, vector<16x32xf32>, vector<16x32xf32> -> vector<16x128xf32>
    %cst_91 = arith.constant dense<0.000000e+00> : vector<16x128xf32>
    %214 = tpu.matmul %213, %135, %cst_91 {dimension_numbers = #tpu.dot_dimension_numbers<[1], [0], [0], [1], [0, 0, 1, 1], [], []>, precision = #tpu.contract_precision<fp32>} : vector<16x128xf32>, vector<128x128xf32>, vector<16x128xf32> -> vector<16x128xf32>
    %215 = vector.broadcast %136 : vector<1x128xf32> to vector<16x128xf32>
    %216 = arith.addf %214, %215 : vector<16x128xf32>
    %217 = arith.addf %122, %216 : vector<16x128xf32>
    %c0_92 = arith.constant 0 : index
    %c0_93 = arith.constant 0 : index
    %218 = vector.load %arg21[%c0_92, %c0_93] : memref<1x128xf32, #tpu.memory_space<vmem>>, vector<1x128xf32>
    %c0_94 = arith.constant 0 : index
    %c0_95 = arith.constant 0 : index
    %219 = vector.load %arg22[%c0_94, %c0_95] : memref<1x128xf32, #tpu.memory_space<vmem>>, vector<1x128xf32>
    %cst_96 = arith.constant dense<0.000000e+00> : vector<16xf32>
    %220 = vector.multi_reduction <add>, %217, %cst_96 [1] : vector<16x128xf32> to vector<16xf32>
    %221 = vector.shape_cast %220 : vector<16xf32> to vector<16x1xf32>
    %cst_97 = arith.constant 1.280000e+02 : f32
    %222 = vector.broadcast %cst_97 : f32 to vector<16x1xf32>
    %223 = arith.divf %221, %222 : vector<16x1xf32>
    %224 = vector.broadcast %223 : vector<16x1xf32> to vector<16x128xf32>
    %225 = arith.subf %217, %224 : vector<16x128xf32>
    %226 = arith.mulf %225, %225 : vector<16x128xf32>
    %cst_98 = arith.constant dense<0.000000e+00> : vector<16xf32>
    %227 = vector.multi_reduction <add>, %226, %cst_98 [1] : vector<16x128xf32> to vector<16xf32>
    %228 = vector.shape_cast %227 : vector<16xf32> to vector<16x1xf32>
    %cst_99 = arith.constant 1.280000e+02 : f32
    %229 = vector.broadcast %cst_99 : f32 to vector<16x1xf32>
    %230 = arith.divf %228, %229 : vector<16x1xf32>
    %231 = vector.broadcast %223 : vector<16x1xf32> to vector<16x128xf32>
    %232 = arith.subf %217, %231 : vector<16x128xf32>
    %cst_100 = arith.constant 9.99999997E-7 : f32
    %233 = vector.broadcast %cst_100 : f32 to vector<16x1xf32>
    %234 = arith.addf %230, %233 : vector<16x1xf32>
    %235 = math.rsqrt %234 : vector<16x1xf32>
    %236 = vector.broadcast %235 : vector<16x1xf32> to vector<16x128xf32>
    %237 = arith.mulf %232, %236 : vector<16x128xf32>
    %238 = vector.broadcast %218 : vector<1x128xf32> to vector<16x128xf32>
    %239 = arith.mulf %237, %238 : vector<16x128xf32>
    %240 = vector.broadcast %219 : vector<1x128xf32> to vector<16x128xf32>
    %241 = arith.addf %239, %240 : vector<16x128xf32>
    %c0_101 = arith.constant 0 : index
    %c0_102 = arith.constant 0 : index
    %242 = vector.load %arg15[%c0_101, %c0_102] : memref<128x256xf32, #tpu.memory_space<vmem>>, vector<128x256xf32>
    %cst_103 = arith.constant dense<0.000000e+00> : vector<16x256xf32>
    %243 = tpu.matmul %241, %242, %cst_103 {dimension_numbers = #tpu.dot_dimension_numbers<[1], [0], [0], [1], [0, 0, 1, 1], [], []>, precision = #tpu.contract_precision<fp32>} : vector<16x128xf32>, vector<128x256xf32>, vector<16x256xf32> -> vector<16x256xf32>
    %c0_104 = arith.constant 0 : index
    %c0_105 = arith.constant 0 : index
    %244 = vector.load %arg16[%c0_104, %c0_105] : memref<1x256xf32, #tpu.memory_space<vmem>>, vector<1x256xf32>
    %245 = vector.broadcast %244 : vector<1x256xf32> to vector<16x256xf32>
    %246 = arith.addf %243, %245 : vector<16x256xf32>
    %cst_106 = arith.constant 0.000000e+00 : f32
    %247 = vector.broadcast %cst_106 : f32 to vector<16x256xf32>
    %248 = arith.maximumf %246, %247 : vector<16x256xf32>
    %c0_107 = arith.constant 0 : index
    %c0_108 = arith.constant 0 : index
    %249 = vector.load %arg17[%c0_107, %c0_108] : memref<256x128xf32, #tpu.memory_space<vmem>>, vector<256x128xf32>
    %cst_109 = arith.constant dense<0.000000e+00> : vector<16x128xf32>
    %250 = tpu.matmul %248, %249, %cst_109 {dimension_numbers = #tpu.dot_dimension_numbers<[1], [0], [0], [1], [0, 0, 1, 1], [], []>, precision = #tpu.contract_precision<fp32>} : vector<16x256xf32>, vector<256x128xf32>, vector<16x128xf32> -> vector<16x128xf32>
    %c0_110 = arith.constant 0 : index
    %c0_111 = arith.constant 0 : index
    %251 = vector.load %arg18[%c0_110, %c0_111] : memref<1x128xf32, #tpu.memory_space<vmem>>, vector<1x128xf32>
    %252 = vector.broadcast %251 : vector<1x128xf32> to vector<16x128xf32>
    %253 = arith.addf %250, %252 : vector<16x128xf32>
    %254 = arith.addf %241, %253 : vector<16x128xf32>
    %c0_112 = arith.constant 0 : index
    %c0_113 = arith.constant 0 : index
    %255 = vector.load %arg23[%c0_112, %c0_113] : memref<1x128xf32, #tpu.memory_space<vmem>>, vector<1x128xf32>
    %c0_114 = arith.constant 0 : index
    %c0_115 = arith.constant 0 : index
    %256 = vector.load %arg24[%c0_114, %c0_115] : memref<1x128xf32, #tpu.memory_space<vmem>>, vector<1x128xf32>
    %cst_116 = arith.constant dense<0.000000e+00> : vector<16xf32>
    %257 = vector.multi_reduction <add>, %254, %cst_116 [1] : vector<16x128xf32> to vector<16xf32>
    %258 = vector.shape_cast %257 : vector<16xf32> to vector<16x1xf32>
    %cst_117 = arith.constant 1.280000e+02 : f32
    %259 = vector.broadcast %cst_117 : f32 to vector<16x1xf32>
    %260 = arith.divf %258, %259 : vector<16x1xf32>
    %261 = vector.broadcast %260 : vector<16x1xf32> to vector<16x128xf32>
    %262 = arith.subf %254, %261 : vector<16x128xf32>
    %263 = arith.mulf %262, %262 : vector<16x128xf32>
    %cst_118 = arith.constant dense<0.000000e+00> : vector<16xf32>
    %264 = vector.multi_reduction <add>, %263, %cst_118 [1] : vector<16x128xf32> to vector<16xf32>
    %265 = vector.shape_cast %264 : vector<16xf32> to vector<16x1xf32>
    %cst_119 = arith.constant 1.280000e+02 : f32
    %266 = vector.broadcast %cst_119 : f32 to vector<16x1xf32>
    %267 = arith.divf %265, %266 : vector<16x1xf32>
    %268 = vector.broadcast %260 : vector<16x1xf32> to vector<16x128xf32>
    %269 = arith.subf %254, %268 : vector<16x128xf32>
    %cst_120 = arith.constant 9.99999997E-7 : f32
    %270 = vector.broadcast %cst_120 : f32 to vector<16x1xf32>
    %271 = arith.addf %267, %270 : vector<16x1xf32>
    %272 = math.rsqrt %271 : vector<16x1xf32>
    %273 = vector.broadcast %272 : vector<16x1xf32> to vector<16x128xf32>
    %274 = arith.mulf %269, %273 : vector<16x128xf32>
    %275 = vector.broadcast %255 : vector<1x128xf32> to vector<16x128xf32>
    %276 = arith.mulf %274, %275 : vector<16x128xf32>
    %277 = vector.broadcast %256 : vector<1x128xf32> to vector<16x128xf32>
    %278 = arith.addf %276, %277 : vector<16x128xf32>
    %c0_121 = arith.constant 0 : index
    %c0_122 = arith.constant 0 : index
    %c0_123 = arith.constant 0 : index
    %279 = vector.load %arg25[%c0_121, %c0_122, %c0_123] : memref<1x16x128xf32, #tpu.memory_space<vmem>>, vector<1x16x128xf32>
    %280 = vector.shape_cast %279 : vector<1x16x128xf32> to vector<16x128xf32>
    %281 = vector.shape_cast %278 : vector<16x128xf32> to vector<1x16x128xf32>
    tpu.vector_store %arg25[%c0_121, %c0_122, %c0_123], %281 {strides = array<i32>} : memref<1x16x128xf32, #tpu.memory_space<vmem>>, vector<1x16x128xf32>,
    return
  }
  func.func @transform_0(%arg0: i32) -> (i32, i32, i32) {
    %c0_i32 = arith.constant 0 : i32
    %c0_i32_0 = arith.constant 0 : i32
    %c0_i32_1 = arith.constant 0 : i32
    return %arg0, %c0_i32, %c0_i32_0 : i32, i32, i32
  }
  func.func @transform_1(%arg0: i32) -> (i32, i32, i32) {
    %c0_i32 = arith.constant 0 : i32
    %c0_i32_0 = arith.constant 0 : i32
    %c0_i32_1 = arith.constant 0 : i32
    return %arg0, %c0_i32, %c0_i32_0 : i32, i32, i32
  }
  func.func @transform_2(%arg0: i32) -> (i32, i32, i32) {
    %c0_i32 = arith.constant 0 : i32
    %c0_i32_0 = arith.constant 0 : i32
    %c0_i32_1 = arith.constant 0 : i32
    return %arg0, %c0_i32, %c0_i32_0 : i32, i32, i32
  }
  func.func @transform_3(%arg0: i32) -> (i32, i32, i32) {
    %c0_i32 = arith.constant 0 : i32
    %c0_i32_0 = arith.constant 0 : i32
    %c0_i32_1 = arith.constant 0 : i32
    return %arg0, %c0_i32, %c0_i32_0 : i32, i32, i32
  }
  func.func @transform_4(%arg0: i32) -> (i32, i32) {
    %c0_i32 = arith.constant 0 : i32
    %c0_i32_0 = arith.constant 0 : i32
    %c0_i32_1 = arith.constant 0 : i32
    return %c0_i32, %c0_i32_0 : i32, i32
  }
  func.func @transform_5(%arg0: i32) -> (i32, i32) {
    %c0_i32 = arith.constant 0 : i32
    %c0_i32_0 = arith.constant 0 : i32
    %c0_i32_1 = arith.constant 0 : i32
    return %c0_i32, %c0_i32_0 : i32, i32
  }
  func.func @transform_6(%arg0: i32) -> (i32, i32) {
    %c0_i32 = arith.constant 0 : i32
    %c0_i32_0 = arith.constant 0 : i32
    %c0_i32_1 = arith.constant 0 : i32
    return %c0_i32, %c0_i32_0 : i32, i32
  }
  func.func @transform_7(%arg0: i32) -> (i32, i32) {
    %c0_i32 = arith.constant 0 : i32
    %c0_i32_0 = arith.constant 0 : i32
    %c0_i32_1 = arith.constant 0 : i32
    return %c0_i32, %c0_i32_0 : i32, i32
  }
  func.func @transform_8(%arg0: i32) -> (i32, i32) {
    %c0_i32 = arith.constant 0 : i32
    %c0_i32_0 = arith.constant 0 : i32
    %c0_i32_1 = arith.constant 0 : i32
    return %c0_i32, %c0_i32_0 : i32, i32
  }
  func.func @transform_9(%arg0: i32) -> (i32, i32) {
    %c0_i32 = arith.constant 0 : i32
    %c0_i32_0 = arith.constant 0 : i32
    %c0_i32_1 = arith.constant 0 : i32
    return %c0_i32, %c0_i32_0 : i32, i32
  }
  func.func @transform_10(%arg0: i32) -> (i32, i32) {
    %c0_i32 = arith.constant 0 : i32
    %c0_i32_0 = arith.constant 0 : i32
    %c0_i32_1 = arith.constant 0 : i32
    return %c0_i32, %c0_i32_0 : i32, i32
  }
  func.func @transform_11(%arg0: i32) -> (i32, i32) {
    %c0_i32 = arith.constant 0 : i32
    %c0_i32_0 = arith.constant 0 : i32
    %c0_i32_1 = arith.constant 0 : i32
    return %c0_i32, %c0_i32_0 : i32, i32
  }
  func.func @transform_12(%arg0: i32) -> (i32, i32) {
    %c0_i32 = arith.constant 0 : i32
    %c0_i32_0 = arith.constant 0 : i32
    %c0_i32_1 = arith.constant 0 : i32
    return %c0_i32, %c0_i32_0 : i32, i32
  }
  func.func @transform_13(%arg0: i32) -> (i32, i32) {
    %c0_i32 = arith.constant 0 : i32
    %c0_i32_0 = arith.constant 0 : i32
    %c0_i32_1 = arith.constant 0 : i32
    return %c0_i32, %c0_i32_0 : i32, i32
  }
  func.func @transform_14(%arg0: i32) -> (i32, i32) {
    %c0_i32 = arith.constant 0 : i32
    %c0_i32_0 = arith.constant 0 : i32
    %c0_i32_1 = arith.constant 0 : i32
    return %c0_i32, %c0_i32_0 : i32, i32
  }
  func.func @transform_15(%arg0: i32) -> (i32, i32) {
    %c0_i32 = arith.constant 0 : i32
    %c0_i32_0 = arith.constant 0 : i32
    %c0_i32_1 = arith.constant 0 : i32
    return %c0_i32, %c0_i32_0 : i32, i32
  }
  func.func @transform_16(%arg0: i32) -> (i32, i32) {
    %c0_i32 = arith.constant 0 : i32
    %c0_i32_0 = arith.constant 0 : i32
    %c0_i32_1 = arith.constant 0 : i32
    return %c0_i32, %c0_i32_0 : i32, i32
  }
  func.func @transform_17(%arg0: i32) -> (i32, i32) {
    %c0_i32 = arith.constant 0 : i32
    %c0_i32_0 = arith.constant 0 : i32
    %c0_i32_1 = arith.constant 0 : i32
    return %c0_i32, %c0_i32_0 : i32, i32
  }
  func.func @transform_18(%arg0: i32) -> (i32, i32) {
    %c0_i32 = arith.constant 0 : i32
    %c0_i32_0 = arith.constant 0 : i32
    %c0_i32_1 = arith.constant 0 : i32
    return %c0_i32, %c0_i32_0 : i32, i32
  }
  func.func @transform_19(%arg0: i32) -> (i32, i32) {
    %c0_i32 = arith.constant 0 : i32
    %c0_i32_0 = arith.constant 0 : i32
    %c0_i32_1 = arith.constant 0 : i32
    return %c0_i32, %c0_i32_0 : i32, i32
  }
  func.func @transform_20(%arg0: i32) -> (i32, i32) {
    %c0_i32 = arith.constant 0 : i32
    %c0_i32_0 = arith.constant 0 : i32
    %c0_i32_1 = arith.constant 0 : i32
    return %c0_i32, %c0_i32_0 : i32, i32
  }
  func.func @transform_21(%arg0: i32) -> (i32, i32) {
    %c0_i32 = arith.constant 0 : i32
    %c0_i32_0 = arith.constant 0 : i32
    %c0_i32_1 = arith.constant 0 : i32
    return %c0_i32, %c0_i32_0 : i32, i32
  }
  func.func @transform_22(%arg0: i32) -> (i32, i32) {
    %c0_i32 = arith.constant 0 : i32
    %c0_i32_0 = arith.constant 0 : i32
    %c0_i32_1 = arith.constant 0 : i32
    return %c0_i32, %c0_i32_0 : i32, i32
  }
  func.func @transform_23(%arg0: i32) -> (i32, i32) {
    %c0_i32 = arith.constant 0 : i32
    %c0_i32_0 = arith.constant 0 : i32
    %c0_i32_1 = arith.constant 0 : i32
    return %c0_i32, %c0_i32_0 : i32, i32
  }
  func.func @transform_24(%arg0: i32) -> (i32, i32, i32) {
    %c0_i32 = arith.constant 0 : i32
    %c0_i32_0 = arith.constant 0 : i32
    %c0_i32_1 = arith.constant 0 : i32
    return %arg0, %c0_i32, %c0_i32_0 : i32, i32, i32
  }
}

</mosaic_0001>

<bundles_post_ra>
// kernel: tpu_custom_call.1
= control target key start
LH: loop header
LB: loop body
LE: loop exit
PB: predicated region body
PF: predicated region fallthrough
CT: control target
= control target key end

     0   :  { %s24795_s0 = inlined_call_operand.hbm [shape: f32[2,16,128], index: 0, kind: input, shape index: {}]   ;;  %s24796_s1 = inlined_call_operand.hbm [shape: f32[2,16,128], index: 1, kind: input, shape index: {}]   ;;  %s24797_s2 = inlined_call_operand.hbm [shape: f32[2,16,16], index: 2, kind: input, shape index: {}]   ;;  %s24798_s3 = inlined_call_operand.hbm [shape: f32[2,16,16], index: 3, kind: input, shape index: {}]   ;;  %s24799_s4 = inlined_call_operand.hbm [shape: f32[128,384], index: 4, kind: input, shape index: {}]   ;;  %s24800_s5 = inlined_call_operand.vmem [shape: f32[1,384], index: 5, kind: input, shape index: {}]   ;;  %s24801_s6 = inlined_call_operand.hbm [shape: f32[128,128], index: 6, kind: input, shape index: {}]   ;;  %s24802_s7 = inlined_call_operand.vmem [shape: f32[1,128], index: 7, kind: input, shape index: {}]   ;;  %s24803_s8 = inlined_call_operand.hbm [shape: f32[128,128], index: 8, kind: input, shape index: {}]   ;;  %s24804_s9 = inlined_call_operand.vmem [shape: f32[1,128], index: 9, kind: input, shape index: {}]   ;;  %s24805_s10 = inlined_call_operand.hbm [shape: f32[128,256], index: 10, kind: input, shape index: {}]   ;;  %s24806_s11 = inlined_call_operand.vmem [shape: f32[1,256], index: 11, kind: input, shape index: {}]   ;;  %s24807_s12 = inlined_call_operand.hbm [shape: f32[128,128], index: 12, kind: input, shape index: {}]   ;;  %s24808_s13 = inlined_call_operand.vmem [shape: f32[1,128], index: 13, kind: input, shape index: {}]   ;;  %s24809_s14 = inlined_call_operand.hbm [shape: f32[128,256], index: 14, kind: input, shape index: {}]   ;;  %s24810_s15 = inlined_call_operand.vmem [shape: f32[1,256], index: 15, kind: input, shape index: {}]   ;;  %s24811_s16 = inlined_call_operand.hbm [shape: f32[256,128], index: 16, kind: input, shape index: {}]   ;;  %s24812_s17 = inlined_call_operand.vmem [shape: f32[1,128], index: 17, kind: input, shape index: {}]   ;;  %s24813_s18 = inlined_call_operand.vmem [shape: f32[1,128], index: 18, kind: input, shape index: {}]   ;;  %s24814_s19 = inlined_call_operand.vmem [shape: f32[1,128], index: 19, kind: input, shape index: {}]   ;;  %s24815_s20 = inlined_call_operand.vmem [shape: f32[1,128], index: 20, kind: input, shape index: {}]   ;;  %s24816_s21 = inlined_call_operand.vmem [shape: f32[1,128], index: 21, kind: input, shape index: {}]   ;;  %s24817_s22 = inlined_call_operand.vmem [shape: f32[1,128], index: 22, kind: input, shape index: {}]   ;;  %s24818_s23 = inlined_call_operand.vmem [shape: f32[1,128], index: 23, kind: input, shape index: {}]   ;;  %s24819_s24 = inlined_call_operand.hbm [shape: f32[2,16,128], index: 24, kind: output, shape index: {}]  }
   0x1   :  { %25206 = sst [smem:[#allocation74_spill]] %s24795_s0 }
   0x2   :  { %25207 = sst [smem:[#allocation75_spill]] %s24796_s1 }
   0x3   :  { %25208 = sst [smem:[#allocation76_spill]] %s24797_s2 }
   0x4   :  { %25209 = sst [smem:[#allocation77_spill]] %s24798_s3 }
   0x5   :  { %25210 = sst [smem:[#allocation78_spill]] %s24799_s4 }
   0x6   :  { %25211 = sst [smem:[#allocation79_spill]] %s24800_s5 }
   0x7   :  { %25212 = sst [smem:[#allocation80_spill]] %s24801_s6 }
   0x8   :  { %25213 = sst [smem:[#allocation81_spill]] %s24802_s7 }
   0x9   :  { %25214 = sst [smem:[#allocation82_spill]] %s24803_s8 }
   0xa   :  { %25215 = sst [smem:[#allocation83_spill]] %s24805_s10 }
   0xb   :  { %25216 = sst [smem:[#allocation84_spill]] %s24807_s12 }
   0xc   :  { %25217 = sst [smem:[#allocation85_spill]] %s24809_s14 }
   0xd   :  { %25218 = sst [smem:[#allocation86_spill]] %s24810_s15 }
   0xe   :  { %25219 = sst [smem:[#allocation87_spill]] %s24811_s16 }
   0xf   :  { %25220 = sst [smem:[#allocation88_spill]] %s24812_s17 }
  0x10   :  { %25221 = sst [smem:[#allocation89_spill]] %s24815_s20 }
  0x11   :  { %25222 = sst [smem:[#allocation90_spill]] %s24816_s21 }
  0x12   :  { %25223 = sst [smem:[#allocation91_spill]] %s24817_s22 }
  0x13   :  { %25224 = sst [smem:[#allocation92_spill]] %s24818_s23 }
  0x14   :  { %25225 = sst [smem:[#allocation93_spill]] %s24819_s24 }
  0x15   :  { %29 = vsyncpa [#allocation3], 0 }
  0x16   :  { %31 = vsyncpa [#allocation3 + $0x1], 0 }
  0x17   :  { %32 = vsyncpa [#allocation6], 0 }
  0x18   :  { %34 = vsyncpa [#allocation6 + $0x1], 0 }
  0x19   :  { %35 = vsyncpa [#allocation9], 0 }
  0x1a   :  { %37 = vsyncpa [#allocation9 + $0x1], 0 }
  0x1b   :  { %38 = vsyncpa [#allocation12], 0 }
  0x1c   :  { %39 = vsyncpa [#allocation15], 0 }
  0x1d   :  { %40 = vsyncpa [#allocation18], 0 }
  0x1e   :  { %41 = vsyncpa [#allocation4], 0 }
  0x1f   :  { %43 = vsyncpa [#allocation4 + $0x1], 0  ;;  %s19843_s5 = smov 0   ;;  %s19845_s26 = smov 0  }
  0x20   :  { %s19847_s27 = smov 0   ;;  %s19849_s28 = smov 0  }
  0x21 LB: > { %25226 = sst [smem:[#allocation29_spill]] %s19680_s5  ;;  %s19694_s6 = smov [#allocation10]   ;;  %s19692_s28 = sphi %s19849_s28, %s25725_s28   ;;  %s19688_s27 = sphi %s19847_s27, %s25729_s27   ;;  %s19684_s26 = sphi %s19845_s26, %s25728_s26   ;;  %s19680_s5 = sphi %s19843_s5, %s25727_s5  }
  0x22   : > { %s616_s2 = sshll.u32 %s19694_s6, 4  ;;  %s19864_s29 = sadd.s32 4294967295, %s19692_s28   ;;  %s617_s2 = int_to_ptr.vmem [resolvable:$true] %s616_s2 }
  0x23   : > { %p16478_p0 = scmp.ge.s32.totalorder %s19692_s28, 1  ;;  %p24837_p1 = scmp.eq.s32.totalorder %s19864_s29, 0 }
  0x24   : > { %p604_p2 = scmp.lt.s32.totalorder %s19692_s28, 3  ;;  %s19695_s7 = smov [#allocation11]  }
  0x25   : > { %s632_s30 = sshll.u32 %s19695_s7, 4  ;;  %s19696_s25 = smov [#allocation14]   ;;  %s19882_s30 = int_to_ptr.vmem [resolvable:$true] %s632_s30 }
  0x26   : > { %p19869_p3 = pnand %p16478_p0, %p604_p2  ;;  %s19884_s8 = sshll.u32 %s19696_s25, 4  ;;  %s665_s8 = int_to_ptr.vmem [resolvable:$true] %s19884_s8 }
  0x27   : > { %s19321_s1 = scalar_lea.vmem %s617_s2, 6144  ;;  %p19329_p11 = scmp.lt.s32.totalorder %s617_s2, %s617_s2 }
  0x28   : > { %s25227_s0 = scalar_select %p19869_p3, 1, 0 }
  0x29   : > { %p19126_p5 = pneg %p19869_p3  ;;  %p19322_p8 = scmp.ne.s32.totalorder %s617_s2, %s19321_s1 }
  0x2a   : > { %p19330_p12 = scmp.lt.s32.totalorder %s19321_s1, %s19321_s1 }
  0x2b   : > { %p19878_p6 = pnand %p19126_p5, %p24837_p1 }
  0x2c   : > { %p19331_p13 = por %p19330_p12, %p19329_p11 }
  0x2d   : > { %s25228_s3 = scalar_select %p19878_p6, 1, 0 }
  0x2e   : > { %p19888_p7 = pneg %p19878_p6 }
  0x30   : > { %s25229_s4 = scalar_select %p19888_p7, 1, 0 }
  0x31   : > { %p19324_p9 = pnand %p19322_p8, %p19888_p7 }
  0x33   : > { %p19325_p10 = pneg %p19324_p9 }
  0x35   : > { %p19332_p0 = pnand %p19331_p13, %p19325_p10 }
  0x37   : > { %19335 = shalt.err (!%p19332_p0)
}
  0x38   : > { %s19697_s6 = smov 384   ;;  %s19698_s7 = smov 24  }
  0x39   : > { %s25230_s23 = sld [smem:[#allocation78_spill]]  ;;  %s19347_s22 = scalar_lea.vmem %s19882_s30, 2048 }
  0x3a   : > { %p19348_p2 = scmp.ne.s32.totalorder %s19882_s30, %s19347_s22  ;;  %p19355_p9 = scmp.lt.s32.totalorder %s19882_s30, %s19882_s30 }
  0x3b   : > { %p19356_p10 = scmp.lt.s32.totalorder %s19347_s22, %s19347_s22 }
  0x3c   : > { %p19350_p5 = pnand %p19348_p2, %p19888_p7 }
  0x3d   : > { %p19357_p11 = por %p19356_p10, %p19355_p9 }
  0x3e   : > { %p19351_p8 = pneg %p19350_p5 }
  0x3f   : > { %19129 = dma.hbm_to_vmem [thread:$0]  (!%p19878_p6), %s25230_s23, 6144, %s617_s2, [#allocation9], %s19697_s6, %s19697_s6, %s19698_s7  }
  0x40   : > { %p19358_p12 = pnand %p19357_p11, %p19351_p8 }
  0x42   : > { %19361 = shalt.err (!%p19358_p12)
}
  0x43   : > { %s24826_s1 = smov 128   ;;  %s24828_s17 = smov 8  }
  0x44   : > { %s25231_s2 = sld [smem:[#allocation80_spill]]  ;;  %s19373_s6 = scalar_lea.vmem %s665_s8, 4096 }
  0x45   : > { %p19374_p13 = scmp.ne.s32.totalorder %s665_s8, %s19373_s6  ;;  %p19381_p5 = scmp.lt.s32.totalorder %s665_s8, %s665_s8 }
  0x46   : > { %p19382_p8 = scmp.lt.s32.totalorder %s19373_s6, %s19373_s6 }
  0x47   : > { %p19376_p0 = pnand %p19374_p13, %p19888_p7 }
  0x48   : > { %p19383_p9 = por %p19382_p8, %p19381_p5 }
  0x49   : > { %p19377_p2 = pneg %p19376_p0 }
  0x4a   : > { %19132 = dma.hbm_to_vmem [thread:$0]  (!%p19878_p6), %s25231_s2, 2048, %s19882_s30, [#allocation12], %s24826_s1, %s24826_s1, %s24828_s17  }
  0x4b   : > { %p19384_p10 = pnand %p19383_p9, %p19377_p2 }
  0x4d   : > { %19387 = shalt.err (!%p19384_p10)
}
  0x4e   : > { %s19701_s22 = smov 256   ;;  %s19702_s7 = smov 16  }
  0x4f   : > { %s25232_s10 = sld [smem:[#allocation83_spill]]  ;;  %s19703_s30 = smov [#allocation17]  }
  0x50   : > { %s696_s23 = sshll.u32 %s19703_s30, 4  ;;  %s697_s23 = int_to_ptr.vmem [resolvable:$true] %s696_s23 }
  0x51   : > { %s19399_s24 = scalar_lea.vmem %s697_s23, 4096  ;;  %p19407_p0 = scmp.lt.s32.totalorder %s697_s23, %s697_s23 }
  0x52   : > { %p19400_p11 = scmp.ne.s32.totalorder %s697_s23, %s19399_s24  ;;  %p19408_p2 = scmp.lt.s32.totalorder %s19399_s24, %s19399_s24 }
  0x54   : > { %p19402_p12 = pnand %p19400_p11, %p19888_p7  ;;  %p19409_p5 = por %p19408_p2, %p19407_p0 }
  0x55   : > { %19138 = dma.hbm_to_vmem [thread:$0]  (!%p19878_p6), %s25232_s10, 4096, %s665_s8, [#allocation15], %s19701_s22, %s19701_s22, %s19702_s7  }
  0x56   : > { %p19403_p13 = pneg %p19402_p12 }
  0x58   : > { %p19410_p8 = pnand %p19409_p5, %p19403_p13 }
  0x5a   : > { %19413 = shalt.err (!%p19410_p8)
}
  0x5b   : > { %s25233_s14 = sld [smem:[#allocation85_spill]]  ;;  %s16477_s15 = sadd.s32 4294967294, %s19692_s28  }
  0x5c   : > { %s19931_s8 = sadd.s32 1, %s19692_s28   ;;  %s56_s30 = sadd.s32 1, %s19688_s27 }
  0x5d   : > { %25234 = sst [smem:[#allocation30_spill]] %s19931_s8  ;;  %s53_s25 = ssub.s32 %s19692_s28, %s19931_s8 }
  0x5e   : > { %p54_p9 = scmp.eq.s32.totalorder %s53_s25, 0  ;;  %p63_p10 = scmp.ne.s32.totalorder %s19688_s27, %s19684_s26 }
  0x5f   : > { %p64_p11 = scmp.eq.s32.totalorder %s19692_s28, 0  ;;  %p69_p12 = scmp.ne.s32.totalorder %s19684_s26, %s19680_s5 }
  0x60   : > { %s19942_s24 = scalar_select %p54_p9, %s19688_s27, %s56_s30  }
  0x61   : > { %19144 = dma.hbm_to_vmem [thread:$0]  (!%p19878_p6), %s25233_s14, 4096, %s697_s23, [#allocation18], %s19701_s22, %s19701_s22, %s19702_s7  }
  0x62   : > { %25235 = sst [smem:[#allocation31_spill]] %s19942_s24  ;;  %p65_p13 = por %p64_p11, %p63_p10 }
  0x63   : > { %p19946_p0 = por %p24837_p1, %p69_p12  ;;  %p591_p2 = scmp.eq.s32.totalorder %s19864_s29, 1 }
  0x64   : > { %p597_p5 = scmp.eq.s32.totalorder %s16477_s15, 1  ;;  %p19172_p8 = scmp.lt.s32.totalorder %s19692_s28, 2 }
  0x65   : > { %s25236_s22 = scalar_select %p19946_p0, 1, 0 }
  0x66   : > { %s24830_s7 = sand.u32 1, %s19688_s27   ;;  %p19953_p4 = por %p591_p2, %p63_p10 }
  0x67   : > { %p19957_p3 = por %p597_p5, %p69_p12  ;;  %s19963_s6 = sshll.u32 %s24830_s7, 4 }
  0x68   : > { %s25237_s23 = scalar_select %p19953_p4, 1, 0 }
  0x69   : > { %s25239_s2 = scalar_select %p19957_p3, 1, 0 }
  0x6a   : > { %25238 = sst [smem:[#allocation32_spill]] %s25237_s23  ;;  %s19966_s25 = sshll.u32 %s19692_s28, 8 }
  0x6b   : > { %25240 = sst [smem:[#allocation33_spill]] %s25239_s2  ;;  %p19968_p9 = pnand %p19172_p8, %p65_p13 }
  0x6c   : > { %s24838_s15 = sand.u32 1, %s19692_s28   ;;  %s25242_s10 = sld [smem:[#allocation75_spill]] }
  0x6d   : > { %s772_s7 = scalar_lea.vmem [#allocation5], %s19963_s6  ;;  %s19984_s8 = scalar_lea.sflag [#allocation6], %s24838_s15 }
  0x6e   : > { %s779_s24 = sshll.u32 %s772_s7, 4  ;;  %p19990_p11 = pneg %p19968_p9  ;;  %s19980_s24 = int_to_ptr.vmem [resolvable:$true] %s779_s24 }
  0x72   : > { %s19977_s14 = scalar_lea.hbm %s25242_s10, %s19966_s25  ;;  %s19419_s7 = scalar_lea.hbm %s25242_s10, 512 }
  0x73   : > { %s19414_s2 = scalar_lea.hbm %s19977_s14, 256  ;;  %p19420_p2 = scmp.lt.s32.totalorder %s19977_s14, %s25242_s10 }
  0x74   : > { %p19415_p10 = scmp.ne.s32.totalorder %s19977_s14, %s19414_s2  ;;  %p19421_p5 = scmp.lt.s32.totalorder %s19419_s7, %s19414_s2 }
  0x76   : > { %p19417_p12 = pnand %p19990_p11, %p19415_p10  ;;  %p19422_p8 = por %p19421_p5, %p19420_p2 }
  0x78   : > { %p19418_p13 = pneg %p19417_p12 }
  0x7a   : > { %p19423_p1 = pnand %p19422_p8, %p19418_p13 }
  0x7c   : > { %19426 = shalt.err (!%p19423_p1)
}
  0x7d   : > { %s19427_s15 = scalar_lea.vmem %s19980_s24, 256  ;;  %s19704_s20 = smov [#allocation5]  }
  0x7e   : > { %p19428_p3 = scmp.ne.s32.totalorder %s19980_s24, %s19427_s15  ;;  %s19432_s17 = sshll.u32 %s19704_s20, 4  ;;  %s19433_s17 = int_to_ptr.vmem [resolvable:$false] %s19432_s17 }
  0x7f   : > { %s19434_s1 = scalar_lea.vmem %s19433_s17, 512  ;;  %p19435_p4 = scmp.lt.s32.totalorder %s19980_s24, %s19433_s17 }
  0x80   : > { %p19430_p10 = pnand %p19428_p3, %p19990_p11  ;;  %p19436_p0 = scmp.lt.s32.totalorder %s19434_s1, %s19427_s15 }
  0x82   : > { %p19431_p12 = pneg %p19430_p10  ;;  %p19437_p6 = por %p19436_p0, %p19435_p4 }
  0x84   : > { %p19438_p7 = pnand %p19437_p6, %p19431_p12 }
  0x86   : > { %19441 = shalt.err (!%p19438_p7)
}
  0x87   : > { %s25244_s21 = smov 8   ;;  %s25245_s23 = smov 128  }
  0x88   : > { %19154 = dma.hbm_to_vmem [thread:$0]  (!%p19968_p9), %s19977_s14, 256, %s19980_s24, %s19984_s8, %s25245_s23, %s25245_s23, %s25244_s21  }
  0x89   : > { %s19705_s2 = smov [#allocation13]   ;;  %s19706_s20 = smov [#allocation16]  }
  0x8a   : > { %s648_s7 = sshll.u32 %s19705_s2, 4  ;;  %s680_s10 = sshll.u32 %s19706_s20, 4  ;;  %s649_s7 = int_to_ptr.vmem [resolvable:$true] %s648_s7  ;;  %s681_s10 = int_to_ptr.vmem [resolvable:$true] %s680_s10 }
  0x8b   : > { %s19453_s17 = scalar_lea.vmem %s649_s7, 2048  ;;  %p25246_p3 = scmp.ne.s32.totalorder %s25229_s4, 0 }
  0x8c   : > { %p19454_p1 = scmp.ne.s32.totalorder %s649_s7, %s19453_s17  ;;  %p19461_p7 = scmp.lt.s32.totalorder %s649_s7, %s649_s7 }
  0x8d   : > { %p19462_p0 = scmp.lt.s32.totalorder %s19453_s17, %s19453_s17 }
  0x8e   : > { %p19456_p4 = pnand %p19454_p1, %p25246_p3 }
  0x8f   : > { %p19463_p13 = por %p19462_p0, %p19461_p7 }
  0x90   : > { %p19457_p6 = pneg %p19456_p4 }
  0x92   : > { %p19464_p2 = pnand %p19463_p13, %p19457_p6 }
  0x94   : > { %19467 = shalt.err (!%p19464_p2)
}
  0x95   : > { %p25247_p5 = scmp.ne.s32.totalorder %s25228_s3, 0  ;;  %s25248_s15 = sld [smem:[#allocation82_spill]] }
  0x96   : > { %s19479_s1 = scalar_lea.vmem %s681_s10, 2048  ;;  %p19487_p1 = scmp.lt.s32.totalorder %s681_s10, %s681_s10 }
  0x97   : > { %p19480_p8 = scmp.ne.s32.totalorder %s681_s10, %s19479_s1  ;;  %p19488_p4 = scmp.lt.s32.totalorder %s19479_s1, %s19479_s1 }
  0x99   : > { %p19482_p10 = pnand %p19480_p8, %p25246_p3  ;;  %p19489_p6 = por %p19488_p4, %p19487_p1 }
  0x9b   : > { %19135 = dma.hbm_to_vmem [thread:$0]  (!%p25247_p5), %s25248_s15, 2048, %s649_s7, [#allocation12], %s25245_s23, %s25245_s23, %s25244_s21  }
  0x9c   : > { %p19483_p12 = pneg %p19482_p10 }
  0x9e   : > { %p19490_p7 = pnand %p19489_p6, %p19483_p12 }
  0xa0   : > { %19493 = shalt.err (!%p19490_p7)
}
  0xa1   : > { %s25249_s12 = sld [smem:[#allocation84_spill]]  ;;  %s19707_s7 = smov [#allocation19]  }
  0xa2   : > { %s712_s17 = sshll.u32 %s19707_s7, 4  ;;  %s713_s17 = int_to_ptr.vmem [resolvable:$true] %s712_s17 }
  0xa3   : > { %s19505_s14 = scalar_lea.vmem %s713_s17, 4096  ;;  %p19513_p8 = scmp.lt.s32.totalorder %s713_s17, %s713_s17 }
  0xa4   : > { %p19506_p0 = scmp.ne.s32.totalorder %s713_s17, %s19505_s14  ;;  %p19514_p10 = scmp.lt.s32.totalorder %s19505_s14, %s19505_s14 }
  0xa6   : > { %p19508_p13 = pnand %p19506_p0, %p25246_p3  ;;  %p19515_p12 = por %p19514_p10, %p19513_p8 }
  0xa7   : > { %19141 = dma.hbm_to_vmem [thread:$0]  (!%p25247_p5), %s25249_s12, 2048, %s681_s10, [#allocation15], %s25245_s23, %s25245_s23, %s25244_s21  }
  0xa8   : > { %p19509_p2 = pneg %p19508_p13 }
  0xaa   : > { %p19516_p1 = pnand %p19515_p12, %p19509_p2 }
  0xac   : > { %19519 = shalt.err (!%p19516_p1)
}
  0xad   : > { %s25250_s16 = sld [smem:[#allocation87_spill]]  ;;  %s751_s3 = scalar_lea.vmem [#allocation2], %s19963_s6 }
  0xae   : > { %s25251_s1 = sld [smem:[#allocation74_spill]]  ;;  %s758_s20 = sshll.u32 %s751_s3, 4  ;;  %s20053_s20 = int_to_ptr.vmem [resolvable:$true] %s758_s20 }
  0xaf   : > { %s25252_s7 = sand.u32 1, %s19688_s27  }
  0xb0   : > { %s748_s14 = scalar_lea.sflag [#allocation3], %s25252_s7 }
  0xb3   : > { %19147 = dma.hbm_to_vmem [thread:$0]  (!%p25247_p5), %s25250_s16, 4096, %s713_s17, [#allocation18], %s25245_s23, %s25245_s23, %s25244_s21  }
  0xb4   : > { %s20050_s2 = scalar_lea.hbm %s25251_s1, %s19966_s25  ;;  %s19525_s4 = scalar_lea.hbm %s25251_s1, 512 }
  0xb5   : > { %s19520_s24 = scalar_lea.hbm %s20050_s2, 256  ;;  %p19526_p5 = scmp.lt.s32.totalorder %s20050_s2, %s25251_s1 }
  0xb6   : > { %p19521_p3 = scmp.ne.s32.totalorder %s20050_s2, %s19520_s24  ;;  %p19527_p7 = scmp.lt.s32.totalorder %s19525_s4, %s19520_s24 }
  0xb8   : > { %p19523_p4 = pnand %p19521_p3, %p19990_p11  ;;  %p19528_p0 = por %p19527_p7, %p19526_p5 }
  0xba   : > { %p19524_p6 = pneg %p19523_p4 }
  0xbc   : > { %p19529_p13 = pnand %p19528_p0, %p19524_p6 }
  0xbe   : > { %19532 = shalt.err (!%p19529_p13)
}
  0xbf   : > { %s19533_s3 = scalar_lea.vmem %s20053_s20, 256  ;;  %s19708_s7 = smov [#allocation2]  }
  0xc0   : > { %p19534_p2 = scmp.ne.s32.totalorder %s20053_s20, %s19533_s3  ;;  %s19538_s17 = sshll.u32 %s19708_s7, 4  ;;  %s19539_s17 = int_to_ptr.vmem [resolvable:$false] %s19538_s17 }
  0xc1   : > { %s19540_s10 = scalar_lea.vmem %s19539_s17, 512  ;;  %p19541_p12 = scmp.lt.s32.totalorder %s20053_s20, %s19539_s17 }
  0xc2   : > { %p19536_p8 = pnand %p19534_p2, %p19990_p11  ;;  %p19542_p1 = scmp.lt.s32.totalorder %s19540_s10, %s19533_s3 }
  0xc4   : > { %p19537_p10 = pneg %p19536_p8  ;;  %p19543_p3 = por %p19542_p1, %p19541_p12 }
  0xc6   : > { %p19544_p4 = pnand %p19543_p3, %p19537_p10 }
  0xc8   : > { %19547 = shalt.err (!%p19544_p4)
}
  0xc9   : > { %19151 = dma.hbm_to_vmem [thread:$0]  (!%p19968_p9), %s20050_s2, 256, %s20053_s20, %s748_s14, %s25245_s23, %s25245_s23, %s25244_s21  }
  0xca   : > { %s25253_s4 = sld [smem:[#allocation76_spill]]  ;;  %s793_s3 = scalar_lea.vmem [#allocation7], %s19963_s6 }
  0xcb   : > { %s800_s7 = sshll.u32 %s793_s3, 4  ;;  %s801_s7 = int_to_ptr.vmem [resolvable:$true] %s800_s7 }
  0xd0   : > { %s20084_s15 = scalar_lea.hbm %s25253_s4, %s19966_s25  ;;  %s19553_s2 = scalar_lea.hbm %s25253_s4, 512 }
  0xd1   : > { %s19548_s17 = scalar_lea.hbm %s20084_s15, 256  ;;  %p19554_p0 = scmp.lt.s32.totalorder %s20084_s15, %s25253_s4 }
  0xd2   : > { %p19549_p6 = scmp.ne.s32.totalorder %s20084_s15, %s19548_s17  ;;  %p19555_p13 = scmp.lt.s32.totalorder %s19553_s2, %s19548_s17 }
  0xd4   : > { %p19551_p5 = pnand %p19549_p6, %p19990_p11  ;;  %p19556_p2 = por %p19555_p13, %p19554_p0 }
  0xd6   : > { %p19552_p7 = pneg %p19551_p5 }
  0xd8   : > { %p19557_p8 = pnand %p19556_p2, %p19552_p7 }
  0xda   : > { %19560 = shalt.err (!%p19557_p8)
}
  0xdb   : > { %s19561_s12 = scalar_lea.vmem %s801_s7, 256  ;;  %s19709_s24 = smov [#allocation7]  }
  0xdc   : > { %p19562_p10 = scmp.ne.s32.totalorder %s801_s7, %s19561_s12  ;;  %s19566_s3 = sshll.u32 %s19709_s24, 4  ;;  %s19567_s3 = int_to_ptr.vmem [resolvable:$false] %s19566_s3 }
  0xdd   : > { %s19568_s16 = scalar_lea.vmem %s19567_s3, 512  ;;  %p19569_p3 = scmp.lt.s32.totalorder %s801_s7, %s19567_s3 }
  0xde   : > { %p19564_p12 = pnand %p19562_p10, %p19990_p11  ;;  %p19570_p4 = scmp.lt.s32.totalorder %s19568_s16, %s19561_s12 }
  0xe0   : > { %p19565_p1 = pneg %p19564_p12  ;;  %p19571_p6 = por %p19570_p4, %p19569_p3 }
  0xe2   : > { %p19572_p5 = pnand %p19571_p6, %p19565_p1 }
  0xe4   : > { %19575 = shalt.err (!%p19572_p5)
}
  0xe5   : > { %19157 = dma.hbm_to_vmem [thread:$0]  (!%p19968_p9), %s20084_s15, 256, %s801_s7, %s19984_s8, %s25245_s23, %s25245_s23, %s25244_s21  }
  0xe6   : > { %s25254_s10 = sld [smem:[#allocation77_spill]]  ;;  %s814_s16 = scalar_lea.vmem [#allocation8], %s19963_s6 }
  0xe7   : > { %s821_s20 = sshll.u32 %s814_s16, 4  ;;  %s25255_s14 = sand.u32 1, %s19692_s28   ;;  %s20114_s20 = int_to_ptr.vmem [resolvable:$true] %s821_s20 }
  0xe8   : > { %s811_s12 = scalar_lea.sflag [#allocation9], %s25255_s14 }
  0xec   : > { %s20111_s2 = scalar_lea.hbm %s25254_s10, %s19966_s25  ;;  %s19581_s7 = scalar_lea.hbm %s25254_s10, 512 }
  0xed   : > { %s19576_s24 = scalar_lea.hbm %s20111_s2, 256  ;;  %p19582_p2 = scmp.lt.s32.totalorder %s20111_s2, %s25254_s10 }
  0xee   : > { %p19577_p7 = scmp.ne.s32.totalorder %s20111_s2, %s19576_s24  ;;  %p19583_p8 = scmp.lt.s32.totalorder %s19581_s7, %s19576_s24 }
  0xf0   : > { %p19579_p0 = pnand %p19577_p7, %p19990_p11  ;;  %p19584_p10 = por %p19583_p8, %p19582_p2 }
  0xf2   : > { %p19580_p13 = pneg %p19579_p0 }
  0xf4   : > { %p19585_p12 = pnand %p19584_p10, %p19580_p13 }
  0xf6   : > { %19588 = shalt.err (!%p19585_p12)
}
  0xf7   : > { %s19589_s6 = scalar_lea.vmem %s20114_s20, 256  ;;  %s19710_s1 = smov [#allocation8]  }
  0xf8   : > { %p19590_p1 = scmp.ne.s32.totalorder %s20114_s20, %s19589_s6  ;;  %s19594_s17 = sshll.u32 %s19710_s1, 4  ;;  %s19595_s17 = int_to_ptr.vmem [resolvable:$false] %s19594_s17 }
  0xf9   : > { %s19596_s16 = scalar_lea.vmem %s19595_s17, 512  ;;  %p19597_p6 = scmp.lt.s32.totalorder %s20114_s20, %s19595_s17 }
  0xfa   : > { %p19592_p3 = pnand %p19590_p1, %p19990_p11  ;;  %p19598_p5 = scmp.lt.s32.totalorder %s19596_s16, %s19589_s6 }
  0xfc   : > { %p19593_p4 = pneg %p19592_p3  ;;  %p19599_p7 = por %p19598_p5, %p19597_p6 }
  0xfe   : > { %p19600_p0 = pnand %p19599_p7, %p19593_p4 }
 0x100   : > { %19603 = shalt.err (!%p19600_p0)
}
 0x101   : > { %19160 = dma.hbm_to_vmem [thread:$0]  (!%p19968_p9), %s20111_s2, 256, %s20114_s20, %s811_s12, %s25245_s23, %s25245_s23, %s25244_s21  }
 0x102   : > { %p25256_p11 = scmp.ne.s32.totalorder %s25227_s0, 0 }
 0x104   : > { %833 = sbr.rel (%p25256_p11) target bundleno = 8196 (0x2004), region = 116 }
 0x109   : > { %s20144_s5 = sand.u32 1, %s19684_s26   ;;  %p25257_p13 = scmp.ne.s32.totalorder %s25236_s22, 0 }
 0x10a   : > { %s20147_s14 = sshll.u32 %s20144_s5, 4  ;;  %s836_s24 = scalar_lea.sflag [#allocation3], %s20144_s5 }
 0x10b   : > { %s20151_s30 = scalar_lea.vmem [#allocation2], %s20147_s14 }
 0x10c   : > { %19647 = dma.done.wait (%p25257_p13), %s836_s24, 256  }
 0x10d   : > { %19649 = vsyncadd (%p25257_p13), %s836_s24, 4294967040  ;;  %s844_s0 = sand.u32 1, %s19864_s29   ;;  %s848_s23 = scalar_lea.vmem [#allocation5], %s20147_s14 }
 0x10e   : > { %s845_s21 = scalar_lea.sflag [#allocation6], %s844_s0 }
 0x10f   : > { %19651 = dma.done.wait (%p25257_p13), %s845_s21, 512  }
 0x110   : > { %19653 = vsyncadd (%p25257_p13), %s845_s21, 4294966784  ;;  %s857_s2 = scalar_lea.vmem [#allocation7], %s20147_s14  ;;  %s863_s20 = scalar_lea.sflag [#allocation9], %s844_s0 }
 0x111   : > { %s866_s12 = scalar_lea.vmem [#allocation8], %s20147_s14 }
 0x112   : > { %19655 = dma.done.wait (%p25257_p13), %s863_s20, 256  }
 0x113   : > { %19657 = vsyncadd (%p25257_p13), %s863_s20, 4294967040  ;;  %p25258_p9 = scmp.eq.s32.totalorder %s19864_s29, 0 }
 0x115   : > { %19659 = dma.done.wait (%p25258_p9), [#allocation9], 6144   ;;  %p25259_p2 = pmov %p25258_p9 }
 0x117   : > { %19661 = vsyncadd (%p25259_p2), [#allocation9], 4294961152  ;;  %p25260_p8 = pmov %p25259_p2 }
 0x118   : > { %p25261_p10 = pmov %p25259_p2 }
 0x119   : > { %19663 = dma.done.wait (%p25260_p8), [#allocation12], 4096  }
 0x11a   : > { %19665 = vsyncadd (%p25261_p10), [#allocation12], 4294963200  ;;  %p25262_p12 = pmov %p25259_p2 }
 0x11b   : > { %p25263_p1 = pmov %p25259_p2 }
 0x11c   : > { %19667 = dma.done.wait (%p25262_p12), [#allocation15], 6144  }
 0x11d   : > { %19669 = vsyncadd (%p25263_p1), [#allocation15], 4294961152  ;;  %p25264_p3 = pmov %p25263_p1 }
 0x11e   : > { %p25265_p4 = pmov %p25263_p1 }
 0x11f   : > { %19671 = dma.done.wait (%p25264_p3), [#allocation18], 8192  }
 0x120   : > { %19673 = vsyncadd (%p25265_p4), [#allocation18], 4294959104  ;;  %v24861_v0 = vmov 0.0   ;;  %v1028_v1 = vld [vmem:[#allocation10 + $0x170] sm:$0xff]  ;;  %v1027_v2 = vld [vmem:[#allocation10 + $0x168] sm:$0xff]  ;;  %s25359_s15 = sld [smem:[#allocation79_spill]] }
 0x121   : > { %1143 = vmatprep.mubr.f32.mxu0 %v24861_v0  ;;  %1390 = vmatprep.mubr.f32.mxu1 %v24861_v0  ;;  %v1025_v3 = vld [vmem:[#allocation10 + $0x158] sm:$0xff]  ;;  %v20187_v4 = vand.u32 4294901760, %v1028_v1  ;;  %v20189_v5 = vand.u32 4294901760, %v1027_v2  ;;  %v1024_v7 = vld [vmem:[#allocation10 + $0x150] sm:$0xff]  ;;  %v1022_v8 = vld [vmem:[#allocation10 + $0x140] sm:$0xff]  ;;  %vm2652_vm0 = vcmask 261120  }
 0x122   : > { %v20191_v6 = vand.u32 4294901760, %v1025_v3  ;;  %v1021_v9 = vld [vmem:[#allocation10 + $0x138] sm:$0xff]  ;;  %v20193_v10 = vand.u32 4294901760, %v1024_v7  ;;  %v20195_v11 = vand.u32 4294901760, %v1022_v8  ;;  %v1019_v13 = vld [vmem:[#allocation10 + $0x128] sm:$0xff]  ;;  %v1018_v14 = vld [vmem:[#allocation10 + $0x120] sm:$0xff] }
 0x123   : > { %v20197_v12 = vand.u32 4294901760, %v1021_v9  ;;  %v1016_v15 = vld [vmem:[#allocation10 + $0x110] sm:$0xff]  ;;  %1048 = vmatprep.subr.mxu0 %v20187_v4  ;;  %v20200_v16 = vand.u32 4294901760, %v1019_v13  ;;  %v20202_v17 = vand.u32 4294901760, %v1018_v14  ;;  %v20207_v19 = vsub.f32 %v1028_v1, %v20187_v4  ;;  %v20209_v20 = vld [vmem:[#allocation10 + $0x108] sm:$0xff]  ;;  %v20211_v21 = vld [vmem:[#allocation10 + $0xf8] sm:$0xff] }
 0x124   : > { %v20204_v18 = vand.u32 4294901760, %v1016_v15  ;;  %v20213_v22 = vld [vmem:[#allocation10 + $0xf0] sm:$0xff]  ;;  %1050 = vmatpush1.msra.mxu0 %v20189_v5  ;;  %v20217_v23 = vand.u32 4294901760, %v20209_v20  ;;  %v20220_v24 = vsub.f32 %v1027_v2, %v20189_v5  ;;  %v20223_v25 = vand.u32 4294901760, %v20211_v21  ;;  %v20228_v27 = vld [vmem:[#allocation10 + $0xe0] sm:$0xff]  ;;  %v20230_v28 = vld [vmem:[#allocation10 + $0xd8] sm:$0xff] }
 0x125   : > { %v20226_v26 = vsub.f32 %v1025_v3, %v20191_v6  ;;  %v20232_v29 = vld [vmem:[#allocation10 + $0xc8] sm:$0xff]  ;;  %1052 = vmatprep.subr.mxu0 %v20191_v6  ;;  %v24859_v30 = vand.u32 4294901760, %v20207_v19  ;;  %v20237_v31 = vand.u32 4294901760, %v20213_v22  ;;  %v20240_v32 = vsub.f32 %v1024_v7, %v20193_v10  ;;  %v20254_v38 = vld [vmem:[#allocation10 + $0xc0] sm:$0xff]  ;;  %v20278_v47 = vld [vmem:[#allocation10 + $0xb0] sm:$0xff]  ;;  %s19712_s7 = smov 96  }
 0x126   : > { %v20243_v33 = vand.u32 4294901760, %v20228_v27  ;;  %1054 = vmatpush1.msra.mxu0 %v20193_v10  ;;  %v24858_v34 = vand.u32 4294901760, %v20220_v24  ;;  %v20249_v36 = vsub.f32 %v1022_v8, %v20195_v11  ;;  %v20252_v37 = vand.u32 4294901760, %v20230_v28  ;;  %v20288_v52 = vld [vmem:[#allocation10 + $0xa8] sm:$0xff]  ;;  %v20295_v57 = vld [vmem:[#allocation10 + $0x98] sm:$0xff]  ;;  %v20307_v62 = vld [vmem:[#allocation10 + $0x90] sm:$0xff] }
 0x127   : > { %25266 = vst [vmem:[#allocation34_spill] sm:$0xff] %v20237_v31  ;;  %v24856_v35 = vand.u32 4294901760, %v20226_v26  ;;  %1056 = vmatprep.subr.mxu0 %v20195_v11  ;;  %v1169_v39 = vsub.f32 %v20207_v19, %v24859_v30  ;;  %v24854_v40 = vand.u32 4294901760, %v20240_v32  ;;  %v20262_v41 = vsub.f32 %v1021_v9, %v20197_v12  ;;  %v20319_v7 = vld [vmem:[#allocation10 + $0x80] sm:$0xff]  ;;  %s19713_s25 = smov 64   ;;  %s19714_s3 = smov 32  }
 0x128   : > { %25267 = vst [vmem:[#allocation35_spill] sm:$0xff] %v20243_v33  ;;  %25268 = vst [vmem:[#allocation36_spill] sm:$0xff] %v20252_v37  ;;  %v20265_v42 = vand.u32 4294901760, %v20232_v29  ;;  %1058 = vmatpush1.msra.mxu0 %v20197_v12  ;;  %v1175_v43 = vsub.f32 %v20220_v24, %v24858_v34  ;;  %v24853_v45 = vand.u32 4294901760, %v20249_v36  ;;  %v20276_v46 = vsub.f32 %v1019_v13, %v20200_v16  ;;  %v20420_v34 = vld [vmem:[#allocation10 + $0x30] sm:$0xff]  ;;  %s25387_s17 = sld [smem:[#allocation81_spill]] }
 0x129   : > { %v1181_v44 = vsub.f32 %v20226_v26, %v24856_v35  ;;  %1060 = vmatprep.subr.mxu0 %v20200_v16  ;;  %v1170_v48 = vand.u32 4294901760, %v1169_v39  ;;  %v1187_v49 = vsub.f32 %v20240_v32, %v24854_v40  ;;  %v24851_v50 = vand.u32 4294901760, %v20262_v41  ;;  %v20410_v35 = vld [vmem:[#allocation10 + $0x38] sm:$0xff]  ;;  %s25537_s6 = sld [smem:[#allocation90_spill]] }
 0x12a   : > { %25269 = vst [vmem:[#allocation37_spill] sm:$0xff] %v20265_v42  ;;  %v20286_v51 = vand.u32 4294901760, %v20254_v38  ;;  %1062 = vmatpush1.msra.mxu0 %v20202_v17  ;;  %v1176_v53 = vand.u32 4294901760, %v1175_v43  ;;  %v1193_v55 = vsub.f32 %v20249_v36, %v24853_v45  ;;  %v24849_v56 = vand.u32 4294901760, %v20276_v46  ;;  %v20397_v45 = vld [vmem:[#allocation10 + $0x48] sm:$0xff]  ;;  %s25633_s16 = sld [smem:[#allocation86_spill]] }
 0x12b   : > { %v1182_v54 = vand.u32 4294901760, %v1181_v44  ;;  %1064 = vmatprep.subr.mxu0 %v20204_v18  ;;  %1171 = vmatprep.subr.mxu1 %v1170_v48  ;;  %v1188_v58 = vand.u32 4294901760, %v1187_v49  ;;  %v1199_v59 = vsub.f32 %v20262_v41, %v24851_v50  ;;  %v20302_v60 = vsub.f32 %v1018_v14, %v20202_v17  ;;  %s25713_s0 = sld [smem:[#allocation88_spill]] }
 0x12c   : > { %25270 = vst [vmem:[#allocation38_spill] sm:$0xff] %v20286_v51  ;;  %v20305_v61 = vand.u32 4294901760, %v20278_v47  ;;  %1066 = vmatpush1.msra.mxu0 %v20217_v23  ;;  %1177 = vmatpush1.msra.mxu1 %v1176_v53  ;;  %v1194_v63 = vand.u32 4294901760, %v1193_v55  ;;  %v1205_v1 = vsub.f32 %v20276_v46, %v24849_v56  ;;  %v20314_v2 = vsub.f32 %v1016_v15, %v20204_v18  ;;  %v20330_v15 = vld [vmem:[#allocation10 + $0x78] sm:$0xff]  ;;  %s25717_s22 = sld [smem:[#allocation92_spill]] }
 0x12d   : > { %v20317_v3 = vand.u32 4294901760, %v20288_v52  ;;  %1068 = vmatprep.subr.mxu0 %v20223_v25  ;;  %1183 = vmatprep.subr.mxu1 %v1182_v54  ;;  %v1200_v8 = vand.u32 4294901760, %v1199_v59  ;;  %v24848_v9 = vand.u32 4294901760, %v20302_v60  ;;  %v20325_v13 = vsub.f32 %v20209_v20, %v20217_v23  ;;  %s25718_s8 = sld [smem:[#allocation32_spill]] }
 0x12e   : > { %25271 = vst [vmem:[#allocation39_spill] sm:$0xff] %v20305_v61  ;;  %v20328_v14 = vand.u32 4294901760, %v20295_v57  ;;  %1070 = vmatpush1.msra.mxu0 %v20237_v31  ;;  %1189 = vmatpush1.msra.mxu1 %v1188_v58  ;;  %v1206_v39 = vand.u32 4294901760, %v1205_v1  ;;  %v24847_v43 = vand.u32 4294901760, %v20314_v2  ;;  %v20336_v44 = vsub.f32 %v20211_v21, %v20223_v25  ;;  %v20353_v21 = vld [vmem:[#allocation10 + $0x68] sm:$0xff]  ;;  %s25719_s1 = sld [smem:[#allocation93_spill]] }
 0x12f   : > { %25272 = vst [vmem:[#allocation40_spill] sm:$0xff] %v20317_v3  ;;  %v20339_v48 = vand.u32 4294901760, %v20307_v62  ;;  %1072 = vmatprep.subr.mxu0 %v20243_v33  ;;  %1195 = vmatprep.subr.mxu1 %v1194_v63  ;;  %v1211_v20 = vsub.f32 %v20302_v60, %v24848_v9  ;;  %v24850_v49 = vand.u32 4294901760, %v20325_v13  ;;  %v20348_v53 = vsub.f32 %v20213_v22, %v20237_v31  ;;  %v20376_v9 = vld [vmem:[#allocation10 + $0x60] sm:$0xff] }
 0x130   : > { %25273 = vst [vmem:[#allocation41_spill] sm:$0xff] %v20328_v14  ;;  %v20351_v54 = vand.u32 4294901760, %v20319_v7  ;;  %1074 = vmatpush1.msra.mxu0 %v20252_v37  ;;  %1201 = vmatpush1.msra.mxu1 %v1200_v8  ;;  %v1217_v55 = vsub.f32 %v20314_v2, %v24847_v43  ;;  %v24852_v58 = vand.u32 4294901760, %v20336_v44  ;;  %v20362_v59 = vsub.f32 %v20228_v27, %v20243_v33  ;;  %v974_v33 = vld [vmem:[%s20151_s30] sm:$0xff] }
 0x131   : > { %25274 = vst [vmem:[#allocation42_spill] sm:$0xff] %v20339_v48  ;;  %v20365_v22 = vand.u32 4294901760, %v20330_v15  ;;  %1076 = vmatprep.subr.mxu0 %v20265_v42  ;;  %1207 = vmatprep.subr.mxu1 %v1206_v39  ;;  %v1212_v63 = vand.u32 4294901760, %v1211_v20  ;;  %v1223_v1 = vsub.f32 %v20325_v13, %v24850_v49  ;;  %v24855_v8 = vand.u32 4294901760, %v20348_v53  ;;  %v20386_v49 = vld [vmem:[#allocation10 + $0x50] sm:$0xff] }
 0x132   : > { %25275 = vst [vmem:[#allocation43_spill] sm:$0xff] %v20351_v54  ;;  %v20374_v43 = vsub.f32 %v20230_v28, %v20252_v37  ;;  %1078 = vmatpush1.msra.mxu0 %v20286_v51  ;;  %v1218_v27 = vand.u32 4294901760, %v1217_v55  ;;  %v1229_v39 = vsub.f32 %v20336_v44, %v24852_v58  ;;  %v24857_v20 = vand.u32 4294901760, %v20362_v59 }
 0x133   : > { %25276 = vst [vmem:[#allocation44_spill] sm:$0xff] %v20365_v22  ;;  %v20384_v56 = vand.u32 4294901760, %v20353_v21  ;;  %1213 = vmatpush1.msra.mxu1 %v1212_v63  ;;  %1080 = vmatprep.subr.mxu0 %v20305_v61  ;;  %v1224_v28 = vand.u32 4294901760, %v1223_v1  ;;  %v1235_v50 = vsub.f32 %v20348_v53, %v24855_v8  ;;  %v20395_v58 = vsub.f32 %v20232_v29, %v20265_v42  ;;  %p25720_p5 = scmp.ne.s32.totalorder %s25718_s8, 0 }
 0x134   : > { %v24860_v55 = vand.u32 4294901760, %v20374_v43  ;;  %1219 = vmatprep.subr.mxu1 %v1218_v27  ;;  %1082 = vmatpush1.msra.mxu0 %v20317_v3  ;;  %v1230_v40 = vand.u32 4294901760, %v1229_v39  ;;  %v1241_v63 = vsub.f32 %v20362_v59, %v24857_v20  ;;  %v20404_v1 = vand.u32 4294901760, %v20376_v9 }
 0x135   : > { %25277 = vst [vmem:[#allocation45_spill] sm:$0xff] %v20384_v56  ;;  %v20408_v8 = vsub.f32 %v20254_v38, %v20286_v51  ;;  %1225 = vmatpush1.msra.mxu1 %v1224_v28  ;;  %1084 = vmatprep.subr.mxu0 %v20328_v14  ;;  %v1236_v29 = vand.u32 4294901760, %v1235_v50  ;;  %v24865_v39 = vand.u32 4294901760, %v20395_v58  ;;  %v20418_v20 = vand.u32 4294901760, %v20386_v49 }
 0x136   : > { %v1247_v27 = vsub.f32 %v20374_v43, %v24860_v55  ;;  %1231 = vmatprep.subr.mxu1 %v1230_v40  ;;  %1086 = vmatpush1.msra.mxu0 %v20339_v48  ;;  %v1242_v38 = vand.u32 4294901760, %v1241_v63  ;;  %v20426_v50 = vsub.f32 %v20278_v47, %v20305_v61  ;;  %v20429_v30 = vand.u32 4294901760, %v20397_v45  ;;  %v20431_v55 = vld [vmem:[#allocation10 + $0x20] sm:$0xff] }
 0x137   : > { %25278 = vst [vmem:[#allocation46_spill] sm:$0xff] %v20418_v20  ;;  %v24868_v28 = vand.u32 4294901760, %v20408_v8  ;;  %1237 = vmatpush1.msra.mxu1 %v1236_v29  ;;  %1088 = vmatprep.subr.mxu0 %v20351_v54  ;;  %v1253_v40 = vsub.f32 %v20395_v58, %v24865_v39  ;;  %v20439_v63 = vsub.f32 %v20288_v52, %v20317_v3  ;;  %v20442_v47 = vand.u32 4294901760, %v20410_v35  ;;  %v20456_v52 = vld [vmem:[#allocation10 + $0x18] sm:$0xff] }
 0x138   : > { %25279 = vst [vmem:[#allocation47_spill] sm:$0xff] %v20429_v30  ;;  %v1248_v0 = vand.u32 4294901760, %v1247_v27  ;;  %1243 = vmatprep.subr.mxu1 %v1242_v38  ;;  %1090 = vmatpush1.msra.mxu0 %v20365_v22  ;;  %v20451_v61 = vsub.f32 %v20295_v57, %v20328_v14  ;;  %v20454_v39 = vand.u32 4294901760, %v20420_v34  ;;  %v20465_v27 = vand.u32 4294901760, %v20431_v55  ;;  %v20467_v57 = vld [vmem:[#allocation10 + $0x8] sm:$0xff] }
 0x139   : > { %25280 = vst [vmem:[#allocation48_spill] sm:$0xff] %v20442_v47  ;;  %v1259_v29 = vsub.f32 %v20408_v8, %v24868_v28  ;;  %1092 = vmatprep.subr.mxu0 %v20384_v56  ;;  %v1254_v38 = vand.u32 4294901760, %v1253_v40  ;;  %v20462_v28 = vsub.f32 %v20307_v62, %v20339_v48  ;;  %v25283_v51 = vand.u32 4294901760, %v20426_v50  ;;  %v20490_v40 = vld [vmem:[#allocation10] sm:$0xff] }
 0x13a   : > { %25281 = vst [vmem:[#allocation49_spill] sm:$0xff] %v20454_v39  ;;  %1249 = vmatpush1.msra.mxu1 %v1248_v0  ;;  %25282 = vst [vmem:[#allocation50_spill] sm:$0xff] %v20465_v27  ;;  %1094 = vmatpush1.msra.mxu0 %v20404_v1  ;;  %v20476_v3 = vsub.f32 %v20319_v7, %v20351_v54  ;;  %v25284_v62 = vand.u32 4294901760, %v20439_v63  ;;  %v20484_v42 = vand.u32 4294901760, %v20456_v52  ;;  %v20515_v31 = vand.u32 4294901760, %v20490_v40 }
 0x13b   : > { %v1260_v14 = vand.u32 4294901760, %v1259_v29  ;;  %v1265_v0 = vsub.f32 %v20426_v50, %v25283_v51  ;;  %1255 = vmatprep.subr.mxu1 %v1254_v38  ;;  %1096 = vmatprep.subr.mxu0 %v20418_v20  ;;  %v20488_v51 = vsub.f32 %v20330_v15, %v20365_v22  ;;  %v25285_v38 = vand.u32 4294901760, %v20451_v61 }
 0x13c   : > { %v1271_v48 = vsub.f32 %v20439_v63, %v25284_v62  ;;  %1098 = vmatpush1.msra.mxu0 %v20429_v30  ;;  %v24887_v54 = vand.u32 4294901760, %v20476_v3  ;;  %v20498_v29 = vand.u32 4294901760, %v20467_v57  ;;  %v25286_v15 = vand.u32 4294901760, %v20462_v28 }
 0x13d   : > { %1261 = vmatpush1.msra.mxu1 %v1260_v14  ;;  %v1266_v7 = vand.u32 4294901760, %v1265_v0  ;;  %v1277_v62 = vsub.f32 %v20451_v61, %v25285_v38  ;;  %1100 = vmatprep.subr.mxu0 %v20442_v47  ;;  %v20507_v0 = vsub.f32 %v20353_v21, %v20384_v56  ;;  %v25287_v21 = vand.u32 4294901760, %v20488_v51 }
 0x13e   : > { %v1272_v37 = vand.u32 4294901760, %v1271_v48  ;;  %v1283_v22 = vsub.f32 %v20462_v28, %v25286_v15  ;;  %1102 = vmatpush1.msra.mxu0 %v20454_v39  ;;  %v1289_v48 = vsub.f32 %v20476_v3, %v24887_v54  ;;  %v20519_v15 = vsub.f32 %v20376_v9, %v20404_v1 }
 0x13f   : > { %1267 = vmatprep.subr.mxu1 %v1266_v7  ;;  %v1278_v38 = vand.u32 4294901760, %v1277_v62  ;;  %1104 = vmatprep.subr.mxu0 %v20465_v27  ;;  %v1295_v7 = vsub.f32 %v20488_v51, %v25287_v21  ;;  %v24890_v62 = vand.u32 4294901760, %v20507_v0  ;;  %v20528_v54 = vsub.f32 %v20386_v49, %v20418_v20 }
 0x140   : > { %1273 = vmatpush1.msra.mxu1 %v1272_v37  ;;  %v1284_v14 = vand.u32 4294901760, %v1283_v22  ;;  %v1290_v56 = vand.u32 4294901760, %v1289_v48  ;;  %1106 = vmatpush1.msra.mxu0 %v20484_v42  ;;  %v24893_v9 = vand.u32 4294901760, %v20519_v15  ;;  %v20532_v37 = vand.u32 4294901760, %v974_v33 }
 0x141   : > { %1279 = vmatprep.subr.mxu1 %v1278_v38  ;;  %v20536_v22 = vsub.f32 %v20397_v45, %v20429_v30  ;;  %v1296_v21 = vand.u32 4294901760, %v1295_v7  ;;  %1108 = vmatprep.subr.mxu0 %v20498_v29  ;;  %v1301_v49 = vsub.f32 %v20507_v0, %v24890_v62  ;;  %v20545_v48 = vsub.f32 %v20410_v35, %v20442_v47 }
 0x142   : > { %25288 = vst [vmem:[#allocation51_spill] sm:$0xff] %v20532_v37  ;;  %1285 = vmatpush1.msra.mxu1 %v1284_v14  ;;  %1110 = vmatpush1.msra.mxu0 %v20515_v31  ;;  %v1307_v45 = vsub.f32 %v20519_v15, %v24893_v9  ;;  %v20552_v14 = vsub.f32 %v974_v33, %v20532_v37  ;;  %v25290_v35 = vand.u32 4294901760, %v20528_v54  ;;  %vm3173_vm1 = vcmask 130048  }
 0x143   : > { %1291 = vmatprep.subr.mxu1 %v1290_v56  ;;  %v20557_v62 = vsub.f32 %v20420_v34, %v20454_v39  ;;  %v1302_v38 = vand.u32 4294901760, %v1301_v49  ;;  %1407 = vmatprep.subr.mxu0 %v20207_v19  ;;  %v24900_v47 = vand.u32 4294901760, %v20545_v48  ;;  %v20566_v33 = vsub.f32 %v20431_v55, %v20465_v27 }
 0x144   : > { %25289 = vst [vmem:[#allocation52_spill] sm:$0xff] %v20552_v14  ;;  %1297 = vmatpush1.msra.mxu1 %v1296_v21  ;;  %v1313_v56 = vsub.f32 %v20528_v54, %v25290_v35  ;;  %v1308_v9 = vand.u32 4294901760, %v1307_v45  ;;  %v20569_v7 = vand.u32 4294901760, %v20552_v14  ;;  %v25292_v34 = vand.u32 4294901760, %v20536_v22 }
 0x145   : > { %v24901_v49 = vand.u32 4294901760, %v20557_v62  ;;  %1303 = vmatprep.subr.mxu1 %v1302_v38  ;;  %v1325_v39 = vsub.f32 %v20545_v48, %v24900_v47  ;;  %v24907_v30 = vand.u32 4294901760, %v20566_v33  ;;  %v20581_v55 = vsub.f32 %v20456_v52, %v20484_v42 }
 0x146   : > { %25291 = vst [vmem:[#allocation53_spill] sm:$0xff] %v20569_v7  ;;  %v1319_v21 = vsub.f32 %v20536_v22, %v25292_v34  ;;  %v1314_v35 = vand.u32 4294901760, %v1313_v56  ;;  %1309 = vmatpush1.msra.mxu1 %v1308_v9  ;;  %v1147_v45 = vsub.f32 %v20552_v14, %v20569_v7  ;;  %v20590_v56 = vsub.f32 %v20467_v57, %v20498_v29 }
 0x147   : > { %25293 = vst [vmem:[#allocation54_spill] sm:$0xff] %v20581_v55  ;;  %v1331_v38 = vsub.f32 %v20557_v62, %v24901_v49  ;;  %v1326_v34 = vand.u32 4294901760, %v1325_v39  ;;  %v1337_v52 = vsub.f32 %v20566_v33, %v24907_v30  ;;  %v24906_v9 = vand.u32 4294901760, %v20581_v55 }
 0x148   : > { %v1320_v27 = vand.u32 4294901760, %v1319_v21  ;;  %1315 = vmatprep.subr.mxu1 %v1314_v35  ;;  %v20598_v47 = vsub.f32 %v20490_v40, %v20515_v31  ;;  %v20600_v21 = vand.u32 4294901760, %v1147_v45  ;;  %v24905_v7 = vand.u32 4294901760, %v20590_v56 }
 0x149   : > { %v1332_v49 = vand.u32 4294901760, %v1331_v38  ;;  %v1338_v57 = vand.u32 4294901760, %v1337_v52  ;;  %v1343_v39 = vsub.f32 %v20581_v55, %v24906_v9  ;;  %v975_v52 = vld [vmem:[%s20151_s30 + $0x8] sm:$0xff]  ;;  %v25303_v9 = vld [vmem:[#allocation40_spill] sm:$0xff]  ;;  %vm6906_vm2 = vcmask 523264  }
 0x14a   : > { %25294 = vst [vmem:[#allocation55_spill] sm:$0xff] %v20598_v47  ;;  %25295 = vst [vmem:[#allocation56_spill] sm:$0xff] %v20600_v21  ;;  %1321 = vmatpush1.msra.mxu1 %v1320_v27  ;;  %v24904_v35 = vand.u32 4294901760, %v20598_v47  ;;  %1149 = vmatmul.mubr.f32.vlgmr.msra.gmra.mxu0 %v20600_v21  ;;  %v1349_v40 = vsub.f32 %v20590_v56, %v24905_v7  ;;  %v25302_v7 = vld [vmem:[#allocation39_spill] sm:$0xff]  ;;  %v25305_v21 = vld [vmem:[#allocation41_spill] sm:$0xff]  ;;  %vm6909_vm3 = vcmask 785408  }
 0x14b   : > { %1327 = vmatprep.subr.mxu1 %v1326_v34  ;;  %1410 = vmatpush1.msra.mxu0 %v20220_v24  ;;  %v1344_v27 = vand.u32 4294901760, %v1343_v39  ;;  %v25296_v34 = vmov 0.0  }
 0x14c   : > { %1333 = vmatpush1.msra.mxu1 %v1332_v49  ;;  %v1355_v45 = vsub.f32 %v20598_v47, %v24904_v35  ;;  %1413 = vmatprep.subr.mxu0 %v20226_v26  ;;  %v1350_v38 = vand.u32 4294901760, %v1349_v40  ;;  %v25301_v35 = vld [vmem:[#allocation38_spill] sm:$0xff] }
 0x14d   : > { %1339 = vmatprep.subr.mxu1 %v1338_v57  ;;  %1154 = vmatprep.mubr.f32.mxu0 %v25296_v34  ;;  %v20627_v57 = vand.u32 4294901760, %v975_v52 }
 0x14e   : > { %1416 = vmatpush1.msra.mxu0 %v20240_v32  ;;  %1345 = vmatpush1.msra.mxu1 %v1344_v27  ;;  %v1356_v49 = vand.u32 4294901760, %v1355_v45  ;;  %v25297_v27 = vld [vmem:[#allocation34_spill] sm:$0xff]  ;;  %v25298_v45 = vld [vmem:[#allocation35_spill] sm:$0xff] }
 0x14f   : > { %1419 = vmatprep.subr.mxu0 %v20249_v36  ;;  %1351 = vmatprep.subr.mxu1 %v1350_v38  ;;  %v20638_v39 = vsub.f32 %v975_v52, %v20627_v57  ;;  %v25299_v38 = vld [vmem:[#allocation36_spill] sm:$0xff]  ;;  %v25300_v52 = vld [vmem:[#allocation37_spill] sm:$0xff] }
 0x150   : > { %1422 = vmatpush1.msra.mxu0 %v20262_v41  ;;  %1357 = vmatpush1.msra.mxu1 %v1356_v49 }
 0x151   : > { %1425 = vmatprep.subr.mxu0 %v20276_v46  ;;  %1392 = vmatmul.mubr.f32.vlgmr.msra.gmra.mxu1 %v20532_v37  ;;  %v20649_v40 = vand.u32 4294901760, %v20638_v39  ;;  %v25306_v37 = vld [vmem:[#allocation42_spill] sm:$0xff] }
 0x152   : > { %1428 = vmatpush1.msra.mxu0 %v20302_v60  ;;  %1551 = vmatprep.subr.mxu1 %v20187_v4 }
 0x153   : > { %1431 = vmatprep.subr.mxu0 %v20314_v2  ;;  %1553 = vmatpush1.msra.mxu1 %v20189_v5  ;;  %v1158_v49 = vsub.f32 %v20638_v39, %v20649_v40 }
 0x154   : > { %1434 = vmatpush1.msra.mxu0 %v20325_v13  ;;  %1555 = vmatprep.subr.mxu1 %v20191_v6 }
 0x155   : > { %1437 = vmatprep.subr.mxu0 %v20336_v44  ;;  %1557 = vmatpush1.msra.mxu1 %v20193_v10  ;;  %v20669_v30 = vand.u32 4294901760, %v1158_v49  ;;  %v25308_v49 = vld [vmem:[#allocation44_spill] sm:$0xff] }
 0x156   : > { %1440 = vmatpush1.msra.mxu0 %v20348_v53  ;;  %1559 = vmatprep.subr.mxu1 %v20195_v11 }
 0x157   : > { %1443 = vmatprep.subr.mxu0 %v20362_v59  ;;  %1561 = vmatpush1.msra.mxu1 %v20197_v12  ;;  %25304 = vst [vmem:[#allocation34_spill] sm:$0xff] %v20669_v30 }
 0x158   : > { %1446 = vmatpush1.msra.mxu0 %v20374_v43  ;;  %1563 = vmatprep.subr.mxu1 %v20200_v16 }
 0x159   : > { %1449 = vmatprep.subr.mxu0 %v20395_v58  ;;  %1565 = vmatpush1.msra.mxu1 %v20202_v17 }
 0x15a   : > { %1452 = vmatpush1.msra.mxu0 %v20408_v8  ;;  %1567 = vmatprep.subr.mxu1 %v20204_v18 }
 0x15b   : > { %1455 = vmatprep.subr.mxu0 %v20426_v50  ;;  %1569 = vmatpush1.msra.mxu1 %v20217_v23 }
 0x15c   : > { %1458 = vmatpush1.msra.mxu0 %v20439_v63  ;;  %1571 = vmatprep.subr.mxu1 %v20223_v25 }
 0x15d   : > { %1461 = vmatprep.subr.mxu0 %v20451_v61  ;;  %1573 = vmatpush1.msra.mxu1 %v25297_v27 }
 0x15e   : > { %1464 = vmatpush1.msra.mxu0 %v20462_v28  ;;  %1575 = vmatprep.subr.mxu1 %v25298_v45 }
 0x15f   : > { %1467 = vmatprep.subr.mxu0 %v20476_v3  ;;  %1577 = vmatpush1.msra.mxu1 %v25299_v38 }
 0x160   : > { %1470 = vmatpush1.msra.mxu0 %v20488_v51  ;;  %1579 = vmatprep.subr.mxu1 %v25300_v52 }
 0x161   : > { %1473 = vmatprep.subr.mxu0 %v20507_v0  ;;  %1581 = vmatpush1.msra.mxu1 %v25301_v35  ;;  %v25307_v35 = vld [vmem:[#allocation43_spill] sm:$0xff] }
 0x162   : > { %1476 = vmatpush1.msra.mxu0 %v20519_v15  ;;  %1583 = vmatprep.subr.mxu1 %v25302_v7 }
 0x163   : > { %1479 = vmatprep.subr.mxu0 %v20528_v54  ;;  %1585 = vmatpush1.msra.mxu1 %v25303_v9  ;;  %v25309_v9 = vld [vmem:[#allocation45_spill] sm:$0xff] }
 0x164   : > { %1482 = vmatpush1.msra.mxu0 %v20536_v22  ;;  %1587 = vmatprep.subr.mxu1 %v25305_v21 }
 0x165   : > { %1485 = vmatprep.subr.mxu0 %v20545_v48  ;;  %1589 = vmatpush1.msra.mxu1 %v25306_v37 }
 0x166   : > { %1488 = vmatpush1.msra.mxu0 %v20557_v62  ;;  %1591 = vmatprep.subr.mxu1 %v25307_v35 }
 0x167   : > { %1160 = vmatmul.mubr.f32.gmra.mxu0 %v20669_v30  ;;  %1491 = vmatprep.subr.mxu0 %v20566_v33  ;;  %v25310_v30 = vand.u32 4294901760, %v20207_v19  ;;  %v25317_v19 = vld [vmem:[#allocation50_spill] sm:$0xff] }
 0x168   : > { %1494 = vmatpush1.msra.mxu0 %v20581_v55  ;;  %1593 = vmatpush1.msra.mxu1 %v25308_v49  ;;  %v25311_v55 = vld [vmem:[#allocation47_spill] sm:$0xff]  ;;  %v25312_v49 = vand.u32 4294901760, %v20220_v24  ;;  %v25318_v24 = vand.u32 4294901760, %v20249_v36  ;;  %v25322_v36 = vld [vmem:[#allocation53_spill] sm:$0xff] }
 0x169   : > { %1497 = vmatprep.subr.mxu0 %v20590_v56  ;;  %1595 = vmatprep.subr.mxu1 %v25309_v9  ;;  %v25313_v9 = vld [vmem:[#allocation48_spill] sm:$0xff] }
 0x16a   : > { %1500 = vmatpush1.msra.mxu0 %v20598_v47  ;;  %1533 = vmatprep.mubr.f32.mxu0 %v25296_v34  ;;  %v25314_v47 = vand.u32 4294901760, %v20226_v26  ;;  %v25319_v26 = vand.u32 4294901760, %v20262_v41  ;;  %v25324_v41 = vand.u32 4294901760, %v20325_v13  ;;  %v25334_v13 = vand.u32 4294901760, %v20462_v28  ;;  %v25342_v28 = vld [vmem:[#allocation40_spill] sm:$0xff] }
 0x16b   : > { %1597 = vmatpush1.msra.mxu1 %v20404_v1  ;;  %1536 = vmatmul.mubr.f32.vlgmr.msra.gmra.mxu0 %v20552_v14  ;;  %v25315_v14 = vld [vmem:[#allocation49_spill] sm:$0xff] }
 0x16c   : > { %1599 = vmatprep.subr.mxu1 %v20418_v20  ;;  %1668 = vmatprep.subr.mxu0 %v25310_v30  ;;  %v25316_v20 = vand.u32 4294901760, %v20240_v32  ;;  %v25320_v30 = vand.u32 4294901760, %v20276_v46  ;;  %v25321_v32 = vand.u32 4294901760, %v20302_v60  ;;  %v25325_v46 = vand.u32 4294901760, %v20336_v44 }
 0x16d   : > { %1601 = vmatpush1.msra.mxu1 %v25311_v55  ;;  %1672 = vmatpush1.msra.mxu0 %v25312_v49  ;;  %v25326_v60 = vand.u32 4294901760, %v20348_v53  ;;  %v25338_v44 = vand.u32 4294901760, %v20519_v15 }
 0x16e   : > { %1397 = vmatprep.mubr.f32.mxu1 %v25296_v34  ;;  %1603 = vmatprep.subr.mxu1 %v25313_v9 }
 0x16f   : > { %1676 = vmatprep.subr.mxu0 %v25314_v47  ;;  %1399 = vmatmul.mubr.f32.gmra.mxu1 %v20627_v57  ;;  %v25343_v47 = vand.u32 4294901760, %v20545_v48  ;;  %v1014_v48 = vld [vmem:[#allocation10 + $0x100] sm:$0xff] }
 0x170   : > { %1605 = vmatpush1.msra.mxu1 %v25315_v14  ;;  %1680 = vmatpush1.msra.mxu0 %v25316_v20  ;;  %v25323_v20 = vand.u32 4294901760, %v20314_v2  ;;  %v25327_v2 = vand.u32 4294901760, %v20362_v59  ;;  %v1020_v59 = vld [vmem:[#allocation10 + $0x130] sm:$0xff] }
 0x171   : > { %1541 = vmatprep.mubr.f32.mxu0 %v25296_v34  ;;  %1607 = vmatprep.subr.mxu1 %v25317_v19  ;;  %v20791_v15 = vand.u32 4294901760, %v1020_v59 }
 0x172   : > { %1684 = vmatprep.subr.mxu0 %v25318_v24  ;;  %1544 = vmatmul.mubr.f32.gmra.mxu0 %v20638_v39 }
 0x173   : > { %1609 = vmatpush1.msra.mxu1 %v20484_v42  ;;  %1688 = vmatpush1.msra.mxu0 %v25319_v26  ;;  %v20817_v26 = vsub.f32 %v1020_v59, %v20791_v15  ;;  %v993_v59 = vld [vmem:[#allocation10 + $0x58] sm:$0xff] }
 0x174   : > { %1611 = vmatprep.subr.mxu1 %v20498_v29  ;;  %1692 = vmatprep.subr.mxu0 %v25320_v30  ;;  %v20819_v30 = vand.u32 4294901760, %v1014_v48 }
 0x175   : > { %1613 = vmatpush1.msra.mxu1 %v20515_v31  ;;  %1646 = vmatprep.mubr.f32.mxu1 %v25296_v34 }
 0x176   : > { %1696 = vmatpush1.msra.mxu0 %v25321_v32  ;;  %1650 = vmatmul.mubr.f32.vlgmr.msra.gmra.mxu1 %v25322_v36  ;;  %v1008_v32 = vld [vmem:[#allocation10 + $0xd0] sm:$0xff] }
 0x177   : > { %1700 = vmatprep.subr.mxu0 %v25323_v20  ;;  %1841 = vmatprep.subr.mxu1 %v20187_v4  ;;  %v25328_v4 = vand.u32 4294901760, %v20374_v43  ;;  %v25336_v43 = vand.u32 4294901760, %v20488_v51  ;;  %v25344_v51 = vand.u32 4294901760, %v20557_v62 }
 0x178   : > { %1704 = vmatpush1.msra.mxu0 %v25324_v41  ;;  %1843 = vmatpush1.msra.mxu1 %v20189_v5  ;;  %v25329_v5 = vand.u32 4294901760, %v20395_v58  ;;  %v25340_v58 = vand.u32 4294901760, %v20528_v54  ;;  %v1017_v54 = vld [vmem:[#allocation10 + $0x118] sm:$0xff]  ;;  %v25354_v41 = vld [vmem:[#allocation46_spill] sm:$0xff] }
 0x179   : > { %1708 = vmatprep.subr.mxu0 %v25325_v46  ;;  %1845 = vmatprep.subr.mxu1 %v20191_v6  ;;  %v25330_v6 = vand.u32 4294901760, %v20408_v8  ;;  %v25341_v8 = vand.u32 4294901760, %v20536_v22  ;;  %v25345_v22 = vand.u32 4294901760, %v20566_v33  ;;  %v25349_v33 = vand.u32 4294901760, %v20590_v56  ;;  %v25353_v56 = vld [vmem:[#allocation51_spill] sm:$0xff] }
 0x17a   : > { %1655 = vmatprep.mubr.f32.mxu1 %v25296_v34  ;;  %1712 = vmatpush1.msra.mxu0 %v25326_v60 }
 0x17b   : > { %1847 = vmatpush1.msra.mxu1 %v20193_v10  ;;  %1716 = vmatprep.subr.mxu0 %v25327_v2  ;;  %v25331_v10 = vand.u32 4294901760, %v20426_v50 }
 0x17c   : > { %1659 = vmatmul.mubr.f32.gmra.mxu1 %v20649_v40  ;;  %1849 = vmatprep.subr.mxu1 %v20195_v11  ;;  %v25332_v11 = vand.u32 4294901760, %v20439_v63 }
 0x17d   : > { %1720 = vmatpush1.msra.mxu0 %v25328_v4  ;;  %1851 = vmatpush1.msra.mxu1 %v20197_v12  ;;  %v25333_v12 = vand.u32 4294901760, %v20451_v61  ;;  %v1023_v61 = vld [vmem:[#allocation10 + $0x148] sm:$0xff]  ;;  %v1005_v4 = vld [vmem:[#allocation10 + $0xb8] sm:$0xff] }
 0x17e   : > { %1724 = vmatprep.subr.mxu0 %v25329_v5  ;;  %1853 = vmatprep.subr.mxu1 %v20200_v16  ;;  %v1029_v16 = vld [vmem:[#allocation10 + $0x178] sm:$0xff]  ;;  %v20780_v63 = vand.u32 4294901760, %v1023_v61 }
 0x17f   : > { %1728 = vmatpush1.msra.mxu0 %v25330_v6  ;;  %1855 = vmatpush1.msra.mxu1 %v20202_v17  ;;  %v25335_v17 = vand.u32 4294901760, %v20476_v3  ;;  %v25339_v3 = vld [vmem:[#allocation38_spill] sm:$0xff]  ;;  %v20844_v6 = vand.u32 4294901760, %v20817_v26 }
 0x180   : > { %1732 = vmatprep.subr.mxu0 %v25331_v10  ;;  %1857 = vmatprep.subr.mxu1 %v20204_v18  ;;  %v1026_v18 = vld [vmem:[#allocation10 + $0x160] sm:$0xff]  ;;  %v20847_v10 = vsub.f32 %v1014_v48, %v20819_v30 }
 0x181   : > { %1736 = vmatpush1.msra.mxu0 %v25332_v11  ;;  %1859 = vmatpush1.msra.mxu1 %v20217_v23  ;;  %v20761_v23 = vand.u32 4294901760, %v1029_v16  ;;  %v20769_v53 = vand.u32 4294901760, %v1026_v18  ;;  %v1002_v11 = vld [vmem:[#allocation10 + $0xa0] sm:$0xff] }
 0x182   : > { %1740 = vmatprep.subr.mxu0 %v25333_v12  ;;  %1861 = vmatprep.subr.mxu1 %v20223_v25  ;;  %v25337_v25 = vand.u32 4294901760, %v20507_v0 }
 0x183   : > { %1744 = vmatpush1.msra.mxu0 %v25334_v13  ;;  %1863 = vmatpush1.msra.mxu1 %v25297_v27  ;;  %v20778_v50 = vsub.f32 %v1029_v16, %v20761_v23  ;;  %v20789_v0 = vsub.f32 %v1026_v18, %v20769_v53  ;;  %v20861_v13 = vand.u32 4294901760, %v1005_v4  ;;  %v2077_v18 = vsub.f32 %v20817_v26, %v20844_v6 }
 0x184   : > { %1748 = vmatprep.subr.mxu0 %v25335_v17  ;;  %1865 = vmatprep.subr.mxu1 %v25298_v45  ;;  %v20805_v45 = vand.u32 4294901760, %v1017_v54  ;;  %v999_v17 = vld [vmem:[#allocation10 + $0x88] sm:$0xff] }
 0x185   : > { %1752 = vmatpush1.msra.mxu0 %v25336_v43  ;;  %1867 = vmatpush1.msra.mxu1 %v25299_v38  ;;  %v20800_v62 = vand.u32 4294901760, %v20778_v50  ;;  %v1011_v38 = vld [vmem:[#allocation10 + $0xe8] sm:$0xff]  ;;  %v20814_v24 = vand.u32 4294901760, %v20789_v0  ;;  %v20873_v43 = vand.u32 4294901760, %v20847_v10 }
 0x186   : > { %1756 = vmatprep.subr.mxu0 %v25337_v25  ;;  %1869 = vmatprep.subr.mxu1 %v25300_v52  ;;  %v25350_v52 = vld [vmem:[#allocation45_spill] sm:$0xff]  ;;  %v20823_v20 = vand.u32 4294901760, %v1011_v38  ;;  %v20833_v2 = vsub.f32 %v1017_v54, %v20805_v45  ;;  %v20875_v25 = vand.u32 4294901760, %v1002_v11 }
 0x187   : > { %1760 = vmatpush1.msra.mxu0 %v25338_v44  ;;  %1871 = vmatpush1.msra.mxu1 %v25339_v3  ;;  %v2056_v46 = vsub.f32 %v20778_v50, %v20800_v62  ;;  %v2063_v5 = vsub.f32 %v20789_v0, %v20814_v24  ;;  %v20886_v3 = vsub.f32 %v1005_v4, %v20861_v13 }
 0x188   : > { %1764 = vmatprep.subr.mxu0 %v25340_v58  ;;  %1873 = vmatprep.subr.mxu1 %v25302_v7  ;;  %v25346_v7 = vld [vmem:[#allocation54_spill] sm:$0xff]  ;;  %v20859_v16 = vand.u32 4294901760, %v20833_v2  ;;  %v20888_v58 = vand.u32 4294901760, %v999_v17 }
 0x189   : > { %1768 = vmatpush1.msra.mxu0 %v25341_v8  ;;  %1875 = vmatpush1.msra.mxu1 %v25342_v28  ;;  %v25347_v27 = vand.u32 4294901760, %v25346_v7  ;;  %v2078_v8 = vand.u32 4294901760, %v2077_v18  ;;  %v2091_v28 = vsub.f32 %v20847_v10, %v20873_v43  ;;  %v20907_v7 = vand.u32 4294901760, %v20886_v3 }
 0x18a   : > { %1772 = vmatprep.subr.mxu0 %v25343_v47  ;;  %1877 = vmatprep.subr.mxu1 %v25305_v21  ;;  %v25348_v21 = vld [vmem:[#allocation44_spill] sm:$0xff]  ;;  %v2084_v44 = vsub.f32 %v20833_v2, %v20859_v16  ;;  %v20898_v47 = vsub.f32 %v1002_v11, %v20875_v25 }
 0x18b   : > { %1776 = vmatpush1.msra.mxu0 %v25344_v51  ;;  %1879 = vmatpush1.msra.mxu1 %v25306_v37  ;;  %v20803_v37 = vsub.f32 %v1023_v61, %v20780_v63  ;;  %v996_v61 = vld [vmem:[#allocation10 + $0x70] sm:$0xff]  ;;  %v2112_v4 = vsub.f32 %v20886_v3, %v20907_v7 }
 0x18c   : > { %1780 = vmatprep.subr.mxu0 %v25345_v22  ;;  %1881 = vmatprep.subr.mxu1 %v25307_v35  ;;  %v25351_v35 = vld [vmem:[#allocation55_spill] sm:$0xff]  ;;  %v20900_v54 = vand.u32 4294901760, %v996_v61  ;;  %v990_v22 = vld [vmem:[#allocation10 + $0x40] sm:$0xff]  ;;  %v2085_v48 = vand.u32 4294901760, %v2084_v44 }
 0x18d   : > { %1784 = vmatpush1.msra.mxu0 %v25347_v27  ;;  %1883 = vmatpush1.msra.mxu1 %v25348_v21  ;;  %v25352_v49 = vand.u32 4294901760, %v25351_v35  ;;  %v20830_v60 = vand.u32 4294901760, %v20803_v37  ;;  %v20910_v27 = vsub.f32 %v999_v17, %v20888_v58  ;;  %v20912_v21 = vand.u32 4294901760, %v993_v59 }
 0x18e   : > { %1788 = vmatprep.subr.mxu0 %v25349_v33  ;;  %1885 = vmatprep.subr.mxu1 %v25350_v52  ;;  %v987_v33 = vld [vmem:[#allocation10 + $0x28] sm:$0xff]  ;;  %v2092_v52 = vand.u32 4294901760, %v2091_v28  ;;  %v20919_v35 = vand.u32 4294901760, %v20898_v47 }
 0x18f   : > { %1792 = vmatpush1.msra.mxu0 %v25352_v49  ;;  %1825 = vmatprep.mubr.f32.mxu0 %v25296_v34  ;;  %v2070_v12 = vsub.f32 %v20803_v37, %v20830_v60  ;;  %v20922_v49 = vsub.f32 %v996_v61, %v20900_v54  ;;  %v20934_v11 = vsub.f32 %v993_v59, %v20912_v21 }
 0x190   : > { %1887 = vmatpush1.msra.mxu1 %v20404_v1  ;;  %1827 = vmatmul.mubr.f32.vlgmr.msra.gmra.mxu0 %v25353_v56  ;;  %v20837_v1 = vand.u32 4294901760, %v1008_v32  ;;  %v2119_v17 = vsub.f32 %v20898_v47, %v20919_v35 }
 0x191   : > { %1889 = vmatprep.subr.mxu1 %v25354_v41  ;;  %1832 = vmatprep.mubr.f32.mxu0 %v25296_v34  ;;  %v20955_v59 = vand.u32 4294901760, %v20934_v11 }
 0x192   : > { %1891 = vmatpush1.msra.mxu1 %v25311_v55  ;;  %1936 = vmatprep.mubr.f32.mxu1 %v25296_v34  ;;  %v20852_v55 = vsub.f32 %v1011_v38, %v20823_v20  ;;  %v2120_v28 = vand.u32 4294901760, %v2119_v17 }
 0x193   : > { %1893 = vmatprep.subr.mxu1 %v25313_v9  ;;  %17576 = vmatprep.subr.mxu0 %v20761_v23  ;;  %v2057_v9 = vand.u32 4294901760, %v2056_v46  ;;  %v984_v46 = vld [vmem:[#allocation10 + $0x10] sm:$0xff] }
 0x194   : > { %1895 = vmatpush1.msra.mxu1 %v25315_v14  ;;  %1834 = vmatmul.mubr.f32.gmra.mxu0 %v20627_v57  ;;  %v20866_v14 = vsub.f32 %v1008_v32, %v20837_v1  ;;  %v20924_v32 = vand.u32 4294901760, %v990_v22  ;;  %v20948_v61 = vand.u32 4294901760, %v984_v46 }
 0x195   : > { %1897 = vmatprep.subr.mxu1 %v25317_v19  ;;  %17577 = vmatpush3.msra.mxu0 %v20761_v23  ;;  %v2064_v19 = vand.u32 4294901760, %v2063_v5  ;;  %v20931_v5 = vand.u32 4294901760, %v20910_v27 }
 0x196   : > { %1899 = vmatpush1.msra.mxu1 %v20484_v42  ;;  %17578 = vmatprep.subr.mxu0 %v20769_v53  ;;  %v20880_v42 = vand.u32 4294901760, %v20852_v55  ;;  %v20946_v18 = vsub.f32 %v990_v22, %v20924_v32 }
 0x197   : > { %1901 = vmatprep.subr.mxu1 %v20498_v29  ;;  %17579 = vmatpush3.msra.mxu0 %v20769_v53  ;;  %v2071_v29 = vand.u32 4294901760, %v2070_v12  ;;  %v2126_v44 = vsub.f32 %v20910_v27, %v20931_v5 }
 0x198   : > { %1903 = vmatpush1.msra.mxu1 %v20515_v31  ;;  %17580 = vmatprep.subr.mxu0 %v20780_v63  ;;  %v20892_v31 = vand.u32 4294901760, %v20866_v14  ;;  %v2098_v51 = vsub.f32 %v20852_v55, %v20880_v42  ;;  %v20965_v22 = vand.u32 4294901760, %v20946_v18 }
 0x199   : > { %1938 = vmatmul.mubr.f32.vlgmr.msra.gmra.mxu1 %v25353_v56  ;;  %17611 = vmatprep.subr.mxu1 %v2057_v9 }
 0x19a   : > { %1943 = vmatprep.mubr.f32.mxu1 %v25296_v34  ;;  %17612 = vmatpush3.msra.mxu1 %v2057_v9  ;;  %v2105_v38 = vsub.f32 %v20866_v14, %v20892_v31  ;;  %v2099_v41 = vand.u32 4294901760, %v2098_v51  ;;  %v20936_v9 = vand.u32 4294901760, %v987_v33 }
 0x19b   : > { %17613 = vmatprep.subr.mxu1 %v2064_v19  ;;  %17581 = vmatpush3.msra.mxu0 %v20780_v63 }
 0x19c   : > { %17614 = vmatpush3.msra.mxu1 %v2064_v19  ;;  %17582 = vmatprep.subr.mxu0 %v20791_v15  ;;  %v2106_v12 = vand.u32 4294901760, %v2105_v38  ;;  %v20943_v19 = vand.u32 4294901760, %v20922_v49  ;;  %v2127_v38 = vand.u32 4294901760, %v2126_v44 }
 0x19d   : > { %1945 = vmatmul.mubr.f32.gmra.mxu1 %v20627_v57  ;;  %17615 = vmatprep.subr.mxu1 %v2071_v29 }
 0x19e   : > { %17583 = vmatpush3.msra.mxu0 %v20791_v15  ;;  %17616 = vmatpush3.msra.mxu1 %v2071_v29  ;;  %v2113_v29 = vand.u32 4294901760, %v2112_v4  ;;  %v2133_v51 = vsub.f32 %v20922_v49, %v20943_v19 }
 0x19f   : > { %17584 = vmatprep.subr.mxu0 %v20805_v45  ;;  %17617 = vmatprep.subr.mxu1 %v2078_v8 }
 0x1a0   : > { %17585 = vmatpush3.msra.mxu0 %v20805_v45  ;;  %17618 = vmatpush3.msra.mxu1 %v2078_v8  ;;  %v20958_v8 = vsub.f32 %v987_v33, %v20936_v9  ;;  %v2140_v33 = vsub.f32 %v20934_v11, %v20955_v59 }
 0x1a1   : > { %17586 = vmatprep.subr.mxu0 %v20819_v30  ;;  %17619 = vmatprep.subr.mxu1 %v2085_v48 }
 0x1a2   : > { %17587 = vmatpush3.msra.mxu0 %v20819_v30  ;;  %17620 = vmatpush3.msra.mxu1 %v2085_v48  ;;  %v20968_v48 = vsub.f32 %v984_v46, %v20948_v61  ;;  %v2147_v46 = vsub.f32 %v20946_v18, %v20965_v22 }
 0x1a3   : > { %17588 = vmatprep.subr.mxu0 %v20823_v20  ;;  %17621 = vmatprep.subr.mxu1 %v2092_v52 }
 0x1a4   : > { %17589 = vmatpush3.msra.mxu0 %v20823_v20  ;;  %17622 = vmatpush3.msra.mxu1 %v2092_v52  ;;  %v20975_v52 = vand.u32 4294901760, %v20958_v8  ;;  %v20982_v4 = vand.u32 4294901760, %v20968_v48 }
 0x1a5   : > { %17590 = vmatprep.subr.mxu0 %v20837_v1  ;;  %17623 = vmatprep.subr.mxu1 %v2099_v41 }
 0x1a6   : > { %17591 = vmatpush3.msra.mxu0 %v20837_v1  ;;  %17624 = vmatpush3.msra.mxu1 %v2099_v41  ;;  %v2134_v41 = vand.u32 4294901760, %v2133_v51  ;;  %v2154_v17 = vsub.f32 %v20958_v8, %v20975_v52  ;;  %v2161_v44 = vsub.f32 %v20968_v48, %v20982_v4 }
 0x1a7   : > { %17592 = vmatprep.subr.mxu0 %v20861_v13  ;;  %17625 = vmatprep.subr.mxu1 %v2106_v12 }
 0x1a8   : > { %17593 = vmatpush3.msra.mxu0 %v20861_v13  ;;  %17626 = vmatpush3.msra.mxu1 %v2106_v12  ;;  %v2141_v12 = vand.u32 4294901760, %v2140_v33  ;;  %v2162_v51 = vand.u32 4294901760, %v2161_v44  ;;  %v25356_v33 = vld [vmem:[#allocation34_spill] sm:$0xff] }
 0x1a9   : > { %17594 = vmatprep.subr.mxu0 %v20875_v25  ;;  %17627 = vmatprep.subr.mxu1 %v2113_v29 }
 0x1aa   : > { %17595 = vmatpush3.msra.mxu0 %v20875_v25  ;;  %17628 = vmatpush3.msra.mxu1 %v2113_v29  ;;  %v2148_v29 = vand.u32 4294901760, %v2147_v46 }
 0x1ab   : > { %17596 = vmatprep.subr.mxu0 %v20888_v58  ;;  %17629 = vmatprep.subr.mxu1 %v2120_v28 }
 0x1ac   : > { %17597 = vmatpush3.msra.mxu0 %v20888_v58  ;;  %17630 = vmatpush3.msra.mxu1 %v2120_v28  ;;  %v2155_v28 = vand.u32 4294901760, %v2154_v17 }
 0x1ad   : > { %17598 = vmatprep.subr.mxu0 %v20900_v54  ;;  %17631 = vmatprep.subr.mxu1 %v2127_v38 }
 0x1ae   : > { %17599 = vmatpush3.msra.mxu0 %v20900_v54  ;;  %17632 = vmatpush3.msra.mxu1 %v2127_v38  ;;  %v25355_v38 = vld [vmem:[#allocation56_spill] sm:$0xff] }
 0x1af   : > { %17600 = vmatprep.subr.mxu0 %v20912_v21  ;;  %17633 = vmatprep.subr.mxu1 %v2134_v41 }
 0x1b0   : > { %17601 = vmatpush3.msra.mxu0 %v20912_v21  ;;  %17634 = vmatpush3.msra.mxu1 %v2134_v41 }
 0x1b1   : > { %17602 = vmatprep.subr.mxu0 %v20924_v32  ;;  %17635 = vmatprep.subr.mxu1 %v2141_v12 }
 0x1b2   : > { %17603 = vmatpush3.msra.mxu0 %v20924_v32  ;;  %17636 = vmatpush3.msra.mxu1 %v2141_v12 }
 0x1b3   : > { %17604 = vmatprep.subr.mxu0 %v20936_v9  ;;  %17637 = vmatprep.subr.mxu1 %v2148_v29 }
 0x1b4   : > { %17605 = vmatpush3.msra.mxu0 %v20936_v9  ;;  %17638 = vmatpush3.msra.mxu1 %v2148_v29 }
 0x1b5   : > { %17606 = vmatprep.subr.mxu0 %v20948_v61  ;;  %17639 = vmatprep.subr.mxu1 %v2155_v28 }
 0x1b6   : > { %17607 = vmatpush3.msra.mxu0 %v20948_v61  ;;  %17640 = vmatpush3.msra.mxu1 %v2155_v28 }
 0x1b7   : > { %17608 = vmatprep.mubr.f32.mxu0 %v25355_v38  ;;  %17641 = vmatprep.subr.mxu1 %v2162_v51 }
 0x1b8   : > { %17646 = vmatprep.subr.mxu0 %v20778_v50  ;;  %17609 = vmatmul.mubr.f32.vlgmr.msra.gmra.mxu0 %v25356_v33 }
 0x1b9   : > { %17642 = vmatpush3.msra.mxu1 %v2162_v51  ;;  %17647 = vmatpush3.msra.mxu0 %v20778_v50  ;;  %v25357_v50 = vld [vmem:[#allocation52_spill] sm:$0xff] }
 0x1ba   : > { %17643 = vmatprep.mubr.f32.mxu1 %v25353_v56  ;;  %17648 = vmatprep.subr.mxu0 %v20789_v0 }
 0x1bb   : > { %17681 = vmatprep.subr.mxu1 %v20761_v23  ;;  %17644 = vmatmul.mubr.f32.vlgmr.msra.gmra.mxu1 %v20627_v57 }
 0x1bc   : > { %17649 = vmatpush3.msra.mxu0 %v20789_v0  ;;  %17682 = vmatpush3.msra.mxu1 %v20761_v23 }
 0x1bd   : > { %17650 = vmatprep.subr.mxu0 %v20803_v37  ;;  %17683 = vmatprep.subr.mxu1 %v20769_v53 }
 0x1be   : > { %17651 = vmatpush3.msra.mxu0 %v20803_v37  ;;  %17684 = vmatpush3.msra.mxu1 %v20769_v53 }
 0x1bf   : > { %17652 = vmatprep.subr.mxu0 %v20817_v26  ;;  %17685 = vmatprep.subr.mxu1 %v20780_v63 }
 0x1c0   : > { %17653 = vmatpush3.msra.mxu0 %v20817_v26  ;;  %17686 = vmatpush3.msra.mxu1 %v20780_v63  ;;  %v21147_v26 = vld [vmem:[%s25359_s15] sm:$0x7]  ;;  %s16531_s15 = sshll.u32 %s19864_s29, 8  ;;  %s19715_s29 = smov [#allocation20]  }
 0x1c1   : > { %17654 = vmatprep.subr.mxu0 %v20833_v2  ;;  %17687 = vmatprep.subr.mxu1 %v20791_v15 }
 0x1c2   : > { %17655 = vmatpush3.msra.mxu0 %v20833_v2  ;;  %17688 = vmatpush3.msra.mxu1 %v20791_v15 }
 0x1c3   : > { %17656 = vmatprep.subr.mxu0 %v20847_v10  ;;  %17689 = vmatprep.subr.mxu1 %v20805_v45 }
 0x1c4   : > { %17657 = vmatpush3.msra.mxu0 %v20847_v10  ;;  %17690 = vmatpush3.msra.mxu1 %v20805_v45 }
 0x1c5   : > { %17658 = vmatprep.subr.mxu0 %v20852_v55  ;;  %17691 = vmatprep.subr.mxu1 %v20819_v30 }
 0x1c6   : > { %17659 = vmatpush3.msra.mxu0 %v20852_v55  ;;  %17692 = vmatpush3.msra.mxu1 %v20819_v30 }
 0x1c7   : > { %17660 = vmatprep.subr.mxu0 %v20866_v14  ;;  %17693 = vmatprep.subr.mxu1 %v20823_v20 }
 0x1c8   : > { %17661 = vmatpush3.msra.mxu0 %v20866_v14  ;;  %17694 = vmatpush3.msra.mxu1 %v20823_v20 }
 0x1c9   : > { %17662 = vmatprep.subr.mxu0 %v20886_v3  ;;  %17695 = vmatprep.subr.mxu1 %v20837_v1 }
 0x1ca   : > { %17663 = vmatpush3.msra.mxu0 %v20886_v3  ;;  %17696 = vmatpush3.msra.mxu1 %v20837_v1 }
 0x1cb   : > { %17664 = vmatprep.subr.mxu0 %v20898_v47  ;;  %17697 = vmatprep.subr.mxu1 %v20861_v13 }
 0x1cc   : > { %17665 = vmatpush3.msra.mxu0 %v20898_v47  ;;  %17698 = vmatpush3.msra.mxu1 %v20861_v13 }
 0x1cd   : > { %17666 = vmatprep.subr.mxu0 %v20910_v27  ;;  %17699 = vmatprep.subr.mxu1 %v20875_v25 }
 0x1ce   : > { %17667 = vmatpush3.msra.mxu0 %v20910_v27  ;;  %17700 = vmatpush3.msra.mxu1 %v20875_v25 }
 0x1cf   : > { %17668 = vmatprep.subr.mxu0 %v20922_v49  ;;  %17701 = vmatprep.subr.mxu1 %v20888_v58 }
 0x1d0   : > { %17669 = vmatpush3.msra.mxu0 %v20922_v49  ;;  %17702 = vmatpush3.msra.mxu1 %v20888_v58 }
 0x1d1   : > { %17670 = vmatprep.subr.mxu0 %v20934_v11  ;;  %17703 = vmatprep.subr.mxu1 %v20900_v54 }
 0x1d2   : > { %17671 = vmatpush3.msra.mxu0 %v20934_v11  ;;  %17704 = vmatpush3.msra.mxu1 %v20900_v54 }
 0x1d3   : > { %17672 = vmatprep.subr.mxu0 %v20946_v18  ;;  %17705 = vmatprep.subr.mxu1 %v20912_v21 }
 0x1d4   : > { %17673 = vmatpush3.msra.mxu0 %v20946_v18  ;;  %17706 = vmatpush3.msra.mxu1 %v20912_v21 }
 0x1d5   : > { %17674 = vmatprep.subr.mxu0 %v20958_v8  ;;  %17707 = vmatprep.subr.mxu1 %v20924_v32 }
 0x1d6   : > { %17675 = vmatpush3.msra.mxu0 %v20958_v8  ;;  %17708 = vmatpush3.msra.mxu1 %v20924_v32 }
 0x1d7   : > { %17676 = vmatprep.subr.mxu0 %v20968_v48  ;;  %17709 = vmatprep.subr.mxu1 %v20936_v9 }
 0x1d8   : > { %17677 = vmatpush3.msra.mxu0 %v20968_v48  ;;  %17710 = vmatpush3.msra.mxu1 %v20936_v9 }
 0x1d9   : > { %17678 = vmatprep.mubr.f32.mxu0 %v25357_v50  ;;  %17711 = vmatprep.subr.mxu1 %v20948_v61 }
 0x1da   : > { %17716 = vmatprep.subr.mxu0 %v20800_v62  ;;  %17679 = vmatmul.mubr.f32.vlgmr.msra.gmra.mxu0 %v20638_v39 }
 0x1db   : > { %17712 = vmatpush3.msra.mxu1 %v20948_v61  ;;  %17717 = vmatpush3.msra.mxu0 %v20800_v62 }
 0x1dc   : > { %17713 = vmatprep.mubr.f32.mxu1 %v25322_v36  ;;  %17718 = vmatprep.subr.mxu0 %v20814_v24 }
 0x1dd   : > { %17751 = vmatprep.subr.mxu1 %v20761_v23  ;;  %17714 = vmatmul.mubr.f32.vlgmr.msra.gmra.mxu1 %v20649_v40 }
 0x1de   : > { %17719 = vmatpush3.msra.mxu0 %v20814_v24  ;;  %17752 = vmatpush3.msra.mxu1 %v20761_v23 }
 0x1df   : > { %17720 = vmatprep.subr.mxu0 %v20830_v60  ;;  %17753 = vmatprep.subr.mxu1 %v20769_v53 }
 0x1e0   : > { %17721 = vmatpush3.msra.mxu0 %v20830_v60  ;;  %17754 = vmatpush3.msra.mxu1 %v20769_v53  ;;  %v1032_v53 = vlaneseq }
 0x1e1   : > { %17722 = vmatprep.subr.mxu0 %v20844_v6  ;;  %17755 = vmatprep.subr.mxu1 %v20780_v63 }
 0x1e2   : > { %17723 = vmatpush3.msra.mxu0 %v20844_v6  ;;  %17756 = vmatpush3.msra.mxu1 %v20780_v63 }
 0x1e3   : > { %17724 = vmatprep.subr.mxu0 %v20859_v16  ;;  %17757 = vmatprep.subr.mxu1 %v20791_v15 }
 0x1e4   : > { %17725 = vmatpush3.msra.mxu0 %v20859_v16  ;;  %17758 = vmatpush3.msra.mxu1 %v20791_v15  ;;  %v21139_v15 = vshrl.u32 %v1032_v53, 7 }
 0x1e5   : > { %17726 = vmatprep.subr.mxu0 %v20873_v43  ;;  %17759 = vmatprep.subr.mxu1 %v20805_v45 }
 0x1e6   : > { %17727 = vmatpush3.msra.mxu0 %v20873_v43  ;;  %17760 = vmatpush3.msra.mxu1 %v20805_v45  ;;  %v21142_v45 = vsub.s32 0, %v21139_v15 }
 0x1e7   : > { %17728 = vmatprep.subr.mxu0 %v20880_v42  ;;  %17761 = vmatprep.subr.mxu1 %v20819_v30 }
 0x1e8   : > { %17729 = vmatpush3.msra.mxu0 %v20880_v42  ;;  %17762 = vmatpush3.msra.mxu1 %v20819_v30  ;;  %25358 = vst [vmem:[#allocation35_spill] sm:$0xff] %v21142_v45  ;;  %v21150_v30 = vsub.s32 1, %v21139_v15 }
 0x1e9   : > { %17730 = vmatprep.subr.mxu0 %v20892_v31  ;;  %17763 = vmatprep.subr.mxu1 %v20823_v20 }
 0x1ea   : > { %17731 = vmatpush3.msra.mxu0 %v20892_v31  ;;  %17764 = vmatpush3.msra.mxu1 %v20823_v20  ;;  %25360 = vst [vmem:[#allocation36_spill] sm:$0xff] %v21150_v30  ;;  %v1039_v2 = vrot.slane %v21147_v26, %v21150_v30 }
 0x1eb   : > { %17732 = vmatprep.subr.mxu0 %v20907_v7  ;;  %17765 = vmatprep.subr.mxu1 %v20837_v1 }
 0x1ec   : > { %17733 = vmatpush3.msra.mxu0 %v20907_v7  ;;  %17766 = vmatpush3.msra.mxu1 %v20837_v1 }
 0x1ed   : > { %17734 = vmatprep.subr.mxu0 %v20919_v35  ;;  %17767 = vmatprep.subr.mxu1 %v20861_v13 }
 0x1ee   : > { %17735 = vmatpush3.msra.mxu0 %v20919_v35  ;;  %17768 = vmatpush3.msra.mxu1 %v20861_v13 }
 0x1ef   : > { %17736 = vmatprep.subr.mxu0 %v20931_v5  ;;  %17769 = vmatprep.subr.mxu1 %v20875_v25 }
 0x1f0   : > { %17737 = vmatpush3.msra.mxu0 %v20931_v5  ;;  %17770 = vmatpush3.msra.mxu1 %v20875_v25 }
 0x1f1   : > { %17738 = vmatprep.subr.mxu0 %v20943_v19  ;;  %17771 = vmatprep.subr.mxu1 %v20888_v58 }
 0x1f2   : > { %17739 = vmatpush3.msra.mxu0 %v20943_v19  ;;  %17772 = vmatpush3.msra.mxu1 %v20888_v58 }
 0x1f3   : > { %17740 = vmatprep.subr.mxu0 %v20955_v59  ;;  %17773 = vmatprep.subr.mxu1 %v20900_v54 }
 0x1f4   : > { %17741 = vmatpush3.msra.mxu0 %v20955_v59  ;;  %17774 = vmatpush3.msra.mxu1 %v20900_v54 }
 0x1f5   : > { %17742 = vmatprep.subr.mxu0 %v20965_v22  ;;  %17775 = vmatprep.subr.mxu1 %v20912_v21 }
 0x1f6   : > { %17743 = vmatpush3.msra.mxu0 %v20965_v22  ;;  %17776 = vmatpush3.msra.mxu1 %v20912_v21 }
 0x1f7   : > { %17744 = vmatprep.subr.mxu0 %v20975_v52  ;;  %17777 = vmatprep.subr.mxu1 %v20924_v32 }
 0x1f8   : > { %17745 = vmatpush3.msra.mxu0 %v20975_v52  ;;  %17778 = vmatpush3.msra.mxu1 %v20924_v32 }
 0x1f9   : > { %17746 = vmatprep.subr.mxu0 %v20982_v4  ;;  %17779 = vmatprep.subr.mxu1 %v20936_v9 }
 0x1fa   : > { %17747 = vmatpush3.msra.mxu0 %v20982_v4  ;;  %17748 = vmatprep.mubr.f32.mxu0 %v25353_v56 }
 0x1fb   : > { %17780 = vmatpush3.msra.mxu1 %v20936_v9  ;;  %17749 = vmatmul.mubr.f32.vlgmr.msra.gmra.mxu0 %v20627_v57 }
 0x1fc   : > { %17781 = vmatprep.subr.mxu1 %v20948_v61  ;;  %17783 = vmatprep.mubr.f32.mxu1 %v25353_v56  ;;  %v1035_v56 = vrot.slane %v21147_v26, %v21142_v45 }
 0x1fd   : > { %17782 = vmatpush3.msra.mxu1 %v20948_v61 }
 0x1fe   : > { %17784 = vmatmul.mubr.f32.vlgmr.msra.gmra.mxu1 %v20627_v57 }
 0x20a   : > { %v1150_v39 = vpop.f32.mrf.mxu0 }
 0x20b   : > { %v1151_v1 = vadd.f32 %v1150_v39, %v1035_v56 }
 0x20c   : > { %v1152_v40 = vpop.f32.mrf.mxu0 }
 0x20d   : > { %v1153_v55 = vadd.f32 %v1152_v40, %v1039_v2 }
 0x211   : > { %v1393_v23 = vpop.f32.mrf.mxu1 }
 0x212   : > { %v1394_v14 = vadd.f32 %v1393_v23, %v1151_v1 }
 0x213   : > { %v1395_v0 = vpop.f32.mrf.mxu1 }
 0x214   : > { %v1396_v3 = vadd.f32 %v1395_v0, %v1153_v55 }
 0x227   : > { %v1161_v36 = vpop.f32.mrf.mxu0 }
 0x228   : > { %v1162_v16 = vadd.f32 %v1161_v36, %v1035_v56 }
 0x229   : > { %v1163_v63 = vpop.f32.mrf.mxu0 }
 0x22a   : > { %v1164_v43 = vadd.f32 %v1163_v63, %v1039_v2 }
 0x22b   : > { %v1537_v62 = vpop.f32.mrf.mxu0 }
 0x22c   : > { %v1538_v58 = vadd.f32 %v1537_v62, %v1394_v14 }
 0x22d   : > { %v1539_v24 = vpop.f32.mrf.mxu0 }
 0x22e   : > { %v1540_v47 = vadd.f32 %v1539_v24, %v1396_v3 }
 0x22f   : > { %v1400_v37 = vpop.f32.mrf.mxu1 }
 0x230   : > { %v1401_v31 = vadd.f32 %v1400_v37, %v1162_v16 }
 0x231   : > { %v1402_v57 = vpop.f32.mrf.mxu1 }
 0x232   : > { %v1545_v20 = vpop.f32.mrf.mxu0  ;;  %v1403_v54 = vadd.f32 %v1402_v57, %v1164_v43 }
 0x233   : > { %v1546_v35 = vadd.f32 %v1545_v20, %v1401_v31 }
 0x234   : > { %v1547_v6 = vpop.f32.mrf.mxu0 }
 0x235   : > { %v1548_v11 = vadd.f32 %v1547_v6, %v1403_v54  ;;  %v1042_v6 = vsub.s32 2, %v21139_v15 }
 0x236   : > { %v1651_v60 = vpop.f32.mrf.mxu1 }
 0x237   : > { %v1652_v7 = vadd.f32 %v1651_v60, %v1538_v58  ;;  %v1043_v55 = vrot.slane %v21147_v26, %v1042_v6 }
 0x238   : > { %v1653_v10 = vpop.f32.mrf.mxu1 }
 0x239   : > { %v1654_v49 = vadd.f32 %v1653_v10, %v1540_v47 }
 0x23c   : > { %v1660_v25 = vpop.f32.mrf.mxu1 }
 0x23d   : > { %v1661_v9 = vadd.f32 %v1660_v25, %v1546_v35 }
 0x23e   : > { %v1662_v27 = vpop.f32.mrf.mxu1 }
 0x23f   : > { %v1663_v8 = vadd.f32 %v1662_v27, %v1548_v11 }
 0x250   : > { %v1828_v13 = vpop.f32.mrf.mxu0 }
 0x251   : > { %v1829_v32 = vadd.f32 %v1828_v13, %v1652_v7 }
 0x252   : > { %v1830_v42 = vpop.f32.mrf.mxu0 }
 0x253   : > { %v1831_v19 = vadd.f32 %v1830_v42, %v1654_v49 }
 0x254   : > { %v1835_v21 = vpop.f32.mrf.mxu0 }
 0x255   : > { %v1836_v22 = vadd.f32 %v1835_v21, %v1661_v9 }
 0x256   : > { %v1837_v61 = vpop.f32.mrf.mxu0 }
 0x257   : > { %v1838_v4 = vadd.f32 %v1837_v61, %v1663_v8 }
 0x259   : > { %v1939_v5 = vpop.f32.mrf.mxu1 }
 0x25a   : > { %v21156_v18 = vadd.f32 %v1939_v5, %v1829_v32 }
 0x25b   : > { %v1941_v59 = vpop.f32.mrf.mxu1 }
 0x25c   : > { %v21158_v48 = vadd.f32 %v1941_v59, %v1831_v19  ;;  %v2654_v52 = vsel %vm2652_vm0, %v21156_v18, 0 }
 0x25d   : > { %v1946_v41 = vpop.f32.mrf.mxu1  ;;  %v2732_v46 = vand.u32 4294901760, %v2654_v52 }
 0x25e   : > { %v2660_v12 = vsel %vm2652_vm0, %v21158_v48, 0  ;;  %v21164_v17 = vadd.f32 %v1946_v41, %v1836_v22 }
 0x25f   : > { %v2697_v29 = vand.u32 4294901760, %v2660_v12  ;;  %v1948_v44 = vpop.f32.mrf.mxu1  ;;  %17797 = vmatprep.mubr.f32.mxu1 %v2732_v46  ;;  %v2733_v28 = vsub.f32 %v2654_v52, %v2732_v46 }
 0x260   : > { %v2657_v51 = vsel %vm2652_vm0, %v21164_v17, 0  ;;  %v21168_v38 = vadd.f32 %v1948_v44, %v1838_v4 }
 0x261   : > { %v2789_v33 = vsub.f32 %v2660_v12, %v2697_v29  ;;  %v2742_v50 = vand.u32 4294901760, %v2657_v51  ;;  %v2734_v39 = vand.u32 4294901760, %v2733_v28 }
 0x262   : > { %v2663_v40 = vsel %vm2652_vm0, %v21168_v38, 0 }
 0x263   : > { %v2743_v36 = vsub.f32 %v2657_v51, %v2742_v50  ;;  %v2694_v23 = vand.u32 4294901760, %v2663_v40  ;;  %v2735_v53 = vsub.f32 %v2733_v28, %v2734_v39  ;;  %v2790_v37 = vand.u32 4294901760, %v2789_v33 }
 0x265   : > { %17786 = vmatprep.subr.mxu0 %v2694_v23  ;;  %v2736_v63 = vand.u32 4294901760, %v2735_v53  ;;  %v2782_v0 = vsub.f32 %v2663_v40, %v2694_v23  ;;  %v2744_v62 = vand.u32 4294901760, %v2743_v36  ;;  %v2791_v20 = vsub.f32 %v2789_v33, %v2790_v37 }
 0x266   : > { %17787 = vmatpush3.xpose.msra.mxu0 %v2694_v23 }
 0x267   : > { %17788 = vmatprep.subr.mxu0 %v2697_v29  ;;  %17790 = vmatprep.mubr.f32.mxu0 %v2736_v63  ;;  %v2745_v24 = vsub.f32 %v2743_v36, %v2744_v62  ;;  %v2783_v57 = vand.u32 4294901760, %v2782_v0  ;;  %v2792_v1 = vand.u32 4294901760, %v2791_v20 }
 0x269   : > { %v2784_v56 = vsub.f32 %v2782_v0, %v2783_v57  ;;  %v2746_v60 = vand.u32 4294901760, %v2745_v24 }
 0x26a   : > { %17789 = vmatpush3.xpose.msra.mxu0 %v2697_v29 }
 0x26b   : > { %17800 = vmatprep.subr.mxu0 %v2782_v0  ;;  %v2785_v2 = vand.u32 4294901760, %v2784_v56 }
 0x26d   : > { %17791 = vmatmul.mubr.f32.vlgmr.msra.gmra.mxu0 %v2746_v60  ;;  %17793 = vmatprep.subr.mxu1 %v2785_v2  ;;  %v978_v60 = vld [vmem:[%s857_s2] sm:$0xff] }
 0x26e   : > { %17794 = vmatpush3.xpose.msra.mxu1 %v2785_v2  ;;  %17801 = vmatpush3.xpose.msra.mxu0 %v2782_v0 }
 0x26f   : > { %17804 = vmatprep.mubr.f32.mxu0 %v2733_v28  ;;  %17795 = vmatprep.subr.mxu1 %v2792_v1 }
 0x270   : > { %17802 = vmatprep.subr.mxu0 %v2789_v33 }
 0x272   : > { %17796 = vmatpush3.xpose.msra.mxu1 %v2792_v1  ;;  %17803 = vmatpush3.xpose.msra.mxu0 %v2789_v33 }
 0x273   : > { %17807 = vmatprep.subr.mxu1 %v2694_v23  ;;  %17814 = vmatprep.subr.mxu0 %v2783_v57 }
 0x275   : > { %17798 = vmatmul.mubr.f32.vlgmr.msra.gmra.mxu1 %v2742_v50  ;;  %17805 = vmatmul.mubr.f32.vlgmr.msra.gmra.mxu0 %v2743_v36 }
 0x276   : > { %17808 = vmatpush3.xpose.msra.mxu1 %v2694_v23  ;;  %17811 = vmatprep.mubr.f32.mxu1 %v2734_v39 }
 0x277   : > { %17815 = vmatpush3.xpose.msra.mxu0 %v2783_v57  ;;  %17818 = vmatprep.mubr.f32.mxu0 %v2732_v46 }
 0x278   : > { %17809 = vmatprep.subr.mxu1 %v2697_v29  ;;  %17816 = vmatprep.subr.mxu0 %v2790_v37  ;;  %v17610_v10 = vpop.f32.mrf.mxu0 }
 0x279   : > { %v2049_v14 = vadd.f32 %v17610_v10, %v1043_v55  ;;  %v979_v10 = vld [vmem:[%s857_s2 + $0x8] sm:$0xff]  ;;  %s25716_s2 = sld [smem:[#allocation91_spill]] }
 0x27a   : > { %17810 = vmatpush3.xpose.msra.mxu1 %v2697_v29  ;;  %v2038_v16 = vpop.f32.mrf.mxu0 }
 0x27b   : > { %17817 = vmatpush3.xpose.msra.mxu0 %v2790_v37  ;;  %17821 = vmatprep.subr.mxu1 %v2694_v23  ;;  %v17645_v13 = vpop.f32.mrf.mxu1  ;;  %v2039_v43 = vadd.f32 %v2038_v16, %v1043_v55  ;;  %v21212_v16 = vmul.f32 -1e+09, %v978_v60 }
 0x27c   : > { %v2206_v3 = vadd.f32 %v17645_v13, %v2049_v14 }
 0x27d   : > { %17812 = vmatmul.mubr.f32.vlgmr.msra.gmra.mxu1 %v2744_v62  ;;  %v2199_v25 = vpop.f32.mrf.mxu1 }
 0x27e   : > { %17819 = vmatmul.mubr.f32.vlgmr.msra.gmra.mxu0 %v2742_v50  ;;  %17822 = vmatpush3.xpose.msra.mxu1 %v2694_v23  ;;  %v2200_v58 = vadd.f32 %v2199_v25, %v2039_v43  ;;  %v21214_v43 = vmul.f32 -1e+09, %v979_v10 }
 0x27f   : > { %17825 = vmatprep.mubr.f32.mxu1 %v2732_v46  ;;  %17823 = vmatprep.subr.mxu1 %v2697_v29 }
 0x282   : > { %17824 = vmatpush3.xpose.msra.mxu1 %v2697_v29 }
 0x285   : > { %17826 = vmatmul.mubr.f32.vlgmr.msra.gmra.mxu1 %v2742_v50 }
 0x29a   : > { %v17680_v42 = vpop.f32.mrf.mxu0 }
 0x29b   : > { %v2317_v54 = vadd.f32 %v17680_v42, %v2206_v3 }
 0x29c   : > { %v2309_v31 = vpop.f32.mrf.mxu0 }
 0x29d   : > { %v17715_v47 = vpop.f32.mrf.mxu1  ;;  %v2310_v7 = vadd.f32 %v2309_v31, %v2200_v58 }
 0x29e   : > { %v2414_v21 = vadd.f32 %v17715_v47, %v2317_v54 }
 0x29f   : > { %v2405_v27 = vpop.f32.mrf.mxu1 }
 0x2a0   : > { %v2406_v35 = vadd.f32 %v2405_v27, %v2310_v7 }
 0x2bb   : > { %v17750_v49 = vpop.f32.mrf.mxu0 }
 0x2bc   : > { %v2539_v15 = vadd.f32 %v17750_v49, %v2414_v21 }
 0x2bd   : > { %v2532_v32 = vpop.f32.mrf.mxu0 }
 0x2be   : > { %v2533_v5 = vadd.f32 %v2532_v32, %v2406_v35  ;;  %v17785_v26 = vpop.f32.mrf.mxu1 }
 0x2bf   : > { %v21174_v11 = vadd.f32 %v17785_v26, %v2539_v15 }
 0x2c0   : > { %v2625_v9 = vpop.f32.mrf.mxu1 }
 0x2c1   : > { %v21177_v19 = vand.u32 4294901760, %v21174_v11  ;;  %v21179_v61 = vadd.f32 %v2625_v9, %v2533_v5 }
 0x2c3   : > { %v21182_v59 = vand.u32 4294901760, %v21179_v61  ;;  %17828 = vmatprep.subr.mxu0 %v21177_v19  ;;  %v21187_v8 = vsub.f32 %v21174_v11, %v21177_v19 }
 0x2c4   : > { %17829 = vmatpush3.msra.mxu0 %v21177_v19 }
 0x2c5   : > { %v21191_v22 = vand.u32 4294901760, %v21187_v8  ;;  %17830 = vmatprep.subr.mxu0 %v21182_v59  ;;  %v21196_v52 = vsub.f32 %v21179_v61, %v21182_v59 }
 0x2c6   : > { %17831 = vmatpush3.msra.mxu0 %v21182_v59 }
 0x2c7   : > { %v3321_v41 = vsub.f32 %v21187_v8, %v21191_v22  ;;  %v21202_v46 = vand.u32 4294901760, %v21196_v52  ;;  %17842 = vmatprep.subr.mxu0 %v21187_v8 }
 0x2c9   : > { %v3322_v4 = vand.u32 4294901760, %v3321_v41  ;;  %v3328_v12 = vsub.f32 %v21196_v52, %v21202_v46 }
 0x2cb   : > { %17835 = vmatprep.subr.mxu1 %v3322_v4  ;;  %v3329_v29 = vand.u32 4294901760, %v3328_v12 }
 0x2cc   : > { %17836 = vmatpush3.msra.mxu1 %v3322_v4 }
 0x2cd   : > { %17837 = vmatprep.subr.mxu1 %v3329_v29 }
 0x2ce   : > { %17838 = vmatpush3.msra.mxu1 %v3329_v29 }
 0x2cf   : > { %17849 = vmatprep.subr.mxu1 %v21177_v19 }
 0x32d   : > { %v17792_v44 = vpop.f32.mrf.mxu0 }
 0x32f   : > { %v2738_v51 = vpop.f32.mrf.mxu0 }
 0x335   : > { %v17799_v28 = vpop.f32.mrf.mxu1  ;;  %v17806_v39 = vpop.f32.mrf.mxu0 }
 0x336   : > { %v2836_v50 = vadd.f32 %v17799_v28, %v17792_v44 }
 0x337   : > { %v2829_v33 = vpop.f32.mrf.mxu1  ;;  %v2911_v53 = vpop.f32.mrf.mxu0 }
 0x338   : > { %v2830_v40 = vadd.f32 %v2829_v33, %v2738_v51  ;;  %v2919_v23 = vadd.f32 %v17806_v39, %v2836_v50 }
 0x33a   : > { %v2912_v0 = vadd.f32 %v2911_v53, %v2830_v40 }
 0x33d   : > { %v17813_v36 = vpop.f32.mrf.mxu1 }
 0x33e   : > { %v3002_v62 = vadd.f32 %v17813_v36, %v2919_v23  ;;  %v17820_v37 = vpop.f32.mrf.mxu0 }
 0x33f   : > { %v2993_v63 = vpop.f32.mrf.mxu1 }
 0x340   : > { %v2994_v24 = vadd.f32 %v2993_v63, %v2912_v0  ;;  %v3085_v57 = vadd.f32 %v17820_v37, %v3002_v62  ;;  %v3078_v56 = vpop.f32.mrf.mxu0 }
 0x342   : > { %v3079_v2 = vadd.f32 %v3078_v56, %v2994_v24 }
 0x345   : > { %v17827_v20 = vpop.f32.mrf.mxu1 }
 0x346   : > { %v3164_v1 = vadd.f32 %v17827_v20, %v3085_v57 }
 0x347   : > { %v3157_v6 = vpop.f32.mrf.mxu1 }
 0x348   : > { %v3158_v55 = vadd.f32 %v3157_v6, %v3079_v2  ;;  %v3168_v13 = vmul.f32 0.17677669, %v3164_v1 }
 0x34a   : > { %v3167_v14 = vmul.f32 0.17677669, %v3158_v55  ;;  %v3172_v3 = vadd.f32 %v21214_v43, %v3168_v13 }
 0x34c   : > { %v3171_v25 = vadd.f32 %v21212_v16, %v3167_v14  ;;  %v3177_v58 = vsel %vm3173_vm1, %v3172_v3, -inf }
 0x34e   : > { %v3174_v42 = vsel %vm3173_vm1, %v3171_v25, -inf }
 0x34f   : > { %3175 = vmax.xlane.f32.xlu0 %v3174_v42 }
 0x353   : > { %3178 = vmax.xlane.f32.xlu0 %v3177_v58 }
 0x369   : > { %3710 = vrot.lane.b32.xlu0 %v21168_v38, %s19712_s7 }
 0x3d8   : > { %v3176_v31 = vpop.xlane.xlu0 %3175 }
 0x3d9   : > { %v3180_v47 = vsub.f32 %v3171_v25, %v3176_v31 }
 0x3db   : > { %v3182_v54 = vmul.f32 1.442695, %v3180_v47 }
 0x3dc   : > { %v3179_v7 = vpop.xlane.xlu0 %3178 }
 0x3dd   : > { %19232 = vpow2.f32 %v3182_v54  ;;  %v3181_v27 = vsub.f32 %v3172_v3, %v3179_v7 }
 0x3df   : > { %v3184_v21 = vmul.f32 1.442695, %v3181_v27 }
 0x3e0   : > { %v3711_v9 = vpop.permute.xlu0 %3710 }
 0x3e1   : > { %19234 = vpow2.f32 %v3184_v21  ;;  %v3718_v41 = vsel %vm2652_vm0, %v3711_v9, 0 }
 0x3e2   : > { %v21231_v29 = vand.u32 4294901760, %v3718_v41 }
 0x3e4   : > { %v21238_v40 = vsub.f32 %v3718_v41, %v21231_v29 }
 0x3e6   : > { %v21245_v24 = vand.u32 4294901760, %v21238_v40 }
 0x3e8   : > { %v3839_v55 = vsub.f32 %v21238_v40, %v21245_v24 }
 0x3ea   : > { %v19233_v35 = vpop.eup %19232  ;;  %v3840_v58 = vand.u32 4294901760, %v3839_v55 }
 0x3eb   : > { %v3186_v49 = vsel %vm3173_vm1, %v19233_v35, 0.0 }
 0x3ec   : > { %3187 = vadd.xlane.f32.xlu1 %v3186_v49 }
 0x3ee   : > { %v19235_v15 = vpop.eup %19234 }
 0x3ef   : > { %v3189_v32 = vsel %vm3173_vm1, %v19235_v15, 0.0 }
 0x3f0   : > { %3190 = vadd.xlane.f32.xlu1 %v3189_v32 }
 0x401   : > { %3708 = vrot.lane.b32.xlu1 %v21158_v48, %s19712_s7 }
 0x405   : > { %3704 = vrot.lane.b32.xlu1 %v21156_v18, %s19712_s7 }
 0x409   : > { %3706 = vrot.lane.b32.xlu1 %v21164_v17, %s19712_s7 }
 0x475   : > { %v3188_v5 = vpop.xlane.xlu1 %3187 }
 0x476   : > { %19236 = vrcp.f32 %v3188_v5 }
 0x479   : > { %v3191_v26 = vpop.xlane.xlu1 %3190 }
 0x47a   : > { %19238 = vrcp.f32 %v3191_v26 }
 0x47d   : > { %v3709_v4 = vpop.permute.xlu1 %3708 }
 0x47e   : > { %v3716_v44 = vsel %vm2652_vm0, %v3709_v4, 0 }
 0x47f   : > { %v21235_v50 = vand.u32 4294901760, %v3716_v44 }
 0x481   : > { %v3705_v53 = vpop.permute.xlu1 %3704  ;;  %v21242_v0 = vsub.f32 %v3716_v44, %v21235_v50 }
 0x482   : > { %v3712_v57 = vsel %vm2652_vm0, %v3705_v53, 0 }
 0x483   : > { %v19237_v12 = vpop.eup %19236  ;;  %v21251_v1 = vand.u32 4294901760, %v21242_v0  ;;  %v21253_v6 = vand.u32 4294901760, %v3712_v57 }
 0x484   : > { %v3193_v28 = vmul.f32 %v19237_v12, %v19233_v35 }
 0x485   : > { %v3707_v10 = vpop.permute.xlu1 %3706  ;;  %v3846_v42 = vsub.f32 %v21242_v0, %v21251_v1  ;;  %v3788_v3 = vsub.f32 %v3712_v57, %v21253_v6 }
 0x486   : > { %v3197_v51 = vsel %vm3173_vm1, %v3193_v28, 0  ;;  %v3714_v14 = vsel %vm2652_vm0, %v3707_v10, 0 }
 0x487   : > { %v19239_v33 = vpop.eup %19238  ;;  %v3269_v39 = vand.u32 4294901760, %v3197_v51  ;;  %v3797_v31 = vand.u32 4294901760, %v3714_v14  ;;  %v3789_v47 = vand.u32 4294901760, %v3788_v3 }
 0x488   : > { %v3195_v36 = vmul.f32 %v19239_v33, %v19235_v15 }
 0x489   : > { %17839 = vmatprep.mubr.f32.mxu1 %v3269_v39  ;;  %v3270_v23 = vsub.f32 %v3197_v51, %v3269_v39  ;;  %v3798_v54 = vsub.f32 %v3714_v14, %v3797_v31 }
 0x48a   : > { %v3200_v63 = vsel %vm3173_vm1, %v3195_v36, 0 }
 0x48b   : > { %v3279_v62 = vand.u32 4294901760, %v3200_v63  ;;  %v3271_v37 = vand.u32 4294901760, %v3270_v23 }
 0x48d   : > { %v3280_v56 = vsub.f32 %v3200_v63, %v3279_v62  ;;  %17840 = vmatmul.mubr.f32.vlgmr.msra.gmra.mxu1 %v3279_v62  ;;  %v3272_v20 = vsub.f32 %v3270_v23, %v3271_v37 }
 0x48e   : > { %17850 = vmatpush3.msra.mxu1 %v21177_v19  ;;  %17853 = vmatprep.mubr.f32.mxu1 %v3271_v37 }
 0x48f   : > { %17851 = vmatprep.subr.mxu1 %v21182_v59  ;;  %v3273_v60 = vand.u32 4294901760, %v3272_v20  ;;  %v3281_v2 = vand.u32 4294901760, %v3280_v56 }
 0x490   : > { %17852 = vmatpush3.msra.mxu1 %v21182_v59 }
 0x491   : > { %17863 = vmatprep.subr.mxu1 %v21177_v19  ;;  %17832 = vmatprep.mubr.f32.mxu0 %v3273_v60  ;;  %v3282_v13 = vsub.f32 %v3280_v56, %v3281_v2 }
 0x492   : > { %17854 = vmatmul.mubr.f32.vlgmr.msra.gmra.mxu1 %v3281_v2 }
 0x493   : > { %17864 = vmatpush3.msra.mxu1 %v21177_v19  ;;  %17867 = vmatprep.mubr.f32.mxu1 %v3269_v39  ;;  %v3283_v25 = vand.u32 4294901760, %v3282_v13  ;;  %v3847_v19 = vand.u32 4294901760, %v3846_v42 }
 0x494   : > { %17865 = vmatprep.subr.mxu1 %v21182_v59 }
 0x495   : > { %17866 = vmatpush3.msra.mxu1 %v21182_v59  ;;  %17833 = vmatmul.mubr.f32.vlgmr.msra.gmra.mxu0 %v3283_v25  ;;  %v3790_v59 = vsub.f32 %v3788_v3, %v3789_v47 }
 0x496   : > { %17877 = vmatprep.subr.mxu1 %v3840_v58  ;;  %17843 = vmatpush3.msra.mxu0 %v21187_v8  ;;  %v3799_v8 = vand.u32 4294901760, %v3798_v54 }
 0x497   : > { %17868 = vmatmul.mubr.f32.vlgmr.msra.gmra.mxu1 %v3279_v62  ;;  %17844 = vmatprep.subr.mxu0 %v21196_v52 }
 0x498   : > { %17878 = vmatpush3.xpose.msra.mxu1 %v3840_v58  ;;  %17846 = vmatprep.mubr.f32.mxu0 %v3270_v23 }
 0x499   : > { %17879 = vmatprep.subr.mxu1 %v3847_v19  ;;  %17881 = vmatprep.mubr.f32.mxu1 %v21253_v6 }
 0x49a   : > { %17845 = vmatpush3.msra.mxu0 %v21196_v52  ;;  %v3791_v52 = vand.u32 4294901760, %v3790_v59 }
 0x49b   : > { %17856 = vmatprep.subr.mxu0 %v21191_v22  ;;  %17847 = vmatmul.mubr.f32.vlgmr.msra.gmra.mxu0 %v3280_v56 }
 0x49c   : > { %17857 = vmatpush3.msra.mxu0 %v21191_v22  ;;  %17880 = vmatpush3.xpose.msra.mxu1 %v3847_v19  ;;  %v3800_v22 = vsub.f32 %v3798_v54, %v3799_v8 }
 0x49d   : > { %17858 = vmatprep.subr.mxu0 %v21202_v46  ;;  %17860 = vmatprep.mubr.f32.mxu0 %v3269_v39 }
 0x49e   : > { %17891 = vmatprep.subr.mxu1 %v21231_v29  ;;  %17859 = vmatpush3.msra.mxu0 %v21202_v46  ;;  %v3801_v46 = vand.u32 4294901760, %v3800_v22 }
 0x49f   : > { %17870 = vmatprep.subr.mxu0 %v21231_v29  ;;  %17882 = vmatmul.mubr.f32.vlgmr.msra.gmra.mxu1 %v3797_v31 }
 0x4a0   : > { %17861 = vmatmul.mubr.f32.vlgmr.msra.gmra.mxu0 %v3279_v62  ;;  %17892 = vmatpush3.xpose.msra.mxu1 %v21231_v29 }
 0x4a1   : > { %17871 = vmatpush3.xpose.msra.mxu0 %v21231_v29  ;;  %17895 = vmatprep.mubr.f32.mxu1 %v3789_v47 }
 0x4a2   : > { %17872 = vmatprep.subr.mxu0 %v21235_v50  ;;  %17874 = vmatprep.mubr.f32.mxu0 %v3791_v52 }
 0x4a3   : > { %17893 = vmatprep.subr.mxu1 %v21235_v50 }
 0x4a4   : > { %17894 = vmatpush3.xpose.msra.mxu1 %v21235_v50 }
 0x4a5   : > { %17873 = vmatpush3.xpose.msra.mxu0 %v21235_v50  ;;  %17905 = vmatprep.subr.mxu1 %v21231_v29 }
 0x4a6   : > { %17884 = vmatprep.subr.mxu0 %v21238_v40 }
 0x4a7   : > { %17896 = vmatmul.mubr.f32.vlgmr.msra.gmra.mxu1 %v3799_v8 }
 0x4a8   : > { %17875 = vmatmul.mubr.f32.vlgmr.msra.gmra.mxu0 %v3801_v46  ;;  %17906 = vmatpush3.xpose.msra.mxu1 %v21231_v29 }
 0x4a9   : > { %17885 = vmatpush3.xpose.msra.mxu0 %v21238_v40  ;;  %17888 = vmatprep.mubr.f32.mxu0 %v3788_v3 }
 0x4aa   : > { %17909 = vmatprep.mubr.f32.mxu1 %v21253_v6  ;;  %17886 = vmatprep.subr.mxu0 %v21242_v0 }
 0x4ab   : > { %17907 = vmatprep.subr.mxu1 %v21235_v50 }
 0x4ac   : > { %17908 = vmatpush3.xpose.msra.mxu1 %v21235_v50 }
 0x4ad   : > { %17887 = vmatpush3.xpose.msra.mxu0 %v21242_v0 }
 0x4ae   : > { %17898 = vmatprep.subr.mxu0 %v21245_v24 }
 0x4af   : > { %17910 = vmatmul.mubr.f32.vlgmr.msra.gmra.mxu1 %v3797_v31 }
 0x4b0   : > { %17889 = vmatmul.mubr.f32.vlgmr.msra.gmra.mxu0 %v3798_v54 }
 0x4b1   : > { %17899 = vmatpush3.xpose.msra.mxu0 %v21245_v24  ;;  %17902 = vmatprep.mubr.f32.mxu0 %v21253_v6 }
 0x4b2   : > { %17900 = vmatprep.subr.mxu0 %v21251_v1 }
 0x4b5   : > { %17901 = vmatpush3.xpose.msra.mxu0 %v21251_v1 }
 0x4b8   : > { %17903 = vmatmul.mubr.f32.vlgmr.msra.gmra.mxu0 %v3797_v31 }
 0x54d   : > { %v17841_v7 = vpop.f32.mrf.mxu1 }
 0x54f   : > { %v21296_v21 = vpop.f32.mrf.mxu1 }
 0x552   : > { %v17855_v15 = vpop.f32.mrf.mxu1 }
 0x554   : > { %v21302_v9 = vpop.f32.mrf.mxu1 }
 0x555   : > { %v17834_v27 = vpop.f32.mrf.mxu0 }
 0x556   : > { %v3373_v35 = vadd.f32 %v17841_v7, %v17834_v27 }
 0x557   : > { %v21298_v49 = vpop.f32.mrf.mxu0  ;;  %v17869_v29 = vpop.f32.mrf.mxu1 }
 0x559   : > { %v21308_v51 = vpop.f32.mrf.mxu1 }
 0x55b   : > { %v17848_v32 = vpop.f32.mrf.mxu0 }
 0x55c   : > { %v3456_v5 = vadd.f32 %v17848_v32, %v3373_v35 }
 0x55d   : > { %v21300_v26 = vpop.f32.mrf.mxu0 }
 0x55e   : > { %v3539_v41 = vadd.f32 %v17855_v15, %v3456_v5 }
 0x55f   : > { %v17883_v50 = vpop.f32.mrf.mxu1 }
 0x560   : > { %v17862_v4 = vpop.f32.mrf.mxu0 }
 0x561   : > { %v3622_v12 = vadd.f32 %v17862_v4, %v3539_v41  ;;  %v3884_v40 = vpop.f32.mrf.mxu1 }
 0x562   : > { %v21306_v28 = vpop.f32.mrf.mxu0 }
 0x563   : > { %v21304_v44 = vadd.f32 %v17869_v29, %v3622_v12 }
 0x567   : > { %v17897_v53 = vpop.f32.mrf.mxu1 }
 0x568   : > { %v17876_v33 = vpop.f32.mrf.mxu0 }
 0x569   : > { %v3891_v23 = vadd.f32 %v17883_v50, %v17876_v33  ;;  %v4048_v24 = vpop.f32.mrf.mxu1 }
 0x56a   : > { %v3793_v39 = vpop.f32.mrf.mxu0 }
 0x56b   : > { %v3885_v0 = vadd.f32 %v3884_v40, %v3793_v39 }
 0x56f   : > { %v17911_v56 = vpop.f32.mrf.mxu1 }
 0x570   : > { %v17890_v36 = vpop.f32.mrf.mxu0 }
 0x571   : > { %v3974_v62 = vadd.f32 %v17890_v36, %v3891_v23  ;;  %v4212_v55 = vpop.f32.mrf.mxu1 }
 0x572   : > { %v3966_v63 = vpop.f32.mrf.mxu0 }
 0x573   : > { %v3967_v37 = vadd.f32 %v3966_v63, %v3885_v0  ;;  %v4057_v57 = vadd.f32 %v17897_v53, %v3974_v62 }
 0x575   : > { %v4049_v2 = vadd.f32 %v4048_v24, %v3967_v37 }
 0x578   : > { %v17904_v20 = vpop.f32.mrf.mxu0 }
 0x579   : > { %v4140_v60 = vadd.f32 %v17904_v20, %v4057_v57 }
 0x57a   : > { %v4133_v1 = vpop.f32.mrf.mxu0 }
 0x57b   : > { %v4219_v6 = vadd.f32 %v17911_v56, %v4140_v60  ;;  %v4134_v10 = vadd.f32 %v4133_v1, %v4049_v2 }
 0x57d   : > { %v4223_v13 = vmul.f32 0.17677669, %v4219_v6  ;;  %v4213_v14 = vadd.f32 %v4212_v55, %v4134_v10 }
 0x57f   : > { %v4222_v25 = vmul.f32 0.17677669, %v4213_v14  ;;  %v4225_v42 = vadd.f32 %v4223_v13, %v21214_v43 }
 0x581   : > { %v4229_v3 = vsel %vm3173_vm1, %v4225_v42, -inf  ;;  %v4224_v58 = vadd.f32 %v4222_v25, %v21212_v16 }
 0x582   : > { %4230 = vmax.xlane.f32.xlu1 %v4229_v3 }
 0x583   : > { %v4226_v31 = vsel %vm3173_vm1, %v4224_v58, -inf }
 0x584   : > { %4227 = vmax.xlane.f32.xlu0 %v4226_v31 }
 0x593   : > { %4250 = vrot.lane.b32.xlu1 %v21179_v61, %s19712_s7 }
 0x597   : > { %4770 = vrot.lane.b32.xlu1 %v21168_v38, %s19713_s25 }
 0x59b   : > { %4768 = vrot.lane.b32.xlu1 %v21158_v48, %s19713_s25 }
 0x59f   : > { %4766 = vrot.lane.b32.xlu1 %v21164_v17, %s19713_s25 }
 0x60b   : > { %v4231_v19 = vpop.xlane.xlu1 %4230 }
 0x60c   : > { %v4233_v47 = vsub.f32 %v4225_v42, %v4231_v19 }
 0x60d   : > { %v4228_v54 = vpop.xlane.xlu0 %4227 }
 0x60e   : > { %v4236_v59 = vmul.f32 1.442695, %v4233_v47  ;;  %v4232_v8 = vsub.f32 %v4224_v58, %v4228_v54 }
 0x60f   : > { %v4251_v35 = vpop.permute.xlu1 %4250 }
 0x610   : > { %19240 = vpow2.f32 %v4236_v59  ;;  %v4234_v52 = vmul.f32 1.442695, %v4232_v8  ;;  %v21328_v32 = vand.u32 4294901760, %v4251_v35 }
 0x612   : > { %19242 = vpow2.f32 %v4234_v52  ;;  %v21331_v4 = vsub.f32 %v4251_v35, %v21328_v32 }
 0x613   : > { %v4771_v41 = vpop.permute.xlu1 %4770 }
 0x614   : > { %v4778_v33 = vsel %vm2652_vm0, %v4771_v41, 0  ;;  %v21337_v39 = vand.u32 4294901760, %v21331_v4 }
 0x615   : > { %v21343_v53 = vand.u32 4294901760, %v4778_v33 }
 0x616   : > { %v4388_v62 = vsub.f32 %v21331_v4, %v21337_v39 }
 0x617   : > { %v4769_v40 = vpop.permute.xlu1 %4768  ;;  %v21358_v2 = vsub.f32 %v4778_v33, %v21343_v53 }
 0x618   : > { %v4776_v63 = vsel %vm2652_vm0, %v4769_v40, 0  ;;  %v4389_v1 = vand.u32 4294901760, %v4388_v62 }
 0x619   : > { %v21353_v20 = vand.u32 4294901760, %v4776_v63  ;;  %v21366_v3 = vand.u32 4294901760, %v21358_v2 }
 0x61b   : > { %v21363_v14 = vsub.f32 %v4776_v63, %v21353_v20  ;;  %v4767_v54 = vpop.permute.xlu1 %4766  ;;  %v4899_v8 = vsub.f32 %v21358_v2, %v21366_v3 }
 0x61d   : > { %v19241_v22 = vpop.eup %19240  ;;  %v21371_v47 = vand.u32 4294901760, %v21363_v14 }
 0x61e   : > { %v4241_v46 = vsel %vm3173_vm1, %v19241_v22, 0.0 }
 0x61f   : > { %v19243_v7 = vpop.eup %19242  ;;  %4242 = vadd.xlane.f32.xlu0 %v4241_v46  ;;  %v4774_v46 = vsel %vm2652_vm0, %v4767_v54, 0 }
 0x620   : > { %v4238_v27 = vsel %vm3173_vm1, %v19243_v7, 0.0  ;;  %v4857_v41 = vand.u32 4294901760, %v4774_v46 }
 0x622   : > { %v4858_v33 = vsub.f32 %v4774_v46, %v4857_v41 }
 0x623   : > { %4239 = vadd.xlane.f32.xlu0 %v4238_v27  ;;  %v4906_v27 = vsub.f32 %v21363_v14, %v21371_v47 }
 0x639   : > { %4252 = vrot.lane.b32.xlu0 %v21174_v11, %s19712_s7 }
 0x63d   : > { %4764 = vrot.lane.b32.xlu0 %v21156_v18, %s19713_s25 }
 0x6a8   : > { %v4243_v15 = vpop.xlane.xlu0 %4242 }
 0x6a9   : > { %19244 = vrcp.f32 %v4243_v15  ;;  %v4900_v15 = vand.u32 4294901760, %v4899_v8 }
 0x6ac   : > { %v4240_v5 = vpop.xlane.xlu0 %4239 }
 0x6ad   : > { %19246 = vrcp.f32 %v4240_v5 }
 0x6b0   : > { %v4253_v12 = vpop.permute.xlu0 %4252 }
 0x6b1   : > { %v4291_v29 = vand.u32 4294901760, %v4253_v12 }
 0x6b3   : > { %v21334_v50 = vsub.f32 %v4253_v12, %v4291_v29  ;;  %17912 = vmatprep.subr.mxu0 %v4291_v29  ;;  %v4907_v12 = vand.u32 4294901760, %v4906_v27 }
 0x6b4   : > { %17913 = vmatpush3.msra.mxu0 %v4291_v29  ;;  %v4765_v55 = vpop.permute.xlu0 %4764 }
 0x6b5   : > { %17914 = vmatprep.subr.mxu0 %v21328_v32  ;;  %v21341_v36 = vand.u32 4294901760, %v21334_v50  ;;  %v4772_v58 = vsel %vm2652_vm0, %v4765_v55, 0 }
 0x6b6   : > { %v19245_v23 = vpop.eup %19244  ;;  %17915 = vmatpush3.msra.mxu0 %v21328_v32  ;;  %v21373_v59 = vand.u32 4294901760, %v4772_v58 }
 0x6b7   : > { %17926 = vmatprep.subr.mxu0 %v21334_v50  ;;  %v4381_v0 = vsub.f32 %v21334_v50, %v21341_v36  ;;  %v4247_v37 = vmul.f32 %v19245_v23, %v19241_v22 }
 0x6b8   : > { %v4848_v35 = vsub.f32 %v4772_v58, %v21373_v59 }
 0x6b9   : > { %v4382_v24 = vand.u32 4294901760, %v4381_v0  ;;  %v4260_v57 = vsel %vm3173_vm1, %v4247_v37, 0 }
 0x6ba   : > { %v19247_v56 = vpop.eup %19246  ;;  %v21355_v60 = vand.u32 4294901760, %v4260_v57 }
 0x6bb   : > { %17919 = vmatprep.subr.mxu1 %v4382_v24  ;;  %v4245_v6 = vmul.f32 %v19247_v56, %v19243_v7 }
 0x6bc   : > { %17920 = vmatpush3.msra.mxu1 %v4382_v24  ;;  %v4340_v10 = vsub.f32 %v4260_v57, %v21355_v60 }
 0x6bd   : > { %17921 = vmatprep.subr.mxu1 %v4389_v1  ;;  %v4257_v13 = vsel %vm3173_vm1, %v4245_v6, 0 }
 0x6be   : > { %17922 = vmatpush3.msra.mxu1 %v4389_v1  ;;  %v4329_v25 = vand.u32 4294901760, %v4257_v13  ;;  %v4341_v42 = vand.u32 4294901760, %v4340_v10 }
 0x6bf   : > { %17933 = vmatprep.subr.mxu1 %v4291_v29 }
 0x6c0   : > { %17923 = vmatprep.mubr.f32.mxu1 %v4329_v25  ;;  %v4330_v31 = vsub.f32 %v4257_v13, %v4329_v25  ;;  %v4342_v52 = vsub.f32 %v4340_v10, %v4341_v42 }
 0x6c1   : > { %17924 = vmatmul.mubr.f32.vlgmr.msra.gmra.mxu1 %v21355_v60 }
 0x6c2   : > { %17934 = vmatpush3.msra.mxu1 %v4291_v29  ;;  %v4331_v19 = vand.u32 4294901760, %v4330_v31  ;;  %v4343_v5 = vand.u32 4294901760, %v4342_v52 }
 0x6c3   : > { %17935 = vmatprep.subr.mxu1 %v21328_v32 }
 0x6c4   : > { %17936 = vmatpush3.msra.mxu1 %v21328_v32  ;;  %17937 = vmatprep.mubr.f32.mxu1 %v4331_v19  ;;  %v4332_v22 = vsub.f32 %v4330_v31, %v4331_v19 }
 0x6c5   : > { %17947 = vmatprep.subr.mxu1 %v4291_v29  ;;  %17938 = vmatmul.mubr.f32.vlgmr.msra.gmra.mxu1 %v4341_v42 }
 0x6c6   : > { %17948 = vmatpush3.msra.mxu1 %v4291_v29  ;;  %17951 = vmatprep.mubr.f32.mxu1 %v4329_v25  ;;  %v4333_v7 = vand.u32 4294901760, %v4332_v22  ;;  %v4849_v29 = vand.u32 4294901760, %v4848_v35 }
 0x6c7   : > { %17949 = vmatprep.subr.mxu1 %v21328_v32 }
 0x6c8   : > { %17950 = vmatpush3.msra.mxu1 %v21328_v32  ;;  %17916 = vmatprep.mubr.f32.mxu0 %v4333_v7  ;;  %v4850_v32 = vsub.f32 %v4848_v35, %v4849_v29 }
 0x6c9   : > { %17961 = vmatprep.subr.mxu1 %v4900_v15  ;;  %17917 = vmatmul.mubr.f32.vlgmr.msra.gmra.mxu0 %v4343_v5 }
 0x6ca   : > { %17927 = vmatpush3.msra.mxu0 %v21334_v50  ;;  %17952 = vmatmul.mubr.f32.vlgmr.msra.gmra.mxu1 %v21355_v60  ;;  %v4859_v50 = vand.u32 4294901760, %v4858_v33 }
 0x6cb   : > { %17962 = vmatpush3.xpose.msra.mxu1 %v4900_v15  ;;  %17928 = vmatprep.subr.mxu0 %v21331_v4 }
 0x6cc   : > { %17930 = vmatprep.mubr.f32.mxu0 %v4330_v31  ;;  %17963 = vmatprep.subr.mxu1 %v4907_v12  ;;  %v4860_v40 = vsub.f32 %v4858_v33, %v4859_v50 }
 0x6cd   : > { %17965 = vmatprep.mubr.f32.mxu1 %v21373_v59  ;;  %17929 = vmatpush3.msra.mxu0 %v21331_v4  ;;  %v4851_v4 = vand.u32 4294901760, %v4850_v32 }
 0x6ce   : > { %17940 = vmatprep.subr.mxu0 %v21341_v36  ;;  %17931 = vmatmul.mubr.f32.vlgmr.msra.gmra.mxu0 %v4340_v10 }
 0x6cf   : > { %17941 = vmatpush3.msra.mxu0 %v21341_v36  ;;  %17964 = vmatpush3.xpose.msra.mxu1 %v4907_v12 }
 0x6d0   : > { %17942 = vmatprep.subr.mxu0 %v21337_v39  ;;  %17944 = vmatprep.mubr.f32.mxu0 %v4329_v25 }
 0x6d1   : > { %17975 = vmatprep.subr.mxu1 %v21343_v53  ;;  %17943 = vmatpush3.msra.mxu0 %v21337_v39  ;;  %v4861_v39 = vand.u32 4294901760, %v4860_v40 }
 0x6d2   : > { %17954 = vmatprep.subr.mxu0 %v21343_v53  ;;  %17966 = vmatmul.mubr.f32.vlgmr.msra.gmra.mxu1 %v4857_v41 }
 0x6d3   : > { %17945 = vmatmul.mubr.f32.vlgmr.msra.gmra.mxu0 %v21355_v60  ;;  %17976 = vmatpush3.xpose.msra.mxu1 %v21343_v53 }
 0x6d4   : > { %17955 = vmatpush3.xpose.msra.mxu0 %v21343_v53  ;;  %17979 = vmatprep.mubr.f32.mxu1 %v4849_v29 }
 0x6d5   : > { %17956 = vmatprep.subr.mxu0 %v21353_v20  ;;  %17958 = vmatprep.mubr.f32.mxu0 %v4851_v4 }
 0x6d6   : > { %17977 = vmatprep.subr.mxu1 %v21353_v20 }
 0x6d7   : > { %17978 = vmatpush3.xpose.msra.mxu1 %v21353_v20 }
 0x6d8   : > { %17957 = vmatpush3.xpose.msra.mxu0 %v21353_v20  ;;  %17989 = vmatprep.subr.mxu1 %v21343_v53 }
 0x6d9   : > { %17968 = vmatprep.subr.mxu0 %v21358_v2 }
 0x6da   : > { %17980 = vmatmul.mubr.f32.vlgmr.msra.gmra.mxu1 %v4859_v50 }
 0x6db   : > { %17959 = vmatmul.mubr.f32.vlgmr.msra.gmra.mxu0 %v4861_v39  ;;  %17990 = vmatpush3.xpose.msra.mxu1 %v21343_v53 }
 0x6dc   : > { %17969 = vmatpush3.xpose.msra.mxu0 %v21358_v2  ;;  %17972 = vmatprep.mubr.f32.mxu0 %v4848_v35 }
 0x6dd   : > { %17993 = vmatprep.mubr.f32.mxu1 %v21373_v59  ;;  %17970 = vmatprep.subr.mxu0 %v21363_v14 }
 0x6de   : > { %17991 = vmatprep.subr.mxu1 %v21353_v20 }
 0x6df   : > { %17992 = vmatpush3.xpose.msra.mxu1 %v21353_v20 }
 0x6e0   : > { %17971 = vmatpush3.xpose.msra.mxu0 %v21363_v14 }
 0x6e1   : > { %17982 = vmatprep.subr.mxu0 %v21366_v3 }
 0x6e2   : > { %17994 = vmatmul.mubr.f32.vlgmr.msra.gmra.mxu1 %v4857_v41 }
 0x6e3   : > { %17973 = vmatmul.mubr.f32.vlgmr.msra.gmra.mxu0 %v4858_v33 }
 0x6e4   : > { %17983 = vmatpush3.xpose.msra.mxu0 %v21366_v3  ;;  %17986 = vmatprep.mubr.f32.mxu0 %v21373_v59 }
 0x6e5   : > { %17984 = vmatprep.subr.mxu0 %v21371_v47 }
 0x6e8   : > { %17985 = vmatpush3.xpose.msra.mxu0 %v21371_v47 }
 0x6eb   : > { %17987 = vmatmul.mubr.f32.vlgmr.msra.gmra.mxu0 %v4857_v41 }
 0x781   : > { %v17925_v36 = vpop.f32.mrf.mxu1 }
 0x783   : > { %v21417_v23 = vpop.f32.mrf.mxu1 }
 0x785   : > { %v17939_v62 = vpop.f32.mrf.mxu1 }
 0x787   : > { %v21423_v56 = vpop.f32.mrf.mxu1 }
 0x789   : > { %v17918_v53 = vpop.f32.mrf.mxu0 }
 0x78a   : > { %v4433_v63 = vadd.f32 %v17925_v36, %v17918_v53  ;;  %v17953_v1 = vpop.f32.mrf.mxu1 }
 0x78b   : > { %v21419_v0 = vpop.f32.mrf.mxu0 }
 0x78c   : > { %v21429_v55 = vpop.f32.mrf.mxu1 }
 0x78e   : > { %v17932_v37 = vpop.f32.mrf.mxu0 }
 0x78f   : > { %v4516_v24 = vadd.f32 %v17932_v37, %v4433_v63 }
 0x790   : > { %v21421_v57 = vpop.f32.mrf.mxu0 }
 0x791   : > { %v4599_v20 = vadd.f32 %v17939_v62, %v4516_v24 }
 0x792   : > { %v17967_v14 = vpop.f32.mrf.mxu1 }
 0x793   : > { %v17946_v60 = vpop.f32.mrf.mxu0 }
 0x794   : > { %v4682_v2 = vadd.f32 %v17946_v60, %v4599_v20  ;;  %v4944_v42 = vpop.f32.mrf.mxu1 }
 0x795   : > { %v21427_v10 = vpop.f32.mrf.mxu0 }
 0x796   : > { %v21425_v6 = vadd.f32 %v17953_v1, %v4682_v2 }
 0x79a   : > { %v17981_v31 = vpop.f32.mrf.mxu1 }
 0x79b   : > { %v17960_v13 = vpop.f32.mrf.mxu0 }
 0x79c   : > { %v4951_v58 = vadd.f32 %v17967_v14, %v17960_v13  ;;  %v5108_v8 = vpop.f32.mrf.mxu1 }
 0x79d   : > { %v4853_v25 = vpop.f32.mrf.mxu0 }
 0x79e   : > { %v4945_v47 = vadd.f32 %v4944_v42, %v4853_v25 }
 0x7a2   : > { %v17995_v22 = vpop.f32.mrf.mxu1 }
 0x7a3   : > { %v17974_v3 = vpop.f32.mrf.mxu0 }
 0x7a4   : > { %v5034_v54 = vadd.f32 %v17974_v3, %v4951_v58  ;;  %v5272_v41 = vpop.f32.mrf.mxu1 }
 0x7a5   : > { %v5026_v19 = vpop.f32.mrf.mxu0 }
 0x7a6   : > { %v5027_v59 = vadd.f32 %v5026_v19, %v4945_v47  ;;  %v5117_v52 = vadd.f32 %v17981_v31, %v5034_v54 }
 0x7a8   : > { %v5109_v27 = vadd.f32 %v5108_v8, %v5027_v59 }
 0x7ab   : > { %v17988_v46 = vpop.f32.mrf.mxu0 }
 0x7ac   : > { %v5200_v7 = vadd.f32 %v17988_v46, %v5117_v52 }
 0x7ad   : > { %v5193_v35 = vpop.f32.mrf.mxu0 }
 0x7ae   : > { %v5279_v15 = vadd.f32 %v17995_v22, %v5200_v7  ;;  %v5194_v5 = vadd.f32 %v5193_v35, %v5109_v27 }
 0x7b0   : > { %v5283_v12 = vmul.f32 0.17677669, %v5279_v15  ;;  %v5273_v29 = vadd.f32 %v5272_v41, %v5194_v5 }
 0x7b2   : > { %v5282_v33 = vmul.f32 0.17677669, %v5273_v29  ;;  %v5285_v32 = vadd.f32 %v5283_v12, %v21214_v43 }
 0x7b4   : > { %v5289_v50 = vsel %vm3173_vm1, %v5285_v32, -inf  ;;  %v5284_v4 = vadd.f32 %v5282_v33, %v21212_v16 }
 0x7b5   : > { %5290 = vmax.xlane.f32.xlu1 %v5289_v50 }
 0x7b6   : > { %v5286_v40 = vsel %vm3173_vm1, %v5284_v4, -inf }
 0x7b7   : > { %5287 = vmax.xlane.f32.xlu0 %v5286_v40 }
 0x7c6   : > { %5308 = vrot.lane.b32.xlu1 %v21179_v61, %s19713_s25 }
 0x7ca   : > { %5828 = vrot.lane.b32.xlu1 %v21168_v38, %s19714_s3 }
 0x7ce   : > { %5826 = vrot.lane.b32.xlu1 %v21158_v48, %s19714_s3 }
 0x7d2   : > { %5824 = vrot.lane.b32.xlu1 %v21164_v17, %s19714_s3 }
 0x83e   : > { %v5291_v39 = vpop.xlane.xlu1 %5290 }
 0x83f   : > { %v5293_v36 = vsub.f32 %v5285_v32, %v5291_v39 }
 0x840   : > { %v5288_v53 = vpop.xlane.xlu0 %5287 }
 0x841   : > { %v5296_v63 = vmul.f32 1.442695, %v5293_v36  ;;  %v5292_v62 = vsub.f32 %v5284_v4, %v5288_v53 }
 0x842   : > { %v5309_v48 = vpop.permute.xlu1 %5308 }
 0x843   : > { %19248 = vpow2.f32 %v5296_v63  ;;  %v5294_v37 = vmul.f32 1.442695, %v5292_v62  ;;  %v21449_v2 = vand.u32 4294901760, %v5309_v48 }
 0x845   : > { %19250 = vpow2.f32 %v5294_v37  ;;  %v21452_v14 = vsub.f32 %v5309_v48, %v21449_v2 }
 0x846   : > { %v5829_v13 = vpop.permute.xlu1 %5828 }
 0x847   : > { %v5836_v3 = vsel %vm2652_vm0, %v5829_v13, 0 }
 0x848   : > { %v21464_v54 = vand.u32 4294901760, %v5836_v3 }
 0x84a   : > { %v5827_v31 = vpop.permute.xlu1 %5826  ;;  %v21479_v5 = vsub.f32 %v5836_v3, %v21464_v54 }
 0x84b   : > { %v5834_v59 = vsel %vm2652_vm0, %v5827_v31, 0 }
 0x84c   : > { %v21474_v35 = vand.u32 4294901760, %v5834_v59  ;;  %v21487_v39 = vand.u32 4294901760, %v21479_v5 }
 0x84e   : > { %v21484_v50 = vsub.f32 %v5834_v59, %v21474_v35  ;;  %v5825_v37 = vpop.permute.xlu1 %5824 }
 0x84f   : > { %v5832_v48 = vsel %vm2652_vm0, %v5825_v37, 0 }
 0x850   : > { %v19249_v24 = vpop.eup %19248  ;;  %v21492_v62 = vand.u32 4294901760, %v21484_v50  ;;  %v5915_v31 = vand.u32 4294901760, %v5832_v48 }
 0x851   : > { %v5301_v20 = vsel %vm3173_vm1, %v19249_v24, 0.0 }
 0x852   : > { %v19251_v60 = vpop.eup %19250  ;;  %5302 = vadd.xlane.f32.xlu0 %v5301_v20  ;;  %v5957_v20 = vsub.f32 %v21479_v5, %v21487_v39  ;;  %v5916_v59 = vsub.f32 %v5832_v48, %v5915_v31 }
 0x853   : > { %v5298_v38 = vsel %vm3173_vm1, %v19251_v60, 0.0 }
 0x856   : > { %5299 = vadd.xlane.f32.xlu0 %v5298_v38 }
 0x86c   : > { %5310 = vrot.lane.b32.xlu0 %v21174_v11, %s19713_s25 }
 0x870   : > { %5822 = vrot.lane.b32.xlu0 %v21156_v18, %s19714_s3  ;;  %v21458_v18 = vand.u32 4294901760, %v21452_v14 }
 0x872   : > { %v5446_v52 = vsub.f32 %v21452_v14, %v21458_v18 }
 0x874   : > { %v5447_v41 = vand.u32 4294901760, %v5446_v52 }
 0x8db   : > { %v5303_v17 = vpop.xlane.xlu0 %5302 }
 0x8dc   : > { %19252 = vrcp.f32 %v5303_v17 }
 0x8df   : > { %v5300_v1 = vpop.xlane.xlu0 %5299 }
 0x8e0   : > { %19254 = vrcp.f32 %v5300_v1  ;;  %v5964_v1 = vsub.f32 %v21484_v50, %v21492_v62 }
 0x8e3   : > { %v5311_v25 = vpop.permute.xlu0 %5310 }
 0x8e4   : > { %v5349_v42 = vand.u32 4294901760, %v5311_v25 }
 0x8e6   : > { %v21455_v58 = vsub.f32 %v5311_v25, %v5349_v42  ;;  %17996 = vmatprep.subr.mxu0 %v5349_v42  ;;  %v5958_v25 = vand.u32 4294901760, %v5957_v20 }
 0x8e7   : > { %17997 = vmatpush3.msra.mxu0 %v5349_v42  ;;  %v5823_v33 = vpop.permute.xlu0 %5822 }
 0x8e8   : > { %17998 = vmatprep.subr.mxu0 %v21449_v2  ;;  %v21462_v19 = vand.u32 4294901760, %v21455_v58  ;;  %v5830_v36 = vsel %vm2652_vm0, %v5823_v33, 0 }
 0x8e9   : > { %v19253_v47 = vpop.eup %19252  ;;  %17999 = vmatpush3.msra.mxu0 %v21449_v2 }
 0x8ea   : > { %18010 = vmatprep.subr.mxu0 %v21455_v58  ;;  %v5439_v8 = vsub.f32 %v21455_v58, %v21462_v19  ;;  %v5307_v22 = vmul.f32 %v19253_v47, %v19249_v24  ;;  %v21494_v24 = vand.u32 4294901760, %v5830_v36 }
 0x8ec   : > { %v5440_v46 = vand.u32 4294901760, %v5439_v8  ;;  %v5318_v7 = vsel %vm3173_vm1, %v5307_v22, 0  ;;  %v5906_v13 = vsub.f32 %v5830_v36, %v21494_v24 }
 0x8ed   : > { %v19255_v27 = vpop.eup %19254  ;;  %v21476_v15 = vand.u32 4294901760, %v5318_v7 }
 0x8ee   : > { %18003 = vmatprep.subr.mxu1 %v5440_v46  ;;  %v5305_v12 = vmul.f32 %v19255_v27, %v19251_v60  ;;  %v5907_v47 = vand.u32 4294901760, %v5906_v13 }
 0x8ef   : > { %18004 = vmatpush3.msra.mxu1 %v5440_v46  ;;  %v5398_v29 = vsub.f32 %v5318_v7, %v21476_v15 }
 0x8f0   : > { %18005 = vmatprep.subr.mxu1 %v5447_v41  ;;  %v5315_v32 = vsel %vm3173_vm1, %v5305_v12, 0 }
 0x8f1   : > { %18006 = vmatpush3.msra.mxu1 %v5447_v41  ;;  %v5387_v4 = vand.u32 4294901760, %v5315_v32  ;;  %v5399_v40 = vand.u32 4294901760, %v5398_v29 }
 0x8f2   : > { %18017 = vmatprep.subr.mxu1 %v5349_v42 }
 0x8f3   : > { %18007 = vmatprep.mubr.f32.mxu1 %v5387_v4  ;;  %v5388_v53 = vsub.f32 %v5315_v32, %v5387_v4  ;;  %v5400_v60 = vsub.f32 %v5398_v29, %v5399_v40 }
 0x8f4   : > { %18008 = vmatmul.mubr.f32.vlgmr.msra.gmra.mxu1 %v21476_v15 }
 0x8f5   : > { %18018 = vmatpush3.msra.mxu1 %v5349_v42  ;;  %v5389_v63 = vand.u32 4294901760, %v5388_v53  ;;  %v5401_v3 = vand.u32 4294901760, %v5400_v60 }
 0x8f6   : > { %18019 = vmatprep.subr.mxu1 %v21449_v2 }
 0x8f7   : > { %18020 = vmatpush3.msra.mxu1 %v21449_v2  ;;  %18021 = vmatprep.mubr.f32.mxu1 %v5389_v63  ;;  %v5390_v38 = vsub.f32 %v5388_v53, %v5389_v63 }
 0x8f8   : > { %18031 = vmatprep.subr.mxu1 %v5349_v42  ;;  %18022 = vmatmul.mubr.f32.vlgmr.msra.gmra.mxu1 %v5399_v40 }
 0x8f9   : > { %18032 = vmatpush3.msra.mxu1 %v5349_v42  ;;  %18035 = vmatprep.mubr.f32.mxu1 %v5387_v4  ;;  %v5391_v17 = vand.u32 4294901760, %v5390_v38  ;;  %v5965_v42 = vand.u32 4294901760, %v5964_v1 }
 0x8fa   : > { %18033 = vmatprep.subr.mxu1 %v21449_v2 }
 0x8fb   : > { %18034 = vmatpush3.msra.mxu1 %v21449_v2  ;;  %18000 = vmatprep.mubr.f32.mxu0 %v5391_v17  ;;  %v5908_v2 = vsub.f32 %v5906_v13, %v5907_v47 }
 0x8fc   : > { %18045 = vmatprep.subr.mxu1 %v5958_v25  ;;  %18001 = vmatmul.mubr.f32.vlgmr.msra.gmra.mxu0 %v5401_v3 }
 0x8fd   : > { %18011 = vmatpush3.msra.mxu0 %v21455_v58  ;;  %18036 = vmatmul.mubr.f32.vlgmr.msra.gmra.mxu1 %v21476_v15  ;;  %v5917_v58 = vand.u32 4294901760, %v5916_v59 }
 0x8fe   : > { %18046 = vmatpush3.xpose.msra.mxu1 %v5958_v25  ;;  %18012 = vmatprep.subr.mxu0 %v21452_v14 }
 0x8ff   : > { %18014 = vmatprep.mubr.f32.mxu0 %v5388_v53  ;;  %18047 = vmatprep.subr.mxu1 %v5965_v42 }
 0x900   : > { %18049 = vmatprep.mubr.f32.mxu1 %v21494_v24  ;;  %18013 = vmatpush3.msra.mxu0 %v21452_v14  ;;  %v5909_v14 = vand.u32 4294901760, %v5908_v2 }
 0x901   : > { %18024 = vmatprep.subr.mxu0 %v21462_v19  ;;  %18015 = vmatmul.mubr.f32.vlgmr.msra.gmra.mxu0 %v5398_v29 }
 0x902   : > { %18025 = vmatpush3.msra.mxu0 %v21462_v19  ;;  %18048 = vmatpush3.xpose.msra.mxu1 %v5965_v42  ;;  %v5918_v19 = vsub.f32 %v5916_v59, %v5917_v58 }
 0x903   : > { %18026 = vmatprep.subr.mxu0 %v21458_v18  ;;  %18028 = vmatprep.mubr.f32.mxu0 %v5387_v4 }
 0x904   : > { %18059 = vmatprep.subr.mxu1 %v21464_v54  ;;  %18027 = vmatpush3.msra.mxu0 %v21458_v18  ;;  %v5919_v18 = vand.u32 4294901760, %v5918_v19 }
 0x905   : > { %18038 = vmatprep.subr.mxu0 %v21464_v54  ;;  %18050 = vmatmul.mubr.f32.vlgmr.msra.gmra.mxu1 %v5915_v31 }
 0x906   : > { %18029 = vmatmul.mubr.f32.vlgmr.msra.gmra.mxu0 %v21476_v15  ;;  %18060 = vmatpush3.xpose.msra.mxu1 %v21464_v54 }
 0x907   : > { %18039 = vmatpush3.xpose.msra.mxu0 %v21464_v54  ;;  %18063 = vmatprep.mubr.f32.mxu1 %v5907_v47 }
 0x908   : > { %18040 = vmatprep.subr.mxu0 %v21474_v35  ;;  %18042 = vmatprep.mubr.f32.mxu0 %v5909_v14  ;;  %v4427_v14 = vadd.f32 %v21417_v23, %v21419_v0 }
 0x909   : > { %18061 = vmatprep.subr.mxu1 %v21474_v35 }
 0x90a   : > { %18062 = vmatpush3.xpose.msra.mxu1 %v21474_v35  ;;  %v4509_v19 = vadd.f32 %v21421_v57, %v4427_v14 }
 0x90b   : > { %18041 = vmatpush3.xpose.msra.mxu0 %v21474_v35  ;;  %18073 = vmatprep.subr.mxu1 %v21464_v54 }
 0x90c   : > { %18052 = vmatprep.subr.mxu0 %v21479_v5 }
 0x90d   : > { %18064 = vmatmul.mubr.f32.vlgmr.msra.gmra.mxu1 %v5917_v58 }
 0x90e   : > { %18043 = vmatmul.mubr.f32.vlgmr.msra.gmra.mxu0 %v5919_v18  ;;  %18074 = vmatpush3.xpose.msra.mxu1 %v21464_v54  ;;  %v4591_v18 = vadd.f32 %v21423_v56, %v4509_v19  ;;  %v2650_v19 = vld [vmem:[#allocation11 + $0x78] sm:$0xff] }
 0x90f   : > { %18053 = vmatpush3.xpose.msra.mxu0 %v21479_v5  ;;  %18056 = vmatprep.mubr.f32.mxu0 %v5906_v13 }
 0x910   : > { %18077 = vmatprep.mubr.f32.mxu1 %v21494_v24  ;;  %18054 = vmatprep.subr.mxu0 %v21484_v50 }
 0x911   : > { %18075 = vmatprep.subr.mxu1 %v21474_v35 }
 0x912   : > { %18076 = vmatpush3.xpose.msra.mxu1 %v21474_v35 }
 0x913   : > { %18055 = vmatpush3.xpose.msra.mxu0 %v21484_v50 }
 0x914   : > { %18066 = vmatprep.subr.mxu0 %v21487_v39 }
 0x915   : > { %18078 = vmatmul.mubr.f32.vlgmr.msra.gmra.mxu1 %v5915_v31 }
 0x916   : > { %18057 = vmatmul.mubr.f32.vlgmr.msra.gmra.mxu0 %v5916_v59 }
 0x917   : > { %18067 = vmatpush3.xpose.msra.mxu0 %v21487_v39  ;;  %18070 = vmatprep.mubr.f32.mxu0 %v21494_v24 }
 0x918   : > { %18068 = vmatprep.subr.mxu0 %v21492_v62 }
 0x91b   : > { %18069 = vmatpush3.xpose.msra.mxu0 %v21492_v62 }
 0x91e   : > { %18071 = vmatmul.mubr.f32.vlgmr.msra.gmra.mxu0 %v5915_v31 }
 0x9b4   : > { %v18009_v54 = vpop.f32.mrf.mxu1 }
 0x9b6   : > { %v21540_v22 = vpop.f32.mrf.mxu1 }
 0x9b8   : > { %v18023_v7 = vpop.f32.mrf.mxu1 }
 0x9ba   : > { %v21544_v35 = vpop.f32.mrf.mxu1 }
 0x9bc   : > { %v18002_v8 = vpop.f32.mrf.mxu0 }
 0x9bd   : > { %v18037_v5 = vpop.f32.mrf.mxu1 }
 0x9be   : > { %v21538_v52 = vpop.f32.mrf.mxu0 }
 0x9bf   : > { %v21548_v12 = vpop.f32.mrf.mxu1 }
 0x9c1   : > { %v18016_v46 = vpop.f32.mrf.mxu0 }
 0x9c3   : > { %v21542_v27 = vpop.f32.mrf.mxu0 }
 0x9c5   : > { %v18051_v33 = vpop.f32.mrf.mxu1 }
 0x9c6   : > { %v18030_v15 = vpop.f32.mrf.mxu0 }
 0x9c7   : > { %v6002_v50 = vpop.f32.mrf.mxu1 }
 0x9c8   : > { %v21546_v41 = vpop.f32.mrf.mxu0 }
 0x9cd   : > { %v18065_v39 = vpop.f32.mrf.mxu1 }
 0x9ce   : > { %v18044_v29 = vpop.f32.mrf.mxu0 }
 0x9cf   : > { %v6009_v40 = vadd.f32 %v18051_v33, %v18044_v29  ;;  %v6166_v37 = vpop.f32.mrf.mxu1  ;;  %v5491_v29 = vadd.f32 %v18009_v54, %v18002_v8  ;;  %v4676_v33 = vadd.f32 %v21427_v10, %v4591_v18  ;;  %v2649_v18 = vld [vmem:[#allocation11 + $0x70] sm:$0xff] }
 0x9d0   : > { %v5911_v32 = vpop.f32.mrf.mxu0 }
 0x9d1   : > { %v6003_v53 = vadd.f32 %v6002_v50, %v5911_v32  ;;  %v5574_v32 = vadd.f32 %v18016_v46, %v5491_v29  ;;  %v2648_v29 = vld [vmem:[#allocation11 + $0x68] sm:$0xff] }
 0x9d5   : > { %v18079_v20 = vpop.f32.mrf.mxu1 }
 0x9d6   : > { %v18058_v4 = vpop.f32.mrf.mxu0 }
 0x9d7   : > { %v6092_v63 = vadd.f32 %v18058_v4, %v6009_v40  ;;  %v6330_v25 = vpop.f32.mrf.mxu1 }
 0x9d8   : > { %v6084_v36 = vpop.f32.mrf.mxu0 }
 0x9d9   : > { %v6085_v62 = vadd.f32 %v6084_v36, %v6003_v53  ;;  %v6175_v24 = vadd.f32 %v18065_v39, %v6092_v63 }
 0x9db   : > { %v6167_v48 = vadd.f32 %v6166_v37, %v6085_v62 }
 0x9de   : > { %v18072_v60 = vpop.f32.mrf.mxu0 }
 0x9df   : > { %v6258_v38 = vadd.f32 %v18072_v60, %v6175_v24 }
 0x9e0   : > { %v6251_v17 = vpop.f32.mrf.mxu0 }
 0x9e1   : > { %v6337_v1 = vadd.f32 %v18079_v20, %v6258_v38  ;;  %v6252_v13 = vadd.f32 %v6251_v17, %v6167_v48 }
 0x9e3   : > { %v6341_v3 = vmul.f32 0.17677669, %v6337_v1  ;;  %v6331_v31 = vadd.f32 %v6330_v25, %v6252_v13 }
 0x9e5   : > { %v6340_v42 = vmul.f32 0.17677669, %v6331_v31  ;;  %v6343_v47 = vadd.f32 %v6341_v3, %v21214_v43  ;;  %v5657_v43 = vadd.f32 %v18023_v7, %v5574_v32  ;;  %v21581_v32 = vand.u32 4294901760, %v2649_v18 }
 0x9e7   : > { %v6347_v59 = vsel %vm3173_vm1, %v6343_v47, -inf  ;;  %v6342_v2 = vadd.f32 %v6340_v42, %v21212_v16  ;;  %v4755_v16 = vadd.f32 %v21429_v55, %v4676_v33  ;;  %v5740_v50 = vadd.f32 %v18030_v15, %v5657_v43  ;;  %v2647_v43 = vld [vmem:[#allocation11 + $0x60] sm:$0xff] }
 0x9e8   : > { %6348 = vmax.xlane.f32.xlu1 %v6347_v59  ;;  %v21579_v33 = vand.u32 4294901760, %v2650_v19 }
 0x9e9   : > { %v6344_v58 = vsel %vm3173_vm1, %v6342_v2, -inf  ;;  %v5819_v23 = vadd.f32 %v18037_v5, %v5740_v50  ;;  %v2646_v50 = vld [vmem:[#allocation11 + $0x58] sm:$0xff] }
 0x9ea   : > { %6345 = vmax.xlane.f32.xlu0 %v6344_v58 }
 0x9f9   : > { %6366 = vrot.lane.b32.xlu1 %v21179_v61, %s19714_s3 }
 0x9fd   : > { %6882 = vrot.lane.b32.xlu1 %v4755_v16, %s19714_s3  ;;  %v21583_v16 = vand.u32 4294901760, %v2648_v29 }
 0xa01   : > { %6884 = vrot.lane.b32.xlu1 %v21425_v6, %s19714_s3  ;;  %v5485_v6 = vadd.f32 %v21540_v22, %v21538_v52 }
 0xa03   : > { %v5567_v15 = vadd.f32 %v21542_v27, %v5485_v6 }
 0xa05   : > { %6892 = vrot.lane.b32.xlu1 %v5819_v23, %s19713_s25  ;;  %v5649_v5 = vadd.f32 %v21544_v35, %v5567_v15  ;;  %v2645_v23 = vld [vmem:[#allocation11 + $0x50] sm:$0xff] }
 0xa07   : > { %v5734_v4 = vadd.f32 %v21546_v41, %v5649_v5 }
 0xa09   : > { %v5813_v40 = vadd.f32 %v21548_v12, %v5734_v4 }
 0xa71   : > { %v6349_v0 = vpop.xlane.xlu1 %6348 }
 0xa72   : > { %v6351_v57 = vsub.f32 %v6343_v47, %v6349_v0  ;;  %v21585_v0 = vand.u32 4294901760, %v2647_v43 }
 0xa73   : > { %v6346_v56 = vpop.xlane.xlu0 %6345 }
 0xa74   : > { %v6354_v10 = vmul.f32 1.442695, %v6351_v57  ;;  %v6350_v54 = vsub.f32 %v6342_v2, %v6346_v56  ;;  %v21587_v57 = vand.u32 4294901760, %v2646_v50  ;;  %v21589_v56 = vand.u32 4294901760, %v2645_v23 }
 0xa75   : > { %v6367_v39 = vpop.permute.xlu1 %6366 }
 0xa76   : > { %19256 = vpow2.f32 %v6354_v10  ;;  %v6352_v8 = vmul.f32 1.442695, %v6350_v54  ;;  %v6410_v53 = vand.u32 4294901760, %v6367_v39  ;;  %v2644_v10 = vld [vmem:[#allocation11 + $0x48] sm:$0xff]  ;;  %v2643_v54 = vld [vmem:[#allocation11 + $0x40] sm:$0xff]  ;;  %v21607_v6 = vsub.f32 %v2646_v50, %v21587_v57 }
 0xa77   : > { %v21611_v15 = vsub.f32 %v2645_v23, %v21589_v56  ;;  %v21613_v5 = vand.u32 4294901760, %v2643_v54 }
 0xa78   : > { %19258 = vpow2.f32 %v6352_v8  ;;  %v6502_v52 = vsub.f32 %v6367_v39, %v6410_v53  ;;  %v21592_v8 = vsub.f32 %v2650_v19, %v21579_v33  ;;  %v2637_v19 = vld [vmem:[#allocation11 + $0x10] sm:$0xff] }
 0xa7a   : > { %v6503_v35 = vand.u32 4294901760, %v6502_v52  ;;  %v21616_v4 = vand.u32 4294901760, %v21592_v8 }
 0xa7c   : > { %v6504_v37 = vsub.f32 %v6502_v52, %v6503_v35 }
 0xa7e   : > { %v6505_v17 = vand.u32 4294901760, %v6504_v37 }
 0xa83   : > { %v19257_v61 = vpop.eup %19256 }
 0xa84   : > { %v6359_v55 = vsel %vm3173_vm1, %v19257_v61, 0.0 }
 0xa85   : > { %v19259_v46 = vpop.eup %19258  ;;  %6360 = vadd.xlane.f32.xlu0 %v6359_v55  ;;  %v21598_v55 = vsub.f32 %v2648_v29, %v21583_v16 }
 0xa86   : > { %v6356_v7 = vsel %vm3173_vm1, %v19259_v46, 0.0 }
 0xa87   : > { %v21622_v39 = vand.u32 4294901760, %v21598_v55 }
 0xa89   : > { %6357 = vadd.xlane.f32.xlu0 %v6356_v7  ;;  %v21604_v7 = vsub.f32 %v2647_v43, %v21585_v0 }
 0xa9f   : > { %6368 = vrot.lane.b32.xlu0 %v21174_v11, %s19714_s3 }
 0xaa3   : > { %6890 = vrot.lane.b32.xlu0 %v5813_v40, %s19713_s25 }
 0xb0e   : > { %v6361_v36 = vpop.xlane.xlu0 %6360 }
 0xb0f   : > { %19260 = vrcp.f32 %v6361_v36  ;;  %v21626_v36 = vand.u32 4294901760, %v21604_v7 }
 0xb11   : > { %25361 = vst [vmem:[#allocation37_spill] sm:$0xff] %v21626_v36 }
 0xb12   : > { %v6358_v63 = vpop.xlane.xlu0 %6357 }
 0xb13   : > { %19262 = vrcp.f32 %v6358_v63 }
 0xb16   : > { %v6369_v22 = vpop.permute.xlu0 %6368 }
 0xb17   : > { %v6407_v27 = vand.u32 4294901760, %v6369_v22 }
 0xb19   : > { %v6495_v62 = vsub.f32 %v6369_v22, %v6407_v27  ;;  %18080 = vmatprep.subr.mxu0 %v6407_v27 }
 0xb1a   : > { %18081 = vmatpush3.msra.mxu0 %v6407_v27 }
 0xb1b   : > { %18082 = vmatprep.subr.mxu0 %v6410_v53  ;;  %v6496_v41 = vand.u32 4294901760, %v6495_v62 }
 0xb1c   : > { %v19261_v11 = vpop.eup %19260  ;;  %18083 = vmatpush3.msra.mxu0 %v6410_v53 }
 0xb1d   : > { %18094 = vmatprep.subr.mxu0 %v6495_v62  ;;  %v6497_v12 = vsub.f32 %v6495_v62, %v6496_v41  ;;  %v6365_v24 = vmul.f32 %v19261_v11, %v19257_v61  ;;  %v21595_v61 = vsub.f32 %v2649_v18, %v21581_v32  ;;  %v2641_v11 = vld [vmem:[#allocation11 + $0x30] sm:$0xff] }
 0xb1f   : > { %v6498_v20 = vand.u32 4294901760, %v6497_v12  ;;  %v6376_v60 = vsel %vm3173_vm1, %v6365_v24, 0  ;;  %v21619_v40 = vand.u32 4294901760, %v21595_v61  ;;  %v2640_v12 = vld [vmem:[#allocation11 + $0x28] sm:$0xff] }
 0xb20   : > { %v19263_v38 = vpop.eup %19262  ;;  %v6455_v48 = vand.u32 4294901760, %v6376_v60 }
 0xb21   : > { %18087 = vmatprep.subr.mxu1 %v6498_v20  ;;  %v6363_v1 = vmul.f32 %v19263_v38, %v19259_v46  ;;  %v21601_v46 = vand.u32 4294901760, %v2644_v10  ;;  %v7030_v22 = vsub.f32 %v21595_v61, %v21619_v40 }
 0xb22   : > { %18088 = vmatpush3.msra.mxu1 %v6498_v20  ;;  %v6456_v13 = vsub.f32 %v6376_v60, %v6455_v48  ;;  %v7044_v20 = vsub.f32 %v21604_v7, %v21626_v36 }
 0xb23   : > { %18089 = vmatprep.subr.mxu1 %v6505_v17  ;;  %v6373_v25 = vsel %vm3173_vm1, %v6363_v1, 0  ;;  %v21633_v63 = vsub.f32 %v2644_v10, %v21601_v46  ;;  %v7031_v24 = vand.u32 4294901760, %v7030_v22  ;;  %v21702_v22 = vand.u32 4294901760, %v2637_v19 }
 0xb24   : > { %18090 = vmatpush3.msra.mxu1 %v6505_v17  ;;  %v6445_v3 = vand.u32 4294901760, %v6373_v25  ;;  %v6457_v31 = vand.u32 4294901760, %v6456_v13 }
 0xb25   : > { %18101 = vmatprep.subr.mxu1 %v6407_v27  ;;  %v21655_v38 = vand.u32 4294901760, %v21633_v63 }
 0xb26   : > { %18091 = vmatprep.mubr.f32.mxu1 %v6445_v3  ;;  %v6446_v42 = vsub.f32 %v6373_v25, %v6445_v3  ;;  %v6458_v59 = vsub.f32 %v6456_v13, %v6457_v31  ;;  %v21663_v25 = vand.u32 4294901760, %v2640_v12 }
 0xb27   : > { %18092 = vmatmul.mubr.f32.vlgmr.msra.gmra.mxu1 %v6455_v48  ;;  %25364 = vst [vmem:[#allocation42_spill] sm:$0xff] %v21655_v38 }
 0xb28   : > { %18102 = vmatpush3.msra.mxu1 %v6407_v27  ;;  %v6447_v47 = vand.u32 4294901760, %v6446_v42  ;;  %v6459_v14 = vand.u32 4294901760, %v6458_v59  ;;  %v21688_v43 = vsub.f32 %v2640_v12, %v21663_v25 }
 0xb29   : > { %18103 = vmatprep.subr.mxu1 %v6410_v53 }
 0xb2a   : > { %18104 = vmatpush3.msra.mxu1 %v6410_v53  ;;  %18105 = vmatprep.mubr.f32.mxu1 %v6447_v47  ;;  %v6448_v2 = vsub.f32 %v6446_v42, %v6447_v47  ;;  %v7045_v47 = vand.u32 4294901760, %v7044_v20 }
 0xb2b   : > { %18115 = vmatprep.subr.mxu1 %v6407_v27  ;;  %18106 = vmatmul.mubr.f32.vlgmr.msra.gmra.mxu1 %v6457_v31 }
 0xb2c   : > { %18116 = vmatpush3.msra.mxu1 %v6407_v27  ;;  %18119 = vmatprep.mubr.f32.mxu1 %v6445_v3  ;;  %v6449_v58 = vand.u32 4294901760, %v6448_v2  ;;  %v7037_v27 = vsub.f32 %v21598_v55, %v21622_v39 }
 0xb2d   : > { %18117 = vmatprep.subr.mxu1 %v6410_v53 }
 0xb2e   : > { %18118 = vmatpush3.msra.mxu1 %v6410_v53  ;;  %18084 = vmatprep.mubr.f32.mxu0 %v6449_v58  ;;  %v21629_v53 = vand.u32 4294901760, %v21607_v6  ;;  %v7038_v17 = vand.u32 4294901760, %v7037_v27 }
 0xb2f   : > { %18085 = vmatmul.mubr.f32.vlgmr.msra.gmra.mxu0 %v6459_v14  ;;  %18120 = vmatmul.mubr.f32.vlgmr.msra.gmra.mxu1 %v6455_v48  ;;  %v7065_v14 = vsub.f32 %v21633_v63, %v21655_v38 }
 0xb30   : > { %18095 = vmatpush3.msra.mxu0 %v6495_v62  ;;  %18098 = vmatprep.mubr.f32.mxu0 %v6446_v42  ;;  %25362 = vst [vmem:[#allocation39_spill] sm:$0xff] %v21629_v53  ;;  %v21643_v62 = vand.u32 4294901760, %v21611_v15  ;;  %v7051_v60 = vsub.f32 %v21607_v6, %v21629_v53  ;;  %v2638_v42 = vld [vmem:[#allocation11 + $0x18] sm:$0xff] }
 0xb31   : > { %18096 = vmatprep.subr.mxu0 %v6502_v52  ;;  %v21690_v50 = vand.u32 4294901760, %v2638_v42  ;;  %v7066_v27 = vand.u32 4294901760, %v7065_v14 }
 0xb32   : > { %18097 = vmatpush3.msra.mxu0 %v6502_v52  ;;  %v7023_v52 = vsub.f32 %v21592_v8, %v21616_v4  ;;  %25363 = vst [vmem:[#allocation41_spill] sm:$0xff] %v21643_v62  ;;  %v7052_v18 = vand.u32 4294901760, %v7051_v60  ;;  %v21722_v60 = vsub.f32 %v2637_v19, %v21702_v22 }
 0xb33   : > { %18108 = vmatprep.subr.mxu0 %v6496_v41  ;;  %18099 = vmatmul.mubr.f32.vlgmr.msra.gmra.mxu0 %v6456_v13  ;;  %v21661_v13 = vand.u32 4294901760, %v2641_v11  ;;  %v21712_v12 = vsub.f32 %v2638_v42, %v21690_v50 }
 0xb34   : > { %18109 = vmatpush3.msra.mxu0 %v6496_v41  ;;  %18112 = vmatprep.mubr.f32.mxu0 %v6445_v3  ;;  %v2642_v41 = vld [vmem:[#allocation11 + $0x38] sm:$0xff]  ;;  %v7024_v37 = vand.u32 4294901760, %v7023_v52  ;;  %v7058_v3 = vsub.f32 %v21611_v15, %v21643_v62  ;;  %v21735_v14 = vand.u32 4294901760, %v21722_v60 }
 0xb35   : > { %18110 = vmatprep.subr.mxu0 %v6503_v35  ;;  %v21659_v1 = vand.u32 4294901760, %v2642_v41  ;;  %v21676_v2 = vsub.f32 %v2641_v11, %v21661_v13  ;;  %v21708_v11 = vand.u32 4294901760, %v21688_v43 }
 0xb36   : > { %18111 = vmatpush3.msra.mxu0 %v6503_v35  ;;  %v21647_v35 = vsub.f32 %v2643_v54, %v21613_v5  ;;  %18157 = vmatprep.subr.mxu1 %v7024_v37  ;;  %v7059_v23 = vand.u32 4294901760, %v7058_v3  ;;  %v21728_v3 = vand.u32 4294901760, %v21712_v12  ;;  %25371 = vst [vmem:[#allocation38_spill] sm:$0xff] %v21735_v14 }
 0xb37   : > { %18113 = vmatmul.mubr.f32.vlgmr.msra.gmra.mxu0 %v6455_v48  ;;  %18122 = vmatprep.subr.mxu0 %v21579_v33  ;;  %v2639_v48 = vld [vmem:[#allocation11 + $0x20] sm:$0xff]  ;;  %v21672_v59 = vsub.f32 %v2642_v41, %v21659_v1  ;;  %v21696_v54 = vand.u32 4294901760, %v21676_v2  ;;  %25368 = vst [vmem:[#allocation49_spill] sm:$0xff] %v21708_v11 }
 0xb38   : > { %18123 = vmatpush3.msra.mxu0 %v21579_v33  ;;  %18158 = vmatpush3.msra.mxu1 %v7024_v37  ;;  %v21668_v31 = vand.u32 4294901760, %v21647_v35  ;;  %v21678_v58 = vand.u32 4294901760, %v2639_v48  ;;  %25370 = vst [vmem:[#allocation53_spill] sm:$0xff] %v21728_v3 }
 0xb39   : > { %18124 = vmatprep.subr.mxu0 %v21581_v32  ;;  %18159 = vmatprep.subr.mxu1 %v7031_v24  ;;  %v21684_v29 = vand.u32 4294901760, %v21672_v59  ;;  %25367 = vst [vmem:[#allocation48_spill] sm:$0xff] %v21696_v54 }
 0xb3a   : > { %18125 = vmatpush3.msra.mxu0 %v21581_v32  ;;  %25365 = vst [vmem:[#allocation43_spill] sm:$0xff] %v21668_v31  ;;  %18160 = vmatpush3.msra.mxu1 %v7031_v24  ;;  %v7072_v10 = vsub.f32 %v21647_v35, %v21668_v31  ;;  %v21700_v52 = vsub.f32 %v2639_v48, %v21678_v58 }
 0xb3b   : > { %18126 = vmatprep.subr.mxu0 %v21583_v16  ;;  %18161 = vmatprep.subr.mxu1 %v7038_v17  ;;  %25366 = vst [vmem:[#allocation47_spill] sm:$0xff] %v21684_v29  ;;  %v7079_v41 = vsub.f32 %v21672_v59, %v21684_v29  ;;  %v7086_v24 = vsub.f32 %v21676_v2, %v21696_v54 }
 0xb3c   : > { %18127 = vmatpush3.msra.mxu0 %v21583_v16  ;;  %18162 = vmatpush3.msra.mxu1 %v7038_v17  ;;  %v7073_v37 = vand.u32 4294901760, %v7072_v10  ;;  %v21718_v20 = vand.u32 4294901760, %v21700_v52  ;;  %v7093_v17 = vsub.f32 %v21688_v43, %v21708_v11  ;;  %v7114_v10 = vsub.f32 %v21722_v60, %v21735_v14 }
 0xb3d   : > { %18128 = vmatprep.subr.mxu0 %v21585_v0  ;;  %18163 = vmatprep.subr.mxu1 %v7045_v47  ;;  %v7080_v48 = vand.u32 4294901760, %v7079_v41  ;;  %v7087_v42 = vand.u32 4294901760, %v7086_v24 }
 0xb3e   : > { %18129 = vmatpush3.msra.mxu0 %v21585_v0  ;;  %18164 = vmatpush3.msra.mxu1 %v7045_v47  ;;  %25369 = vst [vmem:[#allocation50_spill] sm:$0xff] %v21718_v20  ;;  %v7100_v47 = vsub.f32 %v21700_v52, %v21718_v20  ;;  %v7094_v19 = vand.u32 4294901760, %v7093_v17  ;;  %v7115_v41 = vand.u32 4294901760, %v7114_v10  ;;  %v2635_v17 = vld [vmem:[#allocation11] sm:$0xff] }
 0xb3f   : > { %18130 = vmatprep.subr.mxu0 %v21587_v57  ;;  %18165 = vmatprep.subr.mxu1 %v7052_v18 }
 0xb40   : > { %18131 = vmatpush3.msra.mxu0 %v21587_v57  ;;  %18166 = vmatpush3.msra.mxu1 %v7052_v18  ;;  %v7107_v18 = vsub.f32 %v21712_v12, %v21728_v3 }
 0xb41   : > { %18132 = vmatprep.subr.mxu0 %v21589_v56  ;;  %18167 = vmatprep.subr.mxu1 %v7059_v23 }
 0xb42   : > { %18133 = vmatpush3.msra.mxu0 %v21589_v56  ;;  %18168 = vmatpush3.msra.mxu1 %v7059_v23  ;;  %v7101_v23 = vand.u32 4294901760, %v7100_v47 }
 0xb43   : > { %18134 = vmatprep.subr.mxu0 %v21601_v46  ;;  %18169 = vmatprep.subr.mxu1 %v7066_v27 }
 0xb44   : > { %18135 = vmatpush3.msra.mxu0 %v21601_v46  ;;  %18170 = vmatpush3.msra.mxu1 %v7066_v27  ;;  %v7108_v27 = vand.u32 4294901760, %v7107_v18 }
 0xb45   : > { %18136 = vmatprep.subr.mxu0 %v21613_v5  ;;  %18171 = vmatprep.subr.mxu1 %v7073_v37 }
 0xb46   : > { %18137 = vmatpush3.msra.mxu0 %v21613_v5  ;;  %18172 = vmatpush3.msra.mxu1 %v7073_v37  ;;  %v2636_v37 = vld [vmem:[#allocation11 + $0x8] sm:$0xff] }
 0xb47   : > { %18138 = vmatprep.subr.mxu0 %v21659_v1  ;;  %18173 = vmatprep.subr.mxu1 %v7080_v48 }
 0xb48   : > { %18139 = vmatpush3.msra.mxu0 %v21659_v1  ;;  %18174 = vmatpush3.msra.mxu1 %v7080_v48  ;;  %v21747_v48 = vand.u32 4294901760, %v2636_v37 }
 0xb49   : > { %18140 = vmatprep.subr.mxu0 %v21661_v13  ;;  %18175 = vmatprep.subr.mxu1 %v7087_v42 }
 0xb4a   : > { %18141 = vmatpush3.msra.mxu0 %v21661_v13  ;;  %18176 = vmatpush3.msra.mxu1 %v7087_v42  ;;  %v21750_v47 = vsub.f32 %v2636_v37, %v21747_v48  ;;  %v21752_v42 = vand.u32 4294901760, %v2635_v17 }
 0xb4b   : > { %18142 = vmatprep.subr.mxu0 %v21663_v25  ;;  %18177 = vmatprep.subr.mxu1 %v7094_v19 }
 0xb4c   : > { %18143 = vmatpush3.msra.mxu0 %v21663_v25  ;;  %18178 = vmatpush3.msra.mxu1 %v7094_v19  ;;  %v21757_v18 = vand.u32 4294901760, %v21750_v47 }
 0xb4d   : > { %18144 = vmatprep.subr.mxu0 %v21678_v58  ;;  %18179 = vmatprep.subr.mxu1 %v7101_v23 }
 0xb4e   : > { %18145 = vmatpush3.msra.mxu0 %v21678_v58  ;;  %18180 = vmatpush3.msra.mxu1 %v7101_v23  ;;  %25372 = vst [vmem:[#allocation40_spill] sm:$0xff] %v21757_v18  ;;  %v21760_v23 = vsub.f32 %v2635_v17, %v21752_v42  ;;  %v7121_v10 = vsub.f32 %v21750_v47, %v21757_v18 }
 0xb4f   : > { %18146 = vmatprep.subr.mxu0 %v21690_v50  ;;  %18181 = vmatprep.subr.mxu1 %v7108_v27 }
 0xb50   : > { %18147 = vmatpush3.msra.mxu0 %v21690_v50  ;;  %18182 = vmatpush3.msra.mxu1 %v7108_v27  ;;  %v21767_v27 = vand.u32 4294901760, %v21760_v23  ;;  %v7122_v30 = vand.u32 4294901760, %v7121_v10 }
 0xb51   : > { %18148 = vmatprep.subr.mxu0 %v21702_v22  ;;  %18183 = vmatprep.subr.mxu1 %v7115_v41 }
 0xb52   : > { %18149 = vmatpush3.msra.mxu0 %v21702_v22  ;;  %18184 = vmatpush3.msra.mxu1 %v7115_v41  ;;  %25373 = vst [vmem:[#allocation54_spill] sm:$0xff] %v21767_v27  ;;  %v7128_v45 = vsub.f32 %v21760_v23, %v21767_v27 }
 0xb53   : > { %18150 = vmatprep.subr.mxu0 %v21747_v48  ;;  %18185 = vmatprep.subr.mxu1 %v7122_v30 }
 0xb54   : > { %18151 = vmatpush3.msra.mxu0 %v21747_v48  ;;  %v7129_v34 = vand.u32 4294901760, %v7128_v45  ;;  %18186 = vmatpush3.msra.mxu1 %v7122_v30 }
 0xb55   : > { %18152 = vmatprep.subr.mxu0 %v21752_v42 }
 0xb56   : > { %18153 = vmatpush3.msra.mxu0 %v21752_v42  ;;  %18187 = vmatprep.subr.mxu1 %v7129_v34 }
 0xb57   : > { %18192 = vmatprep.subr.mxu0 %v21592_v8  ;;  %18188 = vmatpush3.msra.mxu1 %v7129_v34  ;;  %v3367_v34 = vadd.f32 %v21296_v21, %v21298_v49 }
 0xb58   : > { %18227 = vmatprep.subr.mxu1 %v21579_v33 }
 0xbe7   : > { %v18093_v24 = vpop.f32.mrf.mxu1 }
 0xbe9   : > { %v6542_v19 = vpop.f32.mrf.mxu1 }
 0xbeb   : > { %v18107_v41 = vpop.f32.mrf.mxu1 }
 0xbed   : > { %v6706_v3 = vpop.f32.mrf.mxu1 }
 0xbef   : > { %v18086_v37 = vpop.f32.mrf.mxu0  ;;  %v18121_v10 = vpop.f32.mrf.mxu1 }
 0xbf0   : > { %v6549_v14 = vadd.f32 %v18093_v24, %v18086_v37 }
 0xbf1   : > { %v6451_v17 = vpop.f32.mrf.mxu0  ;;  %v6870_v24 = vpop.f32.mrf.mxu1 }
 0xbf2   : > { %v6543_v18 = vadd.f32 %v6542_v19, %v6451_v17 }
 0xbf3   : > { %v18100_v20 = vpop.f32.mrf.mxu0 }
 0xbf4   : > { %v6632_v11 = vadd.f32 %v18100_v20, %v6549_v14  ;;  %v6883_v20 = vpop.permute.xlu1 %6882 }
 0xbf5   : > { %v6624_v54 = vpop.f32.mrf.mxu0 }
 0xbf6   : > { %v6625_v29 = vadd.f32 %v6624_v54, %v6543_v18  ;;  %v6715_v31 = vadd.f32 %v18107_v41, %v6632_v11  ;;  %v3449_v54 = vadd.f32 %v21300_v26, %v3367_v34  ;;  %v19308_v34 = vld [vmem:[%s20151_s30 + $0x8] sm:$0xff] }
 0xbf7   : > { %v18114_v38 = vpop.f32.mrf.mxu0 }
 0xbf8   : > { %v6798_v62 = vadd.f32 %v18114_v38, %v6715_v31  ;;  %v6707_v27 = vadd.f32 %v6706_v3, %v6625_v29  ;;  %v6885_v11 = vpop.permute.xlu1 %6884  ;;  %v3531_v14 = vadd.f32 %v21302_v9, %v3449_v54 }
 0xbf9   : > { %v6791_v53 = vpop.f32.mrf.mxu0 }
 0xbfa   : > { %v6877_v36 = vadd.f32 %v18121_v10, %v6798_v62  ;;  %v6792_v45 = vadd.f32 %v6791_v53, %v6707_v27  ;;  %v3616_v38 = vadd.f32 %v21306_v28, %v3531_v14  ;;  %v6891_v53 = vpop.permute.xlu0 %6890 }
 0xbfc   : > { %v6871_v30 = vadd.f32 %v6870_v24, %v6792_v45  ;;  %6900 = vrot.lane.b32.xlu1 %v6877_v36, %s19712_s7  ;;  %v6893_v31 = vpop.permute.xlu1 %6892  ;;  %v3695_v62 = vadd.f32 %v21308_v51, %v3616_v38  ;;  %v6905_v36 = vsel %vm2652_vm0, %v21304_v44, %v6885_v11  ;;  %v19309_v11 = vld [vmem:[%s20151_s30] sm:$0xff]  ;;  %v7660_v38 = vld [vmem:[#allocation13 + $0x78] sm:$0xff] }
 0xbfd   : > { %v6908_v29 = vsel %vm6906_vm2, %v6905_v36, %v6893_v31  ;;  %v7659_v31 = vld [vmem:[#allocation13 + $0x70] sm:$0xff] }
 0xbfe   : > { %6898 = vrot.lane.b32.xlu0 %v6871_v30, %s19712_s7  ;;  %v6904_v21 = vsel %vm2652_vm0, %v3695_v62, %v6883_v20  ;;  %v21942_v62 = vand.u32 4294901760, %v7659_v31 }
 0xbff   : > { %v6907_v26 = vsel %vm6906_vm2, %v6904_v21, %v6891_v53  ;;  %v21940_v53 = vand.u32 4294901760, %v7660_v38 }
 0xc01   : > { %v21945_v36 = vsub.f32 %v7660_v38, %v21940_v53  ;;  %v7649_v38 = vld [vmem:[#allocation13 + $0x20] sm:$0xff] }
 0xc6e   : > { %v6901_v3 = vpop.permute.xlu1 %6900 }
 0xc6f   : > { %v6911_v49 = vsel %vm6909_vm3, %v6908_v29, %v6901_v3  ;;  %v21948_v29 = vsub.f32 %v7659_v31, %v21942_v62  ;;  %v21953_v3 = vand.u32 4294901760, %v21945_v36 }
 0xc70   : > { %v21787_v9 = vand.u32 4294901760, %v6911_v49  ;;  %v6899_v28 = vpop.permute.xlu0 %6898 }
 0xc71   : > { %v6910_v19 = vsel %vm6909_vm3, %v6907_v26, %v6899_v28  ;;  %v21956_v21 = vand.u32 4294901760, %v21948_v29 }
 0xc72   : > { %v21791_v18 = vsub.f32 %v6911_v49, %v21787_v9  ;;  %v21793_v51 = vand.u32 4294901760, %v6910_v19  ;;  %v7773_v49 = vsub.f32 %v21945_v36, %v21953_v3 }
 0xc73   : > { %v7780_v26 = vsub.f32 %v21948_v29, %v21956_v21 }
 0xc74   : > { %v7011_v44 = vand.u32 4294901760, %v21791_v18  ;;  %v7000_v27 = vsub.f32 %v6910_v19, %v21793_v51  ;;  %18189 = vmatprep.mubr.f32.mxu1 %v21793_v51 }
 0xc75   : > { %18190 = vmatmul.mubr.f32.vlgmr.msra.gmra.mxu1 %v21787_v9  ;;  %v7781_v28 = vand.u32 4294901760, %v7780_v26 }
 0xc76   : > { %18228 = vmatpush3.msra.mxu1 %v21579_v33  ;;  %v7001_v41 = vand.u32 4294901760, %v7000_v27  ;;  %v7012_v37 = vsub.f32 %v21791_v18, %v7011_v44 }
 0xc77   : > { %18229 = vmatprep.subr.mxu1 %v21581_v32 }
 0xc78   : > { %18230 = vmatpush3.msra.mxu1 %v21581_v32  ;;  %18259 = vmatprep.mubr.f32.mxu1 %v7001_v41  ;;  %v7002_v17 = vsub.f32 %v7000_v27, %v7001_v41  ;;  %v7013_v45 = vand.u32 4294901760, %v7012_v37 }
 0xc79   : > { %18231 = vmatprep.subr.mxu1 %v21583_v16 }
 0xc7a   : > { %18232 = vmatpush3.msra.mxu1 %v21583_v16  ;;  %v7003_v10 = vand.u32 4294901760, %v7002_v17  ;;  %v7658_v17 = vld [vmem:[#allocation13 + $0x68] sm:$0xff] }
 0xc7b   : > { %18233 = vmatprep.subr.mxu1 %v21585_v0 }
 0xc7c   : > { %18234 = vmatpush3.msra.mxu1 %v21585_v0  ;;  %18154 = vmatprep.mubr.f32.mxu0 %v7003_v10 }
 0xc7d   : > { %18235 = vmatprep.subr.mxu1 %v21587_v57  ;;  %18155 = vmatmul.mubr.f32.vlgmr.msra.gmra.mxu0 %v7013_v45  ;;  %v21972_v45 = vand.u32 4294901760, %v7658_v17 }
 0xc7e   : > { %18193 = vmatpush3.msra.mxu0 %v21592_v8  ;;  %18236 = vmatpush3.msra.mxu1 %v21587_v57  ;;  %v25380_v8 = vld [vmem:[#allocation48_spill] sm:$0xff] }
 0xc7f   : > { %18194 = vmatprep.subr.mxu0 %v21595_v61  ;;  %18224 = vmatprep.mubr.f32.mxu0 %v7000_v27 }
 0xc80   : > { %18237 = vmatprep.subr.mxu1 %v21589_v56  ;;  %18195 = vmatpush3.msra.mxu0 %v21595_v61  ;;  %v25381_v61 = vld [vmem:[#allocation49_spill] sm:$0xff] }
 0xc81   : > { %18238 = vmatpush3.msra.mxu1 %v21589_v56  ;;  %18196 = vmatprep.subr.mxu0 %v21598_v55 }
 0xc82   : > { %18239 = vmatprep.subr.mxu1 %v21601_v46  ;;  %18197 = vmatpush3.msra.mxu0 %v21598_v55  ;;  %v25382_v55 = vld [vmem:[#allocation50_spill] sm:$0xff] }
 0xc83   : > { %18240 = vmatpush3.msra.mxu1 %v21601_v46  ;;  %18198 = vmatprep.subr.mxu0 %v21604_v7 }
 0xc84   : > { %18241 = vmatprep.subr.mxu1 %v21613_v5  ;;  %18199 = vmatpush3.msra.mxu0 %v21604_v7  ;;  %v25384_v7 = vld [vmem:[#allocation38_spill] sm:$0xff] }
 0xc85   : > { %18242 = vmatpush3.msra.mxu1 %v21613_v5  ;;  %18200 = vmatprep.subr.mxu0 %v21607_v6 }
 0xc86   : > { %18243 = vmatprep.subr.mxu1 %v21659_v1  ;;  %18201 = vmatpush3.msra.mxu0 %v21607_v6  ;;  %v25385_v6 = vld [vmem:[#allocation40_spill] sm:$0xff] }
 0xc87   : > { %18244 = vmatpush3.msra.mxu1 %v21659_v1  ;;  %18202 = vmatprep.subr.mxu0 %v21611_v15 }
 0xc88   : > { %18245 = vmatprep.subr.mxu1 %v21661_v13  ;;  %18203 = vmatpush3.msra.mxu0 %v21611_v15  ;;  %v25386_v15 = vld [vmem:[#allocation54_spill] sm:$0xff] }
 0xc89   : > { %18246 = vmatpush3.msra.mxu1 %v21661_v13  ;;  %18204 = vmatprep.subr.mxu0 %v21633_v63 }
 0xc8a   : > { %18247 = vmatprep.subr.mxu1 %v21663_v25  ;;  %18205 = vmatpush3.msra.mxu0 %v21633_v63 }
 0xc8b   : > { %18248 = vmatpush3.msra.mxu1 %v21663_v25  ;;  %18206 = vmatprep.subr.mxu0 %v21647_v35 }
 0xc8c   : > { %18249 = vmatprep.subr.mxu1 %v21678_v58  ;;  %18207 = vmatpush3.msra.mxu0 %v21647_v35 }
 0xc8d   : > { %18250 = vmatpush3.msra.mxu1 %v21678_v58  ;;  %18208 = vmatprep.subr.mxu0 %v21672_v59 }
 0xc8e   : > { %18251 = vmatprep.subr.mxu1 %v21690_v50  ;;  %18209 = vmatpush3.msra.mxu0 %v21672_v59 }
 0xc8f   : > { %18252 = vmatpush3.msra.mxu1 %v21690_v50  ;;  %18210 = vmatprep.subr.mxu0 %v21676_v2 }
 0xc90   : > { %18253 = vmatprep.subr.mxu1 %v21702_v22  ;;  %18211 = vmatpush3.msra.mxu0 %v21676_v2 }
 0xc91   : > { %18254 = vmatpush3.msra.mxu1 %v21702_v22  ;;  %18212 = vmatprep.subr.mxu0 %v21688_v43 }
 0xc92   : > { %18255 = vmatprep.subr.mxu1 %v21747_v48  ;;  %18213 = vmatpush3.msra.mxu0 %v21688_v43 }
 0xc93   : > { %18256 = vmatpush3.msra.mxu1 %v21747_v48  ;;  %18214 = vmatprep.subr.mxu0 %v21700_v52 }
 0xc94   : > { %18257 = vmatprep.subr.mxu1 %v21752_v42  ;;  %18215 = vmatpush3.msra.mxu0 %v21700_v52 }
 0xc95   : > { %18258 = vmatpush3.msra.mxu1 %v21752_v42  ;;  %18216 = vmatprep.subr.mxu0 %v21712_v12 }
 0xc96   : > { %18260 = vmatmul.mubr.f32.vlgmr.msra.gmra.mxu1 %v7011_v44  ;;  %18297 = vmatprep.subr.mxu1 %v21579_v33 }
 0xc97   : > { %18217 = vmatpush3.msra.mxu0 %v21712_v12  ;;  %18298 = vmatpush3.msra.mxu1 %v21579_v33  ;;  %v25374_v33 = vld [vmem:[#allocation37_spill] sm:$0xff] }
 0xc98   : > { %18329 = vmatprep.mubr.f32.mxu1 %v21793_v51  ;;  %18218 = vmatprep.subr.mxu0 %v21722_v60 }
 0xc99   : > { %18299 = vmatprep.subr.mxu1 %v21581_v32  ;;  %18219 = vmatpush3.msra.mxu0 %v21722_v60 }
 0xc9a   : > { %18300 = vmatpush3.msra.mxu1 %v21581_v32  ;;  %18220 = vmatprep.subr.mxu0 %v21750_v47  ;;  %v25375_v32 = vld [vmem:[#allocation39_spill] sm:$0xff] }
 0xc9b   : > { %18301 = vmatprep.subr.mxu1 %v21583_v16  ;;  %18221 = vmatpush3.msra.mxu0 %v21750_v47 }
 0xc9c   : > { %18302 = vmatpush3.msra.mxu1 %v21583_v16  ;;  %18222 = vmatprep.subr.mxu0 %v21760_v23  ;;  %v25376_v16 = vld [vmem:[#allocation41_spill] sm:$0xff] }
 0xc9d   : > { %18303 = vmatprep.subr.mxu1 %v21585_v0  ;;  %18223 = vmatpush3.msra.mxu0 %v21760_v23 }
 0xc9e   : > { %18304 = vmatpush3.msra.mxu1 %v21585_v0  ;;  %18225 = vmatmul.mubr.f32.vlgmr.msra.gmra.mxu0 %v21791_v18  ;;  %v25377_v0 = vld [vmem:[#allocation42_spill] sm:$0xff] }
 0xc9f   : > { %18262 = vmatprep.subr.mxu0 %v21616_v4  ;;  %18305 = vmatprep.subr.mxu1 %v21587_v57 }
 0xca0   : > { %18263 = vmatpush3.msra.mxu0 %v21616_v4  ;;  %18294 = vmatprep.mubr.f32.mxu0 %v21793_v51  ;;  %v16512_v4 = vld [vmem:[%s25387_s17] ss:$0 sm:$0xff]  ;;  %s24750_s17 = scalar_lea.hbm %s25719_s1, %s16531_s15 }
 0xca1   : > { %18306 = vmatpush3.msra.mxu1 %v21587_v57  ;;  %18264 = vmatprep.subr.mxu0 %v21619_v40  ;;  %v25378_v57 = vld [vmem:[#allocation43_spill] sm:$0xff] }
 0xca2   : > { %18307 = vmatprep.subr.mxu1 %v21589_v56  ;;  %18265 = vmatpush3.msra.mxu0 %v21619_v40 }
 0xca3   : > { %18308 = vmatpush3.msra.mxu1 %v21589_v56  ;;  %18266 = vmatprep.subr.mxu0 %v21622_v39  ;;  %v25379_v56 = vld [vmem:[#allocation47_spill] sm:$0xff] }
 0xca4   : > { %18309 = vmatprep.subr.mxu1 %v21601_v46  ;;  %18267 = vmatpush3.msra.mxu0 %v21622_v39 }
 0xca5   : > { %18310 = vmatpush3.msra.mxu1 %v21601_v46  ;;  %18268 = vmatprep.subr.mxu0 %v25374_v33  ;;  %v25383_v46 = vld [vmem:[#allocation53_spill] sm:$0xff] }
 0xca6   : > { %18311 = vmatprep.subr.mxu1 %v21613_v5  ;;  %18269 = vmatpush3.msra.mxu0 %v25374_v33  ;;  %v7657_v33 = vld [vmem:[#allocation13 + $0x60] sm:$0xff] }
 0xca7   : > { %18312 = vmatpush3.msra.mxu1 %v21613_v5  ;;  %18270 = vmatprep.subr.mxu0 %v25375_v32 }
 0xca8   : > { %18313 = vmatprep.subr.mxu1 %v21659_v1  ;;  %18271 = vmatpush3.msra.mxu0 %v25375_v32  ;;  %v21975_v32 = vsub.f32 %v7658_v17, %v21972_v45 }
 0xca9   : > { %18314 = vmatpush3.msra.mxu1 %v21659_v1  ;;  %18272 = vmatprep.subr.mxu0 %v25376_v16 }
 0xcaa   : > { %18315 = vmatprep.subr.mxu1 %v21661_v13  ;;  %18273 = vmatpush3.msra.mxu0 %v25376_v16  ;;  %v21977_v16 = vand.u32 4294901760, %v7657_v33 }
 0xcab   : > { %18316 = vmatpush3.msra.mxu1 %v21661_v13  ;;  %18274 = vmatprep.subr.mxu0 %v25377_v0 }
 0xcac   : > { %18317 = vmatprep.subr.mxu1 %v21663_v25  ;;  %18275 = vmatpush3.msra.mxu0 %v25377_v0  ;;  %v7656_v0 = vld [vmem:[#allocation13 + $0x58] sm:$0xff] }
 0xcad   : > { %18318 = vmatpush3.msra.mxu1 %v21663_v25  ;;  %18276 = vmatprep.subr.mxu0 %v25378_v57 }
 0xcae   : > { %18319 = vmatprep.subr.mxu1 %v21678_v58  ;;  %18277 = vmatpush3.msra.mxu0 %v25378_v57  ;;  %v21982_v57 = vand.u32 4294901760, %v21975_v32 }
 0xcaf   : > { %18320 = vmatpush3.msra.mxu1 %v21678_v58  ;;  %18278 = vmatprep.subr.mxu0 %v25379_v56 }
 0xcb0   : > { %18321 = vmatprep.subr.mxu1 %v21690_v50  ;;  %18279 = vmatpush3.msra.mxu0 %v25379_v56  ;;  %v21985_v56 = vsub.f32 %v7657_v33, %v21977_v16 }
 0xcb1   : > { %18322 = vmatpush3.msra.mxu1 %v21690_v50  ;;  %18280 = vmatprep.subr.mxu0 %v25380_v8 }
 0xcb2   : > { %18323 = vmatprep.subr.mxu1 %v21702_v22  ;;  %18281 = vmatpush3.msra.mxu0 %v25380_v8  ;;  %v21987_v8 = vand.u32 4294901760, %v7656_v0 }
 0xcb3   : > { %18324 = vmatpush3.msra.mxu1 %v21702_v22  ;;  %18282 = vmatprep.subr.mxu0 %v25381_v61 }
 0xcb4   : > { %18325 = vmatprep.subr.mxu1 %v21747_v48  ;;  %18283 = vmatpush3.msra.mxu0 %v25381_v61  ;;  %v7655_v61 = vld [vmem:[#allocation13 + $0x50] sm:$0xff] }
 0xcb5   : > { %18326 = vmatpush3.msra.mxu1 %v21747_v48  ;;  %18284 = vmatprep.subr.mxu0 %v25382_v55 }
 0xcb6   : > { %18327 = vmatprep.subr.mxu1 %v21752_v42  ;;  %18285 = vmatpush3.msra.mxu0 %v25382_v55  ;;  %v7787_v55 = vsub.f32 %v21975_v32, %v21982_v57 }
 0xcb7   : > { %18328 = vmatpush3.msra.mxu1 %v21752_v42  ;;  %18286 = vmatprep.subr.mxu0 %v25383_v46 }
 0xcb8   : > { %18330 = vmatmul.mubr.f32.vlgmr.msra.gmra.mxu1 %v21787_v9  ;;  %18287 = vmatpush3.msra.mxu0 %v25383_v46  ;;  %v21994_v46 = vand.u32 4294901760, %v21985_v56 }
 0xcb9   : > { %18288 = vmatprep.subr.mxu0 %v25384_v7 }
 0xcba   : > { %18289 = vmatpush3.msra.mxu0 %v25384_v7  ;;  %v21997_v7 = vsub.f32 %v7656_v0, %v21987_v8 }
 0xcbb   : > { %18290 = vmatprep.subr.mxu0 %v25385_v6 }
 0xcbc   : > { %18291 = vmatpush3.msra.mxu0 %v25385_v6  ;;  %v21999_v6 = vand.u32 4294901760, %v7655_v61 }
 0xcbd   : > { %18292 = vmatprep.subr.mxu0 %v25386_v15 }
 0xcbe   : > { %18293 = vmatpush3.msra.mxu0 %v25386_v15  ;;  %v7654_v15 = vld [vmem:[#allocation13 + $0x48] sm:$0xff] }
 0xcbf   : > { %18295 = vmatmul.mubr.f32.vlgmr.msra.gmra.mxu0 %v21787_v9  ;;  %18332 = vmatprep.subr.mxu0 %v21940_v53  ;;  %v7774_v9 = vand.u32 4294901760, %v7773_v49 }
 0xcc0   : > { %18333 = vmatpush3.msra.mxu0 %v21940_v53 }
 0xcc1   : > { %18334 = vmatprep.subr.mxu0 %v21942_v62  ;;  %18367 = vmatprep.subr.mxu1 %v7774_v9 }
 0xcc2   : > { %18335 = vmatpush3.msra.mxu0 %v21942_v62  ;;  %18368 = vmatpush3.msra.mxu1 %v7774_v9 }
 0xcc3   : > { %18369 = vmatprep.subr.mxu1 %v7781_v28  ;;  %18336 = vmatprep.subr.mxu0 %v21972_v45 }
 0xcc4   : > { %18370 = vmatpush3.msra.mxu1 %v7781_v28  ;;  %18337 = vmatpush3.msra.mxu0 %v21972_v45  ;;  %v22071_v28 = vand.u32 4294901760, %v7649_v38 }
 0xcc5   : > { %18338 = vmatprep.subr.mxu0 %v21977_v16 }
 0xcc6   : > { %18339 = vmatpush3.msra.mxu0 %v21977_v16  ;;  %v22083_v17 = vsub.f32 %v7649_v38, %v22071_v28 }
 0xcc7   : > { %18340 = vmatprep.subr.mxu0 %v21987_v8 }
 0xcc8   : > { %18341 = vmatpush3.msra.mxu0 %v21987_v8 }
 0xcc9   : > { %18342 = vmatprep.subr.mxu0 %v21999_v6 }
 0xcca   : > { %18343 = vmatpush3.msra.mxu0 %v21999_v6 }
 0xd35   : > { %v18191_v40 = vpop.f32.mrf.mxu1 }
 0xd37   : > { %v7166_v13 = vpop.f32.mrf.mxu1 }
 0xd3d   : > { %v18156_v5 = vpop.f32.mrf.mxu0 }
 0xd3e   : > { %v7016_v63 = vadd.f32 %v18156_v5, %v16512_v4  ;;  %v7788_v5 = vand.u32 4294901760, %v7787_v55 }
 0xd3f   : > { %v7005_v39 = vpop.f32.mrf.mxu0 }
 0xd40   : > { %v7006_v1 = vadd.f32 %v16512_v4, %v7005_v39  ;;  %v7173_v25 = vadd.f32 %v18191_v40, %v7016_v63  ;;  %v7794_v4 = vsub.f32 %v21985_v56, %v21994_v46  ;;  %v22006_v40 = vand.u32 4294901760, %v21997_v7  ;;  %18371 = vmatprep.subr.mxu1 %v7788_v5 }
 0xd41   : > { %v22009_v39 = vsub.f32 %v7655_v61, %v21999_v6  ;;  %v22012_v63 = vand.u32 4294901760, %v7654_v15  ;;  %18372 = vmatpush3.msra.mxu1 %v7788_v5  ;;  %v7646_v5 = vld [vmem:[#allocation13 + $0x8] sm:$0xff] }
 0xd42   : > { %v7167_v43 = vadd.f32 %v7166_v13, %v7006_v1  ;;  %v7795_v1 = vand.u32 4294901760, %v7794_v4  ;;  %v7801_v13 = vsub.f32 %v21997_v7, %v22006_v40 }
 0xd43   : > { %18344 = vmatprep.subr.mxu0 %v22012_v63 }
 0xd44   : > { %18373 = vmatprep.subr.mxu1 %v7795_v1  ;;  %18345 = vmatpush3.msra.mxu0 %v22012_v63 }
 0xd45   : > { %18374 = vmatpush3.msra.mxu1 %v7795_v1 }
 0xd56   : > { %v18261_v59 = vpop.f32.mrf.mxu1 }
 0xd58   : > { %v7372_v52 = vpop.f32.mrf.mxu1 }
 0xd5e   : > { %v18226_v35 = vpop.f32.mrf.mxu0 }
 0xd5f   : > { %v7284_v58 = vadd.f32 %v18226_v35, %v7173_v25  ;;  %v7653_v35 = vld [vmem:[#allocation13 + $0x40] sm:$0xff]  ;;  %v22018_v25 = vand.u32 4294901760, %v22009_v39 }
 0xd60   : > { %v7276_v2 = vpop.f32.mrf.mxu0 }
 0xd61   : > { %v7277_v50 = vadd.f32 %v7276_v2, %v7167_v43  ;;  %v7381_v22 = vadd.f32 %v18261_v59, %v7284_v58  ;;  %v22020_v59 = vand.u32 4294901760, %v7653_v35  ;;  %v22023_v2 = vsub.f32 %v7654_v15, %v22012_v63  ;;  %v7652_v58 = vld [vmem:[#allocation13 + $0x38] sm:$0xff] }
 0xd62   : > { %v7802_v43 = vand.u32 4294901760, %v7801_v13  ;;  %v22095_v15 = vand.u32 4294901760, %v22083_v17  ;;  %v22104_v13 = vand.u32 4294901760, %v7646_v5 }
 0xd63   : > { %v7373_v47 = vadd.f32 %v7372_v52, %v7277_v50  ;;  %v7808_v50 = vsub.f32 %v22009_v39, %v22018_v25  ;;  %v22029_v52 = vsub.f32 %v7653_v35, %v22020_v59  ;;  %18346 = vmatprep.subr.mxu0 %v22020_v59 }
 0xd64   : > { %18375 = vmatprep.subr.mxu1 %v7802_v43  ;;  %18347 = vmatpush3.msra.mxu0 %v22020_v59 }
 0xd65   : > { %18376 = vmatpush3.msra.mxu1 %v7802_v43  ;;  %v7645_v43 = vld [vmem:[#allocation13] sm:$0xff] }
 0xd78   : > { %v18331_v12 = vpop.f32.mrf.mxu1 }
 0xd7a   : > { %v7592_v30 = vpop.f32.mrf.mxu1 }
 0xd7f   : > { %v18296_v60 = vpop.f32.mrf.mxu0 }
 0xd80   : > { %v7506_v48 = vadd.f32 %v18296_v60, %v7381_v22  ;;  %v22031_v22 = vand.u32 4294901760, %v7652_v58  ;;  %v7651_v60 = vld [vmem:[#allocation13 + $0x30] sm:$0xff] }
 0xd81   : > { %v7499_v42 = vpop.f32.mrf.mxu0 }
 0xd82   : > { %v7599_v23 = vadd.f32 %v18331_v12, %v7506_v48  ;;  %v7500_v24 = vadd.f32 %v7499_v42, %v7373_v47  ;;  %v22035_v12 = vand.u32 4294901760, %v22023_v2  ;;  %v7809_v48 = vand.u32 4294901760, %v7808_v50  ;;  %18348 = vmatprep.subr.mxu0 %v22031_v22 }
 0xd83   : > { %v22039_v47 = vand.u32 4294901760, %v22029_v52  ;;  %v22042_v42 = vsub.f32 %v7652_v58, %v22031_v22  ;;  %18349 = vmatpush3.msra.mxu0 %v22031_v22  ;;  %v7850_v58 = vsub.f32 %v22083_v17, %v22095_v15 }
 0xd84   : > { %v7593_v20 = vadd.f32 %v7592_v30, %v7500_v24  ;;  %v7603_v54 = vadd.f32 %v19308_v34, %v7599_v23  ;;  %v22044_v23 = vand.u32 4294901760, %v7651_v60  ;;  %v7815_v24 = vsub.f32 %v22023_v2, %v22035_v12  ;;  %v7650_v30 = vld [vmem:[#allocation13 + $0x28] sm:$0xff]  ;;  %18377 = vmatprep.subr.mxu1 %v7809_v48 }
 0xd85   : > { %v22053_v34 = vand.u32 4294901760, %v22042_v42  ;;  %18378 = vmatpush3.msra.mxu1 %v7809_v48  ;;  %v22116_v48 = vsub.f32 %v7646_v5, %v22104_v13 }
 0xd86   : > { %7608 = vadd.xlane.f32.xlu1 %v7603_v54  ;;  %v7602_v14 = vadd.f32 %v19309_v11, %v7593_v20  ;;  %v7822_v20 = vsub.f32 %v22029_v52, %v22039_v47  ;;  %v22058_v11 = vand.u32 4294901760, %v7650_v30  ;;  %18350 = vmatprep.subr.mxu0 %v22044_v23 }
 0xd87   : > { %v7829_v49 = vsub.f32 %v22042_v42, %v22053_v34  ;;  %18351 = vmatpush3.msra.mxu0 %v22044_v23  ;;  %v22125_v38 = vand.u32 4294901760, %v22116_v48 }
 0xd88   : > { %7606 = vadd.xlane.f32.xlu0 %v7602_v14  ;;  %v7823_v31 = vand.u32 4294901760, %v7822_v20  ;;  %v22068_v9 = vsub.f32 %v7650_v30, %v22058_v11  ;;  %18352 = vmatprep.subr.mxu0 %v22058_v11  ;;  %v7851_v30 = vand.u32 4294901760, %v7850_v58 }
 0xd89   : > { %18353 = vmatpush3.msra.mxu0 %v22058_v11 }
 0xd8a   : > { %18354 = vmatprep.subr.mxu0 %v22071_v28 }
 0xd8b   : > { %18355 = vmatpush3.msra.mxu0 %v22071_v28 }
 0xe0f   : > { %v7609_v19 = vpop.xlane.xlu1 %7608 }
 0xe10   : > { %v7612_v51 = vmul.f32 0.0078125, %v7609_v19  ;;  %v7648_v19 = vld [vmem:[#allocation13 + $0x18] sm:$0xff] }
 0xe11   : > { %v7607_v18 = vpop.xlane.xlu0 %7606 }
 0xe12   : > { %v7611_v44 = vmul.f32 0.0078125, %v7607_v18  ;;  %v21966_v41 = vsub.f32 %v7603_v54, %v7612_v51  ;;  %v22056_v54 = vsub.f32 %v7651_v60, %v22044_v23  ;;  %v7830_v18 = vand.u32 4294901760, %v7829_v49 }
 0xe14   : > { %v21964_v27 = vsub.f32 %v7602_v14, %v7611_v44  ;;  %v7616_v10 = vmul.f32 %v21966_v41, %v21966_v41  ;;  %v7816_v14 = vand.u32 4294901760, %v7815_v24  ;;  %v22065_v26 = vand.u32 4294901760, %v22056_v54 }
 0xe15   : > { %v22077_v44 = vand.u32 4294901760, %v22068_v9  ;;  %v22118_v24 = vand.u32 4294901760, %v7645_v43 }
 0xe16   : > { %v7615_v37 = vmul.f32 %v21964_v27, %v21964_v27  ;;  %18379 = vmatprep.subr.mxu1 %v7816_v14  ;;  %v7836_v51 = vsub.f32 %v22056_v54, %v22065_v26 }
 0xe17   : > { %18380 = vmatpush3.msra.mxu1 %v7816_v14  ;;  %v7843_v0 = vsub.f32 %v22068_v9, %v22077_v44 }
 0xe18   : > { %7617 = vadd.xlane.f32.xlu0 %v7615_v37  ;;  %v22079_v37 = vand.u32 4294901760, %v7648_v19  ;;  %18381 = vmatprep.subr.mxu1 %v7823_v31  ;;  %v7837_v33 = vand.u32 4294901760, %v7836_v51 }
 0xe19   : > { %18382 = vmatpush3.msra.mxu1 %v7823_v31  ;;  %v7844_v4 = vand.u32 4294901760, %v7843_v0  ;;  %v22128_v31 = vsub.f32 %v7645_v43, %v22118_v24 }
 0xe1a   : > { %v22089_v61 = vsub.f32 %v7648_v19, %v22079_v37  ;;  %18383 = vmatprep.subr.mxu1 %v7830_v18  ;;  %18356 = vmatprep.subr.mxu0 %v22079_v37  ;;  %v7871_v19 = vsub.f32 %v22116_v48, %v22125_v38 }
 0xe1b   : > { %18384 = vmatpush3.msra.mxu1 %v7830_v18  ;;  %18357 = vmatpush3.msra.mxu0 %v22079_v37  ;;  %v22135_v18 = vand.u32 4294901760, %v22128_v31 }
 0xe1c   : > { %7619 = vadd.xlane.f32.xlu0 %v7616_v10  ;;  %v7647_v10 = vld [vmem:[#allocation13 + $0x10] sm:$0xff]  ;;  %v22099_v35 = vand.u32 4294901760, %v22089_v61  ;;  %18385 = vmatprep.subr.mxu1 %v7837_v33  ;;  %v7872_v51 = vand.u32 4294901760, %v7871_v19 }
 0xe1d   : > { %v22091_v55 = vand.u32 4294901760, %v7647_v10  ;;  %18386 = vmatpush3.msra.mxu1 %v7837_v33 }
 0xe1e   : > { %v7857_v50 = vsub.f32 %v22089_v61, %v22099_v35  ;;  %18387 = vmatprep.subr.mxu1 %v7844_v4 }
 0xe1f   : > { %v22102_v1 = vsub.f32 %v7647_v10, %v22091_v55  ;;  %18358 = vmatprep.subr.mxu0 %v22091_v55  ;;  %18388 = vmatpush3.msra.mxu1 %v7844_v4  ;;  %v7878_v10 = vsub.f32 %v22128_v31, %v22135_v18 }
 0xe20   : > { %18359 = vmatpush3.msra.mxu0 %v22091_v55  ;;  %v7858_v20 = vand.u32 4294901760, %v7857_v50  ;;  %18389 = vmatprep.subr.mxu1 %v7851_v30 }
 0xe21   : > { %v22113_v60 = vand.u32 4294901760, %v22102_v1  ;;  %18360 = vmatprep.subr.mxu0 %v22104_v13  ;;  %18390 = vmatpush3.msra.mxu1 %v7851_v30  ;;  %v7879_v33 = vand.u32 4294901760, %v7878_v10 }
 0xe22   : > { %18361 = vmatpush3.msra.mxu0 %v22104_v13  ;;  %18391 = vmatprep.subr.mxu1 %v7858_v20 }
 0xe23   : > { %v7864_v14 = vsub.f32 %v22102_v1, %v22113_v60  ;;  %18362 = vmatprep.subr.mxu0 %v22118_v24  ;;  %18392 = vmatpush3.msra.mxu1 %v7858_v20  ;;  %v16513_v20 = vld [vmem:[%s24813_s18] ss:$0 sm:$0xff] }
 0xe24   : > { %18363 = vmatpush3.msra.mxu0 %v22118_v24 }
 0xe25   : > { %v7865_v49 = vand.u32 4294901760, %v7864_v14  ;;  %18402 = vmatprep.subr.mxu0 %v21945_v36 }
 0xe27   : > { %18393 = vmatprep.subr.mxu1 %v7865_v49 }
 0xe28   : > { %18394 = vmatpush3.msra.mxu1 %v7865_v49  ;;  %v16514_v49 = vld [vmem:[%s24814_s19] ss:$0 sm:$0xff] }
 0xe29   : > { %18395 = vmatprep.subr.mxu1 %v7872_v51 }
 0xe2a   : > { %18396 = vmatpush3.msra.mxu1 %v7872_v51 }
 0xe2b   : > { %18397 = vmatprep.subr.mxu1 %v7879_v33 }
 0xe2c   : > { %18398 = vmatpush3.msra.mxu1 %v7879_v33 }
 0xe2d   : > { %18437 = vmatprep.subr.mxu1 %v21940_v53 }
 0xea1   : > { %v7618_v0 = vpop.xlane.xlu0 %7617 }
 0xea2   : > { %v7621_v5 = vmul.f32 0.0078125, %v7618_v0 }
 0xea4   : > { %v7623_v4 = vadd.f32 1e-06, %v7621_v5 }
 0xea5   : > { %v7620_v58 = vpop.xlane.xlu0 %7619 }
 0xea6   : > { %19264 = vrsqrt.f32 %v7623_v4  ;;  %v7622_v43 = vmul.f32 0.0078125, %v7620_v58 }
 0xea8   : > { %v7624_v50 = vadd.f32 1e-06, %v7622_v43 }
 0xeaa   : > { %19266 = vrsqrt.f32 %v7624_v50 }
 0xeb3   : > { %v19265_v30 = vpop.eup %19264 }
 0xeb4   : > { %v7627_v14 = vmul.f32 %v19265_v30, %v21964_v27 }
 0xeb6   : > { %v7635_v19 = vmul.f32 %v16513_v20, %v7627_v14 }
 0xeb7   : > { %v19267_v51 = vpop.eup %19266 }
 0xeb8   : > { %v7628_v10 = vmul.f32 %v19267_v51, %v21966_v41  ;;  %v22150_v33 = vadd.f32 %v16514_v49, %v7635_v19  ;;  %v8371_v19 = vld [vmem:[#allocation14 + $0x98] sm:$0xff] }
 0xeba   : > { %25388 = vst [vmem:[#allocation44_spill] sm:$0xff] %v22150_v33  ;;  %v22153_v0 = vand.u32 4294901760, %v22150_v33  ;;  %v7636_v5 = vmul.f32 %v16513_v20, %v7628_v10  ;;  %v8370_v10 = vld [vmem:[#allocation14 + $0x90] sm:$0xff] }
 0xebc   : > { %18399 = vmatprep.mubr.f32.mxu1 %v22153_v0  ;;  %v22156_v4 = vadd.f32 %v16514_v49, %v7636_v5  ;;  %v7750_v27 = vsub.f32 %v22150_v33, %v22153_v0  ;;  %v8361_v33 = vld [vmem:[#allocation14 + $0x48] sm:$0xff] }
 0xebe   : > { %25389 = vst [vmem:[#allocation45_spill] sm:$0xff] %v22156_v4  ;;  %v22161_v58 = vand.u32 4294901760, %v22156_v4  ;;  %v7751_v43 = vand.u32 4294901760, %v7750_v27 }
 0xec0   : > { %18400 = vmatmul.mubr.f32.vlgmr.msra.gmra.mxu1 %v22161_v58  ;;  %v7752_v41 = vsub.f32 %v7750_v27, %v7751_v43  ;;  %v22166_v50 = vsub.f32 %v22156_v4, %v22161_v58 }
 0xec1   : > { %18438 = vmatpush3.msra.mxu1 %v21940_v53  ;;  %18469 = vmatprep.mubr.f32.mxu1 %v7751_v43  ;;  %v8369_v43 = vld [vmem:[#allocation14 + $0x88] sm:$0xff] }
 0xec2   : > { %18439 = vmatprep.subr.mxu1 %v21942_v62  ;;  %v7753_v30 = vand.u32 4294901760, %v7752_v41  ;;  %v7761_v20 = vand.u32 4294901760, %v22166_v50 }
 0xec3   : > { %18440 = vmatpush3.msra.mxu1 %v21942_v62 }
 0xec4   : > { %18441 = vmatprep.subr.mxu1 %v21972_v45  ;;  %18364 = vmatprep.mubr.f32.mxu0 %v7753_v30  ;;  %v7762_v14 = vsub.f32 %v22166_v50, %v7761_v20 }
 0xec5   : > { %18442 = vmatpush3.msra.mxu1 %v21972_v45 }
 0xec6   : > { %18443 = vmatprep.subr.mxu1 %v21977_v16  ;;  %v7763_v49 = vand.u32 4294901760, %v7762_v14  ;;  %v22348_v14 = vand.u32 4294901760, %v8370_v10 }
 0xec7   : > { %18444 = vmatpush3.msra.mxu1 %v21977_v16 }
 0xec8   : > { %18445 = vmatprep.subr.mxu1 %v21987_v8  ;;  %18365 = vmatmul.mubr.f32.vlgmr.msra.gmra.mxu0 %v7763_v49  ;;  %v8368_v49 = vld [vmem:[#allocation14 + $0x80] sm:$0xff] }
 0xec9   : > { %18403 = vmatpush3.msra.mxu0 %v21945_v36  ;;  %18446 = vmatpush3.msra.mxu1 %v21987_v8 }
 0xeca   : > { %18404 = vmatprep.subr.mxu0 %v21948_v29  ;;  %18434 = vmatprep.mubr.f32.mxu0 %v7750_v27 }
 0xecb   : > { %18447 = vmatprep.subr.mxu1 %v21999_v6  ;;  %18405 = vmatpush3.msra.mxu0 %v21948_v29  ;;  %v8381_v29 = vld [vmem:[#allocation14 + $0xe8] sm:$0xff] }
 0xecc   : > { %18448 = vmatpush3.msra.mxu1 %v21999_v6  ;;  %18406 = vmatprep.subr.mxu0 %v21975_v32 }
 0xecd   : > { %18449 = vmatprep.subr.mxu1 %v22012_v63  ;;  %18407 = vmatpush3.msra.mxu0 %v21975_v32  ;;  %v8379_v32 = vld [vmem:[#allocation14 + $0xd8] sm:$0xff] }
 0xece   : > { %18450 = vmatpush3.msra.mxu1 %v22012_v63  ;;  %18408 = vmatprep.subr.mxu0 %v21985_v56 }
 0xecf   : > { %18451 = vmatprep.subr.mxu1 %v22020_v59  ;;  %18409 = vmatpush3.msra.mxu0 %v21985_v56  ;;  %v8378_v56 = vld [vmem:[#allocation14 + $0xd0] sm:$0xff] }
 0xed0   : > { %18452 = vmatpush3.msra.mxu1 %v22020_v59  ;;  %18410 = vmatprep.subr.mxu0 %v21997_v7 }
 0xed1   : > { %18453 = vmatprep.subr.mxu1 %v22031_v22  ;;  %18411 = vmatpush3.msra.mxu0 %v21997_v7  ;;  %v8377_v7 = vld [vmem:[#allocation14 + $0xc8] sm:$0xff] }
 0xed2   : > { %18454 = vmatpush3.msra.mxu1 %v22031_v22  ;;  %18412 = vmatprep.subr.mxu0 %v22009_v39 }
 0xed3   : > { %18455 = vmatprep.subr.mxu1 %v22044_v23  ;;  %18413 = vmatpush3.msra.mxu0 %v22009_v39 }
 0xed4   : > { %18456 = vmatpush3.msra.mxu1 %v22044_v23  ;;  %18414 = vmatprep.subr.mxu0 %v22023_v2 }
 0xed5   : > { %18457 = vmatprep.subr.mxu1 %v22058_v11  ;;  %18415 = vmatpush3.msra.mxu0 %v22023_v2  ;;  %v8375_v2 = vld [vmem:[#allocation14 + $0xb8] sm:$0xff] }
 0xed6   : > { %18458 = vmatpush3.msra.mxu1 %v22058_v11  ;;  %18416 = vmatprep.subr.mxu0 %v22029_v52 }
 0xed7   : > { %18459 = vmatprep.subr.mxu1 %v22071_v28  ;;  %18417 = vmatpush3.msra.mxu0 %v22029_v52 }
 0xed8   : > { %18460 = vmatpush3.msra.mxu1 %v22071_v28  ;;  %18418 = vmatprep.subr.mxu0 %v22042_v42 }
 0xed9   : > { %18461 = vmatprep.subr.mxu1 %v22079_v37  ;;  %18419 = vmatpush3.msra.mxu0 %v22042_v42  ;;  %v8374_v42 = vld [vmem:[#allocation14 + $0xb0] sm:$0xff] }
 0xeda   : > { %18462 = vmatpush3.msra.mxu1 %v22079_v37  ;;  %18420 = vmatprep.subr.mxu0 %v22056_v54 }
 0xedb   : > { %18463 = vmatprep.subr.mxu1 %v22091_v55  ;;  %18421 = vmatpush3.msra.mxu0 %v22056_v54 }
 0xedc   : > { %18464 = vmatpush3.msra.mxu1 %v22091_v55  ;;  %18422 = vmatprep.subr.mxu0 %v22068_v9 }
 0xedd   : > { %18465 = vmatprep.subr.mxu1 %v22104_v13  ;;  %18423 = vmatpush3.msra.mxu0 %v22068_v9 }
 0xede   : > { %18466 = vmatpush3.msra.mxu1 %v22104_v13  ;;  %18424 = vmatprep.subr.mxu0 %v22083_v17 }
 0xedf   : > { %18467 = vmatprep.subr.mxu1 %v22118_v24  ;;  %18425 = vmatpush3.msra.mxu0 %v22083_v17  ;;  %v8373_v17 = vld [vmem:[#allocation14 + $0xa8] sm:$0xff] }
 0xee0   : > { %18468 = vmatpush3.msra.mxu1 %v22118_v24  ;;  %18426 = vmatprep.subr.mxu0 %v22089_v61 }
 0xee1   : > { %18470 = vmatmul.mubr.f32.vlgmr.msra.gmra.mxu1 %v7761_v20  ;;  %18507 = vmatprep.subr.mxu1 %v21940_v53 }
 0xee2   : > { %18427 = vmatpush3.msra.mxu0 %v22089_v61  ;;  %18508 = vmatpush3.msra.mxu1 %v21940_v53  ;;  %v8383_v53 = vld [vmem:[#allocation14 + $0xf8] sm:$0xff]  ;;  %v22298_v61 = vand.u32 4294901760, %v8375_v2 }
 0xee3   : > { %18539 = vmatprep.mubr.f32.mxu1 %v22153_v0  ;;  %18428 = vmatprep.subr.mxu0 %v22102_v1  ;;  %v22248_v36 = vand.u32 4294901760, %v8383_v53 }
 0xee4   : > { %18509 = vmatprep.subr.mxu1 %v21942_v62  ;;  %18429 = vmatpush3.msra.mxu0 %v22102_v1  ;;  %v22333_v41 = vsub.f32 %v8375_v2, %v22298_v61  ;;  %v22386_v2 = vand.u32 4294901760, %v8368_v49 }
 0xee5   : > { %18510 = vmatpush3.msra.mxu1 %v21942_v62  ;;  %18430 = vmatprep.subr.mxu0 %v22116_v48  ;;  %v8382_v62 = vld [vmem:[#allocation14 + $0xf0] sm:$0xff] }
 0xee6   : > { %18511 = vmatprep.subr.mxu1 %v21972_v45  ;;  %18431 = vmatpush3.msra.mxu0 %v22116_v48  ;;  %25395 = vst [vmem:[#allocation52_spill] sm:$0xff] %v22333_v41  ;;  %25401 = vst [vmem:[#allocation47_spill] sm:$0xff] %v22386_v2 }
 0xee7   : > { %18512 = vmatpush3.msra.mxu1 %v21972_v45  ;;  %18432 = vmatprep.subr.mxu0 %v22128_v31  ;;  %v8380_v45 = vld [vmem:[#allocation14 + $0xe0] sm:$0xff] }
 0xee8   : > { %18513 = vmatprep.subr.mxu1 %v21977_v16  ;;  %18433 = vmatpush3.msra.mxu0 %v22128_v31  ;;  %v22306_v31 = vand.u32 4294901760, %v8374_v42 }
 0xee9   : > { %18514 = vmatpush3.msra.mxu1 %v21977_v16  ;;  %18435 = vmatmul.mubr.f32.vlgmr.msra.gmra.mxu0 %v22166_v50  ;;  %v22258_v16 = vand.u32 4294901760, %v8381_v29  ;;  %v22335_v50 = vand.u32 4294901760, %v8371_v19 }
 0xeea   : > { %18472 = vmatprep.subr.mxu0 %v21953_v3  ;;  %18515 = vmatprep.subr.mxu1 %v21987_v8 }
 0xeeb   : > { %18473 = vmatpush3.msra.mxu0 %v21953_v3  ;;  %18504 = vmatprep.mubr.f32.mxu0 %v22153_v0  ;;  %v22254_v3 = vand.u32 4294901760, %v8382_v62  ;;  %v22281_v52 = vsub.f32 %v8381_v29, %v22258_v16  ;;  %25396 = vst [vmem:[#allocation37_spill] sm:$0xff] %v22335_v50  ;;  %v22361_v29 = vand.u32 4294901760, %v8369_v43 }
 0xeec   : > { %18516 = vmatpush3.msra.mxu1 %v21987_v8  ;;  %18474 = vmatprep.subr.mxu0 %v21956_v21  ;;  %v22265_v8 = vand.u32 4294901760, %v8380_v45 }
 0xeed   : > { %18517 = vmatprep.subr.mxu1 %v21999_v6  ;;  %18475 = vmatpush3.msra.mxu0 %v21956_v21  ;;  %v22263_v21 = vsub.f32 %v8383_v53, %v22248_v36  ;;  %v22274_v39 = vsub.f32 %v8382_v62, %v22254_v3 }
 0xeee   : > { %18518 = vmatpush3.msra.mxu1 %v21999_v6  ;;  %18476 = vmatprep.subr.mxu0 %v21982_v57  ;;  %v22269_v6 = vand.u32 4294901760, %v8379_v32  ;;  %v22289_v54 = vsub.f32 %v8380_v45, %v22265_v8 }
 0xeef   : > { %18519 = vmatprep.subr.mxu1 %v22012_v63  ;;  %18477 = vmatpush3.msra.mxu0 %v21982_v57  ;;  %v8376_v57 = vld [vmem:[#allocation14 + $0xc0] sm:$0xff]  ;;  %v24953_v1 = vand.u32 4294901760, %v22274_v39 }
 0xef0   : > { %18520 = vmatpush3.msra.mxu1 %v22012_v63  ;;  %18478 = vmatprep.subr.mxu0 %v21994_v46  ;;  %v22276_v63 = vand.u32 4294901760, %v8378_v56  ;;  %v22291_v9 = vand.u32 4294901760, %v8376_v57  ;;  %v24950_v5 = vand.u32 4294901760, %v22289_v54 }
 0xef1   : > { %18521 = vmatprep.subr.mxu1 %v22020_v59  ;;  %18479 = vmatpush3.msra.mxu0 %v21994_v46  ;;  %v22283_v46 = vand.u32 4294901760, %v8377_v7  ;;  %v22342_v30 = vsub.f32 %v22274_v39, %v24953_v1 }
 0xef2   : > { %18522 = vmatpush3.msra.mxu1 %v22020_v59  ;;  %18480 = vmatprep.subr.mxu0 %v22006_v40  ;;  %25390 = vst [vmem:[#allocation55_spill] sm:$0xff] %v22276_v63  ;;  %v24955_v59 = vand.u32 4294901760, %v22263_v21  ;;  %v22304_v48 = vsub.f32 %v8378_v56, %v22276_v63 }
 0xef3   : > { %18523 = vmatprep.subr.mxu1 %v22031_v22  ;;  %18481 = vmatpush3.msra.mxu0 %v22006_v40  ;;  %v22296_v40 = vsub.f32 %v8379_v32, %v22269_v6  ;;  %v22312_v51 = vsub.f32 %v8377_v7, %v22283_v46  ;;  %v24954_v7 = vand.u32 4294901760, %v22333_v41 }
 0xef4   : > { %18524 = vmatpush3.msra.mxu1 %v22031_v22  ;;  %18482 = vmatprep.subr.mxu0 %v22018_v25  ;;  %v8372_v22 = vld [vmem:[#allocation14 + $0xa0] sm:$0xff]  ;;  %25392 = vst [vmem:[#allocation46_spill] sm:$0xff] %v22304_v48  ;;  %v22321_v0 = vsub.f32 %v22263_v21, %v24955_v59  ;;  %v24947_v20 = vand.u32 4294901760, %v22304_v48  ;;  %v8363_v59 = vld [vmem:[#allocation14 + $0x58] sm:$0xff] }
 0xef5   : > { %18525 = vmatprep.subr.mxu1 %v22044_v23  ;;  %18483 = vmatpush3.msra.mxu0 %v22018_v25  ;;  %25391 = vst [vmem:[#allocation51_spill] sm:$0xff] %v22296_v40  ;;  %v24952_v25 = vand.u32 4294901760, %v22281_v52  ;;  %25393 = vst [vmem:[#allocation56_spill] sm:$0xff] %v22312_v51  ;;  %v22327_v27 = vand.u32 4294901760, %v8372_v22  ;;  %v24949_v53 = vand.u32 4294901760, %v22312_v51 }
 0xef6   : > { %18526 = vmatpush3.msra.mxu1 %v22044_v23  ;;  %18484 = vmatprep.subr.mxu0 %v22035_v12  ;;  %v22314_v23 = vand.u32 4294901760, %v8373_v17  ;;  %v8519_v45 = vand.u32 4294901760, %v22321_v0  ;;  %v22398_v0 = vsub.f32 %v8370_v10, %v22348_v14 }
 0xef7   : > { %18527 = vmatprep.subr.mxu1 %v22058_v11  ;;  %18485 = vmatpush3.msra.mxu0 %v22035_v12  ;;  %v22325_v12 = vsub.f32 %v8376_v57, %v22291_v9  ;;  %v22373_v56 = vsub.f32 %v8372_v22, %v22327_v27  ;;  %v22384_v57 = vsub.f32 %v8371_v19, %v22335_v50 }
 0xef8   : > { %18528 = vmatpush3.msra.mxu1 %v22058_v11  ;;  %18486 = vmatprep.subr.mxu0 %v22039_v47  ;;  %v24948_v11 = vand.u32 4294901760, %v22296_v40  ;;  %v22359_v62 = vsub.f32 %v8373_v17, %v22314_v23  ;;  %v8525_v17 = vand.u32 4294901760, %v22342_v30  ;;  %25402 = vst [vmem:[#allocation48_spill] sm:$0xff] %v22398_v0  ;;  %v22406_v19 = vsub.f32 %v22312_v51, %v24949_v53  ;;  %v8352_v51 = vld [vmem:[#allocation14] sm:$0xff] }
 0xef9   : > { %25394 = vst [vmem:[#allocation34_spill] sm:$0xff] %v22325_v12  ;;  %18529 = vmatprep.subr.mxu1 %v22071_v28  ;;  %18487 = vmatpush3.msra.mxu0 %v22039_v47  ;;  %v22346_v47 = vsub.f32 %v8374_v42, %v22306_v31  ;;  %v24951_v32 = vand.u32 4294901760, %v22325_v12  ;;  %25399 = vst [vmem:[#allocation42_spill] sm:$0xff] %v22373_v56  ;;  %v8367_v42 = vld [vmem:[#allocation14 + $0x78] sm:$0xff] }
 0xefa   : > { %18530 = vmatpush3.msra.mxu1 %v22071_v28  ;;  %18488 = vmatprep.subr.mxu0 %v22053_v34  ;;  %v22355_v28 = vsub.f32 %v22281_v52, %v24952_v25  ;;  %25398 = vst [vmem:[#allocation41_spill] sm:$0xff] %v22359_v62  ;;  %25400 = vst [vmem:[#allocation43_spill] sm:$0xff] %v22384_v57  ;;  %v24957_v30 = vand.u32 4294901760, %v22359_v62  ;;  %v22421_v53 = vand.u32 4294901760, %v8367_v42  ;;  %v8364_v25 = vld [vmem:[#allocation14 + $0x60] sm:$0xff] }
 0xefb   : > { %25397 = vst [vmem:[#allocation39_spill] sm:$0xff] %v22346_v47  ;;  %18531 = vmatprep.subr.mxu1 %v22079_v37  ;;  %18489 = vmatpush3.msra.mxu0 %v22053_v34  ;;  %v22369_v34 = vsub.f32 %v22289_v54, %v24950_v5  ;;  %v24956_v22 = vand.u32 4294901760, %v22346_v47  ;;  %v8365_v5 = vld [vmem:[#allocation14 + $0x68] sm:$0xff] }
 0xefc   : > { %18532 = vmatpush3.msra.mxu1 %v22079_v37  ;;  %18490 = vmatprep.subr.mxu0 %v22065_v26  ;;  %v22380_v37 = vsub.f32 %v22296_v40, %v24948_v11  ;;  %v8366_v11 = vld [vmem:[#allocation14 + $0x70] sm:$0xff]  ;;  %25404 = vst [vmem:[#allocation50_spill] sm:$0xff] %v22421_v53 }
 0xefd   : > { %18533 = vmatprep.subr.mxu1 %v22091_v55  ;;  %18491 = vmatpush3.msra.mxu0 %v22065_v26  ;;  %v22394_v26 = vsub.f32 %v22304_v48, %v24947_v20  ;;  %v22410_v20 = vsub.f32 %v8369_v43, %v22361_v29  ;;  %v8537_v10 = vand.u32 4294901760, %v22369_v34  ;;  %v22429_v43 = vsub.f32 %v22333_v41, %v24954_v7  ;;  %v8362_v34 = vld [vmem:[#allocation14 + $0x50] sm:$0xff] }
 0xefe   : > { %18534 = vmatpush3.msra.mxu1 %v22091_v55  ;;  %18492 = vmatprep.subr.mxu0 %v22077_v44  ;;  %v8531_v55 = vand.u32 4294901760, %v22355_v28  ;;  %v24960_v28 = vand.u32 4294901760, %v22373_v56  ;;  %v22444_v7 = vand.u32 4294901760, %v8366_v11 }
 0xeff   : > { %18535 = vmatprep.subr.mxu1 %v22104_v13  ;;  %18493 = vmatpush3.msra.mxu0 %v22077_v44  ;;  %25403 = vst [vmem:[#allocation49_spill] sm:$0xff] %v22410_v20  ;;  %v22418_v44 = vsub.f32 %v22325_v12, %v24951_v32  ;;  %v22433_v32 = vsub.f32 %v8368_v49, %v22386_v2  ;;  %v8549_v1 = vand.u32 4294901760, %v22394_v26  ;;  %v8567_v26 = vand.u32 4294901760, %v22429_v43 }
 0xf00   : > { %18536 = vmatpush3.msra.mxu1 %v22104_v13  ;;  %18494 = vmatprep.subr.mxu0 %v22095_v15  ;;  %v8543_v13 = vand.u32 4294901760, %v22380_v37  ;;  %25406 = vst [vmem:[#allocation38_spill] sm:$0xff] %v22444_v7  ;;  %v22452_v49 = vsub.f32 %v22359_v62, %v24957_v30  ;;  %v22467_v30 = vand.u32 4294901760, %v8364_v25  ;;  %v22487_v43 = vsub.f32 %v8366_v11, %v22444_v7  ;;  %v8358_v11 = vld [vmem:[#allocation14 + $0x30] sm:$0xff] }
 0xf01   : > { %18537 = vmatprep.subr.mxu1 %v22118_v24  ;;  %18495 = vmatpush3.msra.mxu0 %v22095_v15  ;;  %25405 = vst [vmem:[#allocation53_spill] sm:$0xff] %v22433_v32  ;;  %v22441_v15 = vsub.f32 %v22346_v47, %v24956_v22  ;;  %v22455_v22 = vand.u32 4294901760, %v8365_v5  ;;  %v8561_v37 = vand.u32 4294901760, %v22418_v44 }
 0xf02   : > { %18538 = vmatpush3.msra.mxu1 %v22118_v24  ;;  %18496 = vmatprep.subr.mxu0 %v22099_v35  ;;  %v8555_v24 = vand.u32 4294901760, %v22406_v19  ;;  %v22465_v19 = vsub.f32 %v8367_v42, %v22421_v53  ;;  %25408 = vst [vmem:[#allocation54_spill] sm:$0xff] %v22467_v30  ;;  %25411 = vst [vmem:[#allocation57_spill] sm:$0xff] %v22487_v43  ;;  %v8579_v4 = vand.u32 4294901760, %v22452_v49 }
 0xf03   : > { %18540 = vmatmul.mubr.f32.vlgmr.msra.gmra.mxu1 %v22161_v58  ;;  %18497 = vmatpush3.msra.mxu0 %v22099_v35  ;;  %v22462_v35 = vsub.f32 %v22373_v56, %v24960_v28  ;;  %v22477_v28 = vand.u32 4294901760, %v8363_v59  ;;  %v8360_v56 = vld [vmem:[#allocation14 + $0x40] sm:$0xff]  ;;  %v8573_v42 = vand.u32 4294901760, %v22441_v15  ;;  %v22499_v62 = vsub.f32 %v8365_v5, %v22455_v22 }
 0xf04   : > { %18498 = vmatprep.subr.mxu0 %v22113_v60  ;;  %8520 = vmatprep.subr.mxu1 %v8519_v45  ;;  %25407 = vst [vmem:[#allocation40_spill] sm:$0xff] %v22465_v19  ;;  %v25409_v45 = vand.u32 4294901760, %v22384_v57  ;;  %v22509_v49 = vand.u32 4294901760, %v8360_v56 }
 0xf05   : > { %18499 = vmatpush3.msra.mxu0 %v22113_v60  ;;  %8526 = vmatpush1.msra.mxu1 %v8525_v17  ;;  %v25410_v60 = vand.u32 4294901760, %v22398_v0 }
 0xf06   : > { %v22474_v44 = vsub.f32 %v22384_v57, %v25409_v45  ;;  %18500 = vmatprep.subr.mxu0 %v22125_v38  ;;  %8532 = vmatprep.subr.mxu1 %v8531_v55  ;;  %v22489_v45 = vand.u32 4294901760, %v8362_v34  ;;  %v8359_v57 = vld [vmem:[#allocation14 + $0x38] sm:$0xff]  ;;  %v25412_v55 = vand.u32 4294901760, %v22410_v20 }
 0xf07   : > { %v22484_v17 = vsub.f32 %v22398_v0, %v25410_v60  ;;  %18501 = vmatpush3.msra.mxu0 %v22125_v38  ;;  %8538 = vmatpush1.msra.mxu1 %v8537_v10  ;;  %v22501_v60 = vand.u32 4294901760, %v8361_v33  ;;  %v8585_v0 = vand.u32 4294901760, %v22462_v35  ;;  %v22507_v10 = vsub.f32 %v8364_v25, %v22467_v30  ;;  %v8356_v25 = vld [vmem:[#allocation14 + $0x20] sm:$0xff] }
 0xf08   : > { %v22496_v15 = vsub.f32 %v22410_v20, %v25412_v55  ;;  %18502 = vmatprep.subr.mxu0 %v22135_v18  ;;  %8544 = vmatprep.subr.mxu1 %v8543_v13  ;;  %v8357_v55 = vld [vmem:[#allocation14 + $0x28] sm:$0xff]  ;;  %v8591_v5 = vand.u32 4294901760, %v22474_v44  ;;  %v25413_v20 = vand.u32 4294901760, %v22433_v32  ;;  %v22519_v13 = vsub.f32 %v8363_v59, %v22477_v28 }
 0xf09   : > { %18503 = vmatpush3.msra.mxu0 %v22135_v18  ;;  %8550 = vmatpush1.msra.mxu1 %v8549_v1  ;;  %v22521_v35 = vand.u32 4294901760, %v8359_v57  ;;  %v8597_v18 = vand.u32 4294901760, %v22484_v17  ;;  %v22528_v44 = vsub.f32 %v8362_v34, %v22489_v45  ;;  %v22530_v38 = vand.u32 4294901760, %v8358_v11  ;;  %v8354_v17 = vld [vmem:[#allocation14 + $0x10] sm:$0xff] }
 0xf0a   : > { %v22516_v47 = vsub.f32 %v22433_v32, %v25413_v20  ;;  %25414 = vst [vmem:[#allocation58_spill] sm:$0xff] %v22519_v13  ;;  %18505 = vmatmul.mubr.f32.vlgmr.msra.gmra.mxu0 %v22161_v58  ;;  %8397 = vmatprep.subr.mxu0 %v22248_v36  ;;  %v8355_v20 = vld [vmem:[#allocation14 + $0x18] sm:$0xff]  ;;  %v8603_v59 = vand.u32 4294901760, %v22496_v15  ;;  %v22536_v58 = vsub.f32 %v8361_v33, %v22501_v60  ;;  %v22538_v41 = vand.u32 4294901760, %v8357_v55  ;;  %v8353_v32 = vld [vmem:[#allocation14 + $0x8] sm:$0xff] }
 0xf0b   : > { %25415 = vst [vmem:[#allocation59_spill] sm:$0xff] %v22528_v44  ;;  %8399 = vmatpush1.msra.mxu0 %v22254_v3  ;;  %8556 = vmatprep.subr.mxu1 %v8555_v24  ;;  %v25417_v34 = vand.u32 4294901760, %v22465_v19  ;;  %v22546_v24 = vsub.f32 %v8360_v56, %v22509_v49  ;;  %v22548_v15 = vand.u32 4294901760, %v8356_v25  ;;  %v22556_v48 = vand.u32 4294901760, %v8355_v20 }
 0xf0c   : > { %25416 = vst [vmem:[#allocation60_spill] sm:$0xff] %v22536_v58  ;;  %8401 = vmatprep.subr.mxu0 %v22258_v16  ;;  %8562 = vmatpush1.msra.mxu1 %v8561_v37  ;;  %v8609_v33 = vand.u32 4294901760, %v22516_v47  ;;  %v22554_v37 = vsub.f32 %v8359_v57, %v22521_v35  ;;  %v25418_v56 = vand.u32 4294901760, %v22487_v43  ;;  %v22566_v47 = vand.u32 4294901760, %v8354_v17 }
 0xf0d   : > { %v8614_v1 = vsub.f32 %v22465_v19, %v25417_v34  ;;  %8403 = vmatpush1.msra.mxu0 %v22265_v8  ;;  %8568 = vmatprep.subr.mxu1 %v8567_v26  ;;  %v22564_v26 = vsub.f32 %v8358_v11, %v22530_v38  ;;  %v25419_v57 = vand.u32 4294901760, %v22499_v62  ;;  %v22574_v40 = vsub.f32 %v8357_v55, %v22538_v41 }
 0xf0e   : > { %8405 = vmatprep.subr.mxu0 %v22269_v6  ;;  %8574 = vmatpush1.msra.mxu1 %v8573_v42  ;;  %v8620_v34 = vsub.f32 %v22487_v43, %v25418_v56  ;;  %v22576_v56 = vand.u32 4294901760, %v8353_v32  ;;  %v25420_v12 = vand.u32 4294901760, %v22507_v10  ;;  %v25421_v55 = vand.u32 4294901760, %v22519_v13 }
 0xf0f   : > { %8407 = vmatpush1.msra.mxu0 %v22276_v63  ;;  %8580 = vmatprep.subr.mxu1 %v8579_v4  ;;  %v8626_v19 = vsub.f32 %v22499_v62, %v25419_v57  ;;  %v8615_v11 = vand.u32 4294901760, %v8614_v1  ;;  %v22584_v63 = vsub.f32 %v8356_v25, %v22548_v15  ;;  %v22592_v1 = vsub.f32 %v8355_v20, %v22556_v48 }
 0xf10   : > { %8409 = vmatprep.subr.mxu0 %v22283_v46  ;;  %8586 = vmatpush1.msra.mxu1 %v8585_v0  ;;  %v8632_v43 = vsub.f32 %v22507_v10, %v25420_v12  ;;  %v8638_v57 = vsub.f32 %v22519_v13, %v25421_v55  ;;  %v22594_v42 = vand.u32 4294901760, %v8352_v51  ;;  %v8621_v12 = vand.u32 4294901760, %v8620_v34 }
 0xf11   : > { %8411 = vmatpush1.msra.mxu0 %v22291_v9  ;;  %8592 = vmatprep.subr.mxu1 %v8591_v5  ;;  %v25422_v25 = vand.u32 4294901760, %v22528_v44  ;;  %v22602_v55 = vsub.f32 %v8354_v17, %v22566_v47  ;;  %v8627_v20 = vand.u32 4294901760, %v8626_v19  ;;  %v25423_v0 = vand.u32 4294901760, %v22536_v58 }
 0xf12   : > { %8413 = vmatprep.subr.mxu0 %v22298_v61  ;;  %8598 = vmatpush1.msra.mxu1 %v8597_v18  ;;  %v22610_v34 = vsub.f32 %v8353_v32, %v22576_v56  ;;  %v8633_v17 = vand.u32 4294901760, %v8632_v43  ;;  %v25424_v4 = vand.u32 4294901760, %v22546_v24  ;;  %v25425_v18 = vand.u32 4294901760, %v22554_v37 }
 0xf13   : > { %v8644_v5 = vsub.f32 %v22528_v44, %v25422_v25  ;;  %8415 = vmatpush1.msra.mxu0 %v22306_v31  ;;  %8604 = vmatprep.subr.mxu1 %v8603_v59  ;;  %v8650_v13 = vsub.f32 %v22536_v58, %v25423_v0  ;;  %v976_v25 = vld [vmem:[%s848_s23] sm:$0xff]  ;;  %v8639_v0 = vand.u32 4294901760, %v8638_v57  ;;  %v22625_v44 = vsub.f32 %v8352_v51, %v22594_v42 }
 0xf14   : > { %8417 = vmatprep.subr.mxu0 %v22314_v23  ;;  %8610 = vmatpush1.msra.mxu1 %v8609_v33  ;;  %v8656_v59 = vsub.f32 %v22546_v24, %v25424_v4  ;;  %v8662_v32 = vsub.f32 %v22554_v37, %v25425_v18  ;;  %v25427_v33 = vand.u32 4294901760, %v22564_v26  ;;  %v22632_v57 = vand.u32 4294901760, %v976_v25 }
 0xf15   : > { %8419 = vmatpush1.msra.mxu0 %v22327_v27  ;;  %8616 = vmatprep.subr.mxu1 %v8615_v11  ;;  %25426 = vst [vmem:[#allocation61_spill] sm:$0xff] %v22625_v44  ;;  %v8645_v43 = vand.u32 4294901760, %v8644_v5  ;;  %v8651_v18 = vand.u32 4294901760, %v8650_v13  ;;  %v25429_v58 = vand.u32 4294901760, %v22574_v40  ;;  %v25430_v5 = vand.u32 4294901760, %v22584_v63 }
 0xf16   : > { %8421 = vmatprep.subr.mxu0 %v22335_v50  ;;  %8622 = vmatpush1.msra.mxu1 %v8621_v12  ;;  %v8668_v4 = vsub.f32 %v22564_v26, %v25427_v33  ;;  %25428 = vst [vmem:[#allocation62_spill] sm:$0xff] %v22632_v57  ;;  %v8657_v12 = vand.u32 4294901760, %v8656_v59  ;;  %v8663_v11 = vand.u32 4294901760, %v8662_v32  ;;  %v25431_v13 = vand.u32 4294901760, %v22592_v1 }
 0xf17   : > { %8423 = vmatpush1.msra.mxu0 %v22348_v14  ;;  %8628 = vmatprep.subr.mxu1 %v8627_v20  ;;  %v8674_v51 = vsub.f32 %v22574_v40, %v25429_v58  ;;  %v8680_v33 = vsub.f32 %v22584_v63, %v25430_v5  ;;  %v24997_v58 = vand.u32 4294901760, %v22625_v44  ;;  %v22653_v5 = vsub.f32 %v976_v25, %v22632_v57 }
 0xf18   : > { %8425 = vmatprep.subr.mxu0 %v22361_v29  ;;  %8634 = vmatpush1.msra.mxu1 %v8633_v17  ;;  %v8686_v20 = vsub.f32 %v22592_v1, %v25431_v13  ;;  %v8669_v19 = vand.u32 4294901760, %v8668_v4  ;;  %v25432_v17 = vand.u32 4294901760, %v22602_v55  ;;  %v25433_v32 = vand.u32 4294901760, %v22610_v34 }
 0xf19   : > { %8427 = vmatpush1.msra.mxu0 %v22386_v2  ;;  %8640 = vmatprep.subr.mxu1 %v8639_v0  ;;  %v8675_v0 = vand.u32 4294901760, %v8674_v51  ;;  %v8704_v25 = vsub.f32 %v22625_v44, %v24997_v58  ;;  %v24998_v51 = vand.u32 4294901760, %v22653_v5  ;;  %v25446_v58 = vld [vmem:[#allocation48_spill] sm:$0xff] }
 0xf1a   : > { %8429 = vmatprep.subr.mxu0 %v22421_v53  ;;  %8646 = vmatpush1.msra.mxu1 %v8645_v43  ;;  %v8692_v59 = vsub.f32 %v22602_v55, %v25432_v17  ;;  %v8698_v13 = vsub.f32 %v22610_v34, %v25433_v32  ;;  %v8681_v43 = vand.u32 4294901760, %v8680_v33  ;;  %v8687_v4 = vand.u32 4294901760, %v8686_v20  ;;  %v25435_v20 = vld [vmem:[#allocation51_spill] sm:$0xff]  ;;  %v25437_v32 = vld [vmem:[#allocation46_spill] sm:$0xff] }
 0xf1b   : > { %8431 = vmatpush1.msra.mxu0 %v22444_v7  ;;  %8652 = vmatprep.subr.mxu1 %v8651_v18 }
 0xf1c   : > { %8433 = vmatprep.subr.mxu0 %v22455_v22  ;;  %8658 = vmatpush1.msra.mxu1 %v8657_v12  ;;  %v8693_v18 = vand.u32 4294901760, %v8692_v59  ;;  %v8699_v17 = vand.u32 4294901760, %v8698_v13  ;;  %v25434_v12 = vmov 0.0   ;;  %v25436_v59 = vld [vmem:[#allocation55_spill] sm:$0xff]  ;;  %v25438_v13 = vld [vmem:[#allocation56_spill] sm:$0xff] }
 0xf1d   : > { %8435 = vmatpush1.msra.mxu0 %v22467_v30  ;;  %8664 = vmatprep.subr.mxu1 %v8663_v11  ;;  %v8705_v11 = vand.u32 4294901760, %v8704_v25  ;;  %v25441_v25 = vld [vmem:[#allocation52_spill] sm:$0xff] }
 0xf1e   : > { %8437 = vmatprep.subr.mxu0 %v22477_v28  ;;  %8670 = vmatpush1.msra.mxu1 %v8669_v19  ;;  %v8496_v19 = vsub.f32 %v22653_v5, %v24998_v51  ;;  %v25447_v51 = vld [vmem:[#allocation49_spill] sm:$0xff] }
 0xf1f   : > { %8439 = vmatpush1.msra.mxu0 %v22489_v45  ;;  %8676 = vmatprep.subr.mxu1 %v8675_v0  ;;  %v977_v0 = vld [vmem:[%s848_s23 + $0x8] sm:$0xff] }
 0xf20   : > { %8441 = vmatprep.subr.mxu0 %v22501_v60  ;;  %8682 = vmatpush1.msra.mxu1 %v8681_v43  ;;  %v8497_v33 = vand.u32 4294901760, %v8496_v19  ;;  %v25439_v43 = vld [vmem:[#allocation34_spill] sm:$0xff] }
 0xf21   : > { %8443 = vmatpush1.msra.mxu0 %v22509_v49  ;;  %8688 = vmatprep.subr.mxu1 %v8687_v4  ;;  %v22702_v4 = vand.u32 4294901760, %v977_v0 }
 0xf22   : > { %8445 = vmatprep.subr.mxu0 %v22521_v35  ;;  %8694 = vmatpush1.msra.mxu1 %v8693_v18  ;;  %v25442_v18 = vld [vmem:[#allocation39_spill] sm:$0xff] }
 0xf23   : > { %8447 = vmatpush1.msra.mxu0 %v22530_v38  ;;  %8700 = vmatprep.subr.mxu1 %v8699_v17  ;;  %25440 = vst [vmem:[#allocation51_spill] sm:$0xff] %v22702_v4  ;;  %v25443_v17 = vld [vmem:[#allocation41_spill] sm:$0xff]  ;;  %v22713_v19 = vsub.f32 %v977_v0, %v22702_v4  ;;  %v25449_v0 = vld [vmem:[#allocation40_spill] sm:$0xff] }
 0xf24   : > { %8449 = vmatprep.subr.mxu0 %v22538_v41  ;;  %8492 = vmatprep.mubr.f32.mxu0 %v25434_v12 }
 0xf25   : > { %8451 = vmatpush1.msra.mxu0 %v22548_v15  ;;  %8706 = vmatpush1.msra.mxu1 %v8705_v11  ;;  %v25444_v11 = vld [vmem:[#allocation42_spill] sm:$0xff] }
 0xf26   : > { %8453 = vmatprep.subr.mxu0 %v22556_v48  ;;  %8739 = vmatprep.mubr.f32.mxu1 %v25434_v12 }
 0xf27   : > { %8455 = vmatpush1.msra.mxu0 %v22566_v47  ;;  %8900 = vmatprep.subr.mxu1 %v22248_v36 }
 0xf28   : > { %8457 = vmatprep.subr.mxu0 %v22576_v56  ;;  %8741 = vmatmul.mubr.f32.vlgmr.msra.gmra.mxu1 %v22632_v57  ;;  %v25448_v57 = vld [vmem:[#allocation53_spill] sm:$0xff] }
 0xf29   : > { %8459 = vmatpush1.msra.mxu0 %v22594_v42  ;;  %8902 = vmatpush1.msra.mxu1 %v22254_v3 }
 0xf2a   : > { %8498 = vmatmul.mubr.f32.vlgmr.msra.gmra.mxu0 %v8497_v33  ;;  %8756 = vmatprep.subr.mxu0 %v22263_v21  ;;  %v25445_v33 = vld [vmem:[#allocation43_spill] sm:$0xff] }
 0xf2b   : > { %8759 = vmatpush1.msra.mxu0 %v22274_v39  ;;  %8904 = vmatprep.subr.mxu1 %v22258_v16 }
 0xf2c   : > { %8762 = vmatprep.subr.mxu0 %v22281_v52  ;;  %8906 = vmatpush1.msra.mxu1 %v22265_v8 }
 0xf2d   : > { %8765 = vmatpush1.msra.mxu0 %v22289_v54  ;;  %8908 = vmatprep.subr.mxu1 %v22269_v6 }
 0xf2e   : > { %8768 = vmatprep.subr.mxu0 %v25435_v20  ;;  %8910 = vmatpush1.msra.mxu1 %v25436_v59 }
 0xf2f   : > { %8771 = vmatpush1.msra.mxu0 %v25437_v32  ;;  %8912 = vmatprep.subr.mxu1 %v22283_v46 }
 0xf30   : > { %8774 = vmatprep.subr.mxu0 %v25438_v13  ;;  %8914 = vmatpush1.msra.mxu1 %v22291_v9 }
 0xf31   : > { %8777 = vmatpush1.msra.mxu0 %v25439_v43  ;;  %8916 = vmatprep.subr.mxu1 %v22298_v61 }
 0xf32   : > { %8780 = vmatprep.subr.mxu0 %v25441_v25  ;;  %8918 = vmatpush1.msra.mxu1 %v22306_v31 }
 0xf33   : > { %8783 = vmatpush1.msra.mxu0 %v25442_v18  ;;  %8920 = vmatprep.subr.mxu1 %v22314_v23 }
 0xf34   : > { %8786 = vmatprep.subr.mxu0 %v25443_v17  ;;  %8922 = vmatpush1.msra.mxu1 %v22327_v27 }
 0xf35   : > { %8789 = vmatpush1.msra.mxu0 %v25444_v11  ;;  %8924 = vmatprep.subr.mxu1 %v22335_v50  ;;  %v8506_v50 = vand.u32 4294901760, %v22713_v19 }
 0xf36   : > { %8792 = vmatprep.subr.mxu0 %v25445_v33  ;;  %8926 = vmatpush1.msra.mxu1 %v22348_v14  ;;  %v25450_v33 = vld [vmem:[#allocation57_spill] sm:$0xff] }
 0xf37   : > { %8795 = vmatpush1.msra.mxu0 %v25446_v58  ;;  %8928 = vmatprep.subr.mxu1 %v22361_v29 }
 0xf38   : > { %8798 = vmatprep.subr.mxu0 %v25447_v51  ;;  %8930 = vmatpush1.msra.mxu1 %v22386_v2  ;;  %v25451_v2 = vld [vmem:[#allocation58_spill] sm:$0xff] }
 0xf39   : > { %8801 = vmatpush1.msra.mxu0 %v25448_v57  ;;  %8932 = vmatprep.subr.mxu1 %v22421_v53  ;;  %v8507_v53 = vsub.f32 %v22713_v19, %v8506_v50 }
 0xf3a   : > { %8804 = vmatprep.subr.mxu0 %v25449_v0  ;;  %8934 = vmatpush1.msra.mxu1 %v22444_v7  ;;  %v25452_v0 = vld [vmem:[#allocation59_spill] sm:$0xff]  ;;  %v25453_v7 = vld [vmem:[#allocation60_spill] sm:$0xff] }
 0xf3b   : > { %8807 = vmatpush1.msra.mxu0 %v25450_v33  ;;  %8936 = vmatprep.subr.mxu1 %v22455_v22 }
 0xf3c   : > { %8810 = vmatprep.subr.mxu0 %v22499_v62  ;;  %8938 = vmatpush1.msra.mxu1 %v22467_v30  ;;  %v8508_v30 = vand.u32 4294901760, %v8507_v53  ;;  %v25454_v53 = vand.u32 4294901760, %v22263_v21  ;;  %v25458_v21 = vand.u32 4294901760, %v22289_v54  ;;  %v25467_v54 = vld [vmem:[#allocation43_spill] sm:$0xff] }
 0xf3d   : > { %8813 = vmatpush1.msra.mxu0 %v22507_v10  ;;  %8940 = vmatprep.subr.mxu1 %v22477_v28 }
 0xf3e   : > { %8816 = vmatprep.subr.mxu0 %v25451_v2  ;;  %8942 = vmatpush1.msra.mxu1 %v22489_v45 }
 0xf3f   : > { %8819 = vmatpush1.msra.mxu0 %v25452_v0  ;;  %8944 = vmatprep.subr.mxu1 %v22501_v60 }
 0xf40   : > { %8822 = vmatprep.subr.mxu0 %v25453_v7  ;;  %8946 = vmatpush1.msra.mxu1 %v22509_v49 }
 0xf41   : > { %8825 = vmatpush1.msra.mxu0 %v22546_v24  ;;  %8948 = vmatprep.subr.mxu1 %v22521_v35 }
 0xf42   : > { %8828 = vmatprep.subr.mxu0 %v22554_v37  ;;  %8950 = vmatpush1.msra.mxu1 %v22530_v38 }
 0xf43   : > { %8831 = vmatpush1.msra.mxu0 %v22564_v26  ;;  %8503 = vmatprep.mubr.f32.mxu0 %v25434_v12 }
 0xf44   : > { %8834 = vmatprep.subr.mxu0 %v22574_v40  ;;  %8952 = vmatprep.subr.mxu1 %v22538_v41 }
 0xf45   : > { %8509 = vmatmul.mubr.f32.gmra.mxu0 %v8508_v30  ;;  %8954 = vmatpush1.msra.mxu1 %v22548_v15  ;;  %v25455_v30 = vand.u32 4294901760, %v22653_v5 }
 0xf46   : > { %8837 = vmatpush1.msra.mxu0 %v22584_v63  ;;  %8746 = vmatprep.mubr.f32.mxu1 %v25434_v12 }
 0xf47   : > { %8840 = vmatprep.subr.mxu0 %v22592_v1  ;;  %8956 = vmatprep.subr.mxu1 %v22556_v48 }
 0xf48   : > { %8748 = vmatmul.mubr.f32.gmra.mxu1 %v22702_v4  ;;  %8843 = vmatpush1.msra.mxu0 %v22602_v55  ;;  %v25456_v4 = vand.u32 4294901760, %v22274_v39  ;;  %v25464_v39 = vand.u32 4294901760, %v25442_v18 }
 0xf49   : > { %8958 = vmatpush1.msra.mxu1 %v22566_v47  ;;  %8846 = vmatprep.subr.mxu0 %v22610_v34 }
 0xf4a   : > { %8960 = vmatprep.subr.mxu1 %v22576_v56  ;;  %8849 = vmatpush1.msra.mxu0 %v22625_v44  ;;  %v25457_v44 = vand.u32 4294901760, %v22281_v52  ;;  %v25465_v52 = vand.u32 4294901760, %v25443_v17 }
 0xf4b   : > { %8882 = vmatprep.mubr.f32.mxu0 %v25434_v12  ;;  %8962 = vmatpush1.msra.mxu1 %v22594_v42 }
 0xf4c   : > { %8885 = vmatmul.mubr.f32.vlgmr.msra.gmra.mxu0 %v22653_v5  ;;  %8995 = vmatprep.mubr.f32.mxu1 %v25434_v12 }
 0xf4d   : > { %9017 = vmatprep.subr.mxu0 %v25454_v53  ;;  %9190 = vmatprep.subr.mxu1 %v22248_v36  ;;  %v25459_v36 = vand.u32 4294901760, %v25435_v20  ;;  %v25476_v20 = vld [vmem:[#allocation50_spill] sm:$0xff] }
 0xf4e   : > { %8999 = vmatmul.mubr.f32.vlgmr.msra.gmra.mxu1 %v25455_v30  ;;  %9021 = vmatpush1.msra.mxu0 %v25456_v4 }
 0xf4f   : > { %9192 = vmatpush1.msra.mxu1 %v22254_v3  ;;  %9025 = vmatprep.subr.mxu0 %v25457_v44  ;;  %v25460_v3 = vand.u32 4294901760, %v25437_v32  ;;  %v25473_v44 = vld [vmem:[#allocation47_spill] sm:$0xff]  ;;  %v25483_v32 = vand.u32 4294901760, %v25452_v0 }
 0xf50   : > { %9194 = vmatprep.subr.mxu1 %v22258_v16  ;;  %8890 = vmatprep.mubr.f32.mxu0 %v25434_v12  ;;  %v25461_v16 = vand.u32 4294901760, %v25438_v13 }
 0xf51   : > { %9029 = vmatpush1.msra.mxu0 %v25458_v21  ;;  %9196 = vmatpush1.msra.mxu1 %v22265_v8  ;;  %v25462_v8 = vand.u32 4294901760, %v25439_v43 }
 0xf52   : > { %8893 = vmatmul.mubr.f32.gmra.mxu0 %v22713_v19  ;;  %9033 = vmatprep.subr.mxu0 %v25459_v36 }
 0xf53   : > { %9198 = vmatprep.subr.mxu1 %v22269_v6  ;;  %9004 = vmatprep.mubr.f32.mxu1 %v25434_v12  ;;  %v25463_v6 = vand.u32 4294901760, %v25441_v25 }
 0xf54   : > { %9037 = vmatpush1.msra.mxu0 %v25460_v3  ;;  %9200 = vmatpush1.msra.mxu1 %v25436_v59  ;;  %v25478_v59 = vld [vmem:[#allocation38_spill] sm:$0xff] }
 0xf55   : > { %9008 = vmatmul.mubr.f32.gmra.mxu1 %v8506_v50  ;;  %9041 = vmatprep.subr.mxu0 %v25461_v16  ;;  %v25469_v50 = vld [vmem:[#allocation37_spill] sm:$0xff] }
 0xf56   : > { %9202 = vmatprep.subr.mxu1 %v22283_v46  ;;  %9045 = vmatpush1.msra.mxu0 %v25462_v8  ;;  %v25466_v46 = vand.u32 4294901760, %v25444_v11 }
 0xf57   : > { %9204 = vmatpush1.msra.mxu1 %v22291_v9  ;;  %9049 = vmatprep.subr.mxu0 %v25463_v6  ;;  %v25468_v9 = vand.u32 4294901760, %v25467_v54 }
 0xf58   : > { %9206 = vmatprep.subr.mxu1 %v22298_v61  ;;  %9053 = vmatpush1.msra.mxu0 %v25464_v39  ;;  %v25470_v61 = vand.u32 4294901760, %v25446_v58  ;;  %v25477_v58 = vand.u32 4294901760, %v25450_v33 }
 0xf59   : > { %9208 = vmatpush1.msra.mxu1 %v22306_v31  ;;  %9057 = vmatprep.subr.mxu0 %v25465_v52  ;;  %v25471_v31 = vand.u32 4294901760, %v25447_v51  ;;  %v25482_v51 = vand.u32 4294901760, %v25451_v2  ;;  %v25486_v2 = vand.u32 4294901760, %v22554_v37 }
 0xf5a   : > { %9210 = vmatprep.subr.mxu1 %v22314_v23  ;;  %9061 = vmatpush1.msra.mxu0 %v25466_v46  ;;  %v25472_v23 = vand.u32 4294901760, %v25448_v57  ;;  %v25481_v57 = vld [vmem:[#allocation54_spill] sm:$0xff] }
 0xf5b   : > { %9212 = vmatpush1.msra.mxu1 %v22327_v27  ;;  %9065 = vmatprep.subr.mxu0 %v25468_v9  ;;  %v25474_v27 = vld [vmem:[#allocation40_spill] sm:$0xff] }
 0xf5c   : > { %9214 = vmatprep.subr.mxu1 %v25469_v50  ;;  %9069 = vmatpush1.msra.mxu0 %v25470_v61  ;;  %v25475_v5 = vand.u32 4294901760, %v25474_v27  ;;  %v25497_v27 = vld [vmem:[#allocation35_spill] sm:$0xff] }
 0xf5d   : > { %9216 = vmatpush1.msra.mxu1 %v22348_v14  ;;  %9073 = vmatprep.subr.mxu0 %v25471_v31  ;;  %v25479_v14 = vand.u32 4294901760, %v22499_v62  ;;  %v25484_v62 = vand.u32 4294901760, %v25453_v7  ;;  %v25488_v7 = vand.u32 4294901760, %v22574_v40  ;;  %v25492_v40 = vand.u32 4294901760, %v22610_v34  ;;  %v8384_v31 = vld [vmem:[%s24806_s11] sm:$0x3] }
 0xf5e   : > { %9218 = vmatprep.subr.mxu1 %v22361_v29  ;;  %9077 = vmatpush1.msra.mxu0 %v25472_v23  ;;  %v25480_v29 = vand.u32 4294901760, %v22507_v10  ;;  %v25491_v10 = vand.u32 4294901760, %v22602_v55 }
 0xf5f   : > { %9220 = vmatpush1.msra.mxu1 %v25473_v44  ;;  %9081 = vmatprep.subr.mxu0 %v25475_v5  ;;  %v8389_v5 = vrot.slane %v8384_v31, %v25497_v27 }
 0xf60   : > { %9222 = vmatprep.subr.mxu1 %v25476_v20  ;;  %9085 = vmatpush1.msra.mxu0 %v25477_v58 }
 0xf61   : > { %9224 = vmatpush1.msra.mxu1 %v25478_v59  ;;  %9089 = vmatprep.subr.mxu0 %v25479_v14 }
 0xf62   : > { %9226 = vmatprep.subr.mxu1 %v22455_v22  ;;  %9093 = vmatpush1.msra.mxu0 %v25480_v29  ;;  %v25485_v22 = vand.u32 4294901760, %v22546_v24 }
 0xf63   : > { %9228 = vmatpush1.msra.mxu1 %v25481_v57  ;;  %9097 = vmatprep.subr.mxu0 %v25482_v51 }
 0xf64   : > { %9230 = vmatprep.subr.mxu1 %v22477_v28  ;;  %9101 = vmatpush1.msra.mxu0 %v25483_v32  ;;  %v25487_v28 = vand.u32 4294901760, %v22564_v26 }
 0xf65   : > { %9232 = vmatpush1.msra.mxu1 %v22489_v45  ;;  %9105 = vmatprep.subr.mxu0 %v25484_v62  ;;  %v25489_v45 = vand.u32 4294901760, %v22584_v63 }
 0xf66   : > { %9234 = vmatprep.subr.mxu1 %v22501_v60  ;;  %9109 = vmatpush1.msra.mxu0 %v25485_v22  ;;  %v25490_v60 = vand.u32 4294901760, %v22592_v1 }
 0xf67   : > { %9236 = vmatpush1.msra.mxu1 %v22509_v49  ;;  %9113 = vmatprep.subr.mxu0 %v25486_v2  ;;  %v16515_v49 = vld [vmem:[%s24804_s9] ss:$0 sm:$0xff] }
 0xf68   : > { %9238 = vmatprep.subr.mxu1 %v22521_v35  ;;  %9117 = vmatpush1.msra.mxu0 %v25487_v28 }
 0xf69   : > { %9240 = vmatpush1.msra.mxu1 %v22530_v38  ;;  %9121 = vmatprep.subr.mxu0 %v25488_v7  ;;  %v25496_v38 = vld [vmem:[#allocation51_spill] sm:$0xff] }
 0xf6a   : > { %9242 = vmatprep.subr.mxu1 %v22538_v41  ;;  %9125 = vmatpush1.msra.mxu0 %v25489_v45  ;;  %v25493_v41 = vld [vmem:[#allocation61_spill] sm:$0xff] }
 0xf6b   : > { %9244 = vmatpush1.msra.mxu1 %v22548_v15  ;;  %9129 = vmatprep.subr.mxu0 %v25490_v60  ;;  %v25494_v63 = vand.u32 4294901760, %v25493_v41 }
 0xf6c   : > { %9246 = vmatprep.subr.mxu1 %v22556_v48  ;;  %9133 = vmatpush1.msra.mxu0 %v25491_v10  ;;  %v25495_v48 = vld [vmem:[#allocation62_spill] sm:$0xff] }
 0xf6d   : > { %9248 = vmatpush1.msra.mxu1 %v22566_v47  ;;  %9137 = vmatprep.subr.mxu0 %v25492_v40 }
 0xf6e   : > { %9250 = vmatprep.subr.mxu1 %v22576_v56  ;;  %9141 = vmatpush1.msra.mxu0 %v25494_v63 }
 0xf6f   : > { %9174 = vmatprep.mubr.f32.mxu0 %v25434_v12  ;;  %9252 = vmatpush1.msra.mxu1 %v22594_v42 }
 0xf70   : > { %9285 = vmatprep.mubr.f32.mxu1 %v25434_v12  ;;  %9176 = vmatmul.mubr.f32.vlgmr.msra.gmra.mxu0 %v25495_v48 }
 0xf71   : > { %9287 = vmatmul.mubr.f32.vlgmr.msra.gmra.mxu1 %v25495_v48  ;;  %9181 = vmatprep.mubr.f32.mxu0 %v25434_v12 }
 0xf72   : > { %9292 = vmatprep.mubr.f32.mxu1 %v25434_v12 }
 0xf74   : > { %9183 = vmatmul.mubr.f32.gmra.mxu0 %v25496_v38 }
 0xf75   : > { %9294 = vmatmul.mubr.f32.gmra.mxu1 %v25496_v38  ;;  %v25498_v38 = vld [vmem:[#allocation36_spill] sm:$0xff] }
 0xf80   : > { %v18401_v15 = vpop.f32.mrf.mxu1 }
 0xf82   : > { %v7916_v47 = vpop.f32.mrf.mxu1 }
 0xf88   : > { %v18366_v35 = vpop.f32.mrf.mxu0 }
 0xf89   : > { %v7766_v24 = vadd.f32 %v18366_v35, %v16515_v49 }
 0xf8a   : > { %v7755_v26 = vpop.f32.mrf.mxu0 }
 0xf8b   : > { %v7923_v37 = vadd.f32 %v18401_v15, %v7766_v24  ;;  %v7756_v34 = vadd.f32 %v16515_v49, %v7755_v26  ;;  %v8393_v49 = vrot.slane %v8384_v31, %v25498_v38 }
 0xf8d   : > { %v7917_v43 = vadd.f32 %v7916_v47, %v7756_v34 }
 0xfa1   : > { %v18471_v1 = vpop.f32.mrf.mxu1 }
 0xfa3   : > { %v8122_v25 = vpop.f32.mrf.mxu1 }
 0xfa9   : > { %v18436_v42 = vpop.f32.mrf.mxu0 }
 0xfaa   : > { %v8034_v56 = vadd.f32 %v18436_v42, %v7923_v37 }
 0xfab   : > { %v8026_v13 = vpop.f32.mrf.mxu0 }
 0xfac   : > { %v8131_v55 = vadd.f32 %v18471_v1, %v8034_v56  ;;  %v8027_v4 = vadd.f32 %v8026_v13, %v7917_v43 }
 0xfae   : > { %v8123_v19 = vadd.f32 %v8122_v25, %v8027_v4 }
 0xfc3   : > { %v18541_v18 = vpop.f32.mrf.mxu1 }
 0xfc5   : > { %v8342_v30 = vpop.f32.mrf.mxu1 }
 0xfca   : > { %v18506_v17 = vpop.f32.mrf.mxu0 }
 0xfcb   : > { %v8256_v11 = vadd.f32 %v18506_v17, %v8131_v55 }
 0xfcc   : > { %v8249_v33 = vpop.f32.mrf.mxu0 }
 0xfcd   : > { %v22874_v0 = vadd.f32 %v18541_v18, %v8256_v11  ;;  %v8250_v53 = vadd.f32 %v8249_v33, %v8123_v19 }
 0xfcf   : > { %v22876_v21 = vadd.f32 %v8342_v30, %v8250_v53  ;;  %v9321_v7 = vsel %vm2652_vm0, %v22874_v0, 0 }
 0xfd0   : > { %v22896_v48 = vand.u32 4294901760, %v9321_v7 }
 0xfd1   : > { %v9318_v36 = vsel %vm2652_vm0, %v22876_v21, 0 }
 0xfd2   : > { %v22880_v3 = vand.u32 4294901760, %v9318_v36  ;;  %v22904_v1 = vsub.f32 %v9321_v7, %v22896_v48 }
 0xfd4   : > { %18553 = vmatprep.mubr.f32.mxu1 %v22880_v3  ;;  %v22884_v16 = vsub.f32 %v9318_v36, %v22880_v3  ;;  %v9408_v19 = vand.u32 4294901760, %v22904_v1 }
 0xfd6   : > { %v9398_v8 = vand.u32 4294901760, %v22884_v16 }
 0xfd8   : > { %v9399_v6 = vsub.f32 %v22884_v16, %v9398_v8 }
 0xfda   : > { %v9400_v39 = vand.u32 4294901760, %v9399_v6 }
 0xfdc   : > { %18546 = vmatprep.mubr.f32.mxu0 %v9400_v39 }
 0xfe8   : > { %v8742_v46 = vpop.f32.mrf.mxu1 }
 0xfea   : > { %v8499_v52 = vpop.f32.mrf.mxu0  ;;  %v8744_v9 = vpop.f32.mrf.mxu1 }
 0xfeb   : > { %v8500_v59 = vadd.f32 %v8499_v52, %v8389_v5  ;;  %v9409_v52 = vsub.f32 %v22904_v1, %v9408_v19 }
 0xfec   : > { %v8501_v54 = vpop.f32.mrf.mxu0 }
 0xfed   : > { %v8743_v57 = vadd.f32 %v8742_v46, %v8500_v59  ;;  %v8502_v43 = vadd.f32 %v8501_v54, %v8393_v49 }
 0xfef   : > { %v8745_v33 = vadd.f32 %v8744_v9, %v8502_v43  ;;  %v9410_v9 = vand.u32 4294901760, %v9409_v52 }
0x1005   : > { %v8510_v50 = vpop.f32.mrf.mxu0 }
0x1006   : > { %v8511_v51 = vadd.f32 %v8510_v50, %v8389_v5 }
0x1007   : > { %v8512_v23 = vpop.f32.mrf.mxu0 }
0x1008   : > { %v8749_v61 = vpop.f32.mrf.mxu1  ;;  %v8513_v26 = vadd.f32 %v8512_v23, %v8393_v49 }
0x1009   : > { %v8750_v2 = vadd.f32 %v8749_v61, %v8511_v51 }
0x100a   : > { %v8751_v44 = vpop.f32.mrf.mxu1 }
0x100b   : > { %v8752_v4 = vadd.f32 %v8751_v44, %v8513_v26 }
0x100c   : > { %v8886_v20 = vpop.f32.mrf.mxu0 }
0x100d   : > { %v8887_v62 = vadd.f32 %v8886_v20, %v8743_v57 }
0x100e   : > { %v9000_v58 = vpop.f32.mrf.mxu1  ;;  %v8888_v14 = vpop.f32.mrf.mxu0 }
0x100f   : > { %v9001_v45 = vadd.f32 %v9000_v58, %v8887_v62  ;;  %v8889_v6 = vadd.f32 %v8888_v14, %v8745_v33 }
0x1010   : > { %v9002_v29 = vpop.f32.mrf.mxu1 }
0x1011   : > { %v9003_v31 = vadd.f32 %v9002_v29, %v8889_v6 }
0x1012   : > { %v8894_v32 = vpop.f32.mrf.mxu0 }
0x1013   : > { %v8895_v60 = vadd.f32 %v8894_v32, %v8750_v2 }
0x1014   : > { %v8896_v28 = vpop.f32.mrf.mxu0 }
0x1015   : > { %v9009_v22 = vpop.f32.mrf.mxu1  ;;  %v8897_v17 = vadd.f32 %v8896_v28, %v8752_v4 }
0x1016   : > { %v9010_v24 = vadd.f32 %v9009_v22, %v8895_v60 }
0x1017   : > { %v9011_v10 = vpop.f32.mrf.mxu1 }
0x1018   : > { %v9012_v39 = vadd.f32 %v9011_v10, %v8897_v17 }
0x1030   : > { %v9177_v40 = vpop.f32.mrf.mxu0 }
0x1031   : > { %v9178_v41 = vadd.f32 %v9177_v40, %v9001_v45  ;;  %v9288_v63 = vpop.f32.mrf.mxu1 }
0x1032   : > { %v9179_v35 = vpop.f32.mrf.mxu0 }
0x1033   : > { %v22899_v15 = vadd.f32 %v9288_v63, %v9178_v41  ;;  %v9290_v37 = vpop.f32.mrf.mxu1  ;;  %v9180_v5 = vadd.f32 %v9179_v35, %v9003_v31 }
0x1034   : > { %v9184_v47 = vpop.f32.mrf.mxu0 }
0x1035   : > { %v9324_v42 = vsel %vm2652_vm0, %v22899_v15, 0  ;;  %v9185_v56 = vadd.f32 %v9184_v47, %v9010_v24  ;;  %v9295_v34 = vpop.f32.mrf.mxu1  ;;  %v22920_v59 = vadd.f32 %v9290_v37, %v9180_v5  ;;  %v981_v47 = vld [vmem:[%s866_s12 + $0x8] sm:$0xff] }
0x1036   : > { %v22906_v55 = vand.u32 4294901760, %v9324_v42  ;;  %v9186_v36 = vpop.f32.mrf.mxu0  ;;  %v22968_v4 = vmul.f32 -1e+09, %v981_v47 }
0x1037   : > { %v22908_v13 = vadd.f32 %v9295_v34, %v9185_v56  ;;  %v9187_v54 = vadd.f32 %v9186_v36, %v9012_v39  ;;  %v9297_v44 = vpop.f32.mrf.mxu1  ;;  %v22926_v29 = vand.u32 4294901760, %v22920_v59 }
0x1038   : > { %v9453_v25 = vsub.f32 %v9324_v42, %v22906_v55 }
0x1039   : > { %v9327_v18 = vsel %vm2652_vm0, %v22908_v13, 0  ;;  %v22917_v20 = vadd.f32 %v9297_v44, %v9187_v54  ;;  %v22943_v32 = vsub.f32 %v22920_v59, %v22926_v29 }
0x103a   : > { %v9358_v11 = vand.u32 4294901760, %v9327_v18  ;;  %v9454_v30 = vand.u32 4294901760, %v9453_v25 }
0x103b   : > { %v22923_v14 = vand.u32 4294901760, %v22917_v20 }
0x103c   : > { %18542 = vmatprep.subr.mxu0 %v9358_v11  ;;  %v9446_v53 = vsub.f32 %v9327_v18, %v9358_v11  ;;  %v9455_v61 = vsub.f32 %v9453_v25, %v9454_v30 }
0x103d   : > { %18543 = vmatpush3.xpose.msra.mxu0 %v9358_v11  ;;  %v22932_v57 = vsub.f32 %v22917_v20, %v22923_v14 }
0x103e   : > { %18544 = vmatprep.subr.mxu0 %v22906_v55  ;;  %v9447_v46 = vand.u32 4294901760, %v9446_v53  ;;  %v9456_v58 = vand.u32 4294901760, %v9455_v61 }
0x103f   : > { %v22939_v51 = vand.u32 4294901760, %v22932_v57 }
0x1040   : > { %v9448_v50 = vsub.f32 %v9446_v53, %v9447_v46 }
0x1041   : > { %18545 = vmatpush3.xpose.msra.mxu0 %v22906_v55 }
0x1042   : > { %18556 = vmatprep.subr.mxu0 %v9446_v53  ;;  %v9449_v23 = vand.u32 4294901760, %v9448_v50 }
0x1044   : > { %18547 = vmatmul.mubr.f32.vlgmr.msra.gmra.mxu0 %v9410_v9  ;;  %18549 = vmatprep.subr.mxu1 %v9449_v23 }
0x1045   : > { %18550 = vmatpush3.xpose.msra.mxu1 %v9449_v23  ;;  %18557 = vmatpush3.xpose.msra.mxu0 %v9446_v53 }
0x1046   : > { %18560 = vmatprep.mubr.f32.mxu0 %v22884_v16  ;;  %18551 = vmatprep.subr.mxu1 %v9456_v58  ;;  %v9984_v16 = vsub.f32 %v22932_v57, %v22939_v51 }
0x1047   : > { %18558 = vmatprep.subr.mxu0 %v9453_v25 }
0x1048   : > { %v9985_v62 = vand.u32 4294901760, %v9984_v16 }
0x1049   : > { %18552 = vmatpush3.xpose.msra.mxu1 %v9456_v58  ;;  %18559 = vmatpush3.xpose.msra.mxu0 %v9453_v25 }
0x104a   : > { %18563 = vmatprep.subr.mxu1 %v9358_v11  ;;  %18570 = vmatprep.subr.mxu0 %v9447_v46 }
0x104c   : > { %18554 = vmatmul.mubr.f32.vlgmr.msra.gmra.mxu1 %v22896_v48  ;;  %18561 = vmatmul.mubr.f32.vlgmr.msra.gmra.mxu0 %v22904_v1 }
0x104d   : > { %18564 = vmatpush3.xpose.msra.mxu1 %v9358_v11  ;;  %18567 = vmatprep.mubr.f32.mxu1 %v9398_v8  ;;  %v22950_v8 = vand.u32 4294901760, %v22943_v32 }
0x104e   : > { %18571 = vmatpush3.xpose.msra.mxu0 %v9447_v46  ;;  %18574 = vmatprep.mubr.f32.mxu0 %v22880_v3 }
0x104f   : > { %18565 = vmatprep.subr.mxu1 %v22906_v55  ;;  %18572 = vmatprep.subr.mxu0 %v9454_v30  ;;  %v9991_v22 = vsub.f32 %v22943_v32, %v22950_v8 }
0x1051   : > { %18566 = vmatpush3.xpose.msra.mxu1 %v22906_v55 }
0x1052   : > { %18573 = vmatpush3.xpose.msra.mxu0 %v9454_v30  ;;  %18577 = vmatprep.subr.mxu1 %v9358_v11 }
0x1053   : > { %18584 = vmatprep.subr.mxu0 %v22923_v14 }
0x1054   : > { %18568 = vmatmul.mubr.f32.vlgmr.msra.gmra.mxu1 %v9408_v19 }
0x1055   : > { %18575 = vmatmul.mubr.f32.vlgmr.msra.gmra.mxu0 %v22896_v48  ;;  %18578 = vmatpush3.xpose.msra.mxu1 %v9358_v11 }
0x1056   : > { %18581 = vmatprep.mubr.f32.mxu1 %v22880_v3  ;;  %18585 = vmatpush3.msra.mxu0 %v22923_v14  ;;  %v9992_v3 = vand.u32 4294901760, %v9991_v22 }
0x1057   : > { %18579 = vmatprep.subr.mxu1 %v22906_v55  ;;  %18586 = vmatprep.subr.mxu0 %v22926_v29 }
0x1058   : > { %18587 = vmatpush3.msra.mxu0 %v22926_v29 }
0x1059   : > { %18598 = vmatprep.subr.mxu0 %v22932_v57  ;;  %18580 = vmatpush3.xpose.msra.mxu1 %v22906_v55  ;;  %v980_v55 = vld [vmem:[%s866_s12] sm:$0xff] }
0x105a   : > { %18591 = vmatprep.subr.mxu1 %v9985_v62  ;;  %v22970_v11 = vmul.f32 -1e+09, %v980_v55 }
0x105c   : > { %18582 = vmatmul.mubr.f32.vlgmr.msra.gmra.mxu1 %v22896_v48 }
0x105d   : > { %18592 = vmatpush3.msra.mxu1 %v9985_v62 }
0x105e   : > { %18593 = vmatprep.subr.mxu1 %v9992_v3 }
0x105f   : > { %18594 = vmatpush3.msra.mxu1 %v9992_v3 }
0x1060   : > { %18605 = vmatprep.subr.mxu1 %v22923_v14 }
0x1104   : > { %v18548_v2 = vpop.f32.mrf.mxu0 }
0x1106   : > { %v9402_v7 = vpop.f32.mrf.mxu0 }
0x110c   : > { %v18555_v28 = vpop.f32.mrf.mxu1  ;;  %v18562_v10 = vpop.f32.mrf.mxu0 }
0x110d   : > { %v9500_v60 = vadd.f32 %v18555_v28, %v18548_v2 }
0x110e   : > { %v9493_v45 = vpop.f32.mrf.mxu1  ;;  %v9575_v49 = vpop.f32.mrf.mxu0 }
0x110f   : > { %v9494_v40 = vadd.f32 %v9493_v45, %v9402_v7  ;;  %v9583_v63 = vadd.f32 %v18562_v10, %v9500_v60 }
0x1111   : > { %v9576_v48 = vadd.f32 %v9575_v49, %v9494_v40 }
0x1114   : > { %v18569_v41 = vpop.f32.mrf.mxu1 }
0x1115   : > { %v9666_v24 = vadd.f32 %v18569_v41, %v9583_v63  ;;  %v18576_v37 = vpop.f32.mrf.mxu0 }
0x1116   : > { %v9657_v35 = vpop.f32.mrf.mxu1 }
0x1117   : > { %v9658_v26 = vadd.f32 %v9657_v35, %v9576_v48  ;;  %v9749_v42 = vadd.f32 %v18576_v37, %v9666_v24  ;;  %v9742_v56 = vpop.f32.mrf.mxu0 }
0x1119   : > { %v9743_v34 = vadd.f32 %v9742_v56, %v9658_v26 }
0x111c   : > { %v18583_v1 = vpop.f32.mrf.mxu1 }
0x111d   : > { %v9828_v43 = vadd.f32 %v18583_v1, %v9749_v42 }
0x111e   : > { %v9821_v25 = vpop.f32.mrf.mxu1 }
0x111f   : > { %v9832_v18 = vmul.f32 0.17677669, %v9828_v43  ;;  %v9822_v17 = vadd.f32 %v9821_v25, %v9743_v34 }
0x1121   : > { %v9831_v19 = vmul.f32 0.17677669, %v9822_v17  ;;  %v9836_v33 = vadd.f32 %v22968_v4, %v9832_v18 }
0x1123   : > { %v9840_v53 = vsel %vm3173_vm1, %v9836_v33, -inf  ;;  %v9835_v30 = vadd.f32 %v22970_v11, %v9831_v19 }
0x1124   : > { %9841 = vmax.xlane.f32.xlu1 %v9840_v53 }
0x1125   : > { %v9837_v36 = vsel %vm3173_vm1, %v9835_v30, -inf }
0x1126   : > { %9838 = vmax.xlane.f32.xlu0 %v9837_v36 }
0x11ad   : > { %v9842_v6 = vpop.xlane.xlu1 %9841 }
0x11ae   : > { %v9844_v39 = vsub.f32 %v9836_v33, %v9842_v6 }
0x11af   : > { %v9839_v52 = vpop.xlane.xlu0 %9838 }
0x11b0   : > { %v9847_v46 = vmul.f32 1.442695, %v9844_v39  ;;  %v9843_v54 = vsub.f32 %v9835_v30, %v9839_v52 }
0x11b2   : > { %19268 = vpow2.f32 %v9847_v46  ;;  %v9845_v50 = vmul.f32 1.442695, %v9843_v54 }
0x11b4   : > { %19270 = vpow2.f32 %v9845_v50 }
0x11bf   : > { %v19269_v61 = vpop.eup %19268 }
0x11c0   : > { %v9852_v31 = vsel %vm3173_vm1, %v19269_v61, 0.0 }
0x11c1   : > { %v19271_v9 = vpop.eup %19270  ;;  %9853 = vadd.xlane.f32.xlu1 %v9852_v31 }
0x11c2   : > { %v9849_v23 = vsel %vm3173_vm1, %v19271_v9, 0.0 }
0x11c3   : > { %9850 = vadd.xlane.f32.xlu0 %v9849_v23 }
0x11d2   : > { %10371 = vrot.lane.b32.xlu1 %v22899_v15, %s19712_s7 }
0x11d6   : > { %10367 = vrot.lane.b32.xlu1 %v22876_v21, %s19712_s7 }
0x11d9   : > { %10373 = vrot.lane.b32.xlu0 %v22908_v13, %s19712_s7 }
0x11da   : > { %10369 = vrot.lane.b32.xlu1 %v22874_v0, %s19712_s7 }
0x124a   : > { %v9854_v44 = vpop.xlane.xlu1 %9853 }
0x124b   : > { %19272 = vrcp.f32 %v9854_v44 }
0x124c   : > { %v9851_v5 = vpop.xlane.xlu0 %9850 }
0x124d   : > { %19274 = vrcp.f32 %v9851_v5 }
0x124e   : > { %v10372_v16 = vpop.permute.xlu1 %10371 }
0x124f   : > { %v10379_v22 = vsel %vm2652_vm0, %v10372_v16, 0 }
0x1250   : > { %v10374_v58 = vpop.permute.xlu0 %10373  ;;  %v22990_v45 = vand.u32 4294901760, %v10379_v22 }
0x1251   : > { %v10381_v62 = vsel %vm2652_vm0, %v10374_v58, 0 }
0x1252   : > { %v22988_v3 = vand.u32 4294901760, %v10381_v62  ;;  %v10368_v63 = vpop.permute.xlu1 %10367  ;;  %v22998_v35 = vsub.f32 %v10379_v22, %v22990_v45 }
0x1253   : > { %v10375_v26 = vsel %vm2652_vm0, %v10368_v63, 0 }
0x1254   : > { %v22993_v60 = vsub.f32 %v10381_v62, %v22988_v3  ;;  %v23006_v1 = vand.u32 4294901760, %v22998_v35  ;;  %v23008_v55 = vand.u32 4294901760, %v10375_v26 }
0x1256   : > { %v23001_v37 = vand.u32 4294901760, %v22993_v60  ;;  %v10370_v34 = vpop.permute.xlu1 %10369  ;;  %v10509_v33 = vsub.f32 %v22998_v35, %v23006_v1  ;;  %v10451_v53 = vsub.f32 %v10375_v26, %v23008_v55 }
0x1257   : > { %v10377_v17 = vsel %vm2652_vm0, %v10370_v34, 0 }
0x1258   : > { %v19273_v2 = vpop.eup %19272  ;;  %v10502_v43 = vsub.f32 %v22993_v60, %v23001_v37  ;;  %v10460_v6 = vand.u32 4294901760, %v10377_v17  ;;  %v10452_v39 = vand.u32 4294901760, %v10451_v53 }
0x1259   : > { %v9858_v28 = vmul.f32 %v19273_v2, %v19269_v61 }
0x125a   : > { %v19275_v7 = vpop.eup %19274  ;;  %v10503_v30 = vand.u32 4294901760, %v10502_v43  ;;  %v10461_v52 = vsub.f32 %v10377_v17, %v10460_v6 }
0x125b   : > { %v9856_v10 = vmul.f32 %v19275_v7, %v19271_v9  ;;  %v9863_v40 = vsel %vm3173_vm1, %v9858_v28, 0 }
0x125c   : > { %v9942_v41 = vand.u32 4294901760, %v9863_v40 }
0x125d   : > { %v9860_v49 = vsel %vm3173_vm1, %v9856_v10, 0 }
0x125e   : > { %v9932_v48 = vand.u32 4294901760, %v9860_v49  ;;  %v9943_v24 = vsub.f32 %v9863_v40, %v9942_v41 }
0x1260   : > { %18595 = vmatprep.mubr.f32.mxu1 %v9932_v48  ;;  %v9933_v47 = vsub.f32 %v9860_v49, %v9932_v48  ;;  %v9944_v42 = vand.u32 4294901760, %v9943_v24 }
0x1261   : > { %18596 = vmatmul.mubr.f32.vlgmr.msra.gmra.mxu1 %v9942_v41 }
0x1262   : > { %18606 = vmatpush3.msra.mxu1 %v22923_v14  ;;  %v9934_v56 = vand.u32 4294901760, %v9933_v47  ;;  %v9945_v25 = vsub.f32 %v9943_v24, %v9944_v42 }
0x1263   : > { %18607 = vmatprep.subr.mxu1 %v22926_v29 }
0x1264   : > { %18608 = vmatpush3.msra.mxu1 %v22926_v29  ;;  %18609 = vmatprep.mubr.f32.mxu1 %v9934_v56  ;;  %v9935_v18 = vsub.f32 %v9933_v47, %v9934_v56  ;;  %v9946_v36 = vand.u32 4294901760, %v9945_v25 }
0x1265   : > { %18619 = vmatprep.subr.mxu1 %v22923_v14  ;;  %18610 = vmatmul.mubr.f32.vlgmr.msra.gmra.mxu1 %v9944_v42 }
0x1266   : > { %18620 = vmatpush3.msra.mxu1 %v22923_v14  ;;  %18623 = vmatprep.mubr.f32.mxu1 %v9932_v48  ;;  %v9936_v19 = vand.u32 4294901760, %v9935_v18  ;;  %v10510_v14 = vand.u32 4294901760, %v10509_v33 }
0x1267   : > { %18621 = vmatprep.subr.mxu1 %v22926_v29 }
0x1268   : > { %18622 = vmatpush3.msra.mxu1 %v22926_v29  ;;  %18588 = vmatprep.mubr.f32.mxu0 %v9936_v19  ;;  %v10453_v29 = vsub.f32 %v10451_v53, %v10452_v39 }
0x1269   : > { %18633 = vmatprep.subr.mxu1 %v10503_v30  ;;  %18589 = vmatmul.mubr.f32.vlgmr.msra.gmra.mxu0 %v9946_v36 }
0x126a   : > { %18599 = vmatpush3.msra.mxu0 %v22932_v57  ;;  %18624 = vmatmul.mubr.f32.vlgmr.msra.gmra.mxu1 %v9942_v41  ;;  %v10462_v57 = vand.u32 4294901760, %v10461_v52 }
0x126b   : > { %18634 = vmatpush3.xpose.msra.mxu1 %v10503_v30  ;;  %18600 = vmatprep.subr.mxu0 %v22943_v32 }
0x126c   : > { %18602 = vmatprep.mubr.f32.mxu0 %v9933_v47  ;;  %18635 = vmatprep.subr.mxu1 %v10510_v14 }
0x126d   : > { %18637 = vmatprep.mubr.f32.mxu1 %v23008_v55  ;;  %18601 = vmatpush3.msra.mxu0 %v22943_v32  ;;  %v10454_v32 = vand.u32 4294901760, %v10453_v29 }
0x126e   : > { %18612 = vmatprep.subr.mxu0 %v22939_v51  ;;  %18603 = vmatmul.mubr.f32.vlgmr.msra.gmra.mxu0 %v9943_v24 }
0x126f   : > { %18613 = vmatpush3.msra.mxu0 %v22939_v51  ;;  %18636 = vmatpush3.xpose.msra.mxu1 %v10510_v14  ;;  %v10463_v51 = vsub.f32 %v10461_v52, %v10462_v57 }
0x1270   : > { %18614 = vmatprep.subr.mxu0 %v22950_v8  ;;  %18616 = vmatprep.mubr.f32.mxu0 %v9932_v48 }
0x1271   : > { %18647 = vmatprep.subr.mxu1 %v22988_v3  ;;  %18615 = vmatpush3.msra.mxu0 %v22950_v8  ;;  %v10464_v8 = vand.u32 4294901760, %v10463_v51 }
0x1272   : > { %18626 = vmatprep.subr.mxu0 %v22988_v3  ;;  %18638 = vmatmul.mubr.f32.vlgmr.msra.gmra.mxu1 %v10460_v6 }
0x1273   : > { %18617 = vmatmul.mubr.f32.vlgmr.msra.gmra.mxu0 %v9942_v41  ;;  %18648 = vmatpush3.xpose.msra.mxu1 %v22988_v3 }
0x1274   : > { %18627 = vmatpush3.xpose.msra.mxu0 %v22988_v3  ;;  %18651 = vmatprep.mubr.f32.mxu1 %v10452_v39 }
0x1275   : > { %18628 = vmatprep.subr.mxu0 %v22990_v45  ;;  %18630 = vmatprep.mubr.f32.mxu0 %v10454_v32 }
0x1276   : > { %18649 = vmatprep.subr.mxu1 %v22990_v45 }
0x1277   : > { %18650 = vmatpush3.xpose.msra.mxu1 %v22990_v45 }
0x1278   : > { %18629 = vmatpush3.xpose.msra.mxu0 %v22990_v45  ;;  %18661 = vmatprep.subr.mxu1 %v22988_v3 }
0x1279   : > { %18640 = vmatprep.subr.mxu0 %v22993_v60 }
0x127a   : > { %18652 = vmatmul.mubr.f32.vlgmr.msra.gmra.mxu1 %v10462_v57 }
0x127b   : > { %18631 = vmatmul.mubr.f32.vlgmr.msra.gmra.mxu0 %v10464_v8  ;;  %18662 = vmatpush3.xpose.msra.mxu1 %v22988_v3 }
0x127c   : > { %18641 = vmatpush3.xpose.msra.mxu0 %v22993_v60  ;;  %18644 = vmatprep.mubr.f32.mxu0 %v10451_v53 }
0x127d   : > { %18665 = vmatprep.mubr.f32.mxu1 %v23008_v55  ;;  %18642 = vmatprep.subr.mxu0 %v22998_v35 }
0x127e   : > { %18663 = vmatprep.subr.mxu1 %v22990_v45 }
0x127f   : > { %18664 = vmatpush3.xpose.msra.mxu1 %v22990_v45 }
0x1280   : > { %18643 = vmatpush3.xpose.msra.mxu0 %v22998_v35 }
0x1281   : > { %18654 = vmatprep.subr.mxu0 %v23001_v37 }
0x1282   : > { %18666 = vmatmul.mubr.f32.vlgmr.msra.gmra.mxu1 %v10460_v6 }
0x1283   : > { %18645 = vmatmul.mubr.f32.vlgmr.msra.gmra.mxu0 %v10461_v52 }
0x1284   : > { %18655 = vmatpush3.xpose.msra.mxu0 %v23001_v37  ;;  %18658 = vmatprep.mubr.f32.mxu0 %v23008_v55 }
0x1285   : > { %18656 = vmatprep.subr.mxu0 %v23006_v1 }
0x1288   : > { %18657 = vmatpush3.xpose.msra.mxu0 %v23006_v1 }
0x128b   : > { %18659 = vmatmul.mubr.f32.vlgmr.msra.gmra.mxu0 %v10460_v6 }
0x1321   : > { %v18597_v46 = vpop.f32.mrf.mxu1 }
0x1323   : > { %v10029_v54 = vpop.f32.mrf.mxu1 }
0x1325   : > { %v18611_v31 = vpop.f32.mrf.mxu1 }
0x1327   : > { %v10193_v5 = vpop.f32.mrf.mxu1 }
0x1329   : > { %v18590_v50 = vpop.f32.mrf.mxu0 }
0x132a   : > { %v10036_v61 = vadd.f32 %v18597_v46, %v18590_v50  ;;  %v18625_v3 = vpop.f32.mrf.mxu1 }
0x132b   : > { %v9938_v9 = vpop.f32.mrf.mxu0 }
0x132c   : > { %v10030_v23 = vadd.f32 %v10029_v54, %v9938_v9  ;;  %v10357_v40 = vpop.f32.mrf.mxu1 }
0x132e   : > { %v18604_v44 = vpop.f32.mrf.mxu0 }
0x132f   : > { %v10119_v58 = vadd.f32 %v18604_v44, %v10036_v61 }
0x1330   : > { %v10111_v16 = vpop.f32.mrf.mxu0 }
0x1331   : > { %v10112_v62 = vadd.f32 %v10111_v16, %v10030_v23  ;;  %v10202_v22 = vadd.f32 %v18611_v31, %v10119_v58 }
0x1332   : > { %v18639_v49 = vpop.f32.mrf.mxu1 }
0x1333   : > { %v18618_v2 = vpop.f32.mrf.mxu0  ;;  %v10194_v28 = vadd.f32 %v10193_v5, %v10112_v62 }
0x1334   : > { %v10285_v7 = vadd.f32 %v18618_v2, %v10202_v22  ;;  %v10547_v48 = vpop.f32.mrf.mxu1 }
0x1335   : > { %v10278_v45 = vpop.f32.mrf.mxu0 }
0x1336   : > { %v23052_v60 = vadd.f32 %v18625_v3, %v10285_v7  ;;  %v10279_v10 = vadd.f32 %v10278_v45, %v10194_v28 }
0x1338   : > { %v23054_v41 = vadd.f32 %v10357_v40, %v10279_v10 }
0x133a   : > { %v18653_v26 = vpop.f32.mrf.mxu1 }
0x133b   : > { %v18632_v63 = vpop.f32.mrf.mxu0 }
0x133c   : > { %v10554_v37 = vadd.f32 %v18639_v49, %v18632_v63  ;;  %v10711_v55 = vpop.f32.mrf.mxu1 }
0x133d   : > { %v10456_v35 = vpop.f32.mrf.mxu0 }
0x133e   : > { %v10548_v42 = vadd.f32 %v10547_v48, %v10456_v35 }
0x1342   : > { %v18667_v43 = vpop.f32.mrf.mxu1 }
0x1343   : > { %v18646_v24 = vpop.f32.mrf.mxu0 }
0x1344   : > { %v10637_v56 = vadd.f32 %v18646_v24, %v10554_v37  ;;  %v10875_v30 = vpop.f32.mrf.mxu1 }
0x1345   : > { %v10629_v47 = vpop.f32.mrf.mxu0 }
0x1346   : > { %v10630_v1 = vadd.f32 %v10629_v47, %v10548_v42  ;;  %v10720_v34 = vadd.f32 %v18653_v26, %v10637_v56 }
0x1348   : > { %v10712_v17 = vadd.f32 %v10711_v55, %v10630_v1 }
0x134b   : > { %v18660_v25 = vpop.f32.mrf.mxu0 }
0x134c   : > { %v10803_v18 = vadd.f32 %v18660_v25, %v10720_v34 }
0x134d   : > { %v10796_v19 = vpop.f32.mrf.mxu0 }
0x134e   : > { %v10882_v33 = vadd.f32 %v18667_v43, %v10803_v18  ;;  %v10797_v53 = vadd.f32 %v10796_v19, %v10712_v17 }
0x1350   : > { %v10886_v36 = vmul.f32 0.17677669, %v10882_v33  ;;  %v10876_v6 = vadd.f32 %v10875_v30, %v10797_v53 }
0x1352   : > { %v10885_v14 = vmul.f32 0.17677669, %v10876_v6  ;;  %v10888_v39 = vadd.f32 %v10886_v36, %v22968_v4 }
0x1354   : > { %v10892_v52 = vsel %vm3173_vm1, %v10888_v39, -inf  ;;  %v10887_v29 = vadd.f32 %v10885_v14, %v22970_v11 }
0x1355   : > { %10893 = vmax.xlane.f32.xlu1 %v10892_v52 }
0x1356   : > { %v10889_v57 = vsel %vm3173_vm1, %v10887_v29, -inf }
0x1357   : > { %10890 = vmax.xlane.f32.xlu0 %v10889_v57 }
0x1366   : > { %10913 = vrot.lane.b32.xlu1 %v22920_v59, %s19712_s7 }
0x136a   : > { %11433 = vrot.lane.b32.xlu1 %v22908_v13, %s19713_s25 }
0x136e   : > { %11431 = vrot.lane.b32.xlu1 %v22899_v15, %s19713_s25 }
0x1372   : > { %11429 = vrot.lane.b32.xlu1 %v22874_v0, %s19713_s25 }
0x13de   : > { %v10894_v32 = vpop.xlane.xlu1 %10893 }
0x13df   : > { %v10896_v51 = vsub.f32 %v10888_v39, %v10894_v32 }
0x13e0   : > { %v10891_v8 = vpop.xlane.xlu0 %10890 }
0x13e1   : > { %v10899_v46 = vmul.f32 1.442695, %v10896_v51  ;;  %v10895_v54 = vsub.f32 %v10887_v29, %v10891_v8 }
0x13e2   : > { %v10914_v44 = vpop.permute.xlu1 %10913 }
0x13e3   : > { %19276 = vpow2.f32 %v10899_v46  ;;  %v10897_v50 = vmul.f32 1.442695, %v10895_v54  ;;  %v23074_v58 = vand.u32 4294901760, %v10914_v44 }
0x13e5   : > { %19278 = vpow2.f32 %v10897_v50  ;;  %v23077_v22 = vsub.f32 %v10914_v44, %v23074_v58 }
0x13e6   : > { %v11434_v62 = vpop.permute.xlu1 %11433 }
0x13e7   : > { %v11441_v28 = vsel %vm2652_vm0, %v11434_v62, 0  ;;  %v23083_v45 = vand.u32 4294901760, %v23077_v22 }
0x13e8   : > { %v23089_v49 = vand.u32 4294901760, %v11441_v28 }
0x13e9   : > { %v11051_v24 = vsub.f32 %v23077_v22, %v23083_v45 }
0x13ea   : > { %v11432_v10 = vpop.permute.xlu1 %11431  ;;  %v23104_v55 = vsub.f32 %v11441_v28, %v23089_v49 }
0x13eb   : > { %v11439_v35 = vsel %vm2652_vm0, %v11432_v10, 0  ;;  %v11052_v34 = vand.u32 4294901760, %v11051_v24 }
0x13ec   : > { %v23099_v56 = vand.u32 4294901760, %v11439_v35  ;;  %v23112_v30 = vand.u32 4294901760, %v23104_v55 }
0x13ee   : > { %v23109_v19 = vsub.f32 %v11439_v35, %v23099_v56  ;;  %v11430_v52 = vpop.permute.xlu1 %11429  ;;  %v11562_v57 = vsub.f32 %v23104_v55, %v23112_v30 }
0x13ef   : > { %v11437_v8 = vsel %vm2652_vm0, %v11430_v52, 0 }
0x13f0   : > { %v19277_v61 = vpop.eup %19276  ;;  %v23117_v39 = vand.u32 4294901760, %v23109_v19 }
0x13f1   : > { %v10904_v31 = vsel %vm3173_vm1, %v19277_v61, 0.0 }
0x13f2   : > { %v19279_v9 = vpop.eup %19278  ;;  %10905 = vadd.xlane.f32.xlu0 %v10904_v31  ;;  %v11569_v54 = vsub.f32 %v23109_v19, %v23117_v39 }
0x13f3   : > { %v10901_v23 = vsel %vm3173_vm1, %v19279_v9, 0.0 }
0x13f6   : > { %10902 = vadd.xlane.f32.xlu0 %v10901_v23  ;;  %v11570_v23 = vand.u32 4294901760, %v11569_v54 }
0x140c   : > { %10915 = vrot.lane.b32.xlu0 %v22917_v20, %s19712_s7 }
0x1410   : > { %11427 = vrot.lane.b32.xlu0 %v22876_v21, %s19713_s25 }
0x147b   : > { %v10906_v5 = vpop.xlane.xlu0 %10905 }
0x147c   : > { %19280 = vrcp.f32 %v10906_v5 }
0x147f   : > { %v10903_v16 = vpop.xlane.xlu0 %10902 }
0x1480   : > { %19282 = vrcp.f32 %v10903_v16 }
0x1483   : > { %v10916_v3 = vpop.permute.xlu0 %10915 }
0x1484   : > { %v10954_v2 = vand.u32 4294901760, %v10916_v3 }
0x1486   : > { %v23080_v7 = vsub.f32 %v10916_v3, %v10954_v2  ;;  %18668 = vmatprep.subr.mxu0 %v10954_v2 }
0x1487   : > { %18669 = vmatpush3.msra.mxu0 %v10954_v2  ;;  %v11428_v18 = vpop.permute.xlu0 %11427 }
0x1488   : > { %18670 = vmatprep.subr.mxu0 %v23074_v58  ;;  %v23087_v40 = vand.u32 4294901760, %v23080_v7  ;;  %v11435_v36 = vsel %vm2652_vm0, %v11428_v18, 0 }
0x1489   : > { %v19281_v63 = vpop.eup %19280  ;;  %18671 = vmatpush3.msra.mxu0 %v23074_v58  ;;  %v23119_v29 = vand.u32 4294901760, %v11435_v36 }
0x148a   : > { %18682 = vmatprep.subr.mxu0 %v23080_v7  ;;  %v11044_v48 = vsub.f32 %v23080_v7, %v23087_v40  ;;  %v10910_v37 = vmul.f32 %v19281_v63, %v19277_v61  ;;  %v11563_v61 = vand.u32 4294901760, %v11562_v57 }
0x148b   : > { %v11511_v50 = vsub.f32 %v11435_v36, %v23119_v29 }
0x148c   : > { %v11045_v26 = vand.u32 4294901760, %v11044_v48  ;;  %v10923_v47 = vsel %vm3173_vm1, %v10910_v37, 0 }
0x148d   : > { %v19283_v42 = vpop.eup %19282  ;;  %v23101_v1 = vand.u32 4294901760, %v10923_v47  ;;  %v11512_v44 = vand.u32 4294901760, %v11511_v50 }
0x148e   : > { %18675 = vmatprep.subr.mxu1 %v11045_v26  ;;  %v10908_v43 = vmul.f32 %v19283_v42, %v19279_v9  ;;  %v11520_v9 = vand.u32 4294901760, %v11437_v8 }
0x148f   : > { %18676 = vmatpush3.msra.mxu1 %v11045_v26  ;;  %v11003_v25 = vsub.f32 %v10923_v47, %v23101_v1 }
0x1490   : > { %18677 = vmatprep.subr.mxu1 %v11052_v34  ;;  %v10920_v17 = vsel %vm3173_vm1, %v10908_v43, 0  ;;  %v11521_v5 = vsub.f32 %v11437_v8, %v11520_v9 }
0x1491   : > { %18678 = vmatpush3.msra.mxu1 %v11052_v34  ;;  %v10992_v33 = vand.u32 4294901760, %v10920_v17  ;;  %v11004_v53 = vand.u32 4294901760, %v11003_v25 }
0x1492   : > { %18689 = vmatprep.subr.mxu1 %v10954_v2  ;;  %v11522_v16 = vand.u32 4294901760, %v11521_v5 }
0x1493   : > { %18679 = vmatprep.mubr.f32.mxu1 %v10992_v33  ;;  %v10993_v6 = vsub.f32 %v10920_v17, %v10992_v33  ;;  %v11005_v32 = vsub.f32 %v11003_v25, %v11004_v53 }
0x1494   : > { %18680 = vmatmul.mubr.f32.vlgmr.msra.gmra.mxu1 %v23101_v1 }
0x1495   : > { %18690 = vmatpush3.msra.mxu1 %v10954_v2  ;;  %v10994_v14 = vand.u32 4294901760, %v10993_v6  ;;  %v11006_v31 = vand.u32 4294901760, %v11005_v32 }
0x1496   : > { %18691 = vmatprep.subr.mxu1 %v23074_v58 }
0x1497   : > { %18692 = vmatpush3.msra.mxu1 %v23074_v58  ;;  %18693 = vmatprep.mubr.f32.mxu1 %v10994_v14  ;;  %v10995_v51 = vsub.f32 %v10993_v6, %v10994_v14 }
0x1498   : > { %18703 = vmatprep.subr.mxu1 %v10954_v2  ;;  %18694 = vmatmul.mubr.f32.vlgmr.msra.gmra.mxu1 %v11004_v53 }
0x1499   : > { %18704 = vmatpush3.msra.mxu1 %v10954_v2  ;;  %18707 = vmatprep.mubr.f32.mxu1 %v10992_v33  ;;  %v10996_v46 = vand.u32 4294901760, %v10995_v51 }
0x149a   : > { %18705 = vmatprep.subr.mxu1 %v23074_v58 }
0x149b   : > { %18706 = vmatpush3.msra.mxu1 %v23074_v58  ;;  %18672 = vmatprep.mubr.f32.mxu0 %v10996_v46  ;;  %v11513_v58 = vsub.f32 %v11511_v50, %v11512_v44 }
0x149c   : > { %18717 = vmatprep.subr.mxu1 %v11563_v61  ;;  %18673 = vmatmul.mubr.f32.vlgmr.msra.gmra.mxu0 %v11006_v31 }
0x149d   : > { %18683 = vmatpush3.msra.mxu0 %v23080_v7  ;;  %18708 = vmatmul.mubr.f32.vlgmr.msra.gmra.mxu1 %v23101_v1  ;;  %v11514_v62 = vand.u32 4294901760, %v11513_v58 }
0x149e   : > { %18718 = vmatpush3.xpose.msra.mxu1 %v11563_v61  ;;  %18684 = vmatprep.subr.mxu0 %v23077_v22 }
0x149f   : > { %18686 = vmatprep.mubr.f32.mxu0 %v10993_v6  ;;  %18719 = vmatprep.subr.mxu1 %v11570_v23 }
0x14a0   : > { %18721 = vmatprep.mubr.f32.mxu1 %v23119_v29  ;;  %18685 = vmatpush3.msra.mxu0 %v23077_v22  ;;  %v11523_v22 = vsub.f32 %v11521_v5, %v11522_v16 }
0x14a1   : > { %18696 = vmatprep.subr.mxu0 %v23087_v40  ;;  %18687 = vmatmul.mubr.f32.vlgmr.msra.gmra.mxu0 %v11003_v25 }
0x14a2   : > { %18697 = vmatpush3.msra.mxu0 %v23087_v40  ;;  %18720 = vmatpush3.xpose.msra.mxu1 %v11570_v23  ;;  %v11524_v3 = vand.u32 4294901760, %v11523_v22 }
0x14a3   : > { %18698 = vmatprep.subr.mxu0 %v23083_v45  ;;  %18700 = vmatprep.mubr.f32.mxu0 %v10992_v33 }
0x14a4   : > { %18731 = vmatprep.subr.mxu1 %v23089_v49  ;;  %18699 = vmatpush3.msra.mxu0 %v23083_v45 }
0x14a5   : > { %18710 = vmatprep.subr.mxu0 %v23089_v49  ;;  %18722 = vmatmul.mubr.f32.vlgmr.msra.gmra.mxu1 %v11520_v9 }
0x14a6   : > { %18701 = vmatmul.mubr.f32.vlgmr.msra.gmra.mxu0 %v23101_v1  ;;  %18732 = vmatpush3.xpose.msra.mxu1 %v23089_v49 }
0x14a7   : > { %18711 = vmatpush3.xpose.msra.mxu0 %v23089_v49  ;;  %18735 = vmatprep.mubr.f32.mxu1 %v11512_v44 }
0x14a8   : > { %18712 = vmatprep.subr.mxu0 %v23099_v56  ;;  %18714 = vmatprep.mubr.f32.mxu0 %v11514_v62 }
0x14a9   : > { %18733 = vmatprep.subr.mxu1 %v23099_v56 }
0x14aa   : > { %18734 = vmatpush3.xpose.msra.mxu1 %v23099_v56 }
0x14ab   : > { %18713 = vmatpush3.xpose.msra.mxu0 %v23099_v56  ;;  %18745 = vmatprep.subr.mxu1 %v23089_v49 }
0x14ac   : > { %18724 = vmatprep.subr.mxu0 %v23104_v55 }
0x14ad   : > { %18736 = vmatmul.mubr.f32.vlgmr.msra.gmra.mxu1 %v11522_v16 }
0x14ae   : > { %18715 = vmatmul.mubr.f32.vlgmr.msra.gmra.mxu0 %v11524_v3  ;;  %18746 = vmatpush3.xpose.msra.mxu1 %v23089_v49 }
0x14af   : > { %18725 = vmatpush3.xpose.msra.mxu0 %v23104_v55  ;;  %18728 = vmatprep.mubr.f32.mxu0 %v11511_v50 }
0x14b0   : > { %18749 = vmatprep.mubr.f32.mxu1 %v23119_v29  ;;  %18726 = vmatprep.subr.mxu0 %v23109_v19 }
0x14b1   : > { %18747 = vmatprep.subr.mxu1 %v23099_v56 }
0x14b2   : > { %18748 = vmatpush3.xpose.msra.mxu1 %v23099_v56 }
0x14b3   : > { %18727 = vmatpush3.xpose.msra.mxu0 %v23109_v19 }
0x14b4   : > { %18738 = vmatprep.subr.mxu0 %v23112_v30 }
0x14b5   : > { %18750 = vmatmul.mubr.f32.vlgmr.msra.gmra.mxu1 %v11520_v9 }
0x14b6   : > { %18729 = vmatmul.mubr.f32.vlgmr.msra.gmra.mxu0 %v11521_v5 }
0x14b7   : > { %18739 = vmatpush3.xpose.msra.mxu0 %v23112_v30  ;;  %18742 = vmatprep.mubr.f32.mxu0 %v23119_v29 }
0x14b8   : > { %18740 = vmatprep.subr.mxu0 %v23117_v39 }
0x14bb   : > { %18741 = vmatpush3.xpose.msra.mxu0 %v23117_v39 }
0x14be   : > { %18743 = vmatmul.mubr.f32.vlgmr.msra.gmra.mxu0 %v11520_v9 }
0x1554   : > { %v18681_v2 = vpop.f32.mrf.mxu1 }
0x1556   : > { %v11089_v28 = vpop.f32.mrf.mxu1 }
0x1558   : > { %v18695_v10 = vpop.f32.mrf.mxu1 }
0x155a   : > { %v11253_v35 = vpop.f32.mrf.mxu1 }
0x155c   : > { %v18674_v7 = vpop.f32.mrf.mxu0 }
0x155d   : > { %v11096_v45 = vadd.f32 %v18681_v2, %v18674_v7  ;;  %v18709_v47 = vpop.f32.mrf.mxu1 }
0x155e   : > { %v10998_v40 = vpop.f32.mrf.mxu0 }
0x155f   : > { %v11090_v63 = vadd.f32 %v11089_v28, %v10998_v40  ;;  %v11417_v25 = vpop.f32.mrf.mxu1 }
0x1561   : > { %v18688_v49 = vpop.f32.mrf.mxu0 }
0x1562   : > { %v11179_v48 = vadd.f32 %v18688_v49, %v11096_v45 }
0x1563   : > { %v11171_v24 = vpop.f32.mrf.mxu0 }
0x1564   : > { %v11172_v37 = vadd.f32 %v11171_v24, %v11090_v63  ;;  %v11262_v26 = vadd.f32 %v18695_v10, %v11179_v48 }
0x1565   : > { %v18723_v19 = vpop.f32.mrf.mxu1 }
0x1566   : > { %v18702_v42 = vpop.f32.mrf.mxu0  ;;  %v11254_v56 = vadd.f32 %v11253_v35, %v11172_v37 }
0x1567   : > { %v11345_v1 = vadd.f32 %v18702_v42, %v11262_v26  ;;  %v11607_v53 = vpop.f32.mrf.mxu1 }
0x1568   : > { %v11338_v55 = vpop.f32.mrf.mxu0 }
0x1569   : > { %v23163_v34 = vadd.f32 %v18709_v47, %v11345_v1  ;;  %v11339_v43 = vadd.f32 %v11338_v55, %v11254_v56 }
0x156b   : > { %v23165_v18 = vadd.f32 %v11417_v25, %v11339_v43 }
0x156d   : > { %v18737_v6 = vpop.f32.mrf.mxu1 }
0x156e   : > { %v18716_v17 = vpop.f32.mrf.mxu0 }
0x156f   : > { %v11614_v36 = vadd.f32 %v18723_v19, %v18716_v17  ;;  %v11771_v57 = vpop.f32.mrf.mxu1 }
0x1570   : > { %v11516_v33 = vpop.f32.mrf.mxu0 }
0x1571   : > { %v11608_v39 = vadd.f32 %v11607_v53, %v11516_v33 }
0x1575   : > { %v18751_v51 = vpop.f32.mrf.mxu1 }
0x1576   : > { %v18730_v30 = vpop.f32.mrf.mxu0 }
0x1577   : > { %v11697_v52 = vadd.f32 %v18730_v30, %v11614_v36  ;;  %v11935_v9 = vpop.f32.mrf.mxu1 }
0x1578   : > { %v11689_v14 = vpop.f32.mrf.mxu0 }
0x1579   : > { %v11690_v29 = vadd.f32 %v11689_v14, %v11608_v39  ;;  %v11780_v32 = vadd.f32 %v18737_v6, %v11697_v52 }
0x157b   : > { %v11772_v54 = vadd.f32 %v11771_v57, %v11690_v29 }
0x157e   : > { %v18744_v8 = vpop.f32.mrf.mxu0 }
0x157f   : > { %v11863_v46 = vadd.f32 %v18744_v8, %v11780_v32 }
0x1580   : > { %v11856_v50 = vpop.f32.mrf.mxu0 }
0x1581   : > { %v11942_v61 = vadd.f32 %v18751_v51, %v11863_v46  ;;  %v11857_v31 = vadd.f32 %v11856_v50, %v11772_v54 }
0x1583   : > { %v11946_v23 = vmul.f32 0.17677669, %v11942_v61  ;;  %v11936_v44 = vadd.f32 %v11935_v9, %v11857_v31 }
0x1585   : > { %v11945_v5 = vmul.f32 0.17677669, %v11936_v44  ;;  %v11948_v58 = vadd.f32 %v11946_v23, %v22968_v4 }
0x1587   : > { %v11952_v16 = vsel %vm3173_vm1, %v11948_v58, -inf  ;;  %v11947_v62 = vadd.f32 %v11945_v5, %v22970_v11 }
0x1588   : > { %11953 = vmax.xlane.f32.xlu1 %v11952_v16 }
0x1589   : > { %v11949_v22 = vsel %vm3173_vm1, %v11947_v62, -inf }
0x158a   : > { %11950 = vmax.xlane.f32.xlu0 %v11949_v22 }
0x1599   : > { %11971 = vrot.lane.b32.xlu1 %v22920_v59, %s19713_s25 }
0x159d   : > { %12491 = vrot.lane.b32.xlu1 %v22908_v13, %s19714_s3 }
0x15a1   : > { %12489 = vrot.lane.b32.xlu1 %v22899_v15, %s19714_s3 }
0x15a5   : > { %12487 = vrot.lane.b32.xlu1 %v22874_v0, %s19714_s3 }
0x1611   : > { %v11954_v3 = vpop.xlane.xlu1 %11953 }
0x1612   : > { %v11956_v2 = vsub.f32 %v11948_v58, %v11954_v3 }
0x1613   : > { %v11951_v28 = vpop.xlane.xlu0 %11950 }
0x1614   : > { %v11959_v7 = vmul.f32 1.442695, %v11956_v2  ;;  %v11955_v45 = vsub.f32 %v11947_v62, %v11951_v28 }
0x1615   : > { %v11972_v0 = vpop.permute.xlu1 %11971 }
0x1616   : > { %19284 = vpow2.f32 %v11959_v7  ;;  %v11957_v10 = vmul.f32 1.442695, %v11955_v45  ;;  %v23185_v35 = vand.u32 4294901760, %v11972_v0 }
0x1618   : > { %19286 = vpow2.f32 %v11957_v10  ;;  %v23188_v37 = vsub.f32 %v11972_v0, %v23185_v35 }
0x1619   : > { %v12492_v24 = vpop.permute.xlu1 %12491 }
0x161a   : > { %v12499_v42 = vsel %vm2652_vm0, %v12492_v24, 0 }
0x161b   : > { %v23200_v25 = vand.u32 4294901760, %v12499_v42 }
0x161d   : > { %v12490_v1 = vpop.permute.xlu1 %12489  ;;  %v23215_v52 = vsub.f32 %v12499_v42, %v23200_v25 }
0x161e   : > { %v12497_v17 = vsel %vm2652_vm0, %v12490_v1, 0 }
0x161f   : > { %v23210_v14 = vand.u32 4294901760, %v12497_v17  ;;  %v23223_v61 = vand.u32 4294901760, %v23215_v52 }
0x1621   : > { %v23220_v46 = vsub.f32 %v12497_v17, %v23210_v14  ;;  %v12488_v5 = vpop.permute.xlu1 %12487  ;;  %v12620_v16 = vsub.f32 %v23215_v52, %v23223_v61 }
0x1622   : > { %v12495_v3 = vsel %vm2652_vm0, %v12488_v5, 0 }
0x1623   : > { %v19285_v40 = vpop.eup %19284  ;;  %v23228_v44 = vand.u32 4294901760, %v23220_v46  ;;  %v12621_v45 = vand.u32 4294901760, %v12620_v16 }
0x1624   : > { %v11964_v63 = vsel %vm3173_vm1, %v19285_v40, 0.0 }
0x1625   : > { %v19287_v49 = vpop.eup %19286  ;;  %11965 = vadd.xlane.f32.xlu0 %v11964_v63  ;;  %v12627_v28 = vsub.f32 %v23220_v46, %v23228_v44 }
0x1626   : > { %v11961_v13 = vsel %vm3173_vm1, %v19287_v49, 0.0 }
0x1627   : > { %v12628_v63 = vand.u32 4294901760, %v12627_v28 }
0x1629   : > { %11962 = vadd.xlane.f32.xlu0 %v11961_v13 }
0x163f   : > { %11973 = vrot.lane.b32.xlu0 %v22917_v20, %s19713_s25 }
0x1643   : > { %12485 = vrot.lane.b32.xlu0 %v22876_v21, %s19714_s3  ;;  %v23194_v21 = vand.u32 4294901760, %v23188_v37 }
0x1645   : > { %v12109_v53 = vsub.f32 %v23188_v37, %v23194_v21 }
0x1647   : > { %v12110_v29 = vand.u32 4294901760, %v12109_v53 }
0x16ae   : > { %v11966_v15 = vpop.xlane.xlu0 %11965 }
0x16af   : > { %19288 = vrcp.f32 %v11966_v15 }
0x16b2   : > { %v11963_v48 = vpop.xlane.xlu0 %11962 }
0x16b3   : > { %19290 = vrcp.f32 %v11963_v48 }
0x16b6   : > { %v11974_v26 = vpop.permute.xlu0 %11973 }
0x16b7   : > { %v12012_v47 = vand.u32 4294901760, %v11974_v26 }
0x16b9   : > { %v23191_v56 = vsub.f32 %v11974_v26, %v12012_v47  ;;  %18752 = vmatprep.subr.mxu0 %v12012_v47 }
0x16ba   : > { %18753 = vmatpush3.msra.mxu0 %v12012_v47  ;;  %v12486_v51 = vpop.permute.xlu0 %12485 }
0x16bb   : > { %18754 = vmatprep.subr.mxu0 %v23185_v35  ;;  %v23198_v55 = vand.u32 4294901760, %v23191_v56  ;;  %v12493_v31 = vsel %vm2652_vm0, %v12486_v51, 0 }
0x16bc   : > { %v19289_v43 = vpop.eup %19288  ;;  %18755 = vmatpush3.msra.mxu0 %v23185_v35  ;;  %v23230_v58 = vand.u32 4294901760, %v12493_v31 }
0x16bd   : > { %v11970_v19 = vmul.f32 %v19289_v43, %v19285_v40  ;;  %18766 = vmatprep.subr.mxu0 %v23191_v56  ;;  %v12102_v33 = vsub.f32 %v23191_v56, %v23198_v55  ;;  %v12578_v40 = vand.u32 4294901760, %v12495_v3 }
0x16be   : > { %v12569_v7 = vsub.f32 %v12493_v31, %v23230_v58 }
0x16bf   : > { %v12103_v30 = vand.u32 4294901760, %v12102_v33  ;;  %v11981_v36 = vsel %vm3173_vm1, %v11970_v19, 0  ;;  %v12579_v13 = vsub.f32 %v12495_v3, %v12578_v40 }
0x16c0   : > { %v19291_v6 = vpop.eup %19290  ;;  %v23212_v39 = vand.u32 4294901760, %v11981_v36 }
0x16c1   : > { %18759 = vmatprep.subr.mxu1 %v12103_v30  ;;  %v11968_v57 = vmul.f32 %v19291_v6, %v19287_v49  ;;  %v12570_v49 = vand.u32 4294901760, %v12569_v7  ;;  %v12580_v15 = vand.u32 4294901760, %v12579_v13 }
0x16c2   : > { %18760 = vmatpush3.msra.mxu1 %v12103_v30  ;;  %v12061_v32 = vsub.f32 %v11981_v36, %v23212_v39 }
0x16c3   : > { %18761 = vmatprep.subr.mxu1 %v12110_v29  ;;  %v11978_v8 = vsel %vm3173_vm1, %v11968_v57, 0  ;;  %v12571_v0 = vsub.f32 %v12569_v7, %v12570_v49  ;;  %v12581_v48 = vsub.f32 %v12579_v13, %v12580_v15 }
0x16c4   : > { %18762 = vmatpush3.msra.mxu1 %v12110_v29  ;;  %v12050_v54 = vand.u32 4294901760, %v11978_v8  ;;  %v12062_v50 = vand.u32 4294901760, %v12061_v32 }
0x16c5   : > { %18773 = vmatprep.subr.mxu1 %v12012_v47  ;;  %v12582_v24 = vand.u32 4294901760, %v12581_v48 }
0x16c6   : > { %18763 = vmatprep.mubr.f32.mxu1 %v12050_v54  ;;  %v12051_v9 = vsub.f32 %v11978_v8, %v12050_v54  ;;  %v12063_v62 = vsub.f32 %v12061_v32, %v12062_v50 }
0x16c7   : > { %18764 = vmatmul.mubr.f32.vlgmr.msra.gmra.mxu1 %v23212_v39 }
0x16c8   : > { %18774 = vmatpush3.msra.mxu1 %v12012_v47  ;;  %v12052_v23 = vand.u32 4294901760, %v12051_v9  ;;  %v12064_v10 = vand.u32 4294901760, %v12063_v62 }
0x16c9   : > { %18775 = vmatprep.subr.mxu1 %v23185_v35 }
0x16ca   : > { %18776 = vmatpush3.msra.mxu1 %v23185_v35  ;;  %18777 = vmatprep.mubr.f32.mxu1 %v12052_v23  ;;  %v12053_v22 = vsub.f32 %v12051_v9, %v12052_v23 }
0x16cb   : > { %18787 = vmatprep.subr.mxu1 %v12012_v47  ;;  %18778 = vmatmul.mubr.f32.vlgmr.msra.gmra.mxu1 %v12062_v50 }
0x16cc   : > { %18788 = vmatpush3.msra.mxu1 %v12012_v47  ;;  %18791 = vmatprep.mubr.f32.mxu1 %v12050_v54  ;;  %v12054_v2 = vand.u32 4294901760, %v12053_v22 }
0x16cd   : > { %18789 = vmatprep.subr.mxu1 %v23185_v35 }
0x16ce   : > { %18790 = vmatpush3.msra.mxu1 %v23185_v35  ;;  %18756 = vmatprep.mubr.f32.mxu0 %v12054_v2  ;;  %v12572_v35 = vand.u32 4294901760, %v12571_v0 }
0x16cf   : > { %18801 = vmatprep.subr.mxu1 %v12621_v45  ;;  %18757 = vmatmul.mubr.f32.vlgmr.msra.gmra.mxu0 %v12064_v10 }
0x16d0   : > { %18767 = vmatpush3.msra.mxu0 %v23191_v56  ;;  %18792 = vmatmul.mubr.f32.vlgmr.msra.gmra.mxu1 %v23212_v39 }
0x16d1   : > { %18802 = vmatpush3.xpose.msra.mxu1 %v12621_v45  ;;  %18768 = vmatprep.subr.mxu0 %v23188_v37 }
0x16d2   : > { %18770 = vmatprep.mubr.f32.mxu0 %v12051_v9  ;;  %18803 = vmatprep.subr.mxu1 %v12628_v63 }
0x16d3   : > { %18805 = vmatprep.mubr.f32.mxu1 %v23230_v58  ;;  %18769 = vmatpush3.msra.mxu0 %v23188_v37 }
0x16d4   : > { %18780 = vmatprep.subr.mxu0 %v23198_v55  ;;  %18771 = vmatmul.mubr.f32.vlgmr.msra.gmra.mxu0 %v12061_v32 }
0x16d5   : > { %18781 = vmatpush3.msra.mxu0 %v23198_v55  ;;  %18804 = vmatpush3.xpose.msra.mxu1 %v12628_v63 }
0x16d6   : > { %18782 = vmatprep.subr.mxu0 %v23194_v21  ;;  %18784 = vmatprep.mubr.f32.mxu0 %v12050_v54 }
0x16d7   : > { %18815 = vmatprep.subr.mxu1 %v23200_v25  ;;  %18783 = vmatpush3.msra.mxu0 %v23194_v21 }
0x16d8   : > { %18794 = vmatprep.subr.mxu0 %v23200_v25  ;;  %18806 = vmatmul.mubr.f32.vlgmr.msra.gmra.mxu1 %v12578_v40 }
0x16d9   : > { %18785 = vmatmul.mubr.f32.vlgmr.msra.gmra.mxu0 %v23212_v39  ;;  %18816 = vmatpush3.xpose.msra.mxu1 %v23200_v25 }
0x16da   : > { %18795 = vmatpush3.xpose.msra.mxu0 %v23200_v25  ;;  %18819 = vmatprep.mubr.f32.mxu1 %v12570_v49 }
0x16db   : > { %18796 = vmatprep.subr.mxu0 %v23210_v14  ;;  %18798 = vmatprep.mubr.f32.mxu0 %v12572_v35 }
0x16dc   : > { %18817 = vmatprep.subr.mxu1 %v23210_v14 }
0x16dd   : > { %18818 = vmatpush3.xpose.msra.mxu1 %v23210_v14 }
0x16de   : > { %18797 = vmatpush3.xpose.msra.mxu0 %v23210_v14  ;;  %18829 = vmatprep.subr.mxu1 %v23200_v25 }
0x16df   : > { %18808 = vmatprep.subr.mxu0 %v23215_v52 }
0x16e0   : > { %18820 = vmatmul.mubr.f32.vlgmr.msra.gmra.mxu1 %v12580_v15 }
0x16e1   : > { %18799 = vmatmul.mubr.f32.vlgmr.msra.gmra.mxu0 %v12582_v24  ;;  %18830 = vmatpush3.xpose.msra.mxu1 %v23200_v25 }
0x16e2   : > { %18809 = vmatpush3.xpose.msra.mxu0 %v23215_v52  ;;  %18812 = vmatprep.mubr.f32.mxu0 %v12569_v7 }
0x16e3   : > { %18833 = vmatprep.mubr.f32.mxu1 %v23230_v58  ;;  %18810 = vmatprep.subr.mxu0 %v23220_v46 }
0x16e4   : > { %18831 = vmatprep.subr.mxu1 %v23210_v14 }
0x16e5   : > { %18832 = vmatpush3.xpose.msra.mxu1 %v23210_v14 }
0x16e6   : > { %18811 = vmatpush3.xpose.msra.mxu0 %v23220_v46 }
0x16e7   : > { %18822 = vmatprep.subr.mxu0 %v23223_v61 }
0x16e8   : > { %18834 = vmatmul.mubr.f32.vlgmr.msra.gmra.mxu1 %v12578_v40 }
0x16e9   : > { %18813 = vmatmul.mubr.f32.vlgmr.msra.gmra.mxu0 %v12579_v13 }
0x16ea   : > { %18823 = vmatpush3.xpose.msra.mxu0 %v23223_v61  ;;  %18826 = vmatprep.mubr.f32.mxu0 %v23230_v58 }
0x16eb   : > { %18824 = vmatprep.subr.mxu0 %v23228_v44 }
0x16ee   : > { %18825 = vmatpush3.xpose.msra.mxu0 %v23228_v44 }
0x16f1   : > { %18827 = vmatmul.mubr.f32.vlgmr.msra.gmra.mxu0 %v12578_v40 }
0x1787   : > { %v18765_v37 = vpop.f32.mrf.mxu1 }
0x1789   : > { %v12147_v26 = vpop.f32.mrf.mxu1 }
0x178b   : > { %v18779_v42 = vpop.f32.mrf.mxu1 }
0x178d   : > { %v12311_v55 = vpop.f32.mrf.mxu1 }
0x178f   : > { %v18758_v47 = vpop.f32.mrf.mxu0 }
0x1790   : > { %v18793_v17 = vpop.f32.mrf.mxu1  ;;  %v12154_v63 = vadd.f32 %v18765_v37, %v18758_v47 }
0x1791   : > { %v12056_v56 = vpop.f32.mrf.mxu0 }
0x1792   : > { %v12148_v21 = vadd.f32 %v12147_v26, %v12056_v56  ;;  %v12475_v36 = vpop.f32.mrf.mxu1 }
0x1794   : > { %v18772_v1 = vpop.f32.mrf.mxu0 }
0x1795   : > { %v12237_v49 = vadd.f32 %v18772_v1, %v12154_v63 }
0x1796   : > { %v12229_v43 = vpop.f32.mrf.mxu0 }
0x1797   : > { %v12230_v25 = vadd.f32 %v12229_v43, %v12148_v21  ;;  %v12320_v13 = vadd.f32 %v18779_v42, %v12237_v49 }
0x1798   : > { %v18807_v39 = vpop.f32.mrf.mxu1 }
0x1799   : > { %v18786_v19 = vpop.f32.mrf.mxu0  ;;  %v12312_v33 = vadd.f32 %v12311_v55, %v12230_v25 }
0x179a   : > { %v12665_v29 = vpop.f32.mrf.mxu1  ;;  %v12403_v0 = vadd.f32 %v18786_v19, %v12320_v13 }
0x179b   : > { %v12396_v53 = vpop.f32.mrf.mxu0 }
0x179c   : > { %v12397_v30 = vadd.f32 %v12396_v53, %v12312_v33 }
0x179e   : > { %v12476_v6 = vadd.f32 %v12475_v36, %v12397_v30 }
0x17a0   : > { %v18821_v51 = vpop.f32.mrf.mxu1 }
0x17a1   : > { %v18800_v14 = vpop.f32.mrf.mxu0 }
0x17a2   : > { %v12672_v32 = vadd.f32 %v18807_v39, %v18800_v14  ;;  %v12829_v61 = vpop.f32.mrf.mxu1 }
0x17a3   : > { %v12574_v52 = vpop.f32.mrf.mxu0 }
0x17a4   : > { %v12666_v46 = vadd.f32 %v12665_v29, %v12574_v52 }
0x17a8   : > { %v18835_v9 = vpop.f32.mrf.mxu1 }
0x17a9   : > { %v18814_v57 = vpop.f32.mrf.mxu0 }
0x17aa   : > { %v12755_v54 = vadd.f32 %v18814_v57, %v12672_v32  ;;  %v12993_v22 = vpop.f32.mrf.mxu1 }
0x17ab   : > { %v12747_v8 = vpop.f32.mrf.mxu0 }
0x17ac   : > { %v12748_v50 = vadd.f32 %v12747_v8, %v12666_v46  ;;  %v12838_v31 = vadd.f32 %v18821_v51, %v12755_v54 }
0x17ae   : > { %v12830_v5 = vadd.f32 %v12829_v61, %v12748_v50 }
0x17b1   : > { %v18828_v23 = vpop.f32.mrf.mxu0 }
0x17b2   : > { %v12921_v44 = vadd.f32 %v18828_v23, %v12838_v31  ;;  %v9315_v23 = vld [vmem:[#allocation16 + $0x78] sm:$0xff] }
0x17b3   : > { %v12914_v58 = vpop.f32.mrf.mxu0 }
0x17b4   : > { %v13000_v16 = vadd.f32 %v18835_v9, %v12921_v44  ;;  %v12915_v62 = vadd.f32 %v12914_v58, %v12830_v5  ;;  %v9314_v44 = vld [vmem:[#allocation16 + $0x70] sm:$0xff]  ;;  %v9313_v5 = vld [vmem:[#allocation16 + $0x68] sm:$0xff]  ;;  %v23292_v58 = vand.u32 4294901760, %v9315_v23 }
0x17b6   : > { %v13004_v3 = vmul.f32 0.17677669, %v13000_v16  ;;  %v12994_v2 = vadd.f32 %v12993_v22, %v12915_v62  ;;  %v23294_v16 = vand.u32 4294901760, %v9314_v44  ;;  %v23296_v62 = vand.u32 4294901760, %v9313_v5  ;;  %v9312_v22 = vld [vmem:[#allocation16 + $0x60] sm:$0xff] }
0x17b7   : > { %v23305_v63 = vsub.f32 %v9315_v23, %v23292_v58 }
0x17b8   : > { %v13003_v28 = vmul.f32 0.17677669, %v12994_v2  ;;  %v13006_v7 = vadd.f32 %v13004_v3, %v22968_v4  ;;  %v12482_v4 = vadd.f32 %v18793_v17, %v12403_v0  ;;  %v9311_v3 = vld [vmem:[#allocation16 + $0x58] sm:$0xff]  ;;  %v9310_v2 = vld [vmem:[#allocation16 + $0x50] sm:$0xff]  ;;  %v23308_v49 = vsub.f32 %v9314_v44, %v23294_v16 }
0x17b9   : > { %v23311_v13 = vsub.f32 %v9313_v5, %v23296_v62 }
0x17ba   : > { %v13010_v45 = vsel %vm3173_vm1, %v13006_v7, -inf  ;;  %v13005_v10 = vadd.f32 %v13003_v28, %v22970_v11  ;;  %v23298_v28 = vand.u32 4294901760, %v9312_v22 }
0x17bb   : > { %13011 = vmax.xlane.f32.xlu1 %v13010_v45  ;;  %v23302_v45 = vand.u32 4294901760, %v9310_v2 }
0x17bc   : > { %v13007_v40 = vsel %vm3173_vm1, %v13005_v10, -inf }
0x17bd   : > { %13008 = vmax.xlane.f32.xlu0 %v13007_v40  ;;  %v9308_v40 = vld [vmem:[#allocation16 + $0x40] sm:$0xff] }
0x17cc   : > { %13029 = vrot.lane.b32.xlu1 %v22920_v59, %s19714_s3 }
0x17d0   : > { %13545 = vrot.lane.b32.xlu1 %v23165_v18, %s19714_s3 }
0x17d4   : > { %13547 = vrot.lane.b32.xlu1 %v23163_v34, %s19714_s3 }
0x17d8   : > { %13555 = vrot.lane.b32.xlu1 %v12482_v4, %s19713_s25  ;;  %v23317_v4 = vsub.f32 %v9312_v22, %v23298_v28 }
0x1844   : > { %v13012_v11 = vpop.xlane.xlu1 %13011 }
0x1845   : > { %v13014_v15 = vsub.f32 %v13006_v7, %v13012_v11  ;;  %v23300_v7 = vand.u32 4294901760, %v9311_v3 }
0x1846   : > { %v13009_v35 = vpop.xlane.xlu0 %13008 }
0x1847   : > { %v13017_v48 = vmul.f32 1.442695, %v13014_v15  ;;  %v13013_v24 = vsub.f32 %v13005_v10, %v13009_v35  ;;  %v9309_v10 = vld [vmem:[#allocation16 + $0x48] sm:$0xff]  ;;  %v23320_v11 = vsub.f32 %v9311_v3, %v23300_v7  ;;  %v23324_v15 = vsub.f32 %v9310_v2, %v23302_v45 }
0x1848   : > { %v13030_v34 = vpop.permute.xlu1 %13029  ;;  %v23314_v0 = vand.u32 4294901760, %v9309_v10  ;;  %v23326_v35 = vand.u32 4294901760, %v9308_v40 }
0x1849   : > { %19292 = vpow2.f32 %v13017_v48  ;;  %v13015_v37 = vmul.f32 1.442695, %v13013_v24  ;;  %v13073_v56 = vand.u32 4294901760, %v13030_v34  ;;  %v23329_v48 = vand.u32 4294901760, %v23305_v63 }
0x184a   : > { %v23332_v24 = vand.u32 4294901760, %v23308_v49 }
0x184b   : > { %19294 = vpow2.f32 %v13015_v37  ;;  %v13165_v1 = vsub.f32 %v13030_v34, %v13073_v56  ;;  %v23335_v37 = vand.u32 4294901760, %v23311_v13 }
0x184c   : > { %v13691_v34 = vsub.f32 %v23308_v49, %v23332_v24 }
0x184d   : > { %v13166_v17 = vand.u32 4294901760, %v13165_v1 }
0x184f   : > { %v13167_v30 = vsub.f32 %v13165_v1, %v13166_v17 }
0x1851   : > { %v13168_v52 = vand.u32 4294901760, %v13167_v30 }
0x1856   : > { %v19293_v59 = vpop.eup %19292 }
0x1857   : > { %v13022_v26 = vsel %vm3173_vm1, %v19293_v59, 0.0 }
0x1858   : > { %v19295_v47 = vpop.eup %19294  ;;  %13023 = vadd.xlane.f32.xlu0 %v13022_v26  ;;  %v23342_v26 = vand.u32 4294901760, %v23320_v11 }
0x1859   : > { %v13019_v18 = vsel %vm3173_vm1, %v19295_v47, 0.0 }
0x185c   : > { %13020 = vadd.xlane.f32.xlu0 %v13019_v18  ;;  %v13684_v18 = vsub.f32 %v23305_v63, %v23329_v48 }
0x1872   : > { %13031 = vrot.lane.b32.xlu0 %v22917_v20, %s19714_s3 }
0x1876   : > { %13553 = vrot.lane.b32.xlu0 %v12476_v6, %s19713_s25 }
0x18e1   : > { %v13024_v42 = vpop.xlane.xlu0 %13023 }
0x18e2   : > { %19296 = vrcp.f32 %v13024_v42  ;;  %v13698_v42 = vsub.f32 %v23311_v13, %v23335_v37 }
0x18e4   : > { %v13699_v30 = vand.u32 4294901760, %v13698_v42 }
0x18e5   : > { %v13021_v21 = vpop.xlane.xlu0 %13020 }
0x18e6   : > { %19298 = vrcp.f32 %v13021_v21  ;;  %v23360_v21 = vsub.f32 %v9308_v40, %v23326_v35 }
0x18e9   : > { %v13032_v55 = vpop.permute.xlu0 %13031 }
0x18ea   : > { %v13070_v43 = vand.u32 4294901760, %v13032_v55 }
0x18ec   : > { %v13158_v25 = vsub.f32 %v13032_v55, %v13070_v43  ;;  %18836 = vmatprep.subr.mxu0 %v13070_v43  ;;  %v9306_v55 = vld [vmem:[#allocation16 + $0x30] sm:$0xff] }
0x18ed   : > { %18837 = vmatpush3.msra.mxu0 %v13070_v43 }
0x18ee   : > { %18838 = vmatprep.subr.mxu0 %v13073_v56  ;;  %v13159_v19 = vand.u32 4294901760, %v13158_v25 }
0x18ef   : > { %v19297_v33 = vpop.eup %19296  ;;  %18839 = vmatpush3.msra.mxu0 %v13073_v56 }
0x18f0   : > { %v13028_v20 = vmul.f32 %v19297_v33, %v19293_v59  ;;  %18850 = vmatprep.subr.mxu0 %v13158_v25  ;;  %v13160_v53 = vsub.f32 %v13158_v25, %v13159_v19  ;;  %v23339_v59 = vand.u32 4294901760, %v23317_v4  ;;  %v13712_v33 = vsub.f32 %v23320_v11, %v23342_v26 }
0x18f2   : > { %v13161_v36 = vand.u32 4294901760, %v13160_v53  ;;  %v13039_v6 = vsel %vm3173_vm1, %v13028_v20, 0  ;;  %v9304_v53 = vld [vmem:[#allocation16 + $0x20] sm:$0xff] }
0x18f3   : > { %v19299_v14 = vpop.eup %19298  ;;  %v13118_v39 = vand.u32 4294901760, %v13039_v6 }
0x18f4   : > { %18843 = vmatprep.subr.mxu1 %v13161_v36  ;;  %v13026_v29 = vmul.f32 %v19299_v14, %v19295_v47  ;;  %v23346_v47 = vsub.f32 %v9309_v10, %v23314_v0 }
0x18f5   : > { %18844 = vmatpush3.msra.mxu1 %v13161_v36  ;;  %v13119_v57 = vsub.f32 %v13039_v6, %v13118_v39  ;;  %v23374_v6 = vand.u32 4294901760, %v9306_v55 }
0x18f6   : > { %18845 = vmatprep.subr.mxu1 %v13168_v52  ;;  %v13036_v32 = vsel %vm3173_vm1, %v13026_v29, 0  ;;  %v23368_v20 = vand.u32 4294901760, %v23346_v47  ;;  %v9303_v29 = vld [vmem:[#allocation16 + $0x18] sm:$0xff] }
0x18f7   : > { %18846 = vmatpush3.msra.mxu1 %v13168_v52  ;;  %v13108_v51 = vand.u32 4294901760, %v13036_v32  ;;  %v13120_v8 = vand.u32 4294901760, %v13119_v57  ;;  %v23381_v52 = vand.u32 4294901760, %v23360_v21 }
0x18f8   : > { %18857 = vmatprep.subr.mxu1 %v13070_v43 }
0x18f9   : > { %18847 = vmatprep.mubr.f32.mxu1 %v13108_v51  ;;  %v13109_v46 = vsub.f32 %v13036_v32, %v13108_v51  ;;  %v13121_v50 = vsub.f32 %v13119_v57, %v13120_v8  ;;  %v13733_v44 = vsub.f32 %v23360_v21, %v23381_v52 }
0x18fa   : > { %18848 = vmatmul.mubr.f32.vlgmr.msra.gmra.mxu1 %v13118_v39 }
0x18fb   : > { %18858 = vmatpush3.msra.mxu1 %v13070_v43  ;;  %v13110_v54 = vand.u32 4294901760, %v13109_v46  ;;  %v13122_v9 = vand.u32 4294901760, %v13121_v50  ;;  %v13713_v50 = vand.u32 4294901760, %v13712_v33 }
0x18fc   : > { %18859 = vmatprep.subr.mxu1 %v13073_v56 }
0x18fd   : > { %18860 = vmatpush3.msra.mxu1 %v13073_v56  ;;  %18861 = vmatprep.mubr.f32.mxu1 %v13110_v54  ;;  %v13111_v61 = vsub.f32 %v13109_v46, %v13110_v54  ;;  %v9302_v54 = vld [vmem:[#allocation16 + $0x10] sm:$0xff] }
0x18fe   : > { %18871 = vmatprep.subr.mxu1 %v13070_v43  ;;  %18862 = vmatmul.mubr.f32.vlgmr.msra.gmra.mxu1 %v13120_v8  ;;  %v23391_v8 = vand.u32 4294901760, %v9304_v53  ;;  %v23415_v3 = vand.u32 4294901760, %v9302_v54 }
0x18ff   : > { %18872 = vmatpush3.msra.mxu1 %v13070_v43  ;;  %18875 = vmatprep.mubr.f32.mxu1 %v13108_v51  ;;  %v13112_v31 = vand.u32 4294901760, %v13111_v61  ;;  %v9305_v43 = vld [vmem:[#allocation16 + $0x28] sm:$0xff] }
0x1900   : > { %18873 = vmatprep.subr.mxu1 %v13073_v56  ;;  %v23376_v14 = vand.u32 4294901760, %v9305_v43  ;;  %v23413_v22 = vsub.f32 %v9304_v53, %v23391_v8 }
0x1901   : > { %18874 = vmatpush3.msra.mxu1 %v13073_v56  ;;  %18840 = vmatprep.mubr.f32.mxu0 %v13112_v31  ;;  %v23356_v56 = vand.u32 4294901760, %v23324_v15 }
0x1902   : > { %18841 = vmatmul.mubr.f32.vlgmr.msra.gmra.mxu0 %v13122_v9  ;;  %18876 = vmatmul.mubr.f32.vlgmr.msra.gmra.mxu1 %v13118_v39  ;;  %v23401_v31 = vsub.f32 %v9305_v43, %v23376_v14  ;;  %v23403_v9 = vand.u32 4294901760, %v9303_v29 }
0x1903   : > { %18851 = vmatpush3.msra.mxu0 %v13158_v25  ;;  %18854 = vmatprep.mubr.f32.mxu0 %v13109_v46  ;;  %v13685_v25 = vand.u32 4294901760, %v13684_v18  ;;  %v13726_v46 = vsub.f32 %v23346_v47, %v23368_v20 }
0x1904   : > { %18852 = vmatprep.subr.mxu0 %v13165_v1  ;;  %v23421_v40 = vand.u32 4294901760, %v23401_v31  ;;  %v23425_v18 = vsub.f32 %v9303_v29, %v23403_v9 }
0x1905   : > { %18853 = vmatpush3.msra.mxu0 %v13165_v1  ;;  %v9307_v1 = vld [vmem:[#allocation16 + $0x38] sm:$0xff]  ;;  %18913 = vmatprep.subr.mxu1 %v13685_v25  ;;  %v13727_v2 = vand.u32 4294901760, %v13726_v46 }
0x1906   : > { %18864 = vmatprep.subr.mxu0 %v13159_v19  ;;  %18855 = vmatmul.mubr.f32.vlgmr.msra.gmra.mxu0 %v13119_v57  ;;  %v23372_v36 = vand.u32 4294901760, %v9307_v1  ;;  %25501 = vst [vmem:[#allocation56_spill] sm:$0xff] %v23421_v40 }
0x1907   : > { %18865 = vmatpush3.msra.mxu0 %v13159_v19  ;;  %18868 = vmatprep.mubr.f32.mxu0 %v13108_v51  ;;  %v13705_v19 = vsub.f32 %v23317_v4, %v23339_v59  ;;  %v23389_v51 = vsub.f32 %v9306_v55, %v23374_v6  ;;  %v23435_v55 = vsub.f32 %v9302_v54, %v23415_v3 }
0x1908   : > { %18866 = vmatprep.subr.mxu0 %v13166_v17  ;;  %18914 = vmatpush3.msra.mxu1 %v13685_v25  ;;  %v23385_v32 = vsub.f32 %v9307_v1, %v23372_v36  ;;  %v23431_v1 = vand.u32 4294901760, %v23413_v22  ;;  %v13754_v25 = vsub.f32 %v23401_v31, %v23421_v40 }
0x1909   : > { %18867 = vmatpush3.msra.mxu0 %v13166_v17  ;;  %v13692_v17 = vand.u32 4294901760, %v13691_v34  ;;  %v13706_v57 = vand.u32 4294901760, %v13705_v19  ;;  %v23409_v5 = vand.u32 4294901760, %v23389_v51  ;;  %v13734_v34 = vand.u32 4294901760, %v13733_v44 }
0x190a   : > { %18869 = vmatmul.mubr.f32.vlgmr.msra.gmra.mxu0 %v13118_v39  ;;  %18878 = vmatprep.subr.mxu0 %v23292_v58  ;;  %v13719_v39 = vsub.f32 %v23324_v15, %v23356_v56  ;;  %v23397_v61 = vand.u32 4294901760, %v23385_v32  ;;  %25502 = vst [vmem:[#allocation34_spill] sm:$0xff] %v23431_v1  ;;  %v13761_v33 = vsub.f32 %v23413_v22, %v23431_v1  ;;  %v23448_v53 = vand.u32 4294901760, %v23435_v55 }
0x190b   : > { %18879 = vmatpush3.msra.mxu0 %v23292_v58  ;;  %18915 = vmatprep.subr.mxu1 %v13692_v17  ;;  %25500 = vst [vmem:[#allocation46_spill] sm:$0xff] %v23409_v5  ;;  %v13747_v42 = vsub.f32 %v23389_v51, %v23409_v5 }
0x190c   : > { %18880 = vmatprep.subr.mxu0 %v23294_v16  ;;  %18916 = vmatpush3.msra.mxu1 %v13692_v17  ;;  %25499 = vst [vmem:[#allocation55_spill] sm:$0xff] %v23397_v61  ;;  %v13720_v23 = vand.u32 4294901760, %v13719_v39  ;;  %v13740_v10 = vsub.f32 %v23385_v32, %v23397_v61  ;;  %v23441_v17 = vand.u32 4294901760, %v23425_v18  ;;  %25504 = vst [vmem:[#allocation39_spill] sm:$0xff] %v23448_v53  ;;  %v13762_v29 = vand.u32 4294901760, %v13761_v33 }
0x190d   : > { %18881 = vmatpush3.msra.mxu0 %v23294_v16  ;;  %18917 = vmatprep.subr.mxu1 %v13699_v30  ;;  %v13748_v19 = vand.u32 4294901760, %v13747_v42 }
0x190e   : > { %18882 = vmatprep.subr.mxu0 %v23296_v62  ;;  %18918 = vmatpush3.msra.mxu1 %v13699_v30  ;;  %v13741_v43 = vand.u32 4294901760, %v13740_v10  ;;  %25503 = vst [vmem:[#allocation52_spill] sm:$0xff] %v23441_v17  ;;  %v13755_v30 = vand.u32 4294901760, %v13754_v25  ;;  %v13768_v39 = vsub.f32 %v23425_v18, %v23441_v17 }
0x190f   : > { %18883 = vmatpush3.msra.mxu0 %v23296_v62  ;;  %18919 = vmatprep.subr.mxu1 %v13706_v57 }
0x1910   : > { %18884 = vmatprep.subr.mxu0 %v23298_v28  ;;  %18920 = vmatpush3.msra.mxu1 %v13706_v57  ;;  %v13775_v57 = vsub.f32 %v23435_v55, %v23448_v53  ;;  %v13769_v46 = vand.u32 4294901760, %v13768_v39 }
0x1911   : > { %18885 = vmatpush3.msra.mxu0 %v23298_v28  ;;  %18921 = vmatprep.subr.mxu1 %v13713_v50 }
0x1912   : > { %18886 = vmatprep.subr.mxu0 %v23300_v7  ;;  %18922 = vmatpush3.msra.mxu1 %v13713_v50  ;;  %v13776_v54 = vand.u32 4294901760, %v13775_v57  ;;  %v9301_v50 = vld [vmem:[#allocation16 + $0x8] sm:$0xff] }
0x1913   : > { %18887 = vmatpush3.msra.mxu0 %v23300_v7  ;;  %18923 = vmatprep.subr.mxu1 %v13720_v23  ;;  %v23460_v44 = vand.u32 4294901760, %v9301_v50 }
0x1914   : > { %18888 = vmatprep.subr.mxu0 %v23302_v45  ;;  %18924 = vmatpush3.msra.mxu1 %v13720_v23 }
0x1915   : > { %18889 = vmatpush3.msra.mxu0 %v23302_v45  ;;  %18925 = vmatprep.subr.mxu1 %v13727_v2  ;;  %v23463_v10 = vsub.f32 %v9301_v50, %v23460_v44 }
0x1916   : > { %18890 = vmatprep.subr.mxu0 %v23314_v0  ;;  %18926 = vmatpush3.msra.mxu1 %v13727_v2  ;;  %v9300_v2 = vld [vmem:[#allocation16] sm:$0xff] }
0x1917   : > { %18891 = vmatpush3.msra.mxu0 %v23314_v0  ;;  %18927 = vmatprep.subr.mxu1 %v13734_v34 }
0x1918   : > { %18892 = vmatprep.subr.mxu0 %v23326_v35  ;;  %18928 = vmatpush3.msra.mxu1 %v13734_v34  ;;  %v23465_v34 = vand.u32 4294901760, %v9300_v2 }
0x1919   : > { %18893 = vmatpush3.msra.mxu0 %v23326_v35  ;;  %18929 = vmatprep.subr.mxu1 %v13741_v43 }
0x191a   : > { %18894 = vmatprep.subr.mxu0 %v23372_v36  ;;  %18930 = vmatpush3.msra.mxu1 %v13741_v43  ;;  %v23470_v43 = vand.u32 4294901760, %v23463_v10  ;;  %v23473_v25 = vsub.f32 %v9300_v2, %v23465_v34 }
0x191b   : > { %18895 = vmatpush3.msra.mxu0 %v23372_v36  ;;  %18931 = vmatprep.subr.mxu1 %v13748_v19 }
0x191c   : > { %18896 = vmatprep.subr.mxu0 %v23374_v6  ;;  %18932 = vmatpush3.msra.mxu1 %v13748_v19  ;;  %25505 = vst [vmem:[#allocation41_spill] sm:$0xff] %v23470_v43  ;;  %v13782_v19 = vsub.f32 %v23463_v10, %v23470_v43  ;;  %v23480_v33 = vand.u32 4294901760, %v23473_v25 }
0x191d   : > { %18897 = vmatpush3.msra.mxu0 %v23374_v6  ;;  %18933 = vmatprep.subr.mxu1 %v13755_v30 }
0x191e   : > { %18898 = vmatprep.subr.mxu0 %v23376_v14  ;;  %18934 = vmatpush3.msra.mxu1 %v13755_v30  ;;  %25506 = vst [vmem:[#allocation42_spill] sm:$0xff] %v23480_v33  ;;  %v13789_v57 = vsub.f32 %v23473_v25, %v23480_v33 }
0x191f   : > { %18899 = vmatpush3.msra.mxu0 %v23376_v14  ;;  %18935 = vmatprep.subr.mxu1 %v13762_v29 }
0x1920   : > { %18900 = vmatprep.subr.mxu0 %v23391_v8  ;;  %18936 = vmatpush3.msra.mxu1 %v13762_v29  ;;  %v13783_v29 = vand.u32 4294901760, %v13782_v19 }
0x1921   : > { %18901 = vmatpush3.msra.mxu0 %v23391_v8  ;;  %18937 = vmatprep.subr.mxu1 %v13769_v46 }
0x1922   : > { %18902 = vmatprep.subr.mxu0 %v23403_v9  ;;  %18938 = vmatpush3.msra.mxu1 %v13769_v46 }
0x1923   : > { %18903 = vmatpush3.msra.mxu0 %v23403_v9  ;;  %18939 = vmatprep.subr.mxu1 %v13776_v54 }
0x1924   : > { %18904 = vmatprep.subr.mxu0 %v23415_v3  ;;  %18940 = vmatpush3.msra.mxu1 %v13776_v54  ;;  %v13790_v54 = vand.u32 4294901760, %v13789_v57 }
0x1925   : > { %18905 = vmatpush3.msra.mxu0 %v23415_v3  ;;  %18941 = vmatprep.subr.mxu1 %v13783_v29 }
0x1926   : > { %18906 = vmatprep.subr.mxu0 %v23460_v44  ;;  %18942 = vmatpush3.msra.mxu1 %v13783_v29 }
0x1927   : > { %18907 = vmatpush3.msra.mxu0 %v23460_v44  ;;  %18943 = vmatprep.subr.mxu1 %v13790_v54 }
0x1928   : > { %18908 = vmatprep.subr.mxu0 %v23465_v34  ;;  %18944 = vmatpush3.msra.mxu1 %v13790_v54 }
0x1929   : > { %18909 = vmatpush3.msra.mxu0 %v23465_v34  ;;  %18983 = vmatprep.subr.mxu1 %v23292_v58 }
0x192a   : > { %18948 = vmatprep.subr.mxu0 %v23305_v63 }
0x19ba   : > { %v18849_v23 = vpop.f32.mrf.mxu1 }
0x19bc   : > { %v13205_v42 = vpop.f32.mrf.mxu1 }
0x19be   : > { %v18863_v30 = vpop.f32.mrf.mxu1 }
0x19c0   : > { %v13369_v2 = vpop.f32.mrf.mxu1 }
0x19c2   : > { %v18842_v39 = vpop.f32.mrf.mxu0  ;;  %v18877_v19 = vpop.f32.mrf.mxu1 }
0x19c3   : > { %v13212_v50 = vadd.f32 %v18849_v23, %v18842_v39 }
0x19c4   : > { %v13114_v46 = vpop.f32.mrf.mxu0  ;;  %v13533_v23 = vpop.f32.mrf.mxu1 }
0x19c5   : > { %v13206_v27 = vadd.f32 %v13205_v42, %v13114_v46  ;;  %v13554_v46 = vpop.permute.xlu0 %13553 }
0x19c6   : > { %v18856_v38 = vpop.f32.mrf.mxu0 }
0x19c7   : > { %v13295_v43 = vadd.f32 %v18856_v38, %v13212_v50  ;;  %v13546_v38 = vpop.permute.xlu1 %13545 }
0x19c8   : > { %v13287_v12 = vpop.f32.mrf.mxu0 }
0x19c9   : > { %v13288_v53 = vadd.f32 %v13287_v12, %v13206_v27  ;;  %v13378_v17 = vadd.f32 %v18863_v30, %v13295_v43 }
0x19ca   : > { %v18870_v1 = vpop.f32.mrf.mxu0 }
0x19cb   : > { %v13461_v40 = vadd.f32 %v18870_v1, %v13378_v17  ;;  %v13370_v33 = vadd.f32 %v13369_v2, %v13288_v53  ;;  %v13548_v42 = vpop.permute.xlu1 %13547 }
0x19cc   : > { %v13454_v5 = vpop.f32.mrf.mxu0  ;;  %v13568_v12 = vsel %vm2652_vm0, %v23052_v60, %v13548_v42 }
0x19cd   : > { %v13540_v61 = vadd.f32 %v18877_v19, %v13461_v40  ;;  %v13455_v57 = vadd.f32 %v13454_v5, %v13370_v33  ;;  %v13567_v40 = vsel %vm2652_vm0, %v23054_v41, %v13546_v38 }
0x19ce   : > { %v13569_v17 = vsel %vm6906_vm2, %v13567_v40, %v13554_v46  ;;  %v14332_v46 = vld [vmem:[#allocation17 + $0xd8] sm:$0xff] }
0x19cf   : > { %v13534_v39 = vadd.f32 %v13533_v23, %v13455_v57  ;;  %13563 = vrot.lane.b32.xlu1 %v13540_v61, %s19712_s7  ;;  %v13556_v29 = vpop.permute.xlu1 %13555  ;;  %v14334_v23 = vld [vmem:[#allocation17 + $0xe8] sm:$0xff] }
0x19d0   : > { %v13570_v27 = vsel %vm6906_vm2, %v13568_v12, %v13556_v29  ;;  %v23657_v42 = vand.u32 4294901760, %v14334_v23  ;;  %v14333_v29 = vld [vmem:[#allocation17 + $0xe0] sm:$0xff]  ;;  %v14331_v12 = vld [vmem:[#allocation17 + $0xd0] sm:$0xff] }
0x19d1   : > { %13561 = vrot.lane.b32.xlu0 %v13534_v39, %s19712_s7  ;;  %v23663_v40 = vand.u32 4294901760, %v14331_v12  ;;  %s25536_s7 = sld [smem:[#allocation89_spill]] }
0x1a41   : > { %v13564_v1 = vpop.permute.xlu1 %13563 }
0x1a42   : > { %v13572_v5 = vsel %vm6909_vm3, %v13570_v27, %v13564_v1  ;;  %v23659_v27 = vand.u32 4294901760, %v14333_v29  ;;  %v23661_v1 = vand.u32 4294901760, %v14332_v46 }
0x1a43   : > { %v23495_v61 = vand.u32 4294901760, %v13572_v5  ;;  %v13562_v53 = vpop.permute.xlu0 %13561 }
0x1a44   : > { %v13571_v43 = vsel %vm6909_vm3, %v13569_v17, %v13562_v53  ;;  %v23672_v53 = vsub.f32 %v14334_v23, %v23657_v42 }
0x1a45   : > { %v23499_v33 = vsub.f32 %v13572_v5, %v23495_v61  ;;  %v23501_v30 = vand.u32 4294901760, %v13571_v43  ;;  %v14330_v5 = vld [vmem:[#allocation17 + $0xc8] sm:$0xff] }
0x1a47   : > { %v13672_v60 = vand.u32 4294901760, %v23499_v33  ;;  %v13661_v54 = vsub.f32 %v13571_v43, %v23501_v30  ;;  %18945 = vmatprep.mubr.f32.mxu1 %v23501_v30  ;;  %v23674_v43 = vand.u32 4294901760, %v14330_v5 }
0x1a48   : > { %18946 = vmatmul.mubr.f32.vlgmr.msra.gmra.mxu1 %v23495_v61 }
0x1a49   : > { %18984 = vmatpush3.msra.mxu1 %v23292_v58  ;;  %v13662_v41 = vand.u32 4294901760, %v13661_v54  ;;  %v13673_v50 = vsub.f32 %v23499_v33, %v13672_v60 }
0x1a4a   : > { %18985 = vmatprep.subr.mxu1 %v23294_v16 }
0x1a4b   : > { %18986 = vmatpush3.msra.mxu1 %v23294_v16  ;;  %19015 = vmatprep.mubr.f32.mxu1 %v13662_v41  ;;  %v13663_v2 = vsub.f32 %v13661_v54, %v13662_v41  ;;  %v13674_v57 = vand.u32 4294901760, %v13673_v50  ;;  %v25040_v50 = vand.u32 4294901760, %v23672_v53 }
0x1a4c   : > { %18987 = vmatprep.subr.mxu1 %v23296_v62 }
0x1a4d   : > { %18988 = vmatpush3.msra.mxu1 %v23296_v62  ;;  %v13664_v19 = vand.u32 4294901760, %v13663_v2  ;;  %v23691_v2 = vsub.f32 %v14330_v5, %v23674_v43 }
0x1a4e   : > { %18989 = vmatprep.subr.mxu1 %v23298_v28 }
0x1a4f   : > { %18990 = vmatpush3.msra.mxu1 %v23298_v28  ;;  %18910 = vmatprep.mubr.f32.mxu0 %v13664_v19 }
0x1a50   : > { %18991 = vmatprep.subr.mxu1 %v23300_v7  ;;  %18911 = vmatmul.mubr.f32.vlgmr.msra.gmra.mxu0 %v13674_v57 }
0x1a51   : > { %18949 = vmatpush3.msra.mxu0 %v23305_v63  ;;  %18992 = vmatpush3.msra.mxu1 %v23300_v7  ;;  %v25513_v63 = vmov 0.0  }
0x1a52   : > { %18950 = vmatprep.subr.mxu0 %v23308_v49  ;;  %18980 = vmatprep.mubr.f32.mxu0 %v13661_v54 }
0x1a53   : > { %18993 = vmatprep.subr.mxu1 %v23302_v45  ;;  %18951 = vmatpush3.msra.mxu0 %v23308_v49  ;;  %v25514_v49 = vld [vmem:[#allocation41_spill] sm:$0xff] }
0x1a54   : > { %18994 = vmatpush3.msra.mxu1 %v23302_v45  ;;  %18952 = vmatprep.subr.mxu0 %v23311_v13 }
0x1a55   : > { %18995 = vmatprep.subr.mxu1 %v23314_v0  ;;  %18953 = vmatpush3.msra.mxu0 %v23311_v13  ;;  %v25515_v13 = vld [vmem:[#allocation42_spill] sm:$0xff] }
0x1a56   : > { %18996 = vmatpush3.msra.mxu1 %v23314_v0  ;;  %18954 = vmatprep.subr.mxu0 %v23317_v4 }
0x1a57   : > { %18997 = vmatprep.subr.mxu1 %v23326_v35  ;;  %18955 = vmatpush3.msra.mxu0 %v23317_v4  ;;  %v16516_v4 = vld [vmem:[%s24808_s13] ss:$0 sm:$0xff] }
0x1a58   : > { %18998 = vmatpush3.msra.mxu1 %v23326_v35  ;;  %18956 = vmatprep.subr.mxu0 %v23320_v11 }
0x1a59   : > { %18999 = vmatprep.subr.mxu1 %v23372_v36  ;;  %18957 = vmatpush3.msra.mxu0 %v23320_v11 }
0x1a5a   : > { %19000 = vmatpush3.msra.mxu1 %v23372_v36  ;;  %18958 = vmatprep.subr.mxu0 %v23324_v15 }
0x1a5b   : > { %19001 = vmatprep.subr.mxu1 %v23374_v6  ;;  %18959 = vmatpush3.msra.mxu0 %v23324_v15 }
0x1a5c   : > { %19002 = vmatpush3.msra.mxu1 %v23374_v6  ;;  %18960 = vmatprep.subr.mxu0 %v23346_v47 }
0x1a5d   : > { %19003 = vmatprep.subr.mxu1 %v23376_v14  ;;  %18961 = vmatpush3.msra.mxu0 %v23346_v47 }
0x1a5e   : > { %19004 = vmatpush3.msra.mxu1 %v23376_v14  ;;  %18962 = vmatprep.subr.mxu0 %v23360_v21 }
0x1a5f   : > { %19005 = vmatprep.subr.mxu1 %v23391_v8  ;;  %18963 = vmatpush3.msra.mxu0 %v23360_v21 }
0x1a60   : > { %19006 = vmatpush3.msra.mxu1 %v23391_v8  ;;  %18964 = vmatprep.subr.mxu0 %v23385_v32 }
0x1a61   : > { %19007 = vmatprep.subr.mxu1 %v23403_v9  ;;  %18965 = vmatpush3.msra.mxu0 %v23385_v32 }
0x1a62   : > { %19008 = vmatpush3.msra.mxu1 %v23403_v9  ;;  %18966 = vmatprep.subr.mxu0 %v23389_v51 }
0x1a63   : > { %19009 = vmatprep.subr.mxu1 %v23415_v3  ;;  %18967 = vmatpush3.msra.mxu0 %v23389_v51 }
0x1a64   : > { %19010 = vmatpush3.msra.mxu1 %v23415_v3  ;;  %18968 = vmatprep.subr.mxu0 %v23401_v31 }
0x1a65   : > { %19011 = vmatprep.subr.mxu1 %v23460_v44  ;;  %18969 = vmatpush3.msra.mxu0 %v23401_v31 }
0x1a66   : > { %19012 = vmatpush3.msra.mxu1 %v23460_v44  ;;  %18970 = vmatprep.subr.mxu0 %v23413_v22 }
0x1a67   : > { %19013 = vmatprep.subr.mxu1 %v23465_v34  ;;  %18971 = vmatpush3.msra.mxu0 %v23413_v22 }
0x1a68   : > { %19014 = vmatpush3.msra.mxu1 %v23465_v34  ;;  %18972 = vmatprep.subr.mxu0 %v23425_v18 }
0x1a69   : > { %19016 = vmatmul.mubr.f32.vlgmr.msra.gmra.mxu1 %v13672_v60  ;;  %19053 = vmatprep.subr.mxu1 %v23292_v58  ;;  %v23684_v60 = vsub.f32 %v14331_v12, %v23663_v40  ;;  %v14323_v12 = vld [vmem:[#allocation17 + $0x90] sm:$0xff] }
0x1a6a   : > { %18973 = vmatpush3.msra.mxu0 %v23425_v18  ;;  %19054 = vmatpush3.msra.mxu1 %v23292_v58  ;;  %v25507_v58 = vld [vmem:[#allocation55_spill] sm:$0xff]  ;;  %v25516_v18 = vld [vmem:[#allocation45_spill] sm:$0xff] }
0x1a6b   : > { %19085 = vmatprep.mubr.f32.mxu1 %v23501_v30  ;;  %18974 = vmatprep.subr.mxu0 %v23435_v55 }
0x1a6c   : > { %19055 = vmatprep.subr.mxu1 %v23294_v16  ;;  %18975 = vmatpush3.msra.mxu0 %v23435_v55 }
0x1a6d   : > { %19056 = vmatpush3.msra.mxu1 %v23294_v16  ;;  %18976 = vmatprep.subr.mxu0 %v23463_v10  ;;  %v25508_v16 = vld [vmem:[#allocation46_spill] sm:$0xff] }
0x1a6e   : > { %19057 = vmatprep.subr.mxu1 %v23296_v62  ;;  %18977 = vmatpush3.msra.mxu0 %v23463_v10 }
0x1a6f   : > { %19058 = vmatpush3.msra.mxu1 %v23296_v62  ;;  %18978 = vmatprep.subr.mxu0 %v23473_v25  ;;  %v25509_v62 = vld [vmem:[#allocation56_spill] sm:$0xff] }
0x1a70   : > { %19059 = vmatprep.subr.mxu1 %v23298_v28  ;;  %18979 = vmatpush3.msra.mxu0 %v23473_v25  ;;  %v14335_v25 = vld [vmem:[#allocation17 + $0xf0] sm:$0xff] }
0x1a71   : > { %19060 = vmatpush3.msra.mxu1 %v23298_v28  ;;  %18981 = vmatmul.mubr.f32.vlgmr.msra.gmra.mxu0 %v23499_v33  ;;  %v25510_v28 = vld [vmem:[#allocation34_spill] sm:$0xff]  ;;  %v23655_v38 = vand.u32 4294901760, %v14335_v25  ;;  %v23678_v33 = vsub.f32 %v14333_v29, %v23659_v27 }
0x1a72   : > { %19018 = vmatprep.subr.mxu0 %v23329_v48  ;;  %19061 = vmatprep.subr.mxu1 %v23300_v7 }
0x1a73   : > { %19019 = vmatpush3.msra.mxu0 %v23329_v48  ;;  %19050 = vmatprep.mubr.f32.mxu0 %v23501_v30  ;;  %v23681_v30 = vsub.f32 %v14332_v46, %v23661_v1  ;;  %v25039_v19 = vand.u32 4294901760, %v23678_v33 }
0x1a74   : > { %19062 = vmatpush3.msra.mxu1 %v23300_v7  ;;  %19020 = vmatprep.subr.mxu0 %v23332_v24  ;;  %v25511_v7 = vld [vmem:[#allocation52_spill] sm:$0xff] }
0x1a75   : > { %19063 = vmatprep.subr.mxu1 %v23302_v45  ;;  %19021 = vmatpush3.msra.mxu0 %v23332_v24  ;;  %v25037_v57 = vand.u32 4294901760, %v23681_v30 }
0x1a76   : > { %19064 = vmatpush3.msra.mxu1 %v23302_v45  ;;  %19022 = vmatprep.subr.mxu0 %v23335_v37  ;;  %v25512_v45 = vld [vmem:[#allocation39_spill] sm:$0xff] }
0x1a77   : > { %19065 = vmatprep.subr.mxu1 %v23314_v0  ;;  %19023 = vmatpush3.msra.mxu0 %v23335_v37 }
0x1a78   : > { %19066 = vmatpush3.msra.mxu1 %v23314_v0  ;;  %19024 = vmatprep.subr.mxu0 %v23339_v59 }
0x1a79   : > { %19067 = vmatprep.subr.mxu1 %v23326_v35  ;;  %19025 = vmatpush3.msra.mxu0 %v23339_v59 }
0x1a7a   : > { %19068 = vmatpush3.msra.mxu1 %v23326_v35  ;;  %19026 = vmatprep.subr.mxu0 %v23342_v26 }
0x1a7b   : > { %19069 = vmatprep.subr.mxu1 %v23372_v36  ;;  %19027 = vmatpush3.msra.mxu0 %v23342_v26 }
0x1a7c   : > { %19070 = vmatpush3.msra.mxu1 %v23372_v36  ;;  %19028 = vmatprep.subr.mxu0 %v23356_v56 }
0x1a7d   : > { %19071 = vmatprep.subr.mxu1 %v23374_v6  ;;  %19029 = vmatpush3.msra.mxu0 %v23356_v56 }
0x1a7e   : > { %19072 = vmatpush3.msra.mxu1 %v23374_v6  ;;  %19030 = vmatprep.subr.mxu0 %v23368_v20 }
0x1a7f   : > { %19073 = vmatprep.subr.mxu1 %v23376_v14  ;;  %19031 = vmatpush3.msra.mxu0 %v23368_v20 }
0x1a80   : > { %19074 = vmatpush3.msra.mxu1 %v23376_v14  ;;  %19032 = vmatprep.subr.mxu0 %v23381_v52 }
0x1a81   : > { %19075 = vmatprep.subr.mxu1 %v23391_v8  ;;  %19033 = vmatpush3.msra.mxu0 %v23381_v52 }
0x1a82   : > { %19076 = vmatpush3.msra.mxu1 %v23391_v8  ;;  %19034 = vmatprep.subr.mxu0 %v25507_v58 }
0x1a83   : > { %19077 = vmatprep.subr.mxu1 %v23403_v9  ;;  %19035 = vmatpush3.msra.mxu0 %v25507_v58  ;;  %v25036_v58 = vand.u32 4294901760, %v23684_v60 }
0x1a84   : > { %19078 = vmatpush3.msra.mxu1 %v23403_v9  ;;  %19036 = vmatprep.subr.mxu0 %v25508_v16 }
0x1a85   : > { %19079 = vmatprep.subr.mxu1 %v23415_v3  ;;  %19037 = vmatpush3.msra.mxu0 %v25508_v16 }
0x1a86   : > { %19080 = vmatpush3.msra.mxu1 %v23415_v3  ;;  %19038 = vmatprep.subr.mxu0 %v25509_v62 }
0x1a87   : > { %19081 = vmatprep.subr.mxu1 %v23460_v44  ;;  %19039 = vmatpush3.msra.mxu0 %v25509_v62 }
0x1a88   : > { %19082 = vmatpush3.msra.mxu1 %v23460_v44  ;;  %19040 = vmatprep.subr.mxu0 %v25510_v28  ;;  %v25517_v44 = vld [vmem:[#allocation44_spill] sm:$0xff] }
0x1a89   : > { %19083 = vmatprep.subr.mxu1 %v23465_v34  ;;  %19041 = vmatpush3.msra.mxu0 %v25510_v28  ;;  %v14483_v28 = vsub.f32 %v23672_v53, %v25040_v50 }
0x1a8a   : > { %19084 = vmatpush3.msra.mxu1 %v23465_v34  ;;  %19042 = vmatprep.subr.mxu0 %v25511_v7  ;;  %v14336_v34 = vld [vmem:[#allocation17 + $0xf8] sm:$0xff] }
0x1a8b   : > { %19086 = vmatmul.mubr.f32.vlgmr.msra.gmra.mxu1 %v23495_v61  ;;  %19043 = vmatpush3.msra.mxu0 %v25511_v7  ;;  %v23653_v39 = vand.u32 4294901760, %v14336_v34  ;;  %v25035_v7 = vand.u32 4294901760, %v23691_v2 }
0x1a8c   : > { %19044 = vmatprep.subr.mxu0 %v25512_v45  ;;  %14692 = vmatprep.mubr.f32.mxu1 %v25513_v63 }
0x1a8d   : > { %19045 = vmatpush3.msra.mxu0 %v25512_v45  ;;  %v23666_v17 = vsub.f32 %v14336_v34, %v23653_v39  ;;  %v14489_v45 = vsub.f32 %v23678_v33, %v25039_v19 }
0x1a8e   : > { %19046 = vmatprep.subr.mxu0 %v25514_v49 }
0x1a8f   : > { %19047 = vmatpush3.msra.mxu0 %v25514_v49  ;;  %v25043_v54 = vand.u32 4294901760, %v23666_v17  ;;  %v14495_v49 = vsub.f32 %v23681_v30, %v25037_v57 }
0x1a90   : > { %19048 = vmatprep.subr.mxu0 %v25515_v13 }
0x1a91   : > { %19049 = vmatpush3.msra.mxu0 %v25515_v13  ;;  %v14471_v16 = vsub.f32 %v23666_v17, %v25043_v54  ;;  %v14501_v13 = vsub.f32 %v23684_v60, %v25036_v58 }
0x1a92   : > { %19051 = vmatmul.mubr.f32.vlgmr.msra.gmra.mxu0 %v23495_v61  ;;  %v23669_v61 = vsub.f32 %v14335_v25, %v23655_v38  ;;  %14350 = vmatprep.subr.mxu0 %v23653_v39  ;;  %v14324_v25 = vld [vmem:[#allocation17 + $0x98] sm:$0xff] }
0x1a93   : > { %14445 = vmatprep.mubr.f32.mxu0 %v25513_v63  ;;  %14352 = vmatpush1.msra.mxu0 %v23655_v38  ;;  %v23759_v46 = vand.u32 4294901760, %v14324_v25 }
0x1a94   : > { %v25041_v41 = vand.u32 4294901760, %v23669_v61  ;;  %14354 = vmatprep.subr.mxu0 %v23657_v42 }
0x1a95   : > { %14356 = vmatpush1.msra.mxu0 %v23659_v27 }
0x1a96   : > { %v14477_v62 = vsub.f32 %v23669_v61, %v25041_v41  ;;  %14358 = vmatprep.subr.mxu0 %v23661_v1  ;;  %v14311_v41 = vld [vmem:[#allocation17 + $0x30] sm:$0xff] }
0x1a97   : > { %14360 = vmatpush1.msra.mxu0 %v23663_v40 }
0x1a98   : > { %14362 = vmatprep.subr.mxu0 %v23674_v43 }
0x1b08   : > { %v18947_v11 = vpop.f32.mrf.mxu1 }
0x1b0a   : > { %v13827_v37 = vpop.f32.mrf.mxu1 }
0x1b10   : > { %v18912_v0 = vpop.f32.mrf.mxu0 }
0x1b11   : > { %v13677_v35 = vadd.f32 %v18912_v0, %v16516_v4  ;;  %v14472_v0 = vand.u32 4294901760, %v14471_v16 }
0x1b12   : > { %v13666_v15 = vpop.f32.mrf.mxu0 }
0x1b13   : > { %v13667_v24 = vadd.f32 %v16516_v4, %v13666_v15  ;;  %v13834_v59 = vadd.f32 %v18947_v11, %v13677_v35  ;;  %v14478_v4 = vand.u32 4294901760, %v14477_v62  ;;  %v14484_v11 = vand.u32 4294901760, %v14483_v28  ;;  %14473 = vmatprep.subr.mxu1 %v14472_v0 }
0x1b14   : > { %v14507_v15 = vsub.f32 %v23691_v2, %v25035_v7  ;;  %v14490_v35 = vand.u32 4294901760, %v14489_v45  ;;  %v23769_v28 = vand.u32 4294901760, %v14323_v12  ;;  %v14322_v45 = vld [vmem:[#allocation17 + $0x88] sm:$0xff]  ;;  %v23777_v0 = vsub.f32 %v14324_v25, %v23759_v46  ;;  %v14313_v7 = vld [vmem:[#allocation17 + $0x40] sm:$0xff] }
0x1b15   : > { %v13828_v21 = vadd.f32 %v13827_v37, %v13667_v24  ;;  %14479 = vmatpush1.msra.mxu1 %v14478_v4  ;;  %v14502_v24 = vand.u32 4294901760, %v14501_v13  ;;  %v23779_v4 = vand.u32 4294901760, %v14322_v45  ;;  %v23882_v54 = vand.u32 4294901760, %v14313_v7 }
0x1b16   : > { %14485 = vmatprep.subr.mxu1 %v14484_v11  ;;  %v14508_v37 = vand.u32 4294901760, %v14507_v15  ;;  %v14321_v11 = vld [vmem:[#allocation17 + $0x80] sm:$0xff] }
0x1b17   : > { %14491 = vmatpush1.msra.mxu1 %v14490_v35  ;;  %25525 = vst [vmem:[#allocation43_spill] sm:$0xff] %v23882_v54 }
0x1b29   : > { %v19017_v26 = vpop.f32.mrf.mxu1 }
0x1b2b   : > { %v14033_v36 = vpop.f32.mrf.mxu1 }
0x1b31   : > { %v18982_v48 = vpop.f32.mrf.mxu0 }
0x1b32   : > { %v13945_v56 = vadd.f32 %v18982_v48, %v13834_v59  ;;  %v14496_v48 = vand.u32 4294901760, %v14495_v49 }
0x1b33   : > { %v13937_v47 = vpop.f32.mrf.mxu0 }
0x1b34   : > { %v13938_v20 = vadd.f32 %v13937_v47, %v13828_v21  ;;  %v14042_v6 = vadd.f32 %v19017_v26, %v13945_v56  ;;  %14497 = vmatprep.subr.mxu1 %v14496_v48 }
0x1b35   : > { %14503 = vmatpush1.msra.mxu1 %v14502_v24  ;;  %v23787_v24 = vsub.f32 %v14323_v12, %v23769_v28 }
0x1b36   : > { %v14034_v51 = vadd.f32 %v14033_v36, %v13938_v20  ;;  %14509 = vmatprep.subr.mxu1 %v14508_v37  ;;  %v14320_v37 = vld [vmem:[#allocation17 + $0x78] sm:$0xff] }
0x1b4b   : > { %v19087_v14 = vpop.f32.mrf.mxu1 }
0x1b4d   : > { %v14253_v22 = vpop.f32.mrf.mxu1 }
0x1b52   : > { %v19052_v52 = vpop.f32.mrf.mxu0 }
0x1b53   : > { %v14167_v32 = vadd.f32 %v19052_v52, %v14042_v6  ;;  %v14329_v6 = vld [vmem:[#allocation17 + $0xc0] sm:$0xff]  ;;  %v14328_v52 = vld [vmem:[#allocation17 + $0xb8] sm:$0xff] }
0x1b54   : > { %v14160_v8 = vpop.f32.mrf.mxu0 }
0x1b55   : > { %v14260_v31 = vadd.f32 %v19087_v14, %v14167_v32  ;;  %v14161_v9 = vadd.f32 %v14160_v8, %v14034_v51  ;;  %v23730_v14 = vand.u32 4294901760, %v14329_v6  ;;  %v23734_v51 = vand.u32 4294901760, %v14328_v52  ;;  %v14327_v8 = vld [vmem:[#allocation17 + $0xb0] sm:$0xff] }
0x1b57   : > { %v14254_v3 = vadd.f32 %v14253_v22, %v14161_v9  ;;  %v23649_v55 = vadd.f32 %v14260_v31, %v25516_v18  ;;  %v23737_v31 = vsub.f32 %v14329_v6, %v23730_v14  ;;  %v23739_v9 = vand.u32 4294901760, %v14327_v8  ;;  %v14326_v22 = vld [vmem:[#allocation17 + $0xa8] sm:$0xff]  ;;  %14364 = vmatpush1.msra.mxu0 %v23730_v14 }
0x1b58   : > { %v23745_v18 = vand.u32 4294901760, %v14326_v22  ;;  %14366 = vmatprep.subr.mxu0 %v23734_v51 }
0x1b59   : > { %14269 = vadd.xlane.f32.xlu1 %v23649_v55  ;;  %v14263_v10 = vadd.f32 %v14254_v3, %v25517_v44  ;;  %v23743_v3 = vsub.f32 %v14328_v52, %v23734_v51  ;;  %v25033_v44 = vand.u32 4294901760, %v23737_v31  ;;  %14368 = vmatpush1.msra.mxu0 %v23739_v9 }
0x1b5a   : > { %v23757_v29 = vsub.f32 %v14326_v22, %v23745_v18  ;;  %14370 = vmatprep.subr.mxu0 %v23745_v18  ;;  %v14318_v22 = vld [vmem:[#allocation17 + $0x68] sm:$0xff] }
0x1b5b   : > { %14267 = vadd.xlane.f32.xlu0 %v14263_v10  ;;  %v25032_v23 = vand.u32 4294901760, %v23743_v3  ;;  %v14513_v5 = vsub.f32 %v23737_v31, %v25033_v44 }
0x1b5c   : > { %v25029_v13 = vand.u32 4294901760, %v23757_v29 }
0x1b5d   : > { %v14519_v49 = vsub.f32 %v23743_v3, %v25032_v23  ;;  %v14514_v15 = vand.u32 4294901760, %v14513_v5  ;;  %v23808_v5 = vand.u32 4294901760, %v14320_v37 }
0x1b5f   : > { %14515 = vmatpush1.msra.mxu1 %v14514_v15 }
0x1be2   : > { %v14270_v59 = vpop.xlane.xlu1 %14269 }
0x1be3   : > { %v14272_v47 = vmul.f32 0.0078125, %v14270_v59  ;;  %v14520_v59 = vand.u32 4294901760, %v14519_v49 }
0x1be4   : > { %v14268_v26 = vpop.xlane.xlu0 %14267 }
0x1be5   : > { %v14271_v56 = vmul.f32 0.0078125, %v14268_v26  ;;  %v23726_v20 = vsub.f32 %v23649_v55, %v14272_v47  ;;  %v14325_v55 = vld [vmem:[#allocation17 + $0xa0] sm:$0xff]  ;;  %v14531_v26 = vsub.f32 %v23757_v29, %v25029_v13  ;;  %v25026_v47 = vand.u32 4294901760, %v23777_v0  ;;  %14521 = vmatprep.subr.mxu1 %v14520_v59 }
0x1be6   : > { %v23752_v34 = vand.u32 4294901760, %v14325_v55 }
0x1be7   : > { %v23723_v21 = vsub.f32 %v14263_v10, %v14271_v56  ;;  %v14276_v32 = vmul.f32 %v23726_v20, %v23726_v20  ;;  %v23750_v10 = vsub.f32 %v14327_v8, %v23739_v9  ;;  %v23795_v56 = vsub.f32 %v14322_v45, %v23779_v4  ;;  %v14317_v45 = vld [vmem:[#allocation17 + $0x60] sm:$0xff] }
0x1be8   : > { %v23767_v62 = vsub.f32 %v14325_v55, %v23752_v34  ;;  %14372 = vmatpush1.msra.mxu0 %v23752_v34  ;;  %v23802_v8 = vand.u32 4294901760, %v14321_v11  ;;  %v14532_v55 = vand.u32 4294901760, %v14531_v26  ;;  %v14543_v25 = vsub.f32 %v23777_v0, %v25026_v47  ;;  %v14316_v26 = vld [vmem:[#allocation17 + $0x58] sm:$0xff] }
0x1be9   : > { %v14275_v36 = vmul.f32 %v23723_v21, %v23723_v21  ;;  %v25030_v16 = vand.u32 4294901760, %v23750_v10  ;;  %14374 = vmatprep.subr.mxu0 %v23759_v46  ;;  %v25031_v12 = vand.u32 4294901760, %v23795_v56  ;;  %v23839_v44 = vand.u32 4294901760, %v14316_v26 }
0x1bea   : > { %v25027_v48 = vand.u32 4294901760, %v23767_v62  ;;  %14376 = vmatpush1.msra.mxu0 %v23769_v28  ;;  %v14544_v47 = vand.u32 4294901760, %v14543_v25  ;;  %v14314_v25 = vld [vmem:[#allocation17 + $0x48] sm:$0xff] }
0x1beb   : > { %14277 = vadd.xlane.f32.xlu0 %v14275_v36  ;;  %v14525_v35 = vsub.f32 %v23750_v10, %v25030_v16  ;;  %v14319_v36 = vld [vmem:[#allocation17 + $0x70] sm:$0xff]  ;;  %14378 = vmatprep.subr.mxu0 %v23779_v4 }
0x1bec   : > { %v14537_v52 = vsub.f32 %v23767_v62, %v25027_v48  ;;  %v23816_v59 = vand.u32 4294901760, %v14319_v36  ;;  %14380 = vmatpush1.msra.mxu0 %v23802_v8  ;;  %v14555_v48 = vsub.f32 %v23795_v56, %v25031_v12 }
0x1bed   : > { %v14526_v6 = vand.u32 4294901760, %v14525_v35  ;;  %v23814_v35 = vsub.f32 %v14321_v11, %v23802_v8  ;;  %14382 = vmatprep.subr.mxu0 %v23808_v5 }
0x1bee   : > { %v14538_v49 = vand.u32 4294901760, %v14537_v52  ;;  %v23825_v52 = vand.u32 4294901760, %v14318_v22  ;;  %v23830_v16 = vsub.f32 %v14319_v36, %v23816_v59  ;;  %14384 = vmatpush1.msra.mxu0 %v23816_v59 }
0x1bef   : > { %14279 = vadd.xlane.f32.xlu0 %v14276_v32  ;;  %v25028_v32 = vand.u32 4294901760, %v23787_v24  ;;  %14527 = vmatpush1.msra.mxu1 %v14526_v6  ;;  %v23823_v6 = vsub.f32 %v14320_v37, %v23808_v5  ;;  %v25034_v13 = vand.u32 4294901760, %v23814_v35  ;;  %v14556_v37 = vand.u32 4294901760, %v14555_v48 }
0x1bf0   : > { %14533 = vmatprep.subr.mxu1 %v14532_v55  ;;  %25519 = vst [vmem:[#allocation49_spill] sm:$0xff] %v23830_v16  ;;  %v23832_v55 = vand.u32 4294901760, %v14317_v45  ;;  %v23837_v23 = vsub.f32 %v14318_v22, %v23825_v52  ;;  %14386 = vmatprep.subr.mxu0 %v23825_v52 }
0x1bf1   : > { %v14549_v15 = vsub.f32 %v23787_v24, %v25028_v32  ;;  %25518 = vst [vmem:[#allocation48_spill] sm:$0xff] %v23823_v6  ;;  %v14315_v32 = vld [vmem:[#allocation17 + $0x50] sm:$0xff]  ;;  %14539 = vmatpush1.msra.mxu1 %v14538_v49  ;;  %v25038_v12 = vand.u32 4294901760, %v23823_v6  ;;  %v14561_v36 = vsub.f32 %v23814_v35, %v25034_v13  ;;  %v25042_v49 = vand.u32 4294901760, %v23830_v16 }
0x1bf2   : > { %14545 = vmatprep.subr.mxu1 %v14544_v47  ;;  %25520 = vst [vmem:[#allocation53_spill] sm:$0xff] %v23837_v23  ;;  %v23849_v48 = vand.u32 4294901760, %v14315_v32  ;;  %14388 = vmatpush1.msra.mxu0 %v23832_v55  ;;  %v25046_v22 = vand.u32 4294901760, %v23837_v23  ;;  %v23859_v13 = vand.u32 4294901760, %v14314_v25 }
0x1bf3   : > { %v14550_v11 = vand.u32 4294901760, %v14549_v15  ;;  %v23847_v15 = vsub.f32 %v14317_v45, %v23832_v55  ;;  %v14567_v47 = vsub.f32 %v23823_v6, %v25038_v12  ;;  %14390 = vmatprep.subr.mxu0 %v23839_v44  ;;  %v14562_v45 = vand.u32 4294901760, %v14561_v36  ;;  %v14312_v12 = vld [vmem:[#allocation17 + $0x38] sm:$0xff] }
0x1bf4   : > { %v14573_v58 = vsub.f32 %v23830_v16, %v25042_v49  ;;  %v23867_v57 = vsub.f32 %v14315_v32, %v23849_v48  ;;  %14392 = vmatpush1.msra.mxu0 %v23849_v48  ;;  %v14579_v19 = vsub.f32 %v23837_v23, %v25046_v22  ;;  %v23875_v36 = vsub.f32 %v14314_v25, %v23859_v13  ;;  %v14310_v16 = vld [vmem:[#allocation17 + $0x28] sm:$0xff] }
0x1bf5   : > { %14551 = vmatpush1.msra.mxu1 %v14550_v11  ;;  %25521 = vst [vmem:[#allocation57_spill] sm:$0xff] %v23847_v15  ;;  %v23857_v11 = vsub.f32 %v14316_v26, %v23839_v44  ;;  %v14568_v26 = vand.u32 4294901760, %v14567_v47  ;;  %14394 = vmatprep.subr.mxu0 %v23859_v13  ;;  %v23888_v6 = vand.u32 4294901760, %v14312_v12 }
0x1bf6   : > { %14557 = vmatprep.subr.mxu1 %v14556_v37  ;;  %v25051_v37 = vand.u32 4294901760, %v23847_v15  ;;  %25523 = vst [vmem:[#allocation59_spill] sm:$0xff] %v23867_v57  ;;  %25524 = vst [vmem:[#allocation60_spill] sm:$0xff] %v23875_v36  ;;  %v14574_v49 = vand.u32 4294901760, %v14573_v58  ;;  %v25057_v47 = vand.u32 4294901760, %v23867_v57  ;;  %v14580_v22 = vand.u32 4294901760, %v14579_v19  ;;  %14396 = vmatpush1.msra.mxu0 %v23882_v54 }
0x1bf7   : > { %25522 = vst [vmem:[#allocation58_spill] sm:$0xff] %v23857_v11  ;;  %v25054_v50 = vand.u32 4294901760, %v23857_v11  ;;  %14563 = vmatpush1.msra.mxu1 %v14562_v45  ;;  %v25062_v23 = vand.u32 4294901760, %v23875_v36  ;;  %25526 = vst [vmem:[#allocation37_spill] sm:$0xff] %v23888_v6  ;;  %v14309_v58 = vld [vmem:[#allocation17 + $0x20] sm:$0xff]  ;;  %v14308_v19 = vld [vmem:[#allocation17 + $0x18] sm:$0xff]  ;;  %14398 = vmatprep.subr.mxu0 %v23888_v6 }
0x1bf8   : > { %v14585_v32 = vsub.f32 %v23847_v15, %v25051_v37  ;;  %14569 = vmatprep.subr.mxu1 %v14568_v26  ;;  %v14597_v37 = vsub.f32 %v23867_v57, %v25057_v47  ;;  %v23894_v15 = vsub.f32 %v14313_v7, %v23882_v54  ;;  %v23896_v26 = vand.u32 4294901760, %v14311_v41  ;;  %v14307_v47 = vld [vmem:[#allocation17 + $0x10] sm:$0xff] }
0x1bf9   : > { %v14591_v25 = vsub.f32 %v23857_v11, %v25054_v50  ;;  %14575 = vmatpush1.msra.mxu1 %v14574_v49  ;;  %v14603_v11 = vsub.f32 %v23875_v36, %v25062_v23  ;;  %v23903_v49 = vsub.f32 %v14312_v12, %v23888_v6  ;;  %v23919_v6 = vand.u32 4294901760, %v14308_v19 }
0x1bfa   : > { %v14586_v45 = vand.u32 4294901760, %v14585_v32  ;;  %25527 = vst [vmem:[#allocation47_spill] sm:$0xff] %v23894_v15  ;;  %14581 = vmatprep.subr.mxu1 %v14580_v22  ;;  %v23905_v32 = vand.u32 4294901760, %v14310_v16  ;;  %v14598_v7 = vand.u32 4294901760, %v14597_v37  ;;  %v25067_v57 = vand.u32 4294901760, %v23894_v15  ;;  %14400 = vmatpush1.msra.mxu0 %v23896_v26  ;;  %v14305_v37 = vld [vmem:[#allocation17] sm:$0xff] }
0x1bfb   : > { %v14592_v50 = vand.u32 4294901760, %v14591_v25  ;;  %25528 = vst [vmem:[#allocation40_spill] sm:$0xff] %v23903_v49  ;;  %v23910_v54 = vsub.f32 %v14311_v41, %v23896_v26  ;;  %v23912_v22 = vand.u32 4294901760, %v14309_v58  ;;  %v14306_v25 = vld [vmem:[#allocation17 + $0x8] sm:$0xff]  ;;  %v14604_v12 = vand.u32 4294901760, %v14603_v11  ;;  %25533 = vst [vmem:[#allocation62_spill] sm:$0xff] %v23919_v6 }
0x1bfc   : > { %25529 = vst [vmem:[#allocation50_spill] sm:$0xff] %v23905_v32  ;;  %14587 = vmatpush1.msra.mxu1 %v14586_v45  ;;  %v25074_v23 = vand.u32 4294901760, %v23903_v49  ;;  %v23917_v36 = vsub.f32 %v14310_v16, %v23905_v32  ;;  %14402 = vmatprep.subr.mxu0 %v23905_v32  ;;  %v14609_v41 = vsub.f32 %v23894_v15, %v25067_v57  ;;  %v23939_v57 = vand.u32 4294901760, %v14306_v25 }
0x1bfd   : > { %25530 = vst [vmem:[#allocation38_spill] sm:$0xff] %v23910_v54  ;;  %25531 = vst [vmem:[#allocation54_spill] sm:$0xff] %v23912_v22  ;;  %14593 = vmatprep.subr.mxu1 %v14592_v50  ;;  %v23927_v45 = vsub.f32 %v14309_v58, %v23912_v22  ;;  %v23929_v50 = vand.u32 4294901760, %v14307_v47  ;;  %14404 = vmatpush1.msra.mxu0 %v23912_v22  ;;  %v25535_v15 = vand.u32 4294901760, %v23910_v54 }
0x1bfe   : > { %25532 = vst [vmem:[#allocation61_spill] sm:$0xff] %v23917_v36  ;;  %14599 = vmatpush1.msra.mxu1 %v14598_v7  ;;  %v14615_v16 = vsub.f32 %v23903_v49, %v25074_v23  ;;  %v25081_v11 = vand.u32 4294901760, %v23917_v36  ;;  %v23937_v7 = vsub.f32 %v14308_v19, %v23919_v6  ;;  %14406 = vmatprep.subr.mxu0 %v23919_v6  ;;  %v14610_v58 = vand.u32 4294901760, %v14609_v41 }
0x1bff   : > { %25534 = vst [vmem:[#allocation51_spill] sm:$0xff] %v23929_v50  ;;  %14605 = vmatprep.subr.mxu1 %v14604_v12  ;;  %v14621_v22 = vsub.f32 %v23910_v54, %v25535_v15  ;;  %v25087_v12 = vand.u32 4294901760, %v23927_v45  ;;  %v23947_v32 = vsub.f32 %v14307_v47, %v23929_v50  ;;  %14408 = vmatpush1.msra.mxu0 %v23929_v50 }
0x1c00   : > { %v14616_v23 = vand.u32 4294901760, %v14615_v16  ;;  %v14627_v19 = vsub.f32 %v23917_v36, %v25081_v11  ;;  %v25084_v49 = vand.u32 4294901760, %v23937_v7  ;;  %v23955_v41 = vsub.f32 %v14306_v25, %v23939_v57  ;;  %14410 = vmatprep.subr.mxu0 %v23939_v57  ;;  %14611 = vmatpush1.msra.mxu1 %v14610_v58 }
0x1c01   : > { %v14622_v15 = vand.u32 4294901760, %v14621_v22  ;;  %v14633_v47 = vsub.f32 %v23927_v45, %v25087_v12  ;;  %v25086_v54 = vand.u32 4294901760, %v23947_v32  ;;  %v23962_v16 = vand.u32 4294901760, %v14305_v37 }
0x1c02   : > { %14617 = vmatprep.subr.mxu1 %v14616_v23  ;;  %v14628_v50 = vand.u32 4294901760, %v14627_v19  ;;  %v14639_v11 = vsub.f32 %v23937_v7, %v25084_v49  ;;  %v25085_v25 = vand.u32 4294901760, %v23955_v41 }
0x1c03   : > { %14623 = vmatpush1.msra.mxu1 %v14622_v15  ;;  %v14634_v36 = vand.u32 4294901760, %v14633_v47  ;;  %v14645_v22 = vsub.f32 %v23947_v32, %v25086_v54  ;;  %v23972_v58 = vsub.f32 %v14305_v37, %v23962_v16  ;;  %14412 = vmatpush1.msra.mxu0 %v23962_v16 }
0x1c04   : > { %14629 = vmatprep.subr.mxu1 %v14628_v50  ;;  %v14640_v23 = vand.u32 4294901760, %v14639_v11  ;;  %v14651_v19 = vsub.f32 %v23955_v41, %v25085_v25  ;;  %14709 = vmatprep.subr.mxu0 %v23666_v17 }
0x1c05   : > { %14635 = vmatpush1.msra.mxu1 %v14634_v36  ;;  %v14646_v15 = vand.u32 4294901760, %v14645_v22  ;;  %v25088_v47 = vand.u32 4294901760, %v23972_v58 }
0x1c06   : > { %14641 = vmatprep.subr.mxu1 %v14640_v23  ;;  %v14652_v49 = vand.u32 4294901760, %v14651_v19  ;;  %v16517_v19 = vld [vmem:[%s25536_s7] ss:$0 sm:$0xff]  ;;  %s973_s7 = scalar_lea.vmem [#allocation20], %s20147_s14  ;;  %s19608_s14 = sshll.u32 %s19715_s29, 4  ;;  %s19609_s14 = int_to_ptr.vmem [resolvable:$false] %s19608_s14 }
0x1c07   : > { %14647 = vmatpush1.msra.mxu1 %v14646_v15  ;;  %v14657_v37 = vsub.f32 %v23972_v58, %v25088_v47  ;;  %v25548_v47 = vld [vmem:[#allocation57_spill] sm:$0xff]  ;;  %s16272_s25 = sshll.u32 %s973_s7, 4  ;;  %s19610_s30 = scalar_lea.vmem %s19609_s14, 512  ;;  %s24752_s25 = int_to_ptr.vmem [resolvable:$true] %s16272_s25 }
0x1c08   : > { %14653 = vmatprep.subr.mxu1 %v14652_v49  ;;  %v16518_v49 = vld [vmem:[%s25537_s6] ss:$0 sm:$0xff]  ;;  %s19604_s24 = scalar_lea.vmem %s24752_s25, 256  ;;  %p19611_p11 = scmp.lt.s32.totalorder %s24752_s25, %s19609_s14 }
0x1c09   : > { %v14658_v50 = vand.u32 4294901760, %v14657_v37  ;;  %p19605_p6 = scmp.ne.s32.totalorder %s24752_s25, %s19604_s24  ;;  %p19612_p13 = scmp.lt.s32.totalorder %s19610_s30, %s19604_s24 }
0x1c0b   : > { %14659 = vmatpush1.msra.mxu1 %v14658_v50  ;;  %p19606_p7 = pnand %p19605_p6, %p25720_p5  ;;  %p19613_p9 = por %p19612_p13, %p19611_p11 }
0x1c0c   : > { %14853 = vmatprep.subr.mxu1 %v23653_v39 }
0x1c0d   : > { %p19607_p0 = pneg %p19606_p7 }
0x1c0f   : > { %p19614_p2 = pnand %p19613_p9, %p19607_p0 }
0x1c74   : > { %v14278_v11 = vpop.xlane.xlu0 %14277 }
0x1c75   : > { %v14281_v25 = vmul.f32 0.0078125, %v14278_v11 }
0x1c77   : > { %v14283_v54 = vadd.f32 1e-06, %v14281_v25 }
0x1c78   : > { %v14280_v12 = vpop.xlane.xlu0 %14279 }
0x1c79   : > { %19300 = vrsqrt.f32 %v14283_v54  ;;  %v14282_v36 = vmul.f32 0.0078125, %v14280_v12 }
0x1c7b   : > { %v14284_v22 = vadd.f32 1e-06, %v14282_v36 }
0x1c7d   : > { %19302 = vrsqrt.f32 %v14284_v22 }
0x1c86   : > { %v19301_v23 = vpop.eup %19300 }
0x1c87   : > { %v14287_v15 = vmul.f32 %v19301_v23, %v23723_v21 }
0x1c89   : > { %v14295_v37 = vmul.f32 %v16517_v19, %v14287_v15 }
0x1c8a   : > { %v19303_v50 = vpop.eup %19302 }
0x1c8b   : > { %v14288_v25 = vmul.f32 %v19303_v50, %v23726_v20  ;;  %v23992_v11 = vadd.f32 %v16518_v49, %v14295_v37 }
0x1c8d   : > { %25538 = vst [vmem:[#allocation55_spill] sm:$0xff] %v23992_v11  ;;  %v23995_v54 = vand.u32 4294901760, %v23992_v11  ;;  %v14296_v12 = vmul.f32 %v16517_v19, %v14288_v25  ;;  %v25542_v25 = vld [vmem:[#allocation43_spill] sm:$0xff] }
0x1c8f   : > { %25539 = vst [vmem:[#allocation46_spill] sm:$0xff] %v23995_v54  ;;  %14694 = vmatmul.mubr.f32.vlgmr.msra.gmra.mxu1 %v23995_v54  ;;  %v23998_v36 = vadd.f32 %v16518_v49, %v14296_v12  ;;  %v24002_v21 = vsub.f32 %v23992_v11, %v23995_v54  ;;  %v25543_v12 = vld [vmem:[#allocation48_spill] sm:$0xff]  ;;  %v25552_v11 = vld [vmem:[#allocation51_spill] sm:$0xff] }
0x1c90   : > { %14855 = vmatpush1.msra.mxu1 %v23655_v38  ;;  %14699 = vmatprep.mubr.f32.mxu1 %v25513_v63  ;;  %v25554_v54 = vld [vmem:[#allocation47_spill] sm:$0xff] }
0x1c91   : > { %25540 = vst [vmem:[#allocation56_spill] sm:$0xff] %v23998_v36  ;;  %14857 = vmatprep.subr.mxu1 %v23657_v42  ;;  %v24008_v20 = vand.u32 4294901760, %v23998_v36  ;;  %v25090_v22 = vand.u32 4294901760, %v24002_v21 }
0x1c92   : > { %14859 = vmatpush1.msra.mxu1 %v23659_v27 }
0x1c93   : > { %25541 = vst [vmem:[#allocation34_spill] sm:$0xff] %v24008_v20  ;;  %14861 = vmatprep.subr.mxu1 %v23661_v1  ;;  %14701 = vmatmul.mubr.f32.gmra.mxu1 %v24008_v20  ;;  %v14449_v23 = vsub.f32 %v24002_v21, %v25090_v22  ;;  %v24019_v19 = vsub.f32 %v23998_v36, %v24008_v20  ;;  %v25550_v22 = vld [vmem:[#allocation58_spill] sm:$0xff]  ;;  %v25551_v36 = vld [vmem:[#allocation59_spill] sm:$0xff]  ;;  %v25553_v20 = vld [vmem:[#allocation60_spill] sm:$0xff] }
0x1c94   : > { %14863 = vmatpush1.msra.mxu1 %v23663_v40  ;;  %14948 = vmatprep.mubr.f32.mxu1 %v25513_v63 }
0x1c95   : > { %14865 = vmatprep.subr.mxu1 %v23674_v43  ;;  %v14450_v15 = vand.u32 4294901760, %v14449_v23  ;;  %v25089_v49 = vand.u32 4294901760, %v24019_v19  ;;  %v25544_v23 = vld [vmem:[#allocation37_spill] sm:$0xff] }
0x1c96   : > { %14867 = vmatpush1.msra.mxu1 %v23730_v14 }
0x1c97   : > { %14869 = vmatprep.subr.mxu1 %v23734_v51  ;;  %14451 = vmatmul.mubr.f32.vlgmr.msra.gmra.mxu0 %v14450_v15  ;;  %v14460_v37 = vsub.f32 %v24019_v19, %v25089_v49  ;;  %v25545_v15 = vld [vmem:[#allocation49_spill] sm:$0xff]  ;;  %v25549_v49 = vld [vmem:[#allocation54_spill] sm:$0xff] }
0x1c98   : > { %14712 = vmatpush1.msra.mxu0 %v23669_v61  ;;  %14871 = vmatpush1.msra.mxu1 %v23739_v9 }
0x1c99   : > { %14715 = vmatprep.subr.mxu0 %v23672_v53  ;;  %14873 = vmatprep.subr.mxu1 %v23745_v18  ;;  %v14461_v50 = vand.u32 4294901760, %v14460_v37  ;;  %v25546_v37 = vld [vmem:[#allocation53_spill] sm:$0xff] }
0x1c9a   : > { %14718 = vmatpush1.msra.mxu0 %v23678_v33  ;;  %14875 = vmatpush1.msra.mxu1 %v23752_v34 }
0x1c9b   : > { %14456 = vmatprep.mubr.f32.mxu0 %v25513_v63  ;;  %14721 = vmatprep.subr.mxu0 %v23681_v30 }
0x1c9c   : > { %14877 = vmatprep.subr.mxu1 %v23759_v46  ;;  %14462 = vmatmul.mubr.f32.gmra.mxu0 %v14461_v50  ;;  %v25547_v50 = vld [vmem:[#allocation50_spill] sm:$0xff] }
0x1c9d   : > { %14724 = vmatpush1.msra.mxu0 %v23684_v60  ;;  %14879 = vmatpush1.msra.mxu1 %v23769_v28 }
0x1c9e   : > { %14727 = vmatprep.subr.mxu0 %v23691_v2  ;;  %14881 = vmatprep.subr.mxu1 %v23779_v4 }
0x1c9f   : > { %14730 = vmatpush1.msra.mxu0 %v23737_v31  ;;  %14883 = vmatpush1.msra.mxu1 %v23802_v8 }
0x1ca0   : > { %14733 = vmatprep.subr.mxu0 %v23743_v3  ;;  %14885 = vmatprep.subr.mxu1 %v23808_v5 }
0x1ca1   : > { %14736 = vmatpush1.msra.mxu0 %v23750_v10  ;;  %14887 = vmatpush1.msra.mxu1 %v23816_v59 }
0x1ca2   : > { %14739 = vmatprep.subr.mxu0 %v23757_v29  ;;  %14889 = vmatprep.subr.mxu1 %v23825_v52 }
0x1ca3   : > { %14742 = vmatpush1.msra.mxu0 %v23767_v62  ;;  %14891 = vmatpush1.msra.mxu1 %v23832_v55 }
0x1ca4   : > { %14745 = vmatprep.subr.mxu0 %v23777_v0  ;;  %14893 = vmatprep.subr.mxu1 %v23839_v44 }
0x1ca5   : > { %14748 = vmatpush1.msra.mxu0 %v23787_v24  ;;  %14895 = vmatpush1.msra.mxu1 %v23849_v48 }
0x1ca6   : > { %14751 = vmatprep.subr.mxu0 %v23795_v56  ;;  %14897 = vmatprep.subr.mxu1 %v23859_v13 }
0x1ca7   : > { %14754 = vmatpush1.msra.mxu0 %v23814_v35  ;;  %14899 = vmatpush1.msra.mxu1 %v25542_v25 }
0x1ca8   : > { %14757 = vmatprep.subr.mxu0 %v25543_v12  ;;  %14901 = vmatprep.subr.mxu1 %v25544_v23 }
0x1ca9   : > { %14760 = vmatpush1.msra.mxu0 %v25545_v15  ;;  %14903 = vmatpush1.msra.mxu1 %v23896_v26 }
0x1caa   : > { %14763 = vmatprep.subr.mxu0 %v25546_v37  ;;  %14905 = vmatprep.subr.mxu1 %v25547_v50  ;;  %v25555_v50 = vld [vmem:[#allocation40_spill] sm:$0xff] }
0x1cab   : > { %14766 = vmatpush1.msra.mxu0 %v25548_v47  ;;  %14907 = vmatpush1.msra.mxu1 %v25549_v49  ;;  %v25556_v49 = vand.u32 4294901760, %v24002_v21 }
0x1cac   : > { %14769 = vmatprep.subr.mxu0 %v25550_v22  ;;  %14909 = vmatprep.subr.mxu1 %v23919_v6  ;;  %v25557_v6 = vld [vmem:[#allocation38_spill] sm:$0xff] }
0x1cad   : > { %14772 = vmatpush1.msra.mxu0 %v25551_v36  ;;  %14911 = vmatpush1.msra.mxu1 %v25552_v11  ;;  %v25558_v11 = vld [vmem:[#allocation61_spill] sm:$0xff] }
0x1cae   : > { %14775 = vmatprep.subr.mxu0 %v25553_v20  ;;  %14913 = vmatprep.subr.mxu1 %v23939_v57 }
0x1caf   : > { %14778 = vmatpush1.msra.mxu0 %v25554_v54  ;;  %14915 = vmatpush1.msra.mxu1 %v23962_v16 }
0x1cb0   : > { %14781 = vmatprep.subr.mxu0 %v25555_v50  ;;  %14952 = vmatmul.mubr.f32.vlgmr.msra.gmra.mxu1 %v25556_v49  ;;  %v25559_v49 = vand.u32 4294901760, %v24019_v19 }
0x1cb1   : > { %15143 = vmatprep.subr.mxu1 %v23653_v39  ;;  %14784 = vmatpush1.msra.mxu0 %v25557_v6  ;;  %v25560_v39 = vand.u32 4294901760, %v23666_v17  ;;  %v25566_v17 = vand.u32 4294901760, %v23691_v2  ;;  %v25573_v2 = vand.u32 4294901760, %v23787_v24  ;;  %v25590_v24 = vand.u32 4294901760, %v25557_v6 }
0x1cb2   : > { %15145 = vmatpush1.msra.mxu1 %v23655_v38  ;;  %14787 = vmatprep.subr.mxu0 %v25558_v11  ;;  %v25561_v38 = vand.u32 4294901760, %v23669_v61  ;;  %v25567_v61 = vand.u32 4294901760, %v23737_v31  ;;  %v25576_v31 = vand.u32 4294901760, %v25543_v12  ;;  %v25597_v6 = vand.u32 4294901760, %v23972_v58 }
0x1cb3   : > { %15147 = vmatprep.subr.mxu1 %v23657_v42  ;;  %14790 = vmatpush1.msra.mxu0 %v23927_v45  ;;  %v25562_v42 = vand.u32 4294901760, %v23672_v53  ;;  %v25568_v53 = vand.u32 4294901760, %v23743_v3  ;;  %v25578_v3 = vand.u32 4294901760, %v25546_v37 }
0x1cb4   : > { %14957 = vmatprep.mubr.f32.mxu1 %v25513_v63  ;;  %15149 = vmatpush1.msra.mxu1 %v23659_v27  ;;  %v25563_v27 = vand.u32 4294901760, %v23678_v33  ;;  %v25570_v33 = vand.u32 4294901760, %v23757_v29  ;;  %v25583_v29 = vld [vmem:[#allocation62_spill] sm:$0xff] }
0x1cb5   : > { %14793 = vmatprep.subr.mxu0 %v23937_v7  ;;  %14961 = vmatmul.mubr.f32.gmra.mxu1 %v25559_v49 }
0x1cb6   : > { %15151 = vmatprep.subr.mxu1 %v23661_v1  ;;  %14796 = vmatpush1.msra.mxu0 %v23947_v32  ;;  %v25564_v1 = vand.u32 4294901760, %v23681_v30  ;;  %v25571_v30 = vand.u32 4294901760, %v23767_v62  ;;  %v25585_v62 = vld [vmem:[#allocation51_spill] sm:$0xff] }
0x1cb7   : > { %15153 = vmatpush1.msra.mxu1 %v23663_v40  ;;  %14799 = vmatprep.subr.mxu0 %v23955_v41  ;;  %v25565_v40 = vand.u32 4294901760, %v23684_v60  ;;  %v25572_v60 = vand.u32 4294901760, %v23777_v0  ;;  %v25588_v0 = vand.u32 4294901760, %v25555_v50 }
0x1cb8   : > { %15155 = vmatprep.subr.mxu1 %v23674_v43  ;;  %14802 = vmatpush1.msra.mxu0 %v23972_v58  ;;  %v25569_v43 = vand.u32 4294901760, %v23750_v10  ;;  %v25581_v10 = vld [vmem:[#allocation54_spill] sm:$0xff]  ;;  %v15286_v58 = vld [vmem:[#allocation19 + $0xe8] sm:$0xff] }
0x1cb9   : > { %14835 = vmatprep.mubr.f32.mxu0 %v25513_v63  ;;  %15157 = vmatpush1.msra.mxu1 %v23730_v14  ;;  %v25574_v14 = vand.u32 4294901760, %v23795_v56  ;;  %v25591_v56 = vand.u32 4294901760, %v25558_v11 }
0x1cba   : > { %14838 = vmatmul.mubr.f32.vlgmr.msra.gmra.mxu0 %v24002_v21  ;;  %14970 = vmatprep.subr.mxu0 %v25560_v39 }
0x1cbb   : > { %15159 = vmatprep.subr.mxu1 %v23734_v51  ;;  %14974 = vmatpush1.msra.mxu0 %v25561_v38  ;;  %v25575_v51 = vand.u32 4294901760, %v23814_v35  ;;  %v25595_v35 = vand.u32 4294901760, %v23947_v32  ;;  %v15287_v32 = vld [vmem:[#allocation19 + $0xf0] sm:$0xff] }
0x1cbc   : > { %15161 = vmatpush1.msra.mxu1 %v23739_v9  ;;  %14978 = vmatprep.subr.mxu0 %v25562_v42  ;;  %v25577_v9 = vand.u32 4294901760, %v25545_v15  ;;  %v15284_v42 = vld [vmem:[#allocation19 + $0xd8] sm:$0xff] }
0x1cbd   : > { %15163 = vmatprep.subr.mxu1 %v23745_v18  ;;  %14843 = vmatprep.mubr.f32.mxu0 %v25513_v63  ;;  %v25579_v18 = vld [vmem:[#allocation50_spill] sm:$0xff] }
0x1cbe   : > { %14982 = vmatpush1.msra.mxu0 %v25563_v27  ;;  %15165 = vmatpush1.msra.mxu1 %v23752_v34  ;;  %v25582_v34 = vand.u32 4294901760, %v25550_v22 }
0x1cbf   : > { %14846 = vmatmul.mubr.f32.gmra.mxu0 %v24019_v19  ;;  %14986 = vmatprep.subr.mxu0 %v25564_v1  ;;  %v15285_v19 = vld [vmem:[#allocation19 + $0xe0] sm:$0xff] }
0x1cc0   : > { %15167 = vmatprep.subr.mxu1 %v23759_v46  ;;  %14990 = vmatpush1.msra.mxu0 %v25565_v40  ;;  %v25584_v46 = vand.u32 4294901760, %v25551_v36  ;;  %v15270_v36 = vld [vmem:[#allocation19 + $0x68] sm:$0xff]  ;;  %v24235_v37 = vand.u32 4294901760, %v15285_v19 }
0x1cc1   : > { %15169 = vmatpush1.msra.mxu1 %v23769_v28  ;;  %14994 = vmatprep.subr.mxu0 %v25566_v17  ;;  %v25586_v28 = vand.u32 4294901760, %v25553_v20  ;;  %v24225_v22 = vand.u32 4294901760, %v15270_v36 }
0x1cc2   : > { %15171 = vmatprep.subr.mxu1 %v23779_v4  ;;  %14998 = vmatpush1.msra.mxu0 %v25567_v61  ;;  %v25589_v4 = vld [vmem:[#allocation46_spill] sm:$0xff]  ;;  %v24253_v17 = vsub.f32 %v15285_v19, %v24235_v37  ;;  %v15268_v61 = vld [vmem:[#allocation19 + $0x58] sm:$0xff] }
0x1cc3   : > { %15173 = vmatpush1.msra.mxu1 %v23802_v8  ;;  %15002 = vmatprep.subr.mxu0 %v25568_v53  ;;  %v25593_v8 = vand.u32 4294901760, %v23937_v7  ;;  %v24205_v7 = vand.u32 4294901760, %v15287_v32  ;;  %v24243_v39 = vsub.f32 %v15270_v36, %v24225_v22 }
0x1cc4   : > { %15175 = vmatprep.subr.mxu1 %v23808_v5  ;;  %15006 = vmatpush1.msra.mxu0 %v25569_v43  ;;  %v25594_v5 = vld [vmem:[#allocation34_spill] sm:$0xff] }
0x1cc5   : > { %15177 = vmatpush1.msra.mxu1 %v23816_v59  ;;  %15010 = vmatprep.subr.mxu0 %v25570_v33  ;;  %v25596_v59 = vand.u32 4294901760, %v23955_v41  ;;  %v15271_v41 = vld [vmem:[#allocation19 + $0x70] sm:$0xff]  ;;  %v24216_v11 = vsub.f32 %v15287_v32, %v24205_v7  ;;  %v25109_v33 = vand.u32 4294901760, %v24243_v39 }
0x1cc6   : > { %15179 = vmatprep.subr.mxu1 %v23825_v52  ;;  %15014 = vmatpush1.msra.mxu0 %v25571_v30  ;;  %v15288_v52 = vld [vmem:[#allocation19 + $0xf8] sm:$0xff] }
0x1cc7   : > { %15181 = vmatpush1.msra.mxu1 %v23832_v55  ;;  %15018 = vmatprep.subr.mxu0 %v25572_v60  ;;  %v24198_v55 = vand.u32 4294901760, %v15288_v52  ;;  %v15283_v60 = vld [vmem:[#allocation19 + $0xd0] sm:$0xff] }
0x1cc8   : > { %15183 = vmatprep.subr.mxu1 %v23839_v44  ;;  %15022 = vmatpush1.msra.mxu0 %v25573_v2  ;;  %v25580_v44 = vand.u32 4294901760, %v25548_v47 }
0x1cc9   : > { %15185 = vmatpush1.msra.mxu1 %v23849_v48  ;;  %15026 = vmatprep.subr.mxu0 %v25574_v14  ;;  %25598 = vst [vmem:[#allocation52_spill] sm:$0xff] %v24198_v55  ;;  %v15272_v48 = vld [vmem:[#allocation19 + $0x78] sm:$0xff] }
0x1cca   : > { %15187 = vmatprep.subr.mxu1 %v23859_v13  ;;  %15030 = vmatpush1.msra.mxu0 %v25575_v51  ;;  %v25587_v13 = vand.u32 4294901760, %v25554_v54  ;;  %v24218_v54 = vand.u32 4294901760, %v15286_v58  ;;  %v25108_v51 = vand.u32 4294901760, %v24253_v17 }
0x1ccb   : > { %15189 = vmatpush1.msra.mxu1 %v25542_v25  ;;  %15034 = vmatprep.subr.mxu0 %v25576_v31  ;;  %v15269_v25 = vld [vmem:[#allocation19 + $0x60] sm:$0xff]  ;;  %v24268_v31 = vand.u32 4294901760, %v15284_v42 }
0x1ccc   : > { %15191 = vmatprep.subr.mxu1 %v25544_v23  ;;  %15038 = vmatpush1.msra.mxu0 %v25577_v9  ;;  %v25113_v23 = vand.u32 4294901760, %v24216_v11  ;;  %v24233_v15 = vsub.f32 %v15286_v58, %v24218_v54  ;;  %v24245_v38 = vand.u32 4294901760, %v15269_v25  ;;  %v15267_v9 = vld [vmem:[#allocation19 + $0x50] sm:$0xff] }
0x1ccd   : > { %15193 = vmatpush1.msra.mxu1 %v23896_v26  ;;  %15042 = vmatprep.subr.mxu0 %v25578_v3  ;;  %v24200_v26 = vand.u32 4294901760, %v15272_v48 }
0x1cce   : > { %15195 = vmatprep.subr.mxu1 %v25579_v18  ;;  %15046 = vmatpush1.msra.mxu0 %v25580_v44  ;;  %v15546_v1 = vsub.f32 %v24216_v11, %v25113_v23  ;;  %v25111_v40 = vand.u32 4294901760, %v24233_v15  ;;  %v24261_v30 = vsub.f32 %v15269_v25, %v24245_v38  ;;  %v15441_v18 = vsub.f32 %v24243_v39, %v25109_v33  ;;  %v15275_v23 = vld [vmem:[#allocation19 + $0x90] sm:$0xff] }
0x1ccf   : > { %15197 = vmatpush1.msra.mxu1 %v25581_v10  ;;  %15050 = vmatprep.subr.mxu0 %v25582_v34  ;;  %v24274_v10 = vand.u32 4294901760, %v15268_v61  ;;  %v15282_v34 = vld [vmem:[#allocation19 + $0xc8] sm:$0xff] }
0x1cd0   : > { %15199 = vmatprep.subr.mxu1 %v25583_v29  ;;  %15054 = vmatpush1.msra.mxu0 %v25584_v46  ;;  %v15547_v2 = vand.u32 4294901760, %v15546_v1  ;;  %v15553_v14 = vsub.f32 %v24233_v15, %v25111_v40  ;;  %v25107_v44 = vand.u32 4294901760, %v24261_v30  ;;  %v15560_v46 = vsub.f32 %v24253_v17, %v25108_v51  ;;  %v15280_v1 = vld [vmem:[#allocation19 + $0xb8] sm:$0xff] }
0x1cd1   : > { %15201 = vmatpush1.msra.mxu1 %v25585_v62  ;;  %15058 = vmatprep.subr.mxu0 %v25586_v28  ;;  %v24280_v62 = vsub.f32 %v15284_v42, %v24268_v31  ;;  %v24282_v28 = vand.u32 4294901760, %v15283_v60 }
0x1cd2   : > { %15203 = vmatprep.subr.mxu1 %v23939_v57  ;;  %15062 = vmatpush1.msra.mxu0 %v25587_v13  ;;  %v25592_v57 = vand.u32 4294901760, %v23927_v45  ;;  %v24203_v45 = vsub.f32 %v15288_v52, %v24198_v55  ;;  %v15554_v29 = vand.u32 4294901760, %v15553_v14  ;;  %v15266_v13 = vld [vmem:[#allocation19 + $0x48] sm:$0xff] }
0x1cd3   : > { %15205 = vmatpush1.msra.mxu1 %v23962_v16  ;;  %15238 = vmatprep.mubr.f32.mxu1 %v25513_v63  ;;  %v24209_v16 = vsub.f32 %v15272_v48, %v24200_v26 }
0x1cd4   : > { %15066 = vmatprep.subr.mxu0 %v25588_v0  ;;  %15240 = vmatmul.mubr.f32.vlgmr.msra.gmra.mxu1 %v25589_v4  ;;  %25599 = vst [vmem:[#allocation39_spill] sm:$0xff] %v24203_v45  ;;  %v25116_v47 = vand.u32 4294901760, %v24203_v45  ;;  %v15442_v0 = vand.u32 4294901760, %v15441_v18 }
0x1cd5   : > { %15070 = vmatpush1.msra.mxu0 %v25590_v24  ;;  %15245 = vmatprep.mubr.f32.mxu1 %v25513_v63  ;;  %v25115_v21 = vand.u32 4294901760, %v24209_v16  ;;  %v24289_v24 = vsub.f32 %v15268_v61, %v24274_v10 }
0x1cd6   : > { %15074 = vmatprep.subr.mxu0 %v25591_v56  ;;  %15127 = vmatprep.mubr.f32.mxu0 %v25513_v63  ;;  %v15539_v12 = vsub.f32 %v24203_v45, %v25116_v47  ;;  %v24291_v56 = vand.u32 4294901760, %v15267_v9  ;;  %v15259_v47 = vld [vmem:[#allocation19 + $0x10] sm:$0xff] }
0x1cd7   : > { %15078 = vmatpush1.msra.mxu0 %v25592_v57  ;;  %v15427_v50 = vsub.f32 %v24209_v16, %v25115_v21  ;;  %v15281_v57 = vld [vmem:[#allocation19 + $0xc0] sm:$0xff]  ;;  %v25104_v48 = vand.u32 4294901760, %v24289_v24 }
0x1cd8   : > { %15082 = vmatprep.subr.mxu0 %v25593_v8  ;;  %15247 = vmatmul.mubr.f32.gmra.mxu1 %v25594_v5  ;;  %v15540_v27 = vand.u32 4294901760, %v15539_v12  ;;  %v15561_v8 = vand.u32 4294901760, %v15560_v46  ;;  %v24303_v32 = vsub.f32 %v15267_v9, %v24291_v56  ;;  %v24315_v25 = vand.u32 4294901760, %v15281_v57 }
0x1cd9   : > { %15086 = vmatpush1.msra.mxu0 %v25595_v35  ;;  %v15428_v53 = vand.u32 4294901760, %v15427_v50  ;;  %v24296_v35 = vsub.f32 %v15283_v60, %v24282_v28  ;;  %v15455_v12 = vsub.f32 %v24289_v24, %v25104_v48 }
0x1cda   : > { %15090 = vmatprep.subr.mxu0 %v25596_v59  ;;  %17386 = vmatprep.subr.mxu1 %v15540_v27  ;;  %v24298_v59 = vand.u32 4294901760, %v15282_v34  ;;  %v25101_v50 = vand.u32 4294901760, %v24303_v32  ;;  %v24333_v60 = vsub.f32 %v15281_v57, %v24315_v25 }
0x1cdb   : > { %15094 = vmatpush1.msra.mxu0 %v25597_v6  ;;  %17387 = vmatpush3.msra.mxu1 %v15428_v53  ;;  %v15265_v6 = vld [vmem:[#allocation19 + $0x40] sm:$0xff]  ;;  %v25102_v36 = vand.u32 4294901760, %v24296_v35  ;;  %v15456_v14 = vand.u32 4294901760, %v15455_v12 }
0x1cdc   : > { %15129 = vmatmul.mubr.f32.vlgmr.msra.gmra.mxu0 %v25589_v4  ;;  %17348 = vmatprep.subr.mxu0 %v24198_v55  ;;  %v15448_v4 = vsub.f32 %v24261_v30, %v25107_v44  ;;  %v24313_v19 = vsub.f32 %v15282_v34, %v24298_v59  ;;  %v24325_v27 = vand.u32 4294901760, %v15265_v6  ;;  %25602 = vst [vmem:[#allocation45_spill] sm:$0xff] %v24333_v60  ;;  %v15279_v34 = vld [vmem:[#allocation19 + $0xb0] sm:$0xff]  ;;  %v15276_v44 = vld [vmem:[#allocation19 + $0x98] sm:$0xff] }
0x1cdd   : > { %15134 = vmatprep.mubr.f32.mxu0 %v25513_v63  ;;  %v24211_v63 = vand.u32 4294901760, %v15271_v41  ;;  %17349 = vmatpush3.msra.mxu0 %v24200_v26  ;;  %v15574_v53 = vsub.f32 %v24296_v35, %v25102_v36  ;;  %v15462_v9 = vsub.f32 %v24303_v32, %v25101_v50  ;;  %v24428_v21 = vand.u32 4294901760, %v15276_v44 }
0x1cde   : > { %17350 = vmatprep.subr.mxu0 %v24205_v7  ;;  %17388 = vmatprep.subr.mxu1 %v15547_v2  ;;  %v15449_v52 = vand.u32 4294901760, %v15448_v4  ;;  %25600 = vst [vmem:[#allocation41_spill] sm:$0xff] %v24313_v19  ;;  %v15264_v2 = vld [vmem:[#allocation19 + $0x38] sm:$0xff]  ;;  %v24341_v18 = vsub.f32 %v15265_v6, %v24325_v27  ;;  %v15263_v4 = vld [vmem:[#allocation19 + $0x30] sm:$0xff] }
0x1cdf   : > { %v24223_v20 = vsub.f32 %v15271_v41, %v24211_v63  ;;  %17351 = vmatpush3.msra.mxu0 %v24211_v63  ;;  %v24305_v41 = vand.u32 4294901760, %v15266_v13  ;;  %v15463_v57 = vand.u32 4294901760, %v15462_v9  ;;  %v15262_v9 = vld [vmem:[#allocation19 + $0x28] sm:$0xff]  ;;  %25617 = vst [vmem:[#allocation50_spill] sm:$0xff] %v24428_v21 }
0x1ce0   : > { %15136 = vmatmul.mubr.f32.gmra.mxu0 %v25594_v5  ;;  %17352 = vmatprep.subr.mxu0 %v24218_v54  ;;  %v25105_v5 = vand.u32 4294901760, %v24280_v62  ;;  %25603 = vst [vmem:[#allocation44_spill] sm:$0xff] %v24341_v18  ;;  %v25103_v6 = vand.u32 4294901760, %v24341_v18 }
0x1ce1   : > { %v25112_v49 = vand.u32 4294901760, %v24223_v20  ;;  %17353 = vmatpush3.msra.mxu0 %v24225_v22  ;;  %v24323_v42 = vsub.f32 %v15266_v13, %v24305_v41  ;;  %v25100_v13 = vand.u32 4294901760, %v24333_v60 }
0x1ce2   : > { %17354 = vmatprep.subr.mxu0 %v24235_v37  ;;  %v15567_v58 = vsub.f32 %v24280_v62, %v25105_v5  ;;  %v24385_v5 = vand.u32 4294901760, %v15262_v9 }
0x1ce3   : > { %v15434_v43 = vsub.f32 %v24223_v20, %v25112_v49  ;;  %17355 = vmatpush3.msra.mxu0 %v24245_v38  ;;  %25601 = vst [vmem:[#allocation42_spill] sm:$0xff] %v24323_v42 }
0x1ce4   : > { %17356 = vmatprep.subr.mxu0 %v24268_v31  ;;  %v15568_v61 = vand.u32 4294901760, %v15567_v58  ;;  %v15278_v58 = vld [vmem:[#allocation19 + $0xa8] sm:$0xff]  ;;  %25610 = vst [vmem:[#allocation58_spill] sm:$0xff] %v24385_v5 }
0x1ce5   : > { %v15435_v3 = vand.u32 4294901760, %v15434_v43  ;;  %17357 = vmatpush3.msra.mxu0 %v24274_v10  ;;  %v25099_v43 = vand.u32 4294901760, %v24313_v19 }
0x1ce6   : > { %17358 = vmatprep.subr.mxu0 %v24282_v28 }
0x1ce7   : > { %17389 = vmatpush3.msra.mxu1 %v15435_v3  ;;  %17359 = vmatpush3.msra.mxu0 %v24291_v56  ;;  %v25098_v3 = vand.u32 4294901760, %v24323_v42  ;;  %v15581_v46 = vsub.f32 %v24313_v19, %v25099_v43  ;;  %v15476_v43 = vsub.f32 %v24341_v18, %v25103_v6 }
0x1ce8   : > { %17390 = vmatprep.subr.mxu1 %v15554_v29  ;;  %17360 = vmatprep.subr.mxu0 %v24298_v59  ;;  %v15575_v29 = vand.u32 4294901760, %v15574_v53 }
0x1ce9   : > { %17391 = vmatpush3.msra.mxu1 %v15442_v0  ;;  %17361 = vmatpush3.msra.mxu0 %v24305_v41  ;;  %v24348_v0 = vand.u32 4294901760, %v15280_v1  ;;  %v15582_v12 = vand.u32 4294901760, %v15581_v46  ;;  %v24371_v46 = vand.u32 4294901760, %v15263_v4 }
0x1cea   : > { %17392 = vmatprep.subr.mxu1 %v15561_v8  ;;  %17362 = vmatprep.subr.mxu0 %v24315_v25  ;;  %v15469_v8 = vsub.f32 %v24323_v42, %v25098_v3 }
0x1ceb   : > { %17393 = vmatpush3.msra.mxu1 %v15449_v52  ;;  %17363 = vmatpush3.msra.mxu0 %v24325_v27  ;;  %v24354_v52 = vand.u32 4294901760, %v15264_v2  ;;  %v24360_v53 = vsub.f32 %v15280_v1, %v24348_v0  ;;  %25606 = vst [vmem:[#allocation37_spill] sm:$0xff] %v24371_v46  ;;  %v24383_v48 = vsub.f32 %v15263_v4, %v24371_v46 }
0x1cec   : > { %17394 = vmatprep.subr.mxu1 %v15568_v61  ;;  %v15588_v61 = vsub.f32 %v24333_v60, %v25100_v13  ;;  %17364 = vmatprep.subr.mxu0 %v24348_v0  ;;  %v15470_v3 = vand.u32 4294901760, %v15469_v8  ;;  %v15277_v13 = vld [vmem:[#allocation19 + $0xa0] sm:$0xff] }
0x1ced   : > { %17395 = vmatpush3.msra.mxu1 %v15456_v14  ;;  %25604 = vst [vmem:[#allocation43_spill] sm:$0xff] %v24360_v53  ;;  %v24362_v14 = vand.u32 4294901760, %v15279_v34  ;;  %17365 = vmatpush3.msra.mxu0 %v24354_v52  ;;  %v25106_v50 = vand.u32 4294901760, %v24360_v53  ;;  %v15261_v8 = vld [vmem:[#allocation19 + $0x20] sm:$0xff]  ;;  %25609 = vst [vmem:[#allocation57_spill] sm:$0xff] %v24383_v48  ;;  %v25117_v4 = vand.u32 4294901760, %v24383_v48 }
0x1cee   : > { %17396 = vmatprep.subr.mxu1 %v15575_v29  ;;  %v24369_v29 = vsub.f32 %v15264_v2, %v24354_v52  ;;  %v15589_v1 = vand.u32 4294901760, %v15588_v61  ;;  %v15477_v2 = vand.u32 4294901760, %v15476_v43  ;;  %v24395_v43 = vand.u32 4294901760, %v15277_v13 }
0x1cef   : > { %17397 = vmatpush3.msra.mxu1 %v15463_v57  ;;  %v24376_v36 = vsub.f32 %v15279_v34, %v24362_v14  ;;  %v24378_v57 = vand.u32 4294901760, %v15278_v58  ;;  %17366 = vmatprep.subr.mxu0 %v24362_v14  ;;  %v15595_v34 = vsub.f32 %v24360_v53, %v25106_v50  ;;  %v24405_v50 = vand.u32 4294901760, %v15261_v8 }
0x1cf0   : > { %25605 = vst [vmem:[#allocation48_spill] sm:$0xff] %v24369_v29  ;;  %17398 = vmatprep.subr.mxu1 %v15582_v12  ;;  %v25110_v6 = vand.u32 4294901760, %v24369_v29  ;;  %17367 = vmatpush3.msra.mxu0 %v24371_v46  ;;  %25612 = vst [vmem:[#allocation60_spill] sm:$0xff] %v24395_v43  ;;  %v24413_v33 = vsub.f32 %v15277_v13, %v24395_v43  ;;  %v15490_v40 = vsub.f32 %v24383_v48, %v25117_v4 }
0x1cf1   : > { %25607 = vst [vmem:[#allocation49_spill] sm:$0xff] %v24376_v36  ;;  %25608 = vst [vmem:[#allocation53_spill] sm:$0xff] %v24378_v57  ;;  %17399 = vmatpush3.msra.mxu1 %v15470_v3  ;;  %v25114_v12 = vand.u32 4294901760, %v24376_v36  ;;  %v24393_v61 = vsub.f32 %v15278_v58, %v24378_v57  ;;  %17368 = vmatprep.subr.mxu0 %v24378_v57  ;;  %v15596_v58 = vand.u32 4294901760, %v15595_v34 }
0x1cf2   : > { %17400 = vmatprep.subr.mxu1 %v15589_v1  ;;  %v15483_v3 = vsub.f32 %v24369_v29, %v25110_v6  ;;  %v24403_v1 = vsub.f32 %v15262_v9, %v24385_v5  ;;  %25614 = vst [vmem:[#allocation40_spill] sm:$0xff] %v24405_v50  ;;  %17369 = vmatpush3.msra.mxu0 %v24385_v5  ;;  %25615 = vst [vmem:[#allocation38_spill] sm:$0xff] %v24413_v33  ;;  %v15260_v6 = vld [vmem:[#allocation19 + $0x18] sm:$0xff]  ;;  %v15491_v4 = vand.u32 4294901760, %v15490_v40  ;;  %v15258_v40 = vld [vmem:[#allocation19 + $0x8] sm:$0xff] }
0x1cf3   : > { %25611 = vst [vmem:[#allocation59_spill] sm:$0xff] %v24393_v61  ;;  %17401 = vmatpush3.msra.mxu1 %v15477_v2  ;;  %v15602_v51 = vsub.f32 %v24376_v36, %v25114_v12  ;;  %v25122_v2 = vand.u32 4294901760, %v24393_v61  ;;  %17370 = vmatprep.subr.mxu0 %v24395_v43  ;;  %v24421_v34 = vsub.f32 %v15261_v8, %v24405_v50  ;;  %v24434_v36 = vand.u32 4294901760, %v15260_v6 }
0x1cf4   : > { %25613 = vst [vmem:[#allocation47_spill] sm:$0xff] %v24403_v1  ;;  %v15484_v9 = vand.u32 4294901760, %v15483_v3  ;;  %v25125_v49 = vand.u32 4294901760, %v24403_v1  ;;  %17371 = vmatpush3.msra.mxu0 %v24405_v50  ;;  %17402 = vmatprep.subr.mxu1 %v15596_v58  ;;  %v25128_v3 = vand.u32 4294901760, %v24413_v33 }
0x1cf5   : > { %25616 = vst [vmem:[#allocation61_spill] sm:$0xff] %v24421_v34  ;;  %v15603_v12 = vand.u32 4294901760, %v15602_v51  ;;  %v15609_v13 = vsub.f32 %v24393_v61, %v25122_v2  ;;  %v25133_v48 = vand.u32 4294901760, %v24421_v34  ;;  %25618 = vst [vmem:[#allocation54_spill] sm:$0xff] %v24434_v36  ;;  %v15274_v51 = vld [vmem:[#allocation19 + $0x88] sm:$0xff]  ;;  %v24440_v61 = vsub.f32 %v15276_v44, %v24428_v21  ;;  %17372 = vmatprep.subr.mxu0 %v24428_v21 }
0x1cf6   : > { %17403 = vmatpush3.msra.mxu1 %v15484_v9  ;;  %v15497_v8 = vsub.f32 %v24403_v1, %v25125_v49  ;;  %v15616_v2 = vsub.f32 %v24413_v33, %v25128_v3  ;;  %v24442_v9 = vand.u32 4294901760, %v15275_v23  ;;  %v15273_v3 = vld [vmem:[#allocation19 + $0x80] sm:$0xff]  ;;  %17373 = vmatpush3.msra.mxu0 %v24434_v36 }
0x1cf7   : > { %17404 = vmatprep.subr.mxu1 %v15603_v12  ;;  %v15610_v58 = vand.u32 4294901760, %v15609_v13  ;;  %25619 = vst [vmem:[#allocation62_spill] sm:$0xff] %v24440_v61  ;;  %v15504_v1 = vsub.f32 %v24421_v34, %v25133_v48  ;;  %v24449_v12 = vsub.f32 %v15260_v6, %v24434_v36  ;;  %v24451_v13 = vand.u32 4294901760, %v15259_v47 }
0x1cf8   : > { %25620 = vst [vmem:[#allocation51_spill] sm:$0xff] %v24442_v9  ;;  %17405 = vmatpush3.msra.mxu1 %v15491_v4  ;;  %v15498_v49 = vand.u32 4294901760, %v15497_v8  ;;  %v15617_v44 = vand.u32 4294901760, %v15616_v2  ;;  %v25138_v33 = vand.u32 4294901760, %v24440_v61  ;;  %v24456_v29 = vsub.f32 %v15275_v23, %v24442_v9  ;;  %v15257_v8 = vld [vmem:[#allocation19] sm:$0xff]  ;;  %17374 = vmatprep.subr.mxu0 %v24442_v9 }
0x1cf9   : > { %25621 = vst [vmem:[#allocation46_spill] sm:$0xff] %v24449_v12  ;;  %25622 = vst [vmem:[#allocation34_spill] sm:$0xff] %v24451_v13  ;;  %17406 = vmatprep.subr.mxu1 %v15610_v58  ;;  %v24458_v4 = vand.u32 4294901760, %v15274_v51  ;;  %v15505_v6 = vand.u32 4294901760, %v15504_v1  ;;  %v25143_v48 = vand.u32 4294901760, %v24449_v12  ;;  %v24463_v34 = vsub.f32 %v15259_v47, %v24451_v13  ;;  %17375 = vmatpush3.msra.mxu0 %v24451_v13 }
0x1cfa   : > { %25623 = vst [vmem:[#allocation63_spill] sm:$0xff] %v24456_v29  ;;  %17407 = vmatpush3.msra.mxu1 %v15498_v49  ;;  %v24465_v36 = vand.u32 4294901760, %v15258_v40  ;;  %v15623_v23 = vsub.f32 %v24440_v61, %v25138_v33  ;;  %v25146_v2 = vand.u32 4294901760, %v24456_v29  ;;  %v24475_v49 = vand.u32 4294901760, %v15273_v3 }
0x1cfb   : > { %25624 = vst [vmem:[#allocation64_spill] sm:$0xff] %v24458_v4  ;;  %25625 = vst [vmem:[#allocation65_spill] sm:$0xff] %v24463_v34  ;;  %17408 = vmatprep.subr.mxu1 %v15617_v44  ;;  %v24473_v58 = vsub.f32 %v15274_v51, %v24458_v4  ;;  %17376 = vmatprep.subr.mxu0 %v24458_v4  ;;  %v15511_v47 = vsub.f32 %v24449_v12, %v25143_v48  ;;  %v25149_v1 = vand.u32 4294901760, %v24463_v34 }
0x1cfc   : > { %25626 = vst [vmem:[#allocation66_spill] sm:$0xff] %v24465_v36  ;;  %25628 = vst [vmem:[#allocation68_spill] sm:$0xff] %v24475_v49  ;;  %17409 = vmatpush3.msra.mxu1 %v15505_v6  ;;  %v24483_v44 = vsub.f32 %v15258_v40, %v24465_v36  ;;  %v24485_v33 = vand.u32 4294901760, %v15257_v8  ;;  %17377 = vmatpush3.msra.mxu0 %v24465_v36  ;;  %v15624_v51 = vand.u32 4294901760, %v15623_v23 }
0x1cfd   : > { %25627 = vst [vmem:[#allocation67_spill] sm:$0xff] %v24473_v58  ;;  %v15630_v61 = vsub.f32 %v24456_v29, %v25146_v2  ;;  %v25152_v6 = vand.u32 4294901760, %v24473_v58  ;;  %v24493_v4 = vsub.f32 %v15273_v3, %v24475_v49  ;;  %17378 = vmatprep.subr.mxu0 %v24475_v49  ;;  %v15512_v48 = vand.u32 4294901760, %v15511_v47 }
0x1cfe   : > { %25629 = vst [vmem:[#allocation69_spill] sm:$0xff] %v24483_v44  ;;  %25630 = vst [vmem:[#allocation70_spill] sm:$0xff] %v24485_v33  ;;  %v15518_v40 = vsub.f32 %v24463_v34, %v25149_v1  ;;  %v25153_v12 = vand.u32 4294901760, %v24483_v44  ;;  %v24501_v23 = vsub.f32 %v15257_v8, %v24485_v33  ;;  %17379 = vmatpush3.msra.mxu0 %v24485_v33  ;;  %17410 = vmatprep.subr.mxu1 %v15624_v51 }
0x1cff   : > { %25631 = vst [vmem:[#allocation71_spill] sm:$0xff] %v24493_v4  ;;  %v15631_v2 = vand.u32 4294901760, %v15630_v61  ;;  %v15637_v3 = vsub.f32 %v24473_v58, %v25152_v6  ;;  %v25157_v29 = vand.u32 4294901760, %v24493_v4  ;;  %17424 = vmatprep.subr.mxu0 %v24203_v45  ;;  %17411 = vmatpush3.msra.mxu1 %v15512_v48 }
0x1d00   : > { %25632 = vst [vmem:[#allocation72_spill] sm:$0xff] %v24501_v23  ;;  %v15519_v47 = vand.u32 4294901760, %v15518_v40  ;;  %v15525_v1 = vsub.f32 %v24483_v44, %v25153_v12  ;;  %v25158_v8 = vand.u32 4294901760, %v24501_v23 }
0x1d01   : > { %17412 = vmatprep.subr.mxu1 %v15631_v2  ;;  %v15638_v34 = vand.u32 4294901760, %v15637_v3  ;;  %v15644_v61 = vsub.f32 %v24493_v4, %v25157_v29 }
0x1d02   : > { %17413 = vmatpush3.msra.mxu1 %v15519_v47  ;;  %v15526_v51 = vand.u32 4294901760, %v15525_v1  ;;  %v15532_v6 = vsub.f32 %v24501_v23, %v25158_v8  ;;  %v14337_v1 = vld [vmem:[%s25633_s16] sm:$0x3]  ;;  %s16259_s16 = scalar_lea.sflag [#allocation4], %s20144_s5 }
0x1d03   : > { %17414 = vmatprep.subr.mxu1 %v15638_v34  ;;  %v15645_v48 = vand.u32 4294901760, %v15644_v61  ;;  %v25634_v61 = vld [vmem:[#allocation35_spill] sm:$0xff] }
0x1d04   : > { %17415 = vmatpush3.msra.mxu1 %v15526_v51  ;;  %v15533_v40 = vand.u32 4294901760, %v15532_v6  ;;  %v14342_v51 = vrot.slane %v14337_v1, %v25634_v61 }
0x1d05   : > { %17416 = vmatprep.subr.mxu1 %v15645_v48 }
0x1d06   : > { %17417 = vmatpush3.msra.mxu1 %v15533_v40  ;;  %v25635_v40 = vld [vmem:[#allocation36_spill] sm:$0xff] }
0x1d07   : > { %17462 = vmatprep.subr.mxu1 %v24198_v55  ;;  %v14346_v23 = vrot.slane %v14337_v1, %v25635_v40 }
0x1d4f   : > { %v14695_v2 = vpop.f32.mrf.mxu1 }
0x1d51   : > { %v14697_v3 = vpop.f32.mrf.mxu1 }
0x1d53   : > { %v14702_v45 = vpop.f32.mrf.mxu1 }
0x1d55   : > { %v14704_v29 = vpop.f32.mrf.mxu1 }
0x1d57   : > { %v14452_v12 = vpop.f32.mrf.mxu0 }
0x1d58   : > { %v14453_v4 = vadd.f32 %v14452_v12, %v14342_v51 }
0x1d59   : > { %v14454_v44 = vpop.f32.mrf.mxu0 }
0x1d5a   : > { %v14455_v33 = vadd.f32 %v14454_v44, %v14346_v23  ;;  %v14696_v36 = vadd.f32 %v14695_v2, %v14453_v4 }
0x1d5c   : > { %v14463_v47 = vpop.f32.mrf.mxu0  ;;  %v14698_v50 = vadd.f32 %v14697_v3, %v14455_v33 }
0x1d5d   : > { %v14464_v49 = vadd.f32 %v14463_v47, %v14342_v51 }
0x1d5e   : > { %v14465_v34 = vpop.f32.mrf.mxu0 }
0x1d5f   : > { %v14466_v21 = vadd.f32 %v14465_v34, %v14346_v23  ;;  %v14703_v60 = vadd.f32 %v14702_v45, %v14464_v49 }
0x1d61   : > { %v14705_v42 = vadd.f32 %v14704_v29, %v14466_v21 }
0x1d70   : > { %v14953_v8 = vpop.f32.mrf.mxu1 }
0x1d72   : > { %v14955_v6 = vpop.f32.mrf.mxu1 }
0x1d75   : > { %v14962_v58 = vpop.f32.mrf.mxu1 }
0x1d77   : > { %v14964_v13 = vpop.f32.mrf.mxu1 }
0x1d7a   : > { %v14839_v48 = vpop.f32.mrf.mxu0 }
0x1d7b   : > { %v14840_v53 = vadd.f32 %v14839_v48, %v14696_v36 }
0x1d7c   : > { %v14841_v55 = vpop.f32.mrf.mxu0 }
0x1d7d   : > { %v14842_v43 = vadd.f32 %v14841_v55, %v14698_v50  ;;  %v14954_v57 = vadd.f32 %v14953_v8, %v14840_v53 }
0x1d7f   : > { %v14847_v9 = vpop.f32.mrf.mxu0  ;;  %v14956_v46 = vadd.f32 %v14955_v6, %v14842_v43 }
0x1d80   : > { %v14848_v61 = vadd.f32 %v14847_v9, %v14703_v60 }
0x1d81   : > { %v14849_v5 = vpop.f32.mrf.mxu0 }
0x1d82   : > { %v14850_v12 = vadd.f32 %v14849_v5, %v14705_v42  ;;  %v14963_v2 = vadd.f32 %v14962_v58, %v14848_v61 }
0x1d84   : > { %v14965_v55 = vadd.f32 %v14964_v13, %v14850_v12 }
0x1d94   : > { %v15241_v18 = vpop.f32.mrf.mxu1 }
0x1d96   : > { %v15243_v19 = vpop.f32.mrf.mxu1 }
0x1d98   : > { %v15248_v51 = vpop.f32.mrf.mxu1 }
0x1d9a   : > { %v15250_v29 = vpop.f32.mrf.mxu1 }
0x1d9c   : > { %v15130_v1 = vpop.f32.mrf.mxu0 }
0x1d9d   : > { %v15131_v40 = vadd.f32 %v15130_v1, %v14954_v57 }
0x1d9e   : > { %v15132_v44 = vpop.f32.mrf.mxu0 }
0x1d9f   : > { %v15242_v47 = vadd.f32 %v15241_v18, %v15131_v40  ;;  %v15133_v4 = vadd.f32 %v15132_v44, %v14956_v46 }
0x1da0   : > { %v15137_v23 = vpop.f32.mrf.mxu0 }
0x1da1   : > { %v15253_v36 = vmax.f32 %v15242_v47, 0.0  ;;  %v15244_v33 = vadd.f32 %v15243_v19, %v15133_v4  ;;  %v15138_v3 = vadd.f32 %v15137_v23, %v14963_v2  ;;  %v25639_v2 = vld [vmem:[#allocation37_spill] sm:$0xff] }
0x1da2   : > { %v15139_v45 = vpop.f32.mrf.mxu0  ;;  %v25641_v23 = vld [vmem:[#allocation53_spill] sm:$0xff] }
0x1da3   : > { %v24525_v50 = vand.u32 4294901760, %v15253_v36  ;;  %v15254_v21 = vmax.f32 %v15244_v33, 0.0  ;;  %v15249_v60 = vadd.f32 %v15248_v51, %v15138_v3  ;;  %v15140_v53 = vadd.f32 %v15139_v45, %v14965_v55  ;;  %v25640_v51 = vld [vmem:[#allocation41_spill] sm:$0xff]  ;;  %v25643_v33 = vld [vmem:[#allocation58_spill] sm:$0xff]  ;;  %v25645_v55 = vld [vmem:[#allocation60_spill] sm:$0xff] }
0x1da4   : > { %v25644_v3 = vld [vmem:[#allocation45_spill] sm:$0xff]  ;;  %v25646_v45 = vld [vmem:[#allocation44_spill] sm:$0xff] }
0x1da5   : > { %25636 = vst [vmem:[#allocation35_spill] sm:$0xff] %v24525_v50  ;;  %v24528_v5 = vsub.f32 %v15253_v36, %v24525_v50  ;;  %v24530_v42 = vand.u32 4294901760, %v15254_v21  ;;  %v15255_v18 = vmax.f32 %v15249_v60, 0.0  ;;  %v15251_v46 = vadd.f32 %v15250_v29, %v15140_v53  ;;  %v25642_v36 = vld [vmem:[#allocation42_spill] sm:$0xff]  ;;  %v25648_v60 = vld [vmem:[#allocation43_spill] sm:$0xff]  ;;  %v25650_v29 = vld [vmem:[#allocation48_spill] sm:$0xff] }
0x1da6   : > { %v25649_v53 = vld [vmem:[#allocation50_spill] sm:$0xff] }
0x1da7   : > { %v15400_v57 = vand.u32 4294901760, %v24528_v5  ;;  %v15393_v19 = vsub.f32 %v15254_v21, %v24530_v42  ;;  %v24534_v43 = vand.u32 4294901760, %v15255_v18  ;;  %v15256_v9 = vmax.f32 %v15251_v46, 0.0  ;;  %15648 = vmatprep.mubr.f32.mxu1 %v24530_v42  ;;  %v25647_v21 = vld [vmem:[#allocation40_spill] sm:$0xff]  ;;  %v25652_v46 = vld [vmem:[#allocation49_spill] sm:$0xff] }
0x1da8   : > { %15650 = vmatmul.mubr.f32.vlgmr.msra.gmra.mxu1 %v24525_v50  ;;  %v25668_v50 = vld [vmem:[#allocation63_spill] sm:$0xff] }
0x1da9   : > { %25637 = vst [vmem:[#allocation36_spill] sm:$0xff] %v24534_v43  ;;  %v24539_v13 = vsub.f32 %v15255_v18, %v24534_v43  ;;  %v24541_v58 = vand.u32 4294901760, %v15256_v9  ;;  %17463 = vmatpush3.msra.mxu1 %v24200_v26  ;;  %v15394_v49 = vand.u32 4294901760, %v15393_v19  ;;  %v15401_v8 = vsub.f32 %v24528_v5, %v15400_v57  ;;  %v25651_v18 = vld [vmem:[#allocation54_spill] sm:$0xff] }
0x1daa   : > { %17464 = vmatprep.subr.mxu1 %v24205_v7 }
0x1dab   : > { %25638 = vst [vmem:[#allocation73_spill] sm:$0xff] %v24541_v58  ;;  %v25198_v34 = vand.u32 4294901760, %v24539_v13  ;;  %v24550_v6 = vsub.f32 %v15256_v9, %v24541_v58  ;;  %17465 = vmatpush3.msra.mxu1 %v24211_v63  ;;  %15655 = vmatprep.mubr.f32.mxu1 %v24541_v58  ;;  %v15395_v48 = vsub.f32 %v15393_v19, %v15394_v49  ;;  %v15402_v12 = vand.u32 4294901760, %v15401_v8  ;;  %v25654_v9 = vld [vmem:[#allocation57_spill] sm:$0xff]  ;;  %v25656_v8 = vld [vmem:[#allocation59_spill] sm:$0xff] }
0x1dac   : > { %17466 = vmatprep.subr.mxu1 %v24218_v54  ;;  %15657 = vmatmul.mubr.f32.gmra.mxu1 %v24534_v43  ;;  %v25666_v43 = vld [vmem:[#allocation46_spill] sm:$0xff] }
0x1dad   : > { %17467 = vmatpush3.msra.mxu1 %v24225_v22  ;;  %15908 = vmatprep.mubr.f32.mxu1 %v15394_v49  ;;  %v15396_v61 = vand.u32 4294901760, %v15395_v48  ;;  %v25199_v1 = vand.u32 4294901760, %v24550_v6  ;;  %v15416_v44 = vsub.f32 %v24539_v13, %v25198_v34  ;;  %v25655_v49 = vld [vmem:[#allocation34_spill] sm:$0xff]  ;;  %v25657_v48 = vld [vmem:[#allocation64_spill] sm:$0xff]  ;;  %v25667_v58 = vand.u32 4294901760, %v24550_v6 }
0x1dae   : > { %17468 = vmatprep.subr.mxu1 %v24235_v37  ;;  %v25664_v34 = vld [vmem:[#allocation62_spill] sm:$0xff] }
0x1daf   : > { %17469 = vmatpush3.msra.mxu1 %v24245_v38  ;;  %15397 = vmatprep.mubr.f32.mxu0 %v15396_v61  ;;  %v15410_v40 = vsub.f32 %v24550_v6, %v25199_v1  ;;  %v15417_v4 = vand.u32 4294901760, %v15416_v44  ;;  %v25658_v61 = vld [vmem:[#allocation47_spill] sm:$0xff]  ;;  %v25661_v44 = vld [vmem:[#allocation68_spill] sm:$0xff] }
0x1db0   : > { %17470 = vmatprep.subr.mxu1 %v24268_v31  ;;  %15403 = vmatmul.mubr.f32.vlgmr.msra.gmra.mxu0 %v15402_v12  ;;  %v25659_v12 = vld [vmem:[#allocation66_spill] sm:$0xff]  ;;  %v25665_v1 = vld [vmem:[#allocation52_spill] sm:$0xff] }
0x1db1   : > { %17425 = vmatpush3.msra.mxu0 %v24209_v16  ;;  %17471 = vmatpush3.msra.mxu1 %v24274_v10  ;;  %v15411_v47 = vand.u32 4294901760, %v15410_v40  ;;  %v25660_v40 = vld [vmem:[#allocation38_spill] sm:$0xff] }
0x1db2   : > { %17426 = vmatprep.subr.mxu0 %v24216_v11  ;;  %17472 = vmatprep.subr.mxu1 %v24282_v28 }
0x1db3   : > { %17427 = vmatpush3.msra.mxu0 %v24223_v20  ;;  %17473 = vmatpush3.msra.mxu1 %v24291_v56 }
0x1db4   : > { %15412 = vmatprep.mubr.f32.mxu0 %v15411_v47  ;;  %17428 = vmatprep.subr.mxu0 %v24233_v15  ;;  %v25662_v47 = vld [vmem:[#allocation61_spill] sm:$0xff] }
0x1db5   : > { %17474 = vmatprep.subr.mxu1 %v24298_v59  ;;  %15418 = vmatmul.mubr.f32.gmra.mxu0 %v15417_v4  ;;  %v25663_v4 = vld [vmem:[#allocation70_spill] sm:$0xff] }
0x1db6   : > { %17429 = vmatpush3.msra.mxu0 %v24243_v39  ;;  %17475 = vmatpush3.msra.mxu1 %v24305_v41 }
0x1db7   : > { %17430 = vmatprep.subr.mxu0 %v24253_v17  ;;  %15792 = vmatprep.mubr.f32.mxu0 %v15393_v19  ;;  %v25653_v19 = vld [vmem:[#allocation51_spill] sm:$0xff] }
0x1db8   : > { %17476 = vmatprep.subr.mxu1 %v24315_v25  ;;  %17431 = vmatpush3.msra.mxu0 %v24261_v30 }
0x1db9   : > { %17477 = vmatpush3.msra.mxu1 %v24325_v27  ;;  %17432 = vmatprep.subr.mxu0 %v24280_v62 }
0x1dba   : > { %17478 = vmatprep.subr.mxu1 %v24348_v0  ;;  %17433 = vmatpush3.msra.mxu0 %v24289_v24 }
0x1dbb   : > { %17479 = vmatpush3.msra.mxu1 %v24354_v52  ;;  %17434 = vmatprep.subr.mxu0 %v24296_v35 }
0x1dbc   : > { %17480 = vmatprep.subr.mxu1 %v24362_v14  ;;  %17435 = vmatpush3.msra.mxu0 %v24303_v32 }
0x1dbd   : > { %17481 = vmatpush3.msra.mxu1 %v25639_v2  ;;  %17436 = vmatprep.subr.mxu0 %v25640_v51 }
0x1dbe   : > { %17482 = vmatprep.subr.mxu1 %v25641_v23  ;;  %17437 = vmatpush3.msra.mxu0 %v25642_v36 }
0x1dbf   : > { %17483 = vmatpush3.msra.mxu1 %v25643_v33  ;;  %17438 = vmatprep.subr.mxu0 %v25644_v3 }
0x1dc0   : > { %17484 = vmatprep.subr.mxu1 %v25645_v55  ;;  %17439 = vmatpush3.msra.mxu0 %v25646_v45 }
0x1dc1   : > { %17485 = vmatpush3.msra.mxu1 %v25647_v21  ;;  %17440 = vmatprep.subr.mxu0 %v25648_v60 }
0x1dc2   : > { %17486 = vmatprep.subr.mxu1 %v25649_v53  ;;  %17441 = vmatpush3.msra.mxu0 %v25650_v29 }
0x1dc3   : > { %17487 = vmatpush3.msra.mxu1 %v25651_v18  ;;  %17442 = vmatprep.subr.mxu0 %v25652_v46 }
0x1dc4   : > { %17488 = vmatprep.subr.mxu1 %v25653_v19  ;;  %17443 = vmatpush3.msra.mxu0 %v25654_v9 }
0x1dc5   : > { %17489 = vmatpush3.msra.mxu1 %v25655_v49  ;;  %17444 = vmatprep.subr.mxu0 %v25656_v8 }
0x1dc6   : > { %17490 = vmatprep.subr.mxu1 %v25657_v48  ;;  %17445 = vmatpush3.msra.mxu0 %v25658_v61 }
0x1dc7   : > { %17491 = vmatpush3.msra.mxu1 %v25659_v12  ;;  %17446 = vmatprep.subr.mxu0 %v25660_v40 }
0x1dc8   : > { %17492 = vmatprep.subr.mxu1 %v25661_v44  ;;  %17447 = vmatpush3.msra.mxu0 %v25662_v47  ;;  %v25669_v47 = vld [vmem:[#allocation65_spill] sm:$0xff] }
0x1dc9   : > { %17493 = vmatpush3.msra.mxu1 %v25663_v4  ;;  %17448 = vmatprep.subr.mxu0 %v25664_v34  ;;  %v25670_v34 = vld [vmem:[#allocation67_spill] sm:$0xff] }
0x1dca   : > { %15912 = vmatmul.mubr.f32.vlgmr.msra.gmra.mxu1 %v15400_v57  ;;  %17538 = vmatprep.subr.mxu1 %v25665_v1  ;;  %v25671_v57 = vand.u32 4294901760, %v24539_v13  ;;  %v25672_v1 = vld [vmem:[#allocation69_spill] sm:$0xff] }
0x1dcb   : > { %17449 = vmatpush3.msra.mxu0 %v25666_v43  ;;  %15919 = vmatprep.mubr.f32.mxu1 %v25667_v58 }
0x1dcc   : > { %17539 = vmatpush3.msra.mxu1 %v24200_v26  ;;  %17450 = vmatprep.subr.mxu0 %v25668_v50  ;;  %v25673_v26 = vld [vmem:[#allocation71_spill] sm:$0xff] }
0x1dcd   : > { %17540 = vmatprep.subr.mxu1 %v24205_v7  ;;  %17451 = vmatpush3.msra.mxu0 %v25669_v47  ;;  %v25674_v7 = vld [vmem:[#allocation72_spill] sm:$0xff] }
0x1dce   : > { %17541 = vmatpush3.msra.mxu1 %v24211_v63  ;;  %17452 = vmatprep.subr.mxu0 %v25670_v34  ;;  %v25675_v63 = vld [vmem:[#allocation39_spill] sm:$0xff] }
0x1dcf   : > { %15923 = vmatmul.mubr.f32.gmra.mxu1 %v25671_v57  ;;  %17542 = vmatprep.subr.mxu1 %v24218_v54  ;;  %v25676_v58 = vand.u32 4294901760, %v25675_v63  ;;  %v25677_v54 = vand.u32 4294901760, %v24209_v16  ;;  %v25681_v16 = vand.u32 4294901760, %v24243_v39  ;;  %v25685_v39 = vand.u32 4294901760, %v24289_v24 }
0x1dd0   : > { %17453 = vmatpush3.msra.mxu0 %v25672_v1  ;;  %17543 = vmatpush3.msra.mxu1 %v24225_v22  ;;  %v25678_v22 = vand.u32 4294901760, %v24216_v11  ;;  %v25682_v11 = vand.u32 4294901760, %v24253_v17  ;;  %v25686_v17 = vand.u32 4294901760, %v24296_v35  ;;  %v25692_v24 = vand.u32 4294901760, %v25648_v60 }
0x1dd1   : > { %16200 = vmatprep.mubr.f32.mxu1 %v24530_v42  ;;  %17454 = vmatprep.subr.mxu0 %v25673_v26  ;;  %v25694_v35 = vand.u32 4294901760, %v25652_v46 }
0x1dd2   : > { %17544 = vmatprep.subr.mxu1 %v24235_v37  ;;  %17455 = vmatpush3.msra.mxu0 %v25674_v7  ;;  %v25679_v37 = vand.u32 4294901760, %v24223_v20  ;;  %v25683_v20 = vand.u32 4294901760, %v24261_v30  ;;  %v25687_v30 = vand.u32 4294901760, %v24303_v32  ;;  %v25696_v32 = vand.u32 4294901760, %v25656_v8  ;;  %v16519_v8 = vld [vmem:[%s25713_s0] ss:$0 sm:$0xff] }
0x1dd3   : > { %17545 = vmatpush3.msra.mxu1 %v24245_v38  ;;  %15795 = vmatmul.mubr.f32.vlgmr.msra.gmra.mxu0 %v24528_v5  ;;  %v25680_v38 = vand.u32 4294901760, %v24233_v15  ;;  %v25684_v15 = vand.u32 4294901760, %v24280_v62  ;;  %v25690_v62 = vand.u32 4294901760, %v25644_v3  ;;  %v25703_v5 = vld [vmem:[#allocation35_spill] sm:$0xff] }
0x1dd4   : > { %17500 = vmatprep.subr.mxu0 %v25676_v58  ;;  %17546 = vmatprep.subr.mxu1 %v24268_v31  ;;  %v25688_v31 = vand.u32 4294901760, %v25640_v51  ;;  %v25708_v51 = vand.u32 4294901760, %v25670_v34 }
0x1dd5   : > { %15801 = vmatprep.mubr.f32.mxu0 %v24550_v6  ;;  %17501 = vmatpush3.msra.mxu0 %v25677_v54  ;;  %v25706_v6 = vand.u32 4294901760, %v25668_v50 }
0x1dd6   : > { %17547 = vmatpush3.msra.mxu1 %v24274_v10  ;;  %17502 = vmatprep.subr.mxu0 %v25678_v22  ;;  %v25689_v10 = vand.u32 4294901760, %v25642_v36  ;;  %v25710_v36 = vand.u32 4294901760, %v25672_v1 }
0x1dd7   : > { %17548 = vmatprep.subr.mxu1 %v24282_v28  ;;  %17503 = vmatpush3.msra.mxu0 %v25679_v37  ;;  %v25691_v28 = vand.u32 4294901760, %v25646_v45 }
0x1dd8   : > { %17549 = vmatpush3.msra.mxu1 %v24291_v56  ;;  %15804 = vmatmul.mubr.f32.gmra.mxu0 %v24539_v13  ;;  %v25693_v56 = vand.u32 4294901760, %v25650_v29  ;;  %v25705_v13 = vld [vmem:[#allocation73_spill] sm:$0xff] }
0x1dd9   : > { %17504 = vmatprep.subr.mxu0 %v25680_v38  ;;  %17550 = vmatprep.subr.mxu1 %v24298_v59  ;;  %v25695_v59 = vand.u32 4294901760, %v25654_v9 }
0x1dda   : > { %17505 = vmatpush3.msra.mxu0 %v25681_v16  ;;  %16089 = vmatprep.mubr.f32.mxu0 %v24530_v42  ;;  %v25704_v42 = vand.u32 4294901760, %v25666_v43  ;;  %v25712_v43 = vand.u32 4294901760, %v25674_v7 }
0x1ddb   : > { %17551 = vmatpush3.msra.mxu1 %v24305_v41  ;;  %17506 = vmatprep.subr.mxu0 %v25682_v11  ;;  %v25697_v41 = vand.u32 4294901760, %v25658_v61 }
0x1ddc   : > { %17552 = vmatprep.subr.mxu1 %v24315_v25  ;;  %17507 = vmatpush3.msra.mxu0 %v25683_v20  ;;  %v25698_v25 = vand.u32 4294901760, %v25660_v40 }
0x1ddd   : > { %17553 = vmatpush3.msra.mxu1 %v24325_v27  ;;  %17508 = vmatprep.subr.mxu0 %v25684_v15  ;;  %v25699_v27 = vld [vmem:[#allocation61_spill] sm:$0xff] }
0x1dde   : > { %17554 = vmatprep.subr.mxu1 %v24348_v0  ;;  %17509 = vmatpush3.msra.mxu0 %v25685_v39  ;;  %v25700_v0 = vand.u32 4294901760, %v25699_v27 }
0x1ddf   : > { %17555 = vmatpush3.msra.mxu1 %v24354_v52  ;;  %17510 = vmatprep.subr.mxu0 %v25686_v17  ;;  %v25701_v52 = vld [vmem:[#allocation62_spill] sm:$0xff] }
0x1de0   : > { %17556 = vmatprep.subr.mxu1 %v24362_v14  ;;  %17511 = vmatpush3.msra.mxu0 %v25687_v30  ;;  %v25702_v14 = vand.u32 4294901760, %v25701_v52 }
0x1de1   : > { %17557 = vmatpush3.msra.mxu1 %v25639_v2  ;;  %17512 = vmatprep.subr.mxu0 %v25688_v31  ;;  %v25707_v2 = vand.u32 4294901760, %v25669_v47 }
0x1de2   : > { %17558 = vmatprep.subr.mxu1 %v25641_v23  ;;  %17513 = vmatpush3.msra.mxu0 %v25689_v10  ;;  %v25709_v23 = vld [vmem:[#allocation36_spill] sm:$0xff] }
0x1de3   : > { %17559 = vmatpush3.msra.mxu1 %v25643_v33  ;;  %17514 = vmatprep.subr.mxu0 %v25690_v62  ;;  %v25711_v33 = vand.u32 4294901760, %v25673_v26 }
0x1de4   : > { %17560 = vmatprep.subr.mxu1 %v25645_v55  ;;  %17515 = vmatpush3.msra.mxu0 %v25691_v28 }
0x1de5   : > { %17561 = vmatpush3.msra.mxu1 %v25647_v21  ;;  %17516 = vmatprep.subr.mxu0 %v25692_v24 }
0x1de6   : > { %17562 = vmatprep.subr.mxu1 %v25649_v53  ;;  %17517 = vmatpush3.msra.mxu0 %v25693_v56 }
0x1de7   : > { %17563 = vmatpush3.msra.mxu1 %v25651_v18  ;;  %17518 = vmatprep.subr.mxu0 %v25694_v35 }
0x1de8   : > { %17564 = vmatprep.subr.mxu1 %v25653_v19  ;;  %17519 = vmatpush3.msra.mxu0 %v25695_v59 }
0x1de9   : > { %17565 = vmatpush3.msra.mxu1 %v25655_v49  ;;  %17520 = vmatprep.subr.mxu0 %v25696_v32 }
0x1dea   : > { %17566 = vmatprep.subr.mxu1 %v25657_v48  ;;  %17521 = vmatpush3.msra.mxu0 %v25697_v41  ;;  %v25714_v41 = vld [vmem:[#allocation55_spill] sm:$0xff] }
0x1deb   : > { %17567 = vmatpush3.msra.mxu1 %v25659_v12  ;;  %17522 = vmatprep.subr.mxu0 %v25698_v25 }
0x1dec   : > { %17568 = vmatprep.subr.mxu1 %v25661_v44  ;;  %17523 = vmatpush3.msra.mxu0 %v25700_v0  ;;  %v25715_v0 = vld [vmem:[#allocation56_spill] sm:$0xff] }
0x1ded   : > { %17569 = vmatpush3.msra.mxu1 %v25663_v4  ;;  %17524 = vmatprep.subr.mxu0 %v25702_v14 }
0x1dee   : > { %16202 = vmatmul.mubr.f32.vlgmr.msra.gmra.mxu1 %v25703_v5  ;;  %17525 = vmatpush3.msra.mxu0 %v25704_v42 }
0x1def   : > { %16207 = vmatprep.mubr.f32.mxu1 %v25705_v13  ;;  %17526 = vmatprep.subr.mxu0 %v25706_v6 }
0x1df0   : > { %17527 = vmatpush3.msra.mxu0 %v25707_v2 }
0x1df1   : > { %17528 = vmatprep.subr.mxu0 %v25708_v51 }
0x1df2   : > { %16209 = vmatmul.mubr.f32.gmra.mxu1 %v25709_v23  ;;  %17529 = vmatpush3.msra.mxu0 %v25710_v36 }
0x1df3   : > { %17530 = vmatprep.subr.mxu0 %v25711_v33 }
0x1df4   : > { %17531 = vmatpush3.msra.mxu0 %v25712_v43 }
0x1df5   : > { %16091 = vmatmul.mubr.f32.vlgmr.msra.gmra.mxu0 %v25703_v5 }
0x1df6   : > { %16096 = vmatprep.mubr.f32.mxu0 %v25705_v13 }
0x1df9   : > { %16098 = vmatmul.mubr.f32.gmra.mxu0 %v25709_v23 }
0x1e68   : > { %v17418_v50 = vpop.f32.mrf.mxu1 }
0x1e6a   : > { %v17419_v34 = vpop.f32.mrf.mxu1 }
0x1e6b   : > { %v17420_v47 = vadd.f32 %v17419_v34, %v17418_v50 }
0x1e6c   : > { %v17421_v55 = vpop.f32.mrf.mxu1 }
0x1e6e   : > { %v17422_v21 = vpop.f32.mrf.mxu1 }
0x1e6f   : > { %v17423_v63 = vadd.f32 %v17422_v21, %v17421_v55 }
0x1e70   : > { %v17380_v3 = vpop.f32.mrf.mxu0 }
0x1e72   : > { %v17381_v45 = vpop.f32.mrf.mxu0 }
0x1e73   : > { %v17382_v49 = vadd.f32 %v17381_v45, %v17380_v3  ;;  %v16520_v45 = vld [vmem:[%s25716_s2] ss:$0 sm:$0xff] }
0x1e75   : > { %v17383_v60 = vpop.f32.mrf.mxu0  ;;  %v15405_v12 = vadd.f32 %v17382_v49, %v16519_v8 }
0x1e77   : > { %v17384_v29 = vpop.f32.mrf.mxu0  ;;  %v15652_v26 = vadd.f32 %v17420_v47, %v15405_v12 }
0x1e78   : > { %v17385_v40 = vadd.f32 %v17384_v29, %v17383_v60  ;;  %v16521_v60 = vld [vmem:[%s25717_s22] ss:$0 sm:$0xff] }
0x1e7a   : > { %v15420_v1 = vadd.f32 %v17385_v40, %v16519_v8 }
0x1e7c   : > { %v15659_v38 = vadd.f32 %v17423_v63, %v15420_v1 }
0x1e8a   : > { %v17494_v53 = vpop.f32.mrf.mxu1 }
0x1e8c   : > { %v17495_v18 = vpop.f32.mrf.mxu1 }
0x1e8d   : > { %v17496_v37 = vadd.f32 %v17495_v18, %v17494_v53 }
0x1e8f   : > { %v17497_v19 = vpop.f32.mrf.mxu1 }
0x1e91   : > { %v17498_v48 = vpop.f32.mrf.mxu1 }
0x1e92   : > { %v17499_v30 = vadd.f32 %v17498_v48, %v17497_v19 }
0x1e93   : > { %v17456_v46 = vpop.f32.mrf.mxu0 }
0x1e95   : > { %v17457_v9 = vpop.f32.mrf.mxu0 }
0x1e96   : > { %v17458_v4 = vadd.f32 %v17457_v9, %v17456_v46 }
0x1e98   : > { %v17459_v61 = vpop.f32.mrf.mxu0  ;;  %v15797_v58 = vadd.f32 %v17458_v4, %v15652_v26 }
0x1e9a   : > { %v17460_v57 = vpop.f32.mrf.mxu0  ;;  %v15914_v15 = vadd.f32 %v17496_v37, %v15797_v58 }
0x1e9b   : > { %v17461_v54 = vadd.f32 %v17460_v57, %v17459_v61 }
0x1e9d   : > { %v15806_v20 = vadd.f32 %v17461_v54, %v15659_v38 }
0x1e9f   : > { %v15925_v24 = vadd.f32 %v17499_v30, %v15806_v20 }
0x1eae   : > { %v17570_v44 = vpop.f32.mrf.mxu1 }
0x1eb0   : > { %v17571_v7 = vpop.f32.mrf.mxu1 }
0x1eb1   : > { %v17572_v31 = vadd.f32 %v17571_v7, %v17570_v44 }
0x1eb2   : > { %v17573_v16 = vpop.f32.mrf.mxu1 }
0x1eb4   : > { %v17574_v62 = vpop.f32.mrf.mxu1 }
0x1eb5   : > { %v17532_v22 = vpop.f32.mrf.mxu0  ;;  %v17575_v59 = vadd.f32 %v17574_v62, %v17573_v16 }
0x1eb7   : > { %v17533_v11 = vpop.f32.mrf.mxu0 }
0x1eb8   : > { %v17534_v39 = vadd.f32 %v17533_v11, %v17532_v22 }
0x1eb9   : > { %v17535_v17 = vpop.f32.mrf.mxu0 }
0x1eba   : > { %v16093_v10 = vadd.f32 %v17534_v39, %v15914_v15 }
0x1ebb   : > { %v17536_v28 = vpop.f32.mrf.mxu0 }
0x1ebc   : > { %v17537_v56 = vadd.f32 %v17536_v28, %v17535_v17  ;;  %v16204_v35 = vadd.f32 %v17572_v31, %v16093_v10 }
0x1ebe   : > { %v16100_v32 = vadd.f32 %v17537_v56, %v15925_v24  ;;  %v16214_v25 = vadd.f32 %v16204_v35, %v25714_v41 }
0x1ec0   : > { %16218 = vadd.xlane.f32.xlu0 %v16214_v25  ;;  %v16211_v27 = vadd.f32 %v17575_v59, %v16100_v32 }
0x1ec2   : > { %v16215_v52 = vadd.f32 %v16211_v27, %v25715_v0 }
0x1ec4   : > { %16220 = vadd.xlane.f32.xlu1 %v16215_v52 }
0x1f49   : > { %v16219_v14 = vpop.xlane.xlu0 %16218 }
0x1f4a   : > { %v16222_v5 = vmul.f32 0.0078125, %v16219_v14 }
0x1f4c   : > { %v16224_v42 = vsub.f32 %v16214_v25, %v16222_v5 }
0x1f4d   : > { %v16221_v13 = vpop.xlane.xlu1 %16220 }
0x1f4e   : > { %v16223_v6 = vmul.f32 0.0078125, %v16221_v13  ;;  %v16226_v2 = vmul.f32 %v16224_v42, %v16224_v42 }
0x1f50   : > { %v16225_v51 = vsub.f32 %v16215_v52, %v16223_v6  ;;  %16228 = vadd.xlane.f32.xlu0 %v16226_v2 }
0x1f52   : > { %v16227_v23 = vmul.f32 %v16225_v51, %v16225_v51 }
0x1f54   : > { %16230 = vadd.xlane.f32.xlu1 %v16227_v23 }
0x1fd9   : > { %v16229_v36 = vpop.xlane.xlu0 %16228 }
0x1fda   : > { %v16232_v33 = vmul.f32 0.0078125, %v16229_v36 }
0x1fdc   : > { %v16234_v43 = vadd.f32 1e-06, %v16232_v33 }
0x1fdd   : > { %v16231_v50 = vpop.xlane.xlu1 %16230 }
0x1fde   : > { %19304 = vrsqrt.f32 %v16234_v43  ;;  %v16233_v34 = vmul.f32 0.0078125, %v16231_v50 }
0x1fe0   : > { %v16235_v3 = vadd.f32 1e-06, %v16233_v34 }
0x1fe2   : > { %19306 = vrsqrt.f32 %v16235_v3 }
0x1feb   : > { %v19305_v55 = vpop.eup %19304 }
0x1fec   : > { %v16238_v21 = vmul.f32 %v19305_v55, %v16224_v42 }
0x1fee   : > { %v16246_v53 = vmul.f32 %v16520_v45, %v16238_v21 }
0x1fef   : > { %v19307_v29 = vpop.eup %19306 }
0x1ff0   : > { %v16254_v18 = vadd.f32 %v16521_v60, %v16246_v53  ;;  %v16239_v46 = vmul.f32 %v19307_v29, %v16225_v51 }
0x1ff2   : > { %v16247_v19 = vmul.f32 %v16520_v45, %v16239_v46  ;;  %16256 = vst [vmem:[%s973_s7] sm:$0xff] %v16254_v18 }
0x1ff4   : > { %v16255_v9 = vadd.f32 %v16521_v60, %v16247_v19 }
0x1ff6   : > { %16257 = vst [vmem:[%s973_s7 + $0x8] sm:$0xff] %v16255_v9 }
0x1ff7   : > { %19617 = shalt.err (!%p19614_p2)
}
0x1ff8   : > { %s19618_s0 = scalar_lea.hbm %s24750_s17, 256  ;;  %s19622_s2 = scalar_lea.hbm %s25719_s1, 512 }
0x1ff9   : > { %p19619_p8 = scmp.ne.s32.totalorder %s24750_s17, %s19618_s0  ;;  %p19623_p1 = scmp.lt.s32.totalorder %s24750_s17, %s25719_s1 }
0x1ffa   : > { %p19624_p3 = scmp.lt.s32.totalorder %s19622_s2, %s19618_s0 }
0x1ffb   : > { %p19620_p10 = pnand %p19619_p8, %p25720_p5 }
0x1ffc   : > { %p19625_p4 = por %p19624_p3, %p19623_p1 }
0x1ffd   : > { %p19621_p12 = pneg %p19620_p10 }
0x1fff   : > { %p19626_p6 = pnand %p19625_p4, %p19621_p12 }
0x2001   : > { %19629 = shalt.err (!%p19626_p6)
}
0x2002   : > { %s19716_s22 = smov 128   ;;  %s19717_s15 = smov 8  }
0x2003   : > { %19124 = dma.vmem_to_hbm [thread:$0]  (%p25720_p5), %s24752_s25, 256, %s24750_s17, %s16259_s16, %s19716_s22, %s19716_s22, %s19717_s15  }
0x2004 PF: > { %s25721_s7 = sld [smem:[#allocation29_spill]]  ;;  %p25724_p0 = scmp.ge.s32.totalorder %s19692_s28, 2 }
0x2005   : > { %s25722_s3 = sld [smem:[#allocation33_spill]] }
0x200a   : > { %s16287_s6 = sand.u32 1, %s25721_s7  }
0x200b   : > { %p25723_p7 = scmp.ne.s32.totalorder %s25722_s3, 0  ;;  %s16288_s24 = scalar_lea.sflag [#allocation4], %s16287_s6 }
0x200d   : > { %p19162_p11 = pnand %p25724_p0, %p25723_p7 }
0x200f   : > { %p19163_p13 = pneg %p19162_p11 }
0x2011   : > { %19675 = dma.done.wait (%p19163_p13), %s16288_s24, 256  }
0x2012   : > { %19677 = vsyncadd (%p19163_p13), %s16288_s24, 4294967040  ;;  %s25725_s28 = sld [smem:[#allocation30_spill]]  ;;  %s25727_s5 = smov %s19684_s26 }
0x2013   : > { %s25726_s29 = sld [smem:[#allocation31_spill]]  ;;  %s25728_s26 = smov %s19688_s27 }
0x2018   : > { %p46_p9 = scmp.ge.s32.totalorder %s25725_s28, 4  }
0x2019   : > { %s25729_s27 = smov %s25726_s29 }
0x201a   :  { %48 = sbr.rel (!%p46_p9) target bundleno = 33 (0x21), region = 226 }
0x201f   :  { %16293 = vsyncpa [#allocation3], 1 }
0x2020   :  { %16295 = vsyncpa [#allocation3 + $0x1], 1 }
0x2021   :  { %16296 = vsyncpa [#allocation6], 1 }
0x2022   :  { %16298 = vsyncpa [#allocation6 + $0x1], 1 }
0x2023   :  { %16299 = vsyncpa [#allocation9], 1 }
0x2024   :  { %16301 = vsyncpa [#allocation9 + $0x1], 1 }
0x2025   :  { %16302 = vsyncpa [#allocation12], 1 }
0x2026   :  { %16303 = vsyncpa [#allocation15], 1 }
0x2027   :  { %16304 = vsyncpa [#allocation18], 1 }
0x2028   :  { %16305 = vsyncpa [#allocation4], 1 }
0x2029   :  { %16307 = vsyncpa [#allocation4 + $0x1], 1 }

</bundles_post_ra>
